<compile_context>
chip_gen: v6e
topology: v6e:2x2x1
jax: 0.10.0
libtpu: 0.0.40
codegen_flags: <defaults>
</compile_context>

<pallas_src>
import functools

import jax
import jax.numpy as jnp
from jax.experimental import pallas as pl
from jax.experimental.pallas import tpu as pltpu

_VMEM_LIMIT = 32 * 1024 * 1024
_EPS = 1e-5


def _round_up(x, m):
    return -(-x // m) * m


# ----------------------------------------------------------------------------
# Kernel 1: tiled matmul (bf16 x bf16 -> f32 acc) + fused BN-stat accumulation
# ----------------------------------------------------------------------------
def _matmul_stats_kernel(a_ref, b_ref, o_ref, stats_ref, acc_ref):
    @pl.when(pl.program_id(2) == 0)
    def _():
        acc_ref[...] = jnp.zeros_like(acc_ref)

    acc_ref[...] += jnp.dot(a_ref[...], b_ref[...],
                            preferred_element_type=jnp.float32)

    @pl.when(pl.program_id(2) == pl.num_programs(2) - 1)
    def _():
        acc = acc_ref[...]
        o_ref[...] = acc.astype(o_ref.dtype)
        # Per-channel partial sums for training-mode BN.  Padded rows/columns of
        # the accumulator are exact zeros, so they do not pollute the stats.
        s = jnp.sum(acc, axis=0, keepdims=True)          # (1, tn)
        ss = jnp.sum(acc * acc, axis=0, keepdims=True)   # (1, tn)
        rows = jax.lax.broadcasted_iota(jnp.int32, stats_ref.shape[1:], 0)
        stats_ref[0] = jnp.where(rows == 0, s, jnp.where(rows == 1, ss, 0.0))


# ----------------------------------------------------------------------------
# Kernel 2: BN apply (scale/shift) + optional residual + optional ReLU
# ----------------------------------------------------------------------------
def _bn_apply_kernel(x_ref, scale_ref, shift_ref, o_ref, *, relu):
    y = x_ref[...].astype(jnp.float32) * scale_ref[...] + shift_ref[...]
    if relu:
        y = jnp.maximum(y, 0.0)
    o_ref[...] = y.astype(o_ref.dtype)


def _bn_apply_res_kernel(x_ref, scale_ref, shift_ref, res_ref, o_ref, *, relu):
    y = x_ref[...].astype(jnp.float32) * scale_ref[...] + shift_ref[...]
    y = y + res_ref[...].astype(jnp.float32)
    if relu:
        y = jnp.maximum(y, 0.0)
    o_ref[...] = y.astype(o_ref.dtype)


# ----------------------------------------------------------------------------
# Kernel 3: 3x3 / stride-2 / pad-1 max pool over a 2x2 phase decomposition
# ----------------------------------------------------------------------------
def _maxpool_kernel(ee_ref, eo_ref, oe_ref, oo_ref, ees_ref, oes_ref, o_ref):
    oh = o_ref.shape[1]
    ow = o_ref.shape[2]
    ee = ee_ref[0].astype(jnp.float32)    # (oh+1, ow+1, C)   even row, even col
    eo = eo_ref[0].astype(jnp.float32)    # (oh+1, ow+1, C)   even row, odd  col
    oe = oe_ref[0].astype(jnp.float32)    # (oh+1, ow+1, C)   odd  row, even col
    oo = oo_ref[0].astype(jnp.float32)    # (oh+1, ow+1, C)   odd  row, odd  col
    ees = ees_ref[0].astype(jnp.float32)  # (oh+1, ow,   C)   even row, even col shifted by +1 col
    oes = oes_ref[0].astype(jnp.float32)  # (oh+1, ow,   C)   odd  row, even col shifted by +1 col
    # 3x3 window at stride 2: rows {2oh, 2oh+1, 2oh+2}, cols {2ow, 2ow+1, 2ow+2}
    m = jnp.maximum(ee[:oh, :ow], eo[:oh, :ow])
    m = jnp.maximum(m, ees[:oh])
    m = jnp.maximum(m, oe[:oh, :ow])
    m = jnp.maximum(m, oo[:oh, :ow])
    m = jnp.maximum(m, oes[:oh])
    m = jnp.maximum(m, ee[1:, :ow])
    m = jnp.maximum(m, eo[1:, :ow])
    m = jnp.maximum(m, ees[1:])
    o_ref[0] = m.astype(o_ref.dtype)


# ----------------------------------------------------------------------------
# Conv (as matmul) + fused BatchNorm path
# ----------------------------------------------------------------------------
def _pick_tiles(M, K, C):
    """Fixed, VMEM-bounded tiles; padded dims are tile multiples."""
    if M <= 256:
        tm = max(16, _round_up(M, 16))        # bf16-friendly sublane multiple
        Mp = tm
    else:
        tm = 256
        Mp = _round_up(M, tm)
    Kp = _round_up(K, 128)
    tk = 128
    for cand in (512, 256):                   # largest K tile with no extra pad
        if Kp % cand == 0:
            tk = cand
            break
    Np = _round_up(C, 128)
    tn = Np                                   # Cout <= 512 -> single N block, A read once
    return tm, tk, tn, Mp, Kp, Np


def _conv_matmul_bn(patches, w_mat, gamma, beta, relu, residual, M, C):
    """patches: (M, K) bf16; w_mat: (K, C); residual: (M, C) bf16 or None."""
    K = patches.shape[1]
    tm, tk, tn, Mp, Kp, Np = _pick_tiles(M, K, C)
    n_m, n_n, n_k = Mp // tm, Np // tn, Kp // tk

    a_p = patches
    if (Mp, Kp) != (M, K):
        a_p = jnp.zeros((Mp, Kp), jnp.bfloat16).at[:M, :K].set(patches)
    w_bf = w_mat.astype(jnp.bfloat16)
    if (Kp, Np) != (K, C):
        b_p = jnp.zeros((Kp, Np), jnp.bfloat16).at[:K, :C].set(w_bf)
    else:
        b_p = w_bf

    y_pad, stats = pl.pallas_call(
        _matmul_stats_kernel,
        out_shape=(jax.ShapeDtypeStruct((Mp, Np), jnp.bfloat16),
                   jax.ShapeDtypeStruct((n_m, 8, Np), jnp.float32)),
        grid_spec=pltpu.PrefetchScalarGridSpec(
            num_scalar_prefetch=0,
            grid=(n_m, n_n, n_k),
            in_specs=[pl.BlockSpec((tm, tk), lambda i, j, k: (i, k)),
                      pl.BlockSpec((tk, tn), lambda i, j, k: (k, j))],
            out_specs=[pl.BlockSpec((tm, tn), lambda i, j, k: (i, j)),
                       pl.BlockSpec((1, 8, tn), lambda i, j, k: (i, 0, j))],
            scratch_shapes=[pltpu.VMEM((tm, tn), jnp.float32)],
        ),
        compiler_params=pltpu.CompilerParams(
            dimension_semantics=("parallel", "parallel", "arbitrary"),
            vmem_limit_bytes=_VMEM_LIMIT),
    )(a_p, b_p)

    # O(C) coefficient math (tiny) -> per-channel scale/shift for the apply pass.
    total = jnp.sum(stats[:, 0, :], axis=0)
    total_sq = jnp.sum(stats[:, 1, :], axis=0)
    mean = total / M
    var = jnp.maximum(total_sq / M - mean * mean, 0.0)     # biased variance
    gamma_p = jnp.zeros((Np,), jnp.float32).at[:C].set(gamma.astype(jnp.float32))
    beta_p = jnp.zeros((Np,), jnp.float32).at[:C].set(beta.astype(jnp.float32))
    scale_v = gamma_p * jax.lax.rsqrt(var + _EPS)
    shift_v = beta_p - mean * scale_v
    scale = scale_v.reshape(1, Np)
    shift = shift_v.reshape(1, Np)

    args = [y_pad, scale, shift]
    in_specs = [pl.BlockSpec((tm, Np), lambda i: (i, 0)),
                pl.BlockSpec((1, Np), lambda i: (0, 0)),
                pl.BlockSpec((1, Np), lambda i: (0, 0))]
    if residual is not None:
        r_p = residual
        if (Mp, Np) != (M, C):
            r_p = jnp.zeros((Mp, Np), jnp.bfloat16).at[:M, :C].set(residual)
        args.append(r_p)
        in_specs.append(pl.BlockSpec((tm, Np), lambda i: (i, 0)))
        kernel = functools.partial(_bn_apply_res_kernel, relu=relu)
    else:
        kernel = functools.partial(_bn_apply_kernel, relu=relu)

    out = pl.pallas_call(
        kernel,
        out_shape=jax.ShapeDtypeStruct((Mp, Np), jnp.bfloat16),
        grid_spec=pltpu.PrefetchScalarGridSpec(
            num_scalar_prefetch=0,
            grid=(n_m,),
            in_specs=in_specs,
            out_specs=pl.BlockSpec((tm, Np), lambda i: (i, 0)),
        ),
        compiler_params=pltpu.CompilerParams(
            dimension_semantics=("parallel",),
            vmem_limit_bytes=_VMEM_LIMIT),
    )(*args)

    if (Mp, Np) != (M, C):
        out = out[:M, :C]
    return out


def _im2col(x, kh, kw, stride, pad):
    # TODO(synk): the patch matrix is still materialised in HBM (kh*kw-fold
    # expansion); a K-loop over taps with shifted in-kernel DMA would remove it.
    # It is now at least built in bf16 (half the bytes of the previous version).
    N, H, W, C = x.shape
    xp = jnp.pad(x, ((0, 0), (pad, pad), (pad, pad), (0, 0)))
    OH = (H + 2 * pad - kh) // stride + 1
    OW = (W + 2 * pad - kw) // stride + 1
    slabs = []
    for i in range(kh):
        for j in range(kw):
            slabs.append(xp[:, i:i + stride * OH:stride,
                            j:j + stride * OW:stride, :])
    patches = jnp.stack(slabs, axis=3)                    # (N, OH, OW, kh*kw, C)
    return patches.reshape(N * OH * OW, kh * kw * C), (OH, OW)


def conv_bn(x, w, gamma, beta, stride, pad, relu=True, residual=None):
    """x: NHWC bf16; w: PyTorch layout (Cout, Cin, kh, kw). Returns NHWC bf16."""
    cout, cin, kh, kw = w.shape
    N = x.shape[0]
    if kh == 1 and kw == 1 and pad == 0:
        xs = x[:, ::stride, ::stride, :]                  # no patch expansion
        OH, OW = xs.shape[1], xs.shape[2]
        patches = xs.reshape(N * OH * OW, cin)
    else:
        patches, (OH, OW) = _im2col(x, kh, kw, stride, pad)
    M = N * OH * OW
    w_mat = jnp.transpose(w, (2, 3, 1, 0)).reshape(kh * kw * cin, cout)
    res = None
    if residual is not None:
        res = residual.reshape(M, cout).astype(jnp.bfloat16)
    y = _conv_matmul_bn(patches, w_mat, gamma, beta, relu, res, M, cout)
    return y.reshape(N, OH, OW, cout)


def maxpool(x):
    """3x3, stride 2, pad 1 max pool on NHWC (phase-split, no 9x expansion)."""
    N, H, W, C = x.shape
    OH = (H - 1) // 2 + 1
    OW = (W - 1) // 2 + 1
    Hp, Wp = 2 * OH + 2, 2 * OW + 2
    xp = jnp.full((N, Hp, Wp, C), -jnp.inf, x.dtype).at[
        :, 1:1 + H, 1:1 + W, :].set(x)
    ee = xp[:, 0::2, 0::2, :]                             # (N, OH+1, OW+1, C)
    eo = xp[:, 0::2, 1::2, :]
    oe = xp[:, 1::2, 0::2, :]
    oo = xp[:, 1::2, 1::2, :]
    ees = xp[:, 0::2, 2::2, :]                            # (N, OH+1, OW, C)
    oes = xp[:, 1::2, 2::2, :]
    full_spec = pl.BlockSpec((1, OH + 1, OW + 1, C), lambda n: (n, 0, 0, 0))
    shift_spec = pl.BlockSpec((1, OH + 1, OW, C), lambda n: (n, 0, 0, 0))
    return pl.pallas_call(
        _maxpool_kernel,
        out_shape=jax.ShapeDtypeStruct((N, OH, OW, C), x.dtype),
        grid_spec=pltpu.PrefetchScalarGridSpec(
            num_scalar_prefetch=0,
            grid=(N,),
            in_specs=[full_spec, full_spec, full_spec, full_spec,
                      shift_spec, shift_spec],
            out_specs=pl.BlockSpec((1, OH, OW, C), lambda n: (n, 0, 0, 0)),
        ),
        compiler_params=pltpu.CompilerParams(
            dimension_semantics=("parallel",),
            vmem_limit_bytes=_VMEM_LIMIT),
    )(ee, eo, oe, oo, ees, oes)


# ----------------------------------------------------------------------------
# BasicBlock / backbone
# ----------------------------------------------------------------------------
def basic_block(x, blk):
    stride = blk['stride']
    if 'dw' in blk:
        identity = conv_bn(x, blk['dw'], blk['dg'], blk['db'],
                           stride=stride, pad=0, relu=False)
    else:
        identity = x
    out = conv_bn(x, blk['w1'], blk['g1'], blk['b1'],
                  stride=stride, pad=1, relu=True)
    out = conv_bn(out, blk['w2'], blk['g2'], blk['b2'],
                  stride=1, pad=1, relu=True, residual=identity)
    return out


def init_params(key, in_channel=3, layers=(2, 2, 2, 2)):
    """Matches the module init: conv ~ N(0, 0.001), BN gamma=1, beta=0."""
    n_convs = 1 + sum(layers) * 2 + 3
    keys = iter(jax.random.split(key, n_convs))

    def conv_w(cout, cin, kh, kw):
        return 0.001 * jax.random.normal(next(keys), (cout, cin, kh, kw),
                                         dtype=jnp.float32)

    params = {
        'conv1': conv_w(64, in_channel, 7, 7),
        'bn1_g': jnp.ones((64,), jnp.float32),
        'bn1_b': jnp.zeros((64,), jnp.float32),
        'layers': [],
    }
    inplanes = 64
    for planes, nblocks, lstride in zip((64, 128, 256, 512), layers, (1, 2, 2, 2)):
        blocks = []
        for bi in range(nblocks):
            s = lstride if bi == 0 else 1
            blk = {
                'stride': s,
                'w1': conv_w(planes, inplanes, 3, 3),
                'g1': jnp.ones((planes,), jnp.float32),
                'b1': jnp.zeros((planes,), jnp.float32),
                'w2': conv_w(planes, planes, 3, 3),
                'g2': jnp.ones((planes,), jnp.float32),
                'b2': jnp.zeros((planes,), jnp.float32),
            }
            if bi == 0 and (s != 1 or inplanes != planes):
                blk['dw'] = conv_w(planes, inplanes, 1, 1)
                blk['dg'] = jnp.ones((planes,), jnp.float32)
                blk['db'] = jnp.zeros((planes,), jnp.float32)
            inplanes = planes
            blocks.append(blk)
        params['layers'].append(blocks)
    return params


def resnet_backbone_forward(x_nchw, params):
    """Equivalent of ResNetBackboneNet.forward (freeze=False path). NCHW in/out."""
    x = jnp.transpose(x_nchw, (0, 2, 3, 1)).astype(jnp.bfloat16)   # -> NHWC bf16
    x = conv_bn(x, params['conv1'], params['bn1_g'], params['bn1_b'],
                stride=2, pad=3, relu=True)
    x = maxpool(x)                                                 # x_low_feature
    for blocks in params['layers']:                                # layer1..layer4
        for blk in blocks:
            x = basic_block(x, blk)
    return jnp.transpose(x, (0, 3, 1, 2)).astype(jnp.float32)      # x_high_feature


# TODO(synk): the `freeze=True` branch only wraps forward in no_grad/detach —
# irrelevant for a pure inference kernel, so only the compute path is implemented.

if __name__ == "__main__":
    key = jax.random.PRNGKey(0)
    pkey, xkey = jax.random.split(key)

    in_channel = 3
    params = init_params(pkey, in_channel=in_channel, layers=(2, 2, 2, 2))

    x = jax.random.normal(xkey, (2, in_channel, 16, 16), dtype=jnp.float32)

    fwd = jax.jit(lambda inp: resnet_backbone_forward(inp, params))
    out = jax.block_until_ready(fwd(x))

    assert out.shape == (2, 512, 1, 1), out.shape
    assert jnp.all(jnp.isfinite(out))
    print("KERNEL_OK")
</pallas_src>

<mosaic_0001>
module attributes {stable_mosaic.version = 11 : i64} {
  func.func @_matmul_stats_kernel(%arg0: i32, %arg1: i32, %arg2: i32, %arg3: memref<128x256xbf16, #tpu.memory_space<vmem>>, %arg4: memref<256x128xbf16, #tpu.memory_space<vmem>>, %arg5: memref<128x128xbf16, #tpu.memory_space<vmem>>, %arg6: memref<1x8x128xf32, #tpu.memory_space<vmem>>, %arg7: memref<128x128xf32, #tpu.memory_space<vmem>>) attributes {dimension_semantics = [#tpu.dimension_semantics<parallel>, #tpu.dimension_semantics<parallel>, #tpu.dimension_semantics<arbitrary>], iteration_bounds = array<i64: 1, 1, 1>, scalar_prefetch = 0 : i64, scratch_operands = 1 : i64, tpu.core_type = #tpu.core_type<tc>, window_params = [{transform_indices = @transform_0, window_bounds = array<i64: 128, 256>}, {transform_indices = @transform_1, window_bounds = array<i64: 256, 128>}, {transform_indices = @transform_2, window_bounds = array<i64: 128, 128>}, {transform_indices = @transform_3, window_bounds = array<i64: 1, 8, 128>}]} {
    %c0_i32 = arith.constant 0 : i32
    %0 = arith.cmpi eq, %arg2, %c0_i32 : i32
    %1 = arith.extui %0 : i1 to i32
    %c0_i32_0 = arith.constant 0 : i32
    %2 = arith.cmpi ne, %1, %c0_i32_0 : i32
    scf.if %2 {
      %cst_10 = arith.constant 0.000000e+00 : f32
      %12 = vector.broadcast %cst_10 : f32 to vector<128x128xf32>
      %c0_11 = arith.constant 0 : index
      %c0_12 = arith.constant 0 : index
      %13 = vector.load %arg7[%c0_11, %c0_12] : memref<128x128xf32, #tpu.memory_space<vmem>>, vector<128x128xf32>
      tpu.vector_store %arg7[%c0_11, %c0_12], %12 {strides = array<i32>} : memref<128x128xf32, #tpu.memory_space<vmem>>, vector<128x128xf32>,
    } else {
    }
    %c0 = arith.constant 0 : index
    %c0_1 = arith.constant 0 : index
    %3 = vector.load %arg7[%c0, %c0_1] : memref<128x128xf32, #tpu.memory_space<vmem>>, vector<128x128xf32>
    %c0_2 = arith.constant 0 : index
    %c0_3 = arith.constant 0 : index
    %4 = vector.load %arg3[%c0_2, %c0_3] : memref<128x256xbf16, #tpu.memory_space<vmem>>, vector<128x256xbf16>
    %c0_4 = arith.constant 0 : index
    %c0_5 = arith.constant 0 : index
    %5 = vector.load %arg4[%c0_4, %c0_5] : memref<256x128xbf16, #tpu.memory_space<vmem>>, vector<256x128xbf16>
    %cst = arith.constant dense<0.000000e+00> : vector<128x128xf32>
    %6 = tpu.matmul %4, %5, %cst {dimension_numbers = #tpu.dot_dimension_numbers<[1], [0], [0], [1], [0, 0, 1, 1], [], []>} : vector<128x256xbf16>, vector<256x128xbf16>, vector<128x128xf32> -> vector<128x128xf32>
    %7 = arith.addf %3, %6 : vector<128x128xf32>
    %c0_6 = arith.constant 0 : index
    %c0_7 = arith.constant 0 : index
    %8 = vector.load %arg7[%c0_6, %c0_7] : memref<128x128xf32, #tpu.memory_space<vmem>>, vector<128x128xf32>
    tpu.vector_store %arg7[%c0_6, %c0_7], %7 {strides = array<i32>} : memref<128x128xf32, #tpu.memory_space<vmem>>, vector<128x128xf32>,
    %c0_i32_8 = arith.constant 0 : i32
    %9 = arith.cmpi eq, %arg2, %c0_i32_8 : i32
    %10 = arith.extui %9 : i1 to i32
    %c0_i32_9 = arith.constant 0 : i32
    %11 = arith.cmpi ne, %10, %c0_i32_9 : i32
    scf.if %11 {
      %c0_10 = arith.constant 0 : index
      %c0_11 = arith.constant 0 : index
      %12 = vector.load %arg7[%c0_10, %c0_11] : memref<128x128xf32, #tpu.memory_space<vmem>>, vector<128x128xf32>
      %13 = arith.truncf %12 : vector<128x128xf32> to vector<128x128xbf16>
      %c0_12 = arith.constant 0 : index
      %c0_13 = arith.constant 0 : index
      %14 = vector.load %arg5[%c0_12, %c0_13] : memref<128x128xbf16, #tpu.memory_space<vmem>>, vector<128x128xbf16>
      tpu.vector_store %arg5[%c0_12, %c0_13], %13 {strides = array<i32>} : memref<128x128xbf16, #tpu.memory_space<vmem>>, vector<128x128xbf16>,
      %cst_14 = arith.constant dense<0.000000e+00> : vector<128xf32>
      %15 = vector.multi_reduction <add>, %12, %cst_14 [0] : vector<128x128xf32> to vector<128xf32>
      %16 = vector.shape_cast %15 : vector<128xf32> to vector<1x128xf32>
      %17 = arith.mulf %12, %12 : vector<128x128xf32>
      %cst_15 = arith.constant dense<0.000000e+00> : vector<128xf32>
      %18 = vector.multi_reduction <add>, %17, %cst_15 [0] : vector<128x128xf32> to vector<128xf32>
      %19 = vector.shape_cast %18 : vector<128xf32> to vector<1x128xf32>
      %20 = tpu.iota {dimensions = array<i32: 0>} : vector<8x128xi32>
      %c0_i32_16 = arith.constant 0 : i32
      %21 = vector.broadcast %c0_i32_16 : i32 to vector<8x128xi32>
      %22 = arith.cmpi eq, %20, %21 : vector<8x128xi32>
      %c1_i32 = arith.constant 1 : i32
      %23 = vector.broadcast %c1_i32 : i32 to vector<8x128xi32>
      %24 = arith.cmpi eq, %20, %23 : vector<8x128xi32>
      %cst_17 = arith.constant 0.000000e+00 : f32
      %25 = vector.shape_cast %19 : vector<1x128xf32> to vector<1x128xf32>
      %26 = vector.broadcast %25 : vector<1x128xf32> to vector<8x128xf32>
      %27 = vector.broadcast %cst_17 : f32 to vector<8x128xf32>
      %28 = arith.select %24, %26, %27 : vector<8x128xi1>, vector<8x128xf32>
      %29 = vector.shape_cast %16 : vector<1x128xf32> to vector<1x128xf32>
      %30 = vector.broadcast %29 : vector<1x128xf32> to vector<8x128xf32>
      %31 = arith.select %22, %30, %28 : vector<8x128xi1>, vector<8x128xf32>
      %c0_18 = arith.constant 0 : index
      %c0_19 = arith.constant 0 : index
      %c0_20 = arith.constant 0 : index
      %32 = vector.load %arg6[%c0_18, %c0_19, %c0_20] : memref<1x8x128xf32, #tpu.memory_space<vmem>>, vector<1x8x128xf32>
      %33 = vector.shape_cast %32 : vector<1x8x128xf32> to vector<8x128xf32>
      %34 = vector.shape_cast %31 : vector<8x128xf32> to vector<1x8x128xf32>
      tpu.vector_store %arg6[%c0_18, %c0_19, %c0_20], %34 {strides = array<i32>} : memref<1x8x128xf32, #tpu.memory_space<vmem>>, vector<1x8x128xf32>,
    } else {
    }
    return
  }
  func.func @transform_0(%arg0: i32, %arg1: i32, %arg2: i32) -> (i32, i32) {
    %c0_i32 = arith.constant 0 : i32
    return %arg0, %arg2 : i32, i32
  }
  func.func @transform_1(%arg0: i32, %arg1: i32, %arg2: i32) -> (i32, i32) {
    %c0_i32 = arith.constant 0 : i32
    return %arg2, %arg1 : i32, i32
  }
  func.func @transform_2(%arg0: i32, %arg1: i32, %arg2: i32) -> (i32, i32) {
    %c0_i32 = arith.constant 0 : i32
    return %arg0, %arg1 : i32, i32
  }
  func.func @transform_3(%arg0: i32, %arg1: i32, %arg2: i32) -> (i32, i32, i32) {
    %c0_i32 = arith.constant 0 : i32
    %c0_i32_0 = arith.constant 0 : i32
    return %arg0, %c0_i32, %arg1 : i32, i32, i32
  }
}

module attributes {stable_mosaic.version = 11 : i64} {
  func.func @_bn_apply_kernel(%arg0: i32, %arg1: memref<128x128xbf16, #tpu.memory_space<vmem>>, %arg2: memref<1x128xf32, #tpu.memory_space<vmem>>, %arg3: memref<1x128xf32, #tpu.memory_space<vmem>>, %arg4: memref<128x128xbf16, #tpu.memory_space<vmem>>) attributes {dimension_semantics = [#tpu.dimension_semantics<parallel>], iteration_bounds = array<i64: 1>, scalar_prefetch = 0 : i64, scratch_operands = 0 : i64, tpu.core_type = #tpu.core_type<tc>, window_params = [{transform_indices = @transform_0, window_bounds = array<i64: 128, 128>}, {pipeline_mode = #tpu.pipeline_mode<synchronous>, transform_indices = @transform_1, window_bounds = array<i64: 1, 128>}, {pipeline_mode = #tpu.pipeline_mode<synchronous>, transform_indices = @transform_2, window_bounds = array<i64: 1, 128>}, {transform_indices = @transform_3, window_bounds = array<i64: 128, 128>}]} {
    %c0 = arith.constant 0 : index
    %c0_0 = arith.constant 0 : index
    %0 = vector.load %arg1[%c0, %c0_0] : memref<128x128xbf16, #tpu.memory_space<vmem>>, vector<128x128xbf16>
    %1 = arith.extf %0 : vector<128x128xbf16> to vector<128x128xf32>
    %c0_1 = arith.constant 0 : index
    %c0_2 = arith.constant 0 : index
    %2 = vector.load %arg2[%c0_1, %c0_2] : memref<1x128xf32, #tpu.memory_space<vmem>>, vector<1x128xf32>
    %3 = vector.broadcast %2 : vector<1x128xf32> to vector<128x128xf32>
    %4 = arith.mulf %1, %3 : vector<128x128xf32>
    %c0_3 = arith.constant 0 : index
    %c0_4 = arith.constant 0 : index
    %5 = vector.load %arg3[%c0_3, %c0_4] : memref<1x128xf32, #tpu.memory_space<vmem>>, vector<1x128xf32>
    %6 = vector.broadcast %5 : vector<1x128xf32> to vector<128x128xf32>
    %7 = arith.addf %4, %6 : vector<128x128xf32>
    %cst = arith.constant 0.000000e+00 : f32
    %8 = vector.broadcast %cst : f32 to vector<128x128xf32>
    %9 = arith.maximumf %7, %8 : vector<128x128xf32>
    %10 = arith.truncf %9 : vector<128x128xf32> to vector<128x128xbf16>
    %c0_5 = arith.constant 0 : index
    %c0_6 = arith.constant 0 : index
    %11 = vector.load %arg4[%c0_5, %c0_6] : memref<128x128xbf16, #tpu.memory_space<vmem>>, vector<128x128xbf16>
    tpu.vector_store %arg4[%c0_5, %c0_6], %10 {strides = array<i32>} : memref<128x128xbf16, #tpu.memory_space<vmem>>, vector<128x128xbf16>,
    return
  }
  func.func @transform_0(%arg0: i32) -> (i32, i32) {
    %c0_i32 = arith.constant 0 : i32
    %c0_i32_0 = arith.constant 0 : i32
    return %arg0, %c0_i32 : i32, i32
  }
  func.func @transform_1(%arg0: i32) -> (i32, i32) {
    %c0_i32 = arith.constant 0 : i32
    %c0_i32_0 = arith.constant 0 : i32
    %c0_i32_1 = arith.constant 0 : i32
    return %c0_i32, %c0_i32_0 : i32, i32
  }
  func.func @transform_2(%arg0: i32) -> (i32, i32) {
    %c0_i32 = arith.constant 0 : i32
    %c0_i32_0 = arith.constant 0 : i32
    %c0_i32_1 = arith.constant 0 : i32
    return %c0_i32, %c0_i32_0 : i32, i32
  }
  func.func @transform_3(%arg0: i32) -> (i32, i32) {
    %c0_i32 = arith.constant 0 : i32
    %c0_i32_0 = arith.constant 0 : i32
    return %arg0, %c0_i32 : i32, i32
  }
}

module attributes {stable_mosaic.version = 11 : i64} {
  func.func @_maxpool_kernel(%arg0: i32, %arg1: memref<1x5x5x64xbf16, #tpu.memory_space<vmem>>, %arg2: memref<1x5x5x64xbf16, #tpu.memory_space<vmem>>, %arg3: memref<1x5x5x64xbf16, #tpu.memory_space<vmem>>, %arg4: memref<1x5x5x64xbf16, #tpu.memory_space<vmem>>, %arg5: memref<1x5x4x64xbf16, #tpu.memory_space<vmem>>, %arg6: memref<1x5x4x64xbf16, #tpu.memory_space<vmem>>, %arg7: memref<1x4x4x64xbf16, #tpu.memory_space<vmem>>) attributes {dimension_semantics = [#tpu.dimension_semantics<parallel>], iteration_bounds = array<i64: 2>, scalar_prefetch = 0 : i64, scratch_operands = 0 : i64, tpu.core_type = #tpu.core_type<tc>, window_params = [{transform_indices = @transform_0, window_bounds = array<i64: 1, 5, 5, 64>}, {transform_indices = @transform_1, window_bounds = array<i64: 1, 5, 5, 64>}, {transform_indices = @transform_2, window_bounds = array<i64: 1, 5, 5, 64>}, {transform_indices = @transform_3, window_bounds = array<i64: 1, 5, 5, 64>}, {transform_indices = @transform_4, window_bounds = array<i64: 1, 5, 4, 64>}, {transform_indices = @transform_5, window_bounds = array<i64: 1, 5, 4, 64>}, {transform_indices = @transform_6, window_bounds = array<i64: 1, 4, 4, 64>}]} {
    %c0 = arith.constant 0 : index
    %c0_0 = arith.constant 0 : index
    %c0_1 = arith.constant 0 : index
    %c0_2 = arith.constant 0 : index
    %0 = vector.load %arg1[%c0, %c0_0, %c0_1, %c0_2] : memref<1x5x5x64xbf16, #tpu.memory_space<vmem>>, vector<1x5x5x64xbf16>
    %1 = vector.shape_cast %0 : vector<1x5x5x64xbf16> to vector<5x5x64xbf16>
    %2 = arith.extf %1 : vector<5x5x64xbf16> to vector<5x5x64xf32>
    %c0_3 = arith.constant 0 : index
    %c0_4 = arith.constant 0 : index
    %c0_5 = arith.constant 0 : index
    %c0_6 = arith.constant 0 : index
    %3 = vector.load %arg2[%c0_3, %c0_4, %c0_5, %c0_6] : memref<1x5x5x64xbf16, #tpu.memory_space<vmem>>, vector<1x5x5x64xbf16>
    %4 = vector.shape_cast %3 : vector<1x5x5x64xbf16> to vector<5x5x64xbf16>
    %5 = arith.extf %4 : vector<5x5x64xbf16> to vector<5x5x64xf32>
    %c0_7 = arith.constant 0 : index
    %c0_8 = arith.constant 0 : index
    %c0_9 = arith.constant 0 : index
    %c0_10 = arith.constant 0 : index
    %6 = vector.load %arg3[%c0_7, %c0_8, %c0_9, %c0_10] : memref<1x5x5x64xbf16, #tpu.memory_space<vmem>>, vector<1x5x5x64xbf16>
    %7 = vector.shape_cast %6 : vector<1x5x5x64xbf16> to vector<5x5x64xbf16>
    %8 = arith.extf %7 : vector<5x5x64xbf16> to vector<5x5x64xf32>
    %c0_11 = arith.constant 0 : index
    %c0_12 = arith.constant 0 : index
    %c0_13 = arith.constant 0 : index
    %c0_14 = arith.constant 0 : index
    %9 = vector.load %arg4[%c0_11, %c0_12, %c0_13, %c0_14] : memref<1x5x5x64xbf16, #tpu.memory_space<vmem>>, vector<1x5x5x64xbf16>
    %10 = vector.shape_cast %9 : vector<1x5x5x64xbf16> to vector<5x5x64xbf16>
    %11 = arith.extf %10 : vector<5x5x64xbf16> to vector<5x5x64xf32>
    %c0_15 = arith.constant 0 : index
    %c0_16 = arith.constant 0 : index
    %c0_17 = arith.constant 0 : index
    %c0_18 = arith.constant 0 : index
    %12 = vector.load %arg5[%c0_15, %c0_16, %c0_17, %c0_18] : memref<1x5x4x64xbf16, #tpu.memory_space<vmem>>, vector<1x5x4x64xbf16>
    %13 = vector.shape_cast %12 : vector<1x5x4x64xbf16> to vector<5x4x64xbf16>
    %14 = arith.extf %13 : vector<5x4x64xbf16> to vector<5x4x64xf32>
    %c0_19 = arith.constant 0 : index
    %c0_20 = arith.constant 0 : index
    %c0_21 = arith.constant 0 : index
    %c0_22 = arith.constant 0 : index
    %15 = vector.load %arg6[%c0_19, %c0_20, %c0_21, %c0_22] : memref<1x5x4x64xbf16, #tpu.memory_space<vmem>>, vector<1x5x4x64xbf16>
    %16 = vector.shape_cast %15 : vector<1x5x4x64xbf16> to vector<5x4x64xbf16>
    %17 = arith.extf %16 : vector<5x4x64xbf16> to vector<5x4x64xf32>
    %18 = vector.extract_strided_slice %2 {offsets = [0, 0, 0], sizes = [4, 4, 64], strides = [1, 1, 1]} : vector<5x5x64xf32> to vector<4x4x64xf32>
    %19 = vector.extract_strided_slice %5 {offsets = [0, 0, 0], sizes = [4, 4, 64], strides = [1, 1, 1]} : vector<5x5x64xf32> to vector<4x4x64xf32>
    %20 = arith.maximumf %18, %19 : vector<4x4x64xf32>
    %21 = vector.extract_strided_slice %14 {offsets = [0, 0, 0], sizes = [4, 4, 64], strides = [1, 1, 1]} : vector<5x4x64xf32> to vector<4x4x64xf32>
    %22 = arith.maximumf %20, %21 : vector<4x4x64xf32>
    %23 = vector.extract_strided_slice %8 {offsets = [0, 0, 0], sizes = [4, 4, 64], strides = [1, 1, 1]} : vector<5x5x64xf32> to vector<4x4x64xf32>
    %24 = arith.maximumf %22, %23 : vector<4x4x64xf32>
    %25 = vector.extract_strided_slice %11 {offsets = [0, 0, 0], sizes = [4, 4, 64], strides = [1, 1, 1]} : vector<5x5x64xf32> to vector<4x4x64xf32>
    %26 = arith.maximumf %24, %25 : vector<4x4x64xf32>
    %27 = vector.extract_strided_slice %17 {offsets = [0, 0, 0], sizes = [4, 4, 64], strides = [1, 1, 1]} : vector<5x4x64xf32> to vector<4x4x64xf32>
    %28 = arith.maximumf %26, %27 : vector<4x4x64xf32>
    %29 = vector.extract_strided_slice %2 {offsets = [1, 0, 0], sizes = [4, 4, 64], strides = [1, 1, 1]} : vector<5x5x64xf32> to vector<4x4x64xf32>
    %30 = arith.maximumf %28, %29 : vector<4x4x64xf32>
    %31 = vector.extract_strided_slice %5 {offsets = [1, 0, 0], sizes = [4, 4, 64], strides = [1, 1, 1]} : vector<5x5x64xf32> to vector<4x4x64xf32>
    %32 = arith.maximumf %30, %31 : vector<4x4x64xf32>
    %33 = vector.extract_strided_slice %14 {offsets = [1, 0, 0], sizes = [4, 4, 64], strides = [1, 1, 1]} : vector<5x4x64xf32> to vector<4x4x64xf32>
    %34 = arith.maximumf %32, %33 : vector<4x4x64xf32>
    %35 = arith.truncf %34 : vector<4x4x64xf32> to vector<4x4x64xbf16>
    %c0_23 = arith.constant 0 : index
    %c0_24 = arith.constant 0 : index
    %c0_25 = arith.constant 0 : index
    %c0_26 = arith.constant 0 : index
    %36 = vector.load %arg7[%c0_23, %c0_24, %c0_25, %c0_26] : memref<1x4x4x64xbf16, #tpu.memory_space<vmem>>, vector<1x4x4x64xbf16>
    %37 = vector.shape_cast %36 : vector<1x4x4x64xbf16> to vector<4x4x64xbf16>
    %38 = vector.shape_cast %35 : vector<4x4x64xbf16> to vector<1x4x4x64xbf16>
    tpu.vector_store %arg7[%c0_23, %c0_24, %c0_25, %c0_26], %38 {strides = array<i32>} : memref<1x4x4x64xbf16, #tpu.memory_space<vmem>>, vector<1x4x4x64xbf16>,
    return
  }
  func.func @transform_0(%arg0: i32) -> (i32, i32, i32, i32) {
    %c0_i32 = arith.constant 0 : i32
    %c0_i32_0 = arith.constant 0 : i32
    %c0_i32_1 = arith.constant 0 : i32
    %c0_i32_2 = arith.constant 0 : i32
    return %arg0, %c0_i32, %c0_i32_0, %c0_i32_1 : i32, i32, i32, i32
  }
  func.func @transform_1(%arg0: i32) -> (i32, i32, i32, i32) {
    %c0_i32 = arith.constant 0 : i32
    %c0_i32_0 = arith.constant 0 : i32
    %c0_i32_1 = arith.constant 0 : i32
    %c0_i32_2 = arith.constant 0 : i32
    return %arg0, %c0_i32, %c0_i32_0, %c0_i32_1 : i32, i32, i32, i32
  }
  func.func @transform_2(%arg0: i32) -> (i32, i32, i32, i32) {
    %c0_i32 = arith.constant 0 : i32
    %c0_i32_0 = arith.constant 0 : i32
    %c0_i32_1 = arith.constant 0 : i32
    %c0_i32_2 = arith.constant 0 : i32
    return %arg0, %c0_i32, %c0_i32_0, %c0_i32_1 : i32, i32, i32, i32
  }
  func.func @transform_3(%arg0: i32) -> (i32, i32, i32, i32) {
    %c0_i32 = arith.constant 0 : i32
    %c0_i32_0 = arith.constant 0 : i32
    %c0_i32_1 = arith.constant 0 : i32
    %c0_i32_2 = arith.constant 0 : i32
    return %arg0, %c0_i32, %c0_i32_0, %c0_i32_1 : i32, i32, i32, i32
  }
  func.func @transform_4(%arg0: i32) -> (i32, i32, i32, i32) {
    %c0_i32 = arith.constant 0 : i32
    %c0_i32_0 = arith.constant 0 : i32
    %c0_i32_1 = arith.constant 0 : i32
    %c0_i32_2 = arith.constant 0 : i32
    return %arg0, %c0_i32, %c0_i32_0, %c0_i32_1 : i32, i32, i32, i32
  }
  func.func @transform_5(%arg0: i32) -> (i32, i32, i32, i32) {
    %c0_i32 = arith.constant 0 : i32
    %c0_i32_0 = arith.constant 0 : i32
    %c0_i32_1 = arith.constant 0 : i32
    %c0_i32_2 = arith.constant 0 : i32
    return %arg0, %c0_i32, %c0_i32_0, %c0_i32_1 : i32, i32, i32, i32
  }
  func.func @transform_6(%arg0: i32) -> (i32, i32, i32, i32) {
    %c0_i32 = arith.constant 0 : i32
    %c0_i32_0 = arith.constant 0 : i32
    %c0_i32_1 = arith.constant 0 : i32
    %c0_i32_2 = arith.constant 0 : i32
    return %arg0, %c0_i32, %c0_i32_0, %c0_i32_1 : i32, i32, i32, i32
  }
}

module attributes {stable_mosaic.version = 11 : i64} {
  func.func @_matmul_stats_kernel(%arg0: i32, %arg1: i32, %arg2: i32, %arg3: memref<32x128xbf16, #tpu.memory_space<vmem>>, %arg4: memref<128x128xbf16, #tpu.memory_space<vmem>>, %arg5: memref<32x128xbf16, #tpu.memory_space<vmem>>, %arg6: memref<1x8x128xf32, #tpu.memory_space<vmem>>, %arg7: memref<32x128xf32, #tpu.memory_space<vmem>>) attributes {dimension_semantics = [#tpu.dimension_semantics<parallel>, #tpu.dimension_semantics<parallel>, #tpu.dimension_semantics<arbitrary>], iteration_bounds = array<i64: 1, 1, 5>, scalar_prefetch = 0 : i64, scratch_operands = 1 : i64, tpu.core_type = #tpu.core_type<tc>, window_params = [{transform_indices = @transform_0, window_bounds = array<i64: 32, 128>}, {transform_indices = @transform_1, window_bounds = array<i64: 128, 128>}, {transform_indices = @transform_2, window_bounds = array<i64: 32, 128>}, {transform_indices = @transform_3, window_bounds = array<i64: 1, 8, 128>}]} {
    %c0_i32 = arith.constant 0 : i32
    %0 = arith.cmpi eq, %arg2, %c0_i32 : i32
    %1 = arith.extui %0 : i1 to i32
    %c0_i32_0 = arith.constant 0 : i32
    %2 = arith.cmpi ne, %1, %c0_i32_0 : i32
    scf.if %2 {
      %cst_9 = arith.constant 0.000000e+00 : f32
      %12 = vector.broadcast %cst_9 : f32 to vector<32x128xf32>
      %c0_10 = arith.constant 0 : index
      %c0_11 = arith.constant 0 : index
      %13 = vector.load %arg7[%c0_10, %c0_11] : memref<32x128xf32, #tpu.memory_space<vmem>>, vector<32x128xf32>
      tpu.vector_store %arg7[%c0_10, %c0_11], %12 {strides = array<i32>} : memref<32x128xf32, #tpu.memory_space<vmem>>, vector<32x128xf32>,
    } else {
    }
    %c0 = arith.constant 0 : index
    %c0_1 = arith.constant 0 : index
    %3 = vector.load %arg7[%c0, %c0_1] : memref<32x128xf32, #tpu.memory_space<vmem>>, vector<32x128xf32>
    %c0_2 = arith.constant 0 : index
    %c0_3 = arith.constant 0 : index
    %4 = vector.load %arg3[%c0_2, %c0_3] : memref<32x128xbf16, #tpu.memory_space<vmem>>, vector<32x128xbf16>
    %c0_4 = arith.constant 0 : index
    %c0_5 = arith.constant 0 : index
    %5 = vector.load %arg4[%c0_4, %c0_5] : memref<128x128xbf16, #tpu.memory_space<vmem>>, vector<128x128xbf16>
    %cst = arith.constant dense<0.000000e+00> : vector<32x128xf32>
    %6 = tpu.matmul %4, %5, %cst {dimension_numbers = #tpu.dot_dimension_numbers<[1], [0], [0], [1], [0, 0, 1, 1], [], []>} : vector<32x128xbf16>, vector<128x128xbf16>, vector<32x128xf32> -> vector<32x128xf32>
    %7 = arith.addf %3, %6 : vector<32x128xf32>
    %c0_6 = arith.constant 0 : index
    %c0_7 = arith.constant 0 : index
    %8 = vector.load %arg7[%c0_6, %c0_7] : memref<32x128xf32, #tpu.memory_space<vmem>>, vector<32x128xf32>
    tpu.vector_store %arg7[%c0_6, %c0_7], %7 {strides = array<i32>} : memref<32x128xf32, #tpu.memory_space<vmem>>, vector<32x128xf32>,
    %c4_i32 = arith.constant 4 : i32
    %9 = arith.cmpi eq, %arg2, %c4_i32 : i32
    %10 = arith.extui %9 : i1 to i32
    %c0_i32_8 = arith.constant 0 : i32
    %11 = arith.cmpi ne, %10, %c0_i32_8 : i32
    scf.if %11 {
      %c0_9 = arith.constant 0 : index
      %c0_10 = arith.constant 0 : index
      %12 = vector.load %arg7[%c0_9, %c0_10] : memref<32x128xf32, #tpu.memory_space<vmem>>, vector<32x128xf32>
      %13 = arith.truncf %12 : vector<32x128xf32> to vector<32x128xbf16>
      %c0_11 = arith.constant 0 : index
      %c0_12 = arith.constant 0 : index
      %14 = vector.load %arg5[%c0_11, %c0_12] : memref<32x128xbf16, #tpu.memory_space<vmem>>, vector<32x128xbf16>
      tpu.vector_store %arg5[%c0_11, %c0_12], %13 {strides = array<i32>} : memref<32x128xbf16, #tpu.memory_space<vmem>>, vector<32x128xbf16>,
      %cst_13 = arith.constant dense<0.000000e+00> : vector<128xf32>
      %15 = vector.multi_reduction <add>, %12, %cst_13 [0] : vector<32x128xf32> to vector<128xf32>
      %16 = vector.shape_cast %15 : vector<128xf32> to vector<1x128xf32>
      %17 = arith.mulf %12, %12 : vector<32x128xf32>
      %cst_14 = arith.constant dense<0.000000e+00> : vector<128xf32>
      %18 = vector.multi_reduction <add>, %17, %cst_14 [0] : vector<32x128xf32> to vector<128xf32>
      %19 = vector.shape_cast %18 : vector<128xf32> to vector<1x128xf32>
      %20 = tpu.iota {dimensions = array<i32: 0>} : vector<8x128xi32>
      %c0_i32_15 = arith.constant 0 : i32
      %21 = vector.broadcast %c0_i32_15 : i32 to vector<8x128xi32>
      %22 = arith.cmpi eq, %20, %21 : vector<8x128xi32>
      %c1_i32 = arith.constant 1 : i32
      %23 = vector.broadcast %c1_i32 : i32 to vector<8x128xi32>
      %24 = arith.cmpi eq, %20, %23 : vector<8x128xi32>
      %cst_16 = arith.constant 0.000000e+00 : f32
      %25 = vector.shape_cast %19 : vector<1x128xf32> to vector<1x128xf32>
      %26 = vector.broadcast %25 : vector<1x128xf32> to vector<8x128xf32>
      %27 = vector.broadcast %cst_16 : f32 to vector<8x128xf32>
      %28 = arith.select %24, %26, %27 : vector<8x128xi1>, vector<8x128xf32>
      %29 = vector.shape_cast %16 : vector<1x128xf32> to vector<1x128xf32>
      %30 = vector.broadcast %29 : vector<1x128xf32> to vector<8x128xf32>
      %31 = arith.select %22, %30, %28 : vector<8x128xi1>, vector<8x128xf32>
      %c0_17 = arith.constant 0 : index
      %c0_18 = arith.constant 0 : index
      %c0_19 = arith.constant 0 : index
      %32 = vector.load %arg6[%c0_17, %c0_18, %c0_19] : memref<1x8x128xf32, #tpu.memory_space<vmem>>, vector<1x8x128xf32>
      %33 = vector.shape_cast %32 : vector<1x8x128xf32> to vector<8x128xf32>
      %34 = vector.shape_cast %31 : vector<8x128xf32> to vector<1x8x128xf32>
      tpu.vector_store %arg6[%c0_17, %c0_18, %c0_19], %34 {strides = array<i32>} : memref<1x8x128xf32, #tpu.memory_space<vmem>>, vector<1x8x128xf32>,
    } else {
    }
    return
  }
  func.func @transform_0(%arg0: i32, %arg1: i32, %arg2: i32) -> (i32, i32) {
    %c0_i32 = arith.constant 0 : i32
    return %arg0, %arg2 : i32, i32
  }
  func.func @transform_1(%arg0: i32, %arg1: i32, %arg2: i32) -> (i32, i32) {
    %c0_i32 = arith.constant 0 : i32
    return %arg2, %arg1 : i32, i32
  }
  func.func @transform_2(%arg0: i32, %arg1: i32, %arg2: i32) -> (i32, i32) {
    %c0_i32 = arith.constant 0 : i32
    return %arg0, %arg1 : i32, i32
  }
  func.func @transform_3(%arg0: i32, %arg1: i32, %arg2: i32) -> (i32, i32, i32) {
    %c0_i32 = arith.constant 0 : i32
    %c0_i32_0 = arith.constant 0 : i32
    return %arg0, %c0_i32, %arg1 : i32, i32, i32
  }
}

module attributes {stable_mosaic.version = 11 : i64} {
  func.func @_bn_apply_kernel(%arg0: i32, %arg1: memref<32x128xbf16, #tpu.memory_space<vmem>>, %arg2: memref<1x128xf32, #tpu.memory_space<vmem>>, %arg3: memref<1x128xf32, #tpu.memory_space<vmem>>, %arg4: memref<32x128xbf16, #tpu.memory_space<vmem>>) attributes {dimension_semantics = [#tpu.dimension_semantics<parallel>], iteration_bounds = array<i64: 1>, scalar_prefetch = 0 : i64, scratch_operands = 0 : i64, tpu.core_type = #tpu.core_type<tc>, window_params = [{transform_indices = @transform_0, window_bounds = array<i64: 32, 128>}, {pipeline_mode = #tpu.pipeline_mode<synchronous>, transform_indices = @transform_1, window_bounds = array<i64: 1, 128>}, {pipeline_mode = #tpu.pipeline_mode<synchronous>, transform_indices = @transform_2, window_bounds = array<i64: 1, 128>}, {transform_indices = @transform_3, window_bounds = array<i64: 32, 128>}]} {
    %c0 = arith.constant 0 : index
    %c0_0 = arith.constant 0 : index
    %0 = vector.load %arg1[%c0, %c0_0] : memref<32x128xbf16, #tpu.memory_space<vmem>>, vector<32x128xbf16>
    %1 = arith.extf %0 : vector<32x128xbf16> to vector<32x128xf32>
    %c0_1 = arith.constant 0 : index
    %c0_2 = arith.constant 0 : index
    %2 = vector.load %arg2[%c0_1, %c0_2] : memref<1x128xf32, #tpu.memory_space<vmem>>, vector<1x128xf32>
    %3 = vector.broadcast %2 : vector<1x128xf32> to vector<32x128xf32>
    %4 = arith.mulf %1, %3 : vector<32x128xf32>
    %c0_3 = arith.constant 0 : index
    %c0_4 = arith.constant 0 : index
    %5 = vector.load %arg3[%c0_3, %c0_4] : memref<1x128xf32, #tpu.memory_space<vmem>>, vector<1x128xf32>
    %6 = vector.broadcast %5 : vector<1x128xf32> to vector<32x128xf32>
    %7 = arith.addf %4, %6 : vector<32x128xf32>
    %cst = arith.constant 0.000000e+00 : f32
    %8 = vector.broadcast %cst : f32 to vector<32x128xf32>
    %9 = arith.maximumf %7, %8 : vector<32x128xf32>
    %10 = arith.truncf %9 : vector<32x128xf32> to vector<32x128xbf16>
    %c0_5 = arith.constant 0 : index
    %c0_6 = arith.constant 0 : index
    %11 = vector.load %arg4[%c0_5, %c0_6] : memref<32x128xbf16, #tpu.memory_space<vmem>>, vector<32x128xbf16>
    tpu.vector_store %arg4[%c0_5, %c0_6], %10 {strides = array<i32>} : memref<32x128xbf16, #tpu.memory_space<vmem>>, vector<32x128xbf16>,
    return
  }
  func.func @transform_0(%arg0: i32) -> (i32, i32) {
    %c0_i32 = arith.constant 0 : i32
    %c0_i32_0 = arith.constant 0 : i32
    return %arg0, %c0_i32 : i32, i32
  }
  func.func @transform_1(%arg0: i32) -> (i32, i32) {
    %c0_i32 = arith.constant 0 : i32
    %c0_i32_0 = arith.constant 0 : i32
    %c0_i32_1 = arith.constant 0 : i32
    return %c0_i32, %c0_i32_0 : i32, i32
  }
  func.func @transform_2(%arg0: i32) -> (i32, i32) {
    %c0_i32 = arith.constant 0 : i32
    %c0_i32_0 = arith.constant 0 : i32
    %c0_i32_1 = arith.constant 0 : i32
    return %c0_i32, %c0_i32_0 : i32, i32
  }
  func.func @transform_3(%arg0: i32) -> (i32, i32) {
    %c0_i32 = arith.constant 0 : i32
    %c0_i32_0 = arith.constant 0 : i32
    return %arg0, %c0_i32 : i32, i32
  }
}

module attributes {stable_mosaic.version = 11 : i64} {
  func.func @_bn_apply_res_kernel(%arg0: i32, %arg1: memref<32x128xbf16, #tpu.memory_space<vmem>>, %arg2: memref<1x128xf32, #tpu.memory_space<vmem>>, %arg3: memref<1x128xf32, #tpu.memory_space<vmem>>, %arg4: memref<32x128xbf16, #tpu.memory_space<vmem>>, %arg5: memref<32x128xbf16, #tpu.memory_space<vmem>>) attributes {dimension_semantics = [#tpu.dimension_semantics<parallel>], iteration_bounds = array<i64: 1>, scalar_prefetch = 0 : i64, scratch_operands = 0 : i64, tpu.core_type = #tpu.core_type<tc>, window_params = [{transform_indices = @transform_0, window_bounds = array<i64: 32, 128>}, {pipeline_mode = #tpu.pipeline_mode<synchronous>, transform_indices = @transform_1, window_bounds = array<i64: 1, 128>}, {pipeline_mode = #tpu.pipeline_mode<synchronous>, transform_indices = @transform_2, window_bounds = array<i64: 1, 128>}, {transform_indices = @transform_3, window_bounds = array<i64: 32, 128>}, {transform_indices = @transform_4, window_bounds = array<i64: 32, 128>}]} {
    %c0 = arith.constant 0 : index
    %c0_0 = arith.constant 0 : index
    %0 = vector.load %arg1[%c0, %c0_0] : memref<32x128xbf16, #tpu.memory_space<vmem>>, vector<32x128xbf16>
    %1 = arith.extf %0 : vector<32x128xbf16> to vector<32x128xf32>
    %c0_1 = arith.constant 0 : index
    %c0_2 = arith.constant 0 : index
    %2 = vector.load %arg2[%c0_1, %c0_2] : memref<1x128xf32, #tpu.memory_space<vmem>>, vector<1x128xf32>
    %3 = vector.broadcast %2 : vector<1x128xf32> to vector<32x128xf32>
    %4 = arith.mulf %1, %3 : vector<32x128xf32>
    %c0_3 = arith.constant 0 : index
    %c0_4 = arith.constant 0 : index
    %5 = vector.load %arg3[%c0_3, %c0_4] : memref<1x128xf32, #tpu.memory_space<vmem>>, vector<1x128xf32>
    %6 = vector.broadcast %5 : vector<1x128xf32> to vector<32x128xf32>
    %7 = arith.addf %4, %6 : vector<32x128xf32>
    %c0_5 = arith.constant 0 : index
    %c0_6 = arith.constant 0 : index
    %8 = vector.load %arg4[%c0_5, %c0_6] : memref<32x128xbf16, #tpu.memory_space<vmem>>, vector<32x128xbf16>
    %9 = arith.extf %8 : vector<32x128xbf16> to vector<32x128xf32>
    %10 = arith.addf %7, %9 : vector<32x128xf32>
    %cst = arith.constant 0.000000e+00 : f32
    %11 = vector.broadcast %cst : f32 to vector<32x128xf32>
    %12 = arith.maximumf %10, %11 : vector<32x128xf32>
    %13 = arith.truncf %12 : vector<32x128xf32> to vector<32x128xbf16>
    %c0_7 = arith.constant 0 : index
    %c0_8 = arith.constant 0 : index
    %14 = vector.load %arg5[%c0_7, %c0_8] : memref<32x128xbf16, #tpu.memory_space<vmem>>, vector<32x128xbf16>
    tpu.vector_store %arg5[%c0_7, %c0_8], %13 {strides = array<i32>} : memref<32x128xbf16, #tpu.memory_space<vmem>>, vector<32x128xbf16>,
    return
  }
  func.func @transform_0(%arg0: i32) -> (i32, i32) {
    %c0_i32 = arith.constant 0 : i32
    %c0_i32_0 = arith.constant 0 : i32
    return %arg0, %c0_i32 : i32, i32
  }
  func.func @transform_1(%arg0: i32) -> (i32, i32) {
    %c0_i32 = arith.constant 0 : i32
    %c0_i32_0 = arith.constant 0 : i32
    %c0_i32_1 = arith.constant 0 : i32
    return %c0_i32, %c0_i32_0 : i32, i32
  }
  func.func @transform_2(%arg0: i32) -> (i32, i32) {
    %c0_i32 = arith.constant 0 : i32
    %c0_i32_0 = arith.constant 0 : i32
    %c0_i32_1 = arith.constant 0 : i32
    return %c0_i32, %c0_i32_0 : i32, i32
  }
  func.func @transform_3(%arg0: i32) -> (i32, i32) {
    %c0_i32 = arith.constant 0 : i32
    %c0_i32_0 = arith.constant 0 : i32
    return %arg0, %c0_i32 : i32, i32
  }
  func.func @transform_4(%arg0: i32) -> (i32, i32) {
    %c0_i32 = arith.constant 0 : i32
    %c0_i32_0 = arith.constant 0 : i32
    return %arg0, %c0_i32 : i32, i32
  }
}

module attributes {stable_mosaic.version = 11 : i64} {
  func.func @_matmul_stats_kernel(%arg0: i32, %arg1: i32, %arg2: i32, %arg3: memref<16x128xbf16, #tpu.memory_space<vmem>>, %arg4: memref<128x128xbf16, #tpu.memory_space<vmem>>, %arg5: memref<16x128xbf16, #tpu.memory_space<vmem>>, %arg6: memref<1x8x128xf32, #tpu.memory_space<vmem>>, %arg7: memref<16x128xf32, #tpu.memory_space<vmem>>) attributes {dimension_semantics = [#tpu.dimension_semantics<parallel>, #tpu.dimension_semantics<parallel>, #tpu.dimension_semantics<arbitrary>], iteration_bounds = array<i64: 1, 1, 1>, scalar_prefetch = 0 : i64, scratch_operands = 1 : i64, tpu.core_type = #tpu.core_type<tc>, window_params = [{transform_indices = @transform_0, window_bounds = array<i64: 16, 128>}, {transform_indices = @transform_1, window_bounds = array<i64: 128, 128>}, {transform_indices = @transform_2, window_bounds = array<i64: 16, 128>}, {transform_indices = @transform_3, window_bounds = array<i64: 1, 8, 128>}]} {
    %c0_i32 = arith.constant 0 : i32
    %0 = arith.cmpi eq, %arg2, %c0_i32 : i32
    %1 = arith.extui %0 : i1 to i32
    %c0_i32_0 = arith.constant 0 : i32
    %2 = arith.cmpi ne, %1, %c0_i32_0 : i32
    scf.if %2 {
      %cst_10 = arith.constant 0.000000e+00 : f32
      %12 = vector.broadcast %cst_10 : f32 to vector<16x128xf32>
      %c0_11 = arith.constant 0 : index
      %c0_12 = arith.constant 0 : index
      %13 = vector.load %arg7[%c0_11, %c0_12] : memref<16x128xf32, #tpu.memory_space<vmem>>, vector<16x128xf32>
      tpu.vector_store %arg7[%c0_11, %c0_12], %12 {strides = array<i32>} : memref<16x128xf32, #tpu.memory_space<vmem>>, vector<16x128xf32>,
    } else {
    }
    %c0 = arith.constant 0 : index
    %c0_1 = arith.constant 0 : index
    %3 = vector.load %arg7[%c0, %c0_1] : memref<16x128xf32, #tpu.memory_space<vmem>>, vector<16x128xf32>
    %c0_2 = arith.constant 0 : index
    %c0_3 = arith.constant 0 : index
    %4 = vector.load %arg3[%c0_2, %c0_3] : memref<16x128xbf16, #tpu.memory_space<vmem>>, vector<16x128xbf16>
    %c0_4 = arith.constant 0 : index
    %c0_5 = arith.constant 0 : index
    %5 = vector.load %arg4[%c0_4, %c0_5] : memref<128x128xbf16, #tpu.memory_space<vmem>>, vector<128x128xbf16>
    %cst = arith.constant dense<0.000000e+00> : vector<16x128xf32>
    %6 = tpu.matmul %4, %5, %cst {dimension_numbers = #tpu.dot_dimension_numbers<[1], [0], [0], [1], [0, 0, 1, 1], [], []>} : vector<16x128xbf16>, vector<128x128xbf16>, vector<16x128xf32> -> vector<16x128xf32>
    %7 = arith.addf %3, %6 : vector<16x128xf32>
    %c0_6 = arith.constant 0 : index
    %c0_7 = arith.constant 0 : index
    %8 = vector.load %arg7[%c0_6, %c0_7] : memref<16x128xf32, #tpu.memory_space<vmem>>, vector<16x128xf32>
    tpu.vector_store %arg7[%c0_6, %c0_7], %7 {strides = array<i32>} : memref<16x128xf32, #tpu.memory_space<vmem>>, vector<16x128xf32>,
    %c0_i32_8 = arith.constant 0 : i32
    %9 = arith.cmpi eq, %arg2, %c0_i32_8 : i32
    %10 = arith.extui %9 : i1 to i32
    %c0_i32_9 = arith.constant 0 : i32
    %11 = arith.cmpi ne, %10, %c0_i32_9 : i32
    scf.if %11 {
      %c0_10 = arith.constant 0 : index
      %c0_11 = arith.constant 0 : index
      %12 = vector.load %arg7[%c0_10, %c0_11] : memref<16x128xf32, #tpu.memory_space<vmem>>, vector<16x128xf32>
      %13 = arith.truncf %12 : vector<16x128xf32> to vector<16x128xbf16>
      %c0_12 = arith.constant 0 : index
      %c0_13 = arith.constant 0 : index
      %14 = vector.load %arg5[%c0_12, %c0_13] : memref<16x128xbf16, #tpu.memory_space<vmem>>, vector<16x128xbf16>
      tpu.vector_store %arg5[%c0_12, %c0_13], %13 {strides = array<i32>} : memref<16x128xbf16, #tpu.memory_space<vmem>>, vector<16x128xbf16>,
      %cst_14 = arith.constant dense<0.000000e+00> : vector<128xf32>
      %15 = vector.multi_reduction <add>, %12, %cst_14 [0] : vector<16x128xf32> to vector<128xf32>
      %16 = vector.shape_cast %15 : vector<128xf32> to vector<1x128xf32>
      %17 = arith.mulf %12, %12 : vector<16x128xf32>
      %cst_15 = arith.constant dense<0.000000e+00> : vector<128xf32>
      %18 = vector.multi_reduction <add>, %17, %cst_15 [0] : vector<16x128xf32> to vector<128xf32>
      %19 = vector.shape_cast %18 : vector<128xf32> to vector<1x128xf32>
      %20 = tpu.iota {dimensions = array<i32: 0>} : vector<8x128xi32>
      %c0_i32_16 = arith.constant 0 : i32
      %21 = vector.broadcast %c0_i32_16 : i32 to vector<8x128xi32>
      %22 = arith.cmpi eq, %20, %21 : vector<8x128xi32>
      %c1_i32 = arith.constant 1 : i32
      %23 = vector.broadcast %c1_i32 : i32 to vector<8x128xi32>
      %24 = arith.cmpi eq, %20, %23 : vector<8x128xi32>
      %cst_17 = arith.constant 0.000000e+00 : f32
      %25 = vector.shape_cast %19 : vector<1x128xf32> to vector<1x128xf32>
      %26 = vector.broadcast %25 : vector<1x128xf32> to vector<8x128xf32>
      %27 = vector.broadcast %cst_17 : f32 to vector<8x128xf32>
      %28 = arith.select %24, %26, %27 : vector<8x128xi1>, vector<8x128xf32>
      %29 = vector.shape_cast %16 : vector<1x128xf32> to vector<1x128xf32>
      %30 = vector.broadcast %29 : vector<1x128xf32> to vector<8x128xf32>
      %31 = arith.select %22, %30, %28 : vector<8x128xi1>, vector<8x128xf32>
      %c0_18 = arith.constant 0 : index
      %c0_19 = arith.constant 0 : index
      %c0_20 = arith.constant 0 : index
      %32 = vector.load %arg6[%c0_18, %c0_19, %c0_20] : memref<1x8x128xf32, #tpu.memory_space<vmem>>, vector<1x8x128xf32>
      %33 = vector.shape_cast %32 : vector<1x8x128xf32> to vector<8x128xf32>
      %34 = vector.shape_cast %31 : vector<8x128xf32> to vector<1x8x128xf32>
      tpu.vector_store %arg6[%c0_18, %c0_19, %c0_20], %34 {strides = array<i32>} : memref<1x8x128xf32, #tpu.memory_space<vmem>>, vector<1x8x128xf32>,
    } else {
    }
    return
  }
  func.func @transform_0(%arg0: i32, %arg1: i32, %arg2: i32) -> (i32, i32) {
    %c0_i32 = arith.constant 0 : i32
    return %arg0, %arg2 : i32, i32
  }
  func.func @transform_1(%arg0: i32, %arg1: i32, %arg2: i32) -> (i32, i32) {
    %c0_i32 = arith.constant 0 : i32
    return %arg2, %arg1 : i32, i32
  }
  func.func @transform_2(%arg0: i32, %arg1: i32, %arg2: i32) -> (i32, i32) {
    %c0_i32 = arith.constant 0 : i32
    return %arg0, %arg1 : i32, i32
  }
  func.func @transform_3(%arg0: i32, %arg1: i32, %arg2: i32) -> (i32, i32, i32) {
    %c0_i32 = arith.constant 0 : i32
    %c0_i32_0 = arith.constant 0 : i32
    return %arg0, %c0_i32, %arg1 : i32, i32, i32
  }
}

module attributes {stable_mosaic.version = 11 : i64} {
  func.func @_bn_apply_kernel(%arg0: i32, %arg1: memref<16x128xbf16, #tpu.memory_space<vmem>>, %arg2: memref<1x128xf32, #tpu.memory_space<vmem>>, %arg3: memref<1x128xf32, #tpu.memory_space<vmem>>, %arg4: memref<16x128xbf16, #tpu.memory_space<vmem>>) attributes {dimension_semantics = [#tpu.dimension_semantics<parallel>], iteration_bounds = array<i64: 1>, scalar_prefetch = 0 : i64, scratch_operands = 0 : i64, tpu.core_type = #tpu.core_type<tc>, window_params = [{transform_indices = @transform_0, window_bounds = array<i64: 16, 128>}, {pipeline_mode = #tpu.pipeline_mode<synchronous>, transform_indices = @transform_1, window_bounds = array<i64: 1, 128>}, {pipeline_mode = #tpu.pipeline_mode<synchronous>, transform_indices = @transform_2, window_bounds = array<i64: 1, 128>}, {transform_indices = @transform_3, window_bounds = array<i64: 16, 128>}]} {
    %c0 = arith.constant 0 : index
    %c0_0 = arith.constant 0 : index
    %0 = vector.load %arg1[%c0, %c0_0] : memref<16x128xbf16, #tpu.memory_space<vmem>>, vector<16x128xbf16>
    %1 = arith.extf %0 : vector<16x128xbf16> to vector<16x128xf32>
    %c0_1 = arith.constant 0 : index
    %c0_2 = arith.constant 0 : index
    %2 = vector.load %arg2[%c0_1, %c0_2] : memref<1x128xf32, #tpu.memory_space<vmem>>, vector<1x128xf32>
    %3 = vector.broadcast %2 : vector<1x128xf32> to vector<16x128xf32>
    %4 = arith.mulf %1, %3 : vector<16x128xf32>
    %c0_3 = arith.constant 0 : index
    %c0_4 = arith.constant 0 : index
    %5 = vector.load %arg3[%c0_3, %c0_4] : memref<1x128xf32, #tpu.memory_space<vmem>>, vector<1x128xf32>
    %6 = vector.broadcast %5 : vector<1x128xf32> to vector<16x128xf32>
    %7 = arith.addf %4, %6 : vector<16x128xf32>
    %8 = arith.truncf %7 : vector<16x128xf32> to vector<16x128xbf16>
    %c0_5 = arith.constant 0 : index
    %c0_6 = arith.constant 0 : index
    %9 = vector.load %arg4[%c0_5, %c0_6] : memref<16x128xbf16, #tpu.memory_space<vmem>>, vector<16x128xbf16>
    tpu.vector_store %arg4[%c0_5, %c0_6], %8 {strides = array<i32>} : memref<16x128xbf16, #tpu.memory_space<vmem>>, vector<16x128xbf16>,
    return
  }
  func.func @transform_0(%arg0: i32) -> (i32, i32) {
    %c0_i32 = arith.constant 0 : i32
    %c0_i32_0 = arith.constant 0 : i32
    return %arg0, %c0_i32 : i32, i32
  }
  func.func @transform_1(%arg0: i32) -> (i32, i32) {
    %c0_i32 = arith.constant 0 : i32
    %c0_i32_0 = arith.constant 0 : i32
    %c0_i32_1 = arith.constant 0 : i32
    return %c0_i32, %c0_i32_0 : i32, i32
  }
  func.func @transform_2(%arg0: i32) -> (i32, i32) {
    %c0_i32 = arith.constant 0 : i32
    %c0_i32_0 = arith.constant 0 : i32
    %c0_i32_1 = arith.constant 0 : i32
    return %c0_i32, %c0_i32_0 : i32, i32
  }
  func.func @transform_3(%arg0: i32) -> (i32, i32) {
    %c0_i32 = arith.constant 0 : i32
    %c0_i32_0 = arith.constant 0 : i32
    return %arg0, %c0_i32 : i32, i32
  }
}

module attributes {stable_mosaic.version = 11 : i64} {
  func.func @_matmul_stats_kernel(%arg0: i32, %arg1: i32, %arg2: i32, %arg3: memref<16x128xbf16, #tpu.memory_space<vmem>>, %arg4: memref<128x128xbf16, #tpu.memory_space<vmem>>, %arg5: memref<16x128xbf16, #tpu.memory_space<vmem>>, %arg6: memref<1x8x128xf32, #tpu.memory_space<vmem>>, %arg7: memref<16x128xf32, #tpu.memory_space<vmem>>) attributes {dimension_semantics = [#tpu.dimension_semantics<parallel>, #tpu.dimension_semantics<parallel>, #tpu.dimension_semantics<arbitrary>], iteration_bounds = array<i64: 1, 1, 5>, scalar_prefetch = 0 : i64, scratch_operands = 1 : i64, tpu.core_type = #tpu.core_type<tc>, window_params = [{transform_indices = @transform_0, window_bounds = array<i64: 16, 128>}, {transform_indices = @transform_1, window_bounds = array<i64: 128, 128>}, {transform_indices = @transform_2, window_bounds = array<i64: 16, 128>}, {transform_indices = @transform_3, window_bounds = array<i64: 1, 8, 128>}]} {
    %c0_i32 = arith.constant 0 : i32
    %0 = arith.cmpi eq, %arg2, %c0_i32 : i32
    %1 = arith.extui %0 : i1 to i32
    %c0_i32_0 = arith.constant 0 : i32
    %2 = arith.cmpi ne, %1, %c0_i32_0 : i32
    scf.if %2 {
      %cst_9 = arith.constant 0.000000e+00 : f32
      %12 = vector.broadcast %cst_9 : f32 to vector<16x128xf32>
      %c0_10 = arith.constant 0 : index
      %c0_11 = arith.constant 0 : index
      %13 = vector.load %arg7[%c0_10, %c0_11] : memref<16x128xf32, #tpu.memory_space<vmem>>, vector<16x128xf32>
      tpu.vector_store %arg7[%c0_10, %c0_11], %12 {strides = array<i32>} : memref<16x128xf32, #tpu.memory_space<vmem>>, vector<16x128xf32>,
    } else {
    }
    %c0 = arith.constant 0 : index
    %c0_1 = arith.constant 0 : index
    %3 = vector.load %arg7[%c0, %c0_1] : memref<16x128xf32, #tpu.memory_space<vmem>>, vector<16x128xf32>
    %c0_2 = arith.constant 0 : index
    %c0_3 = arith.constant 0 : index
    %4 = vector.load %arg3[%c0_2, %c0_3] : memref<16x128xbf16, #tpu.memory_space<vmem>>, vector<16x128xbf16>
    %c0_4 = arith.constant 0 : index
    %c0_5 = arith.constant 0 : index
    %5 = vector.load %arg4[%c0_4, %c0_5] : memref<128x128xbf16, #tpu.memory_space<vmem>>, vector<128x128xbf16>
    %cst = arith.constant dense<0.000000e+00> : vector<16x128xf32>
    %6 = tpu.matmul %4, %5, %cst {dimension_numbers = #tpu.dot_dimension_numbers<[1], [0], [0], [1], [0, 0, 1, 1], [], []>} : vector<16x128xbf16>, vector<128x128xbf16>, vector<16x128xf32> -> vector<16x128xf32>
    %7 = arith.addf %3, %6 : vector<16x128xf32>
    %c0_6 = arith.constant 0 : index
    %c0_7 = arith.constant 0 : index
    %8 = vector.load %arg7[%c0_6, %c0_7] : memref<16x128xf32, #tpu.memory_space<vmem>>, vector<16x128xf32>
    tpu.vector_store %arg7[%c0_6, %c0_7], %7 {strides = array<i32>} : memref<16x128xf32, #tpu.memory_space<vmem>>, vector<16x128xf32>,
    %c4_i32 = arith.constant 4 : i32
    %9 = arith.cmpi eq, %arg2, %c4_i32 : i32
    %10 = arith.extui %9 : i1 to i32
    %c0_i32_8 = arith.constant 0 : i32
    %11 = arith.cmpi ne, %10, %c0_i32_8 : i32
    scf.if %11 {
      %c0_9 = arith.constant 0 : index
      %c0_10 = arith.constant 0 : index
      %12 = vector.load %arg7[%c0_9, %c0_10] : memref<16x128xf32, #tpu.memory_space<vmem>>, vector<16x128xf32>
      %13 = arith.truncf %12 : vector<16x128xf32> to vector<16x128xbf16>
      %c0_11 = arith.constant 0 : index
      %c0_12 = arith.constant 0 : index
      %14 = vector.load %arg5[%c0_11, %c0_12] : memref<16x128xbf16, #tpu.memory_space<vmem>>, vector<16x128xbf16>
      tpu.vector_store %arg5[%c0_11, %c0_12], %13 {strides = array<i32>} : memref<16x128xbf16, #tpu.memory_space<vmem>>, vector<16x128xbf16>,
      %cst_13 = arith.constant dense<0.000000e+00> : vector<128xf32>
      %15 = vector.multi_reduction <add>, %12, %cst_13 [0] : vector<16x128xf32> to vector<128xf32>
      %16 = vector.shape_cast %15 : vector<128xf32> to vector<1x128xf32>
      %17 = arith.mulf %12, %12 : vector<16x128xf32>
      %cst_14 = arith.constant dense<0.000000e+00> : vector<128xf32>
      %18 = vector.multi_reduction <add>, %17, %cst_14 [0] : vector<16x128xf32> to vector<128xf32>
      %19 = vector.shape_cast %18 : vector<128xf32> to vector<1x128xf32>
      %20 = tpu.iota {dimensions = array<i32: 0>} : vector<8x128xi32>
      %c0_i32_15 = arith.constant 0 : i32
      %21 = vector.broadcast %c0_i32_15 : i32 to vector<8x128xi32>
      %22 = arith.cmpi eq, %20, %21 : vector<8x128xi32>
      %c1_i32 = arith.constant 1 : i32
      %23 = vector.broadcast %c1_i32 : i32 to vector<8x128xi32>
      %24 = arith.cmpi eq, %20, %23 : vector<8x128xi32>
      %cst_16 = arith.constant 0.000000e+00 : f32
      %25 = vector.shape_cast %19 : vector<1x128xf32> to vector<1x128xf32>
      %26 = vector.broadcast %25 : vector<1x128xf32> to vector<8x128xf32>
      %27 = vector.broadcast %cst_16 : f32 to vector<8x128xf32>
      %28 = arith.select %24, %26, %27 : vector<8x128xi1>, vector<8x128xf32>
      %29 = vector.shape_cast %16 : vector<1x128xf32> to vector<1x128xf32>
      %30 = vector.broadcast %29 : vector<1x128xf32> to vector<8x128xf32>
      %31 = arith.select %22, %30, %28 : vector<8x128xi1>, vector<8x128xf32>
      %c0_17 = arith.constant 0 : index
      %c0_18 = arith.constant 0 : index
      %c0_19 = arith.constant 0 : index
      %32 = vector.load %arg6[%c0_17, %c0_18, %c0_19] : memref<1x8x128xf32, #tpu.memory_space<vmem>>, vector<1x8x128xf32>
      %33 = vector.shape_cast %32 : vector<1x8x128xf32> to vector<8x128xf32>
      %34 = vector.shape_cast %31 : vector<8x128xf32> to vector<1x8x128xf32>
      tpu.vector_store %arg6[%c0_17, %c0_18, %c0_19], %34 {strides = array<i32>} : memref<1x8x128xf32, #tpu.memory_space<vmem>>, vector<1x8x128xf32>,
    } else {
    }
    return
  }
  func.func @transform_0(%arg0: i32, %arg1: i32, %arg2: i32) -> (i32, i32) {
    %c0_i32 = arith.constant 0 : i32
    return %arg0, %arg2 : i32, i32
  }
  func.func @transform_1(%arg0: i32, %arg1: i32, %arg2: i32) -> (i32, i32) {
    %c0_i32 = arith.constant 0 : i32
    return %arg2, %arg1 : i32, i32
  }
  func.func @transform_2(%arg0: i32, %arg1: i32, %arg2: i32) -> (i32, i32) {
    %c0_i32 = arith.constant 0 : i32
    return %arg0, %arg1 : i32, i32
  }
  func.func @transform_3(%arg0: i32, %arg1: i32, %arg2: i32) -> (i32, i32, i32) {
    %c0_i32 = arith.constant 0 : i32
    %c0_i32_0 = arith.constant 0 : i32
    return %arg0, %c0_i32, %arg1 : i32, i32, i32
  }
}

module attributes {stable_mosaic.version = 11 : i64} {
  func.func @_bn_apply_kernel(%arg0: i32, %arg1: memref<16x128xbf16, #tpu.memory_space<vmem>>, %arg2: memref<1x128xf32, #tpu.memory_space<vmem>>, %arg3: memref<1x128xf32, #tpu.memory_space<vmem>>, %arg4: memref<16x128xbf16, #tpu.memory_space<vmem>>) attributes {dimension_semantics = [#tpu.dimension_semantics<parallel>], iteration_bounds = array<i64: 1>, scalar_prefetch = 0 : i64, scratch_operands = 0 : i64, tpu.core_type = #tpu.core_type<tc>, window_params = [{transform_indices = @transform_0, window_bounds = array<i64: 16, 128>}, {pipeline_mode = #tpu.pipeline_mode<synchronous>, transform_indices = @transform_1, window_bounds = array<i64: 1, 128>}, {pipeline_mode = #tpu.pipeline_mode<synchronous>, transform_indices = @transform_2, window_bounds = array<i64: 1, 128>}, {transform_indices = @transform_3, window_bounds = array<i64: 16, 128>}]} {
    %c0 = arith.constant 0 : index
    %c0_0 = arith.constant 0 : index
    %0 = vector.load %arg1[%c0, %c0_0] : memref<16x128xbf16, #tpu.memory_space<vmem>>, vector<16x128xbf16>
    %1 = arith.extf %0 : vector<16x128xbf16> to vector<16x128xf32>
    %c0_1 = arith.constant 0 : index
    %c0_2 = arith.constant 0 : index
    %2 = vector.load %arg2[%c0_1, %c0_2] : memref<1x128xf32, #tpu.memory_space<vmem>>, vector<1x128xf32>
    %3 = vector.broadcast %2 : vector<1x128xf32> to vector<16x128xf32>
    %4 = arith.mulf %1, %3 : vector<16x128xf32>
    %c0_3 = arith.constant 0 : index
    %c0_4 = arith.constant 0 : index
    %5 = vector.load %arg3[%c0_3, %c0_4] : memref<1x128xf32, #tpu.memory_space<vmem>>, vector<1x128xf32>
    %6 = vector.broadcast %5 : vector<1x128xf32> to vector<16x128xf32>
    %7 = arith.addf %4, %6 : vector<16x128xf32>
    %cst = arith.constant 0.000000e+00 : f32
    %8 = vector.broadcast %cst : f32 to vector<16x128xf32>
    %9 = arith.maximumf %7, %8 : vector<16x128xf32>
    %10 = arith.truncf %9 : vector<16x128xf32> to vector<16x128xbf16>
    %c0_5 = arith.constant 0 : index
    %c0_6 = arith.constant 0 : index
    %11 = vector.load %arg4[%c0_5, %c0_6] : memref<16x128xbf16, #tpu.memory_space<vmem>>, vector<16x128xbf16>
    tpu.vector_store %arg4[%c0_5, %c0_6], %10 {strides = array<i32>} : memref<16x128xbf16, #tpu.memory_space<vmem>>, vector<16x128xbf16>,
    return
  }
  func.func @transform_0(%arg0: i32) -> (i32, i32) {
    %c0_i32 = arith.constant 0 : i32
    %c0_i32_0 = arith.constant 0 : i32
    return %arg0, %c0_i32 : i32, i32
  }
  func.func @transform_1(%arg0: i32) -> (i32, i32) {
    %c0_i32 = arith.constant 0 : i32
    %c0_i32_0 = arith.constant 0 : i32
    %c0_i32_1 = arith.constant 0 : i32
    return %c0_i32, %c0_i32_0 : i32, i32
  }
  func.func @transform_2(%arg0: i32) -> (i32, i32) {
    %c0_i32 = arith.constant 0 : i32
    %c0_i32_0 = arith.constant 0 : i32
    %c0_i32_1 = arith.constant 0 : i32
    return %c0_i32, %c0_i32_0 : i32, i32
  }
  func.func @transform_3(%arg0: i32) -> (i32, i32) {
    %c0_i32 = arith.constant 0 : i32
    %c0_i32_0 = arith.constant 0 : i32
    return %arg0, %c0_i32 : i32, i32
  }
}

module attributes {stable_mosaic.version = 11 : i64} {
  func.func @_bn_apply_res_kernel(%arg0: i32, %arg1: memref<16x128xbf16, #tpu.memory_space<vmem>>, %arg2: memref<1x128xf32, #tpu.memory_space<vmem>>, %arg3: memref<1x128xf32, #tpu.memory_space<vmem>>, %arg4: memref<16x128xbf16, #tpu.memory_space<vmem>>, %arg5: memref<16x128xbf16, #tpu.memory_space<vmem>>) attributes {dimension_semantics = [#tpu.dimension_semantics<parallel>], iteration_bounds = array<i64: 1>, scalar_prefetch = 0 : i64, scratch_operands = 0 : i64, tpu.core_type = #tpu.core_type<tc>, window_params = [{transform_indices = @transform_0, window_bounds = array<i64: 16, 128>}, {pipeline_mode = #tpu.pipeline_mode<synchronous>, transform_indices = @transform_1, window_bounds = array<i64: 1, 128>}, {pipeline_mode = #tpu.pipeline_mode<synchronous>, transform_indices = @transform_2, window_bounds = array<i64: 1, 128>}, {transform_indices = @transform_3, window_bounds = array<i64: 16, 128>}, {transform_indices = @transform_4, window_bounds = array<i64: 16, 128>}]} {
    %c0 = arith.constant 0 : index
    %c0_0 = arith.constant 0 : index
    %0 = vector.load %arg1[%c0, %c0_0] : memref<16x128xbf16, #tpu.memory_space<vmem>>, vector<16x128xbf16>
    %1 = arith.extf %0 : vector<16x128xbf16> to vector<16x128xf32>
    %c0_1 = arith.constant 0 : index
    %c0_2 = arith.constant 0 : index
    %2 = vector.load %arg2[%c0_1, %c0_2] : memref<1x128xf32, #tpu.memory_space<vmem>>, vector<1x128xf32>
    %3 = vector.broadcast %2 : vector<1x128xf32> to vector<16x128xf32>
    %4 = arith.mulf %1, %3 : vector<16x128xf32>
    %c0_3 = arith.constant 0 : index
    %c0_4 = arith.constant 0 : index
    %5 = vector.load %arg3[%c0_3, %c0_4] : memref<1x128xf32, #tpu.memory_space<vmem>>, vector<1x128xf32>
    %6 = vector.broadcast %5 : vector<1x128xf32> to vector<16x128xf32>
    %7 = arith.addf %4, %6 : vector<16x128xf32>
    %c0_5 = arith.constant 0 : index
    %c0_6 = arith.constant 0 : index
    %8 = vector.load %arg4[%c0_5, %c0_6] : memref<16x128xbf16, #tpu.memory_space<vmem>>, vector<16x128xbf16>
    %9 = arith.extf %8 : vector<16x128xbf16> to vector<16x128xf32>
    %10 = arith.addf %7, %9 : vector<16x128xf32>
    %cst = arith.constant 0.000000e+00 : f32
    %11 = vector.broadcast %cst : f32 to vector<16x128xf32>
    %12 = arith.maximumf %10, %11 : vector<16x128xf32>
    %13 = arith.truncf %12 : vector<16x128xf32> to vector<16x128xbf16>
    %c0_7 = arith.constant 0 : index
    %c0_8 = arith.constant 0 : index
    %14 = vector.load %arg5[%c0_7, %c0_8] : memref<16x128xbf16, #tpu.memory_space<vmem>>, vector<16x128xbf16>
    tpu.vector_store %arg5[%c0_7, %c0_8], %13 {strides = array<i32>} : memref<16x128xbf16, #tpu.memory_space<vmem>>, vector<16x128xbf16>,
    return
  }
  func.func @transform_0(%arg0: i32) -> (i32, i32) {
    %c0_i32 = arith.constant 0 : i32
    %c0_i32_0 = arith.constant 0 : i32
    return %arg0, %c0_i32 : i32, i32
  }
  func.func @transform_1(%arg0: i32) -> (i32, i32) {
    %c0_i32 = arith.constant 0 : i32
    %c0_i32_0 = arith.constant 0 : i32
    %c0_i32_1 = arith.constant 0 : i32
    return %c0_i32, %c0_i32_0 : i32, i32
  }
  func.func @transform_2(%arg0: i32) -> (i32, i32) {
    %c0_i32 = arith.constant 0 : i32
    %c0_i32_0 = arith.constant 0 : i32
    %c0_i32_1 = arith.constant 0 : i32
    return %c0_i32, %c0_i32_0 : i32, i32
  }
  func.func @transform_3(%arg0: i32) -> (i32, i32) {
    %c0_i32 = arith.constant 0 : i32
    %c0_i32_0 = arith.constant 0 : i32
    return %arg0, %c0_i32 : i32, i32
  }
  func.func @transform_4(%arg0: i32) -> (i32, i32) {
    %c0_i32 = arith.constant 0 : i32
    %c0_i32_0 = arith.constant 0 : i32
    return %arg0, %c0_i32 : i32, i32
  }
}

module attributes {stable_mosaic.version = 11 : i64} {
  func.func @_matmul_stats_kernel(%arg0: i32, %arg1: i32, %arg2: i32, %arg3: memref<16x128xbf16, #tpu.memory_space<vmem>>, %arg4: memref<128x128xbf16, #tpu.memory_space<vmem>>, %arg5: memref<16x128xbf16, #tpu.memory_space<vmem>>, %arg6: memref<1x8x128xf32, #tpu.memory_space<vmem>>, %arg7: memref<16x128xf32, #tpu.memory_space<vmem>>) attributes {dimension_semantics = [#tpu.dimension_semantics<parallel>, #tpu.dimension_semantics<parallel>, #tpu.dimension_semantics<arbitrary>], iteration_bounds = array<i64: 1, 1, 9>, scalar_prefetch = 0 : i64, scratch_operands = 1 : i64, tpu.core_type = #tpu.core_type<tc>, window_params = [{transform_indices = @transform_0, window_bounds = array<i64: 16, 128>}, {transform_indices = @transform_1, window_bounds = array<i64: 128, 128>}, {transform_indices = @transform_2, window_bounds = array<i64: 16, 128>}, {transform_indices = @transform_3, window_bounds = array<i64: 1, 8, 128>}]} {
    %c0_i32 = arith.constant 0 : i32
    %0 = arith.cmpi eq, %arg2, %c0_i32 : i32
    %1 = arith.extui %0 : i1 to i32
    %c0_i32_0 = arith.constant 0 : i32
    %2 = arith.cmpi ne, %1, %c0_i32_0 : i32
    scf.if %2 {
      %cst_9 = arith.constant 0.000000e+00 : f32
      %12 = vector.broadcast %cst_9 : f32 to vector<16x128xf32>
      %c0_10 = arith.constant 0 : index
      %c0_11 = arith.constant 0 : index
      %13 = vector.load %arg7[%c0_10, %c0_11] : memref<16x128xf32, #tpu.memory_space<vmem>>, vector<16x128xf32>
      tpu.vector_store %arg7[%c0_10, %c0_11], %12 {strides = array<i32>} : memref<16x128xf32, #tpu.memory_space<vmem>>, vector<16x128xf32>,
    } else {
    }
    %c0 = arith.constant 0 : index
    %c0_1 = arith.constant 0 : index
    %3 = vector.load %arg7[%c0, %c0_1] : memref<16x128xf32, #tpu.memory_space<vmem>>, vector<16x128xf32>
    %c0_2 = arith.constant 0 : index
    %c0_3 = arith.constant 0 : index
    %4 = vector.load %arg3[%c0_2, %c0_3] : memref<16x128xbf16, #tpu.memory_space<vmem>>, vector<16x128xbf16>
    %c0_4 = arith.constant 0 : index
    %c0_5 = arith.constant 0 : index
    %5 = vector.load %arg4[%c0_4, %c0_5] : memref<128x128xbf16, #tpu.memory_space<vmem>>, vector<128x128xbf16>
    %cst = arith.constant dense<0.000000e+00> : vector<16x128xf32>
    %6 = tpu.matmul %4, %5, %cst {dimension_numbers = #tpu.dot_dimension_numbers<[1], [0], [0], [1], [0, 0, 1, 1], [], []>} : vector<16x128xbf16>, vector<128x128xbf16>, vector<16x128xf32> -> vector<16x128xf32>
    %7 = arith.addf %3, %6 : vector<16x128xf32>
    %c0_6 = arith.constant 0 : index
    %c0_7 = arith.constant 0 : index
    %8 = vector.load %arg7[%c0_6, %c0_7] : memref<16x128xf32, #tpu.memory_space<vmem>>, vector<16x128xf32>
    tpu.vector_store %arg7[%c0_6, %c0_7], %7 {strides = array<i32>} : memref<16x128xf32, #tpu.memory_space<vmem>>, vector<16x128xf32>,
    %c8_i32 = arith.constant 8 : i32
    %9 = arith.cmpi eq, %arg2, %c8_i32 : i32
    %10 = arith.extui %9 : i1 to i32
    %c0_i32_8 = arith.constant 0 : i32
    %11 = arith.cmpi ne, %10, %c0_i32_8 : i32
    scf.if %11 {
      %c0_9 = arith.constant 0 : index
      %c0_10 = arith.constant 0 : index
      %12 = vector.load %arg7[%c0_9, %c0_10] : memref<16x128xf32, #tpu.memory_space<vmem>>, vector<16x128xf32>
      %13 = arith.truncf %12 : vector<16x128xf32> to vector<16x128xbf16>
      %c0_11 = arith.constant 0 : index
      %c0_12 = arith.constant 0 : index
      %14 = vector.load %arg5[%c0_11, %c0_12] : memref<16x128xbf16, #tpu.memory_space<vmem>>, vector<16x128xbf16>
      tpu.vector_store %arg5[%c0_11, %c0_12], %13 {strides = array<i32>} : memref<16x128xbf16, #tpu.memory_space<vmem>>, vector<16x128xbf16>,
      %cst_13 = arith.constant dense<0.000000e+00> : vector<128xf32>
      %15 = vector.multi_reduction <add>, %12, %cst_13 [0] : vector<16x128xf32> to vector<128xf32>
      %16 = vector.shape_cast %15 : vector<128xf32> to vector<1x128xf32>
      %17 = arith.mulf %12, %12 : vector<16x128xf32>
      %cst_14 = arith.constant dense<0.000000e+00> : vector<128xf32>
      %18 = vector.multi_reduction <add>, %17, %cst_14 [0] : vector<16x128xf32> to vector<128xf32>
      %19 = vector.shape_cast %18 : vector<128xf32> to vector<1x128xf32>
      %20 = tpu.iota {dimensions = array<i32: 0>} : vector<8x128xi32>
      %c0_i32_15 = arith.constant 0 : i32
      %21 = vector.broadcast %c0_i32_15 : i32 to vector<8x128xi32>
      %22 = arith.cmpi eq, %20, %21 : vector<8x128xi32>
      %c1_i32 = arith.constant 1 : i32
      %23 = vector.broadcast %c1_i32 : i32 to vector<8x128xi32>
      %24 = arith.cmpi eq, %20, %23 : vector<8x128xi32>
      %cst_16 = arith.constant 0.000000e+00 : f32
      %25 = vector.shape_cast %19 : vector<1x128xf32> to vector<1x128xf32>
      %26 = vector.broadcast %25 : vector<1x128xf32> to vector<8x128xf32>
      %27 = vector.broadcast %cst_16 : f32 to vector<8x128xf32>
      %28 = arith.select %24, %26, %27 : vector<8x128xi1>, vector<8x128xf32>
      %29 = vector.shape_cast %16 : vector<1x128xf32> to vector<1x128xf32>
      %30 = vector.broadcast %29 : vector<1x128xf32> to vector<8x128xf32>
      %31 = arith.select %22, %30, %28 : vector<8x128xi1>, vector<8x128xf32>
      %c0_17 = arith.constant 0 : index
      %c0_18 = arith.constant 0 : index
      %c0_19 = arith.constant 0 : index
      %32 = vector.load %arg6[%c0_17, %c0_18, %c0_19] : memref<1x8x128xf32, #tpu.memory_space<vmem>>, vector<1x8x128xf32>
      %33 = vector.shape_cast %32 : vector<1x8x128xf32> to vector<8x128xf32>
      %34 = vector.shape_cast %31 : vector<8x128xf32> to vector<1x8x128xf32>
      tpu.vector_store %arg6[%c0_17, %c0_18, %c0_19], %34 {strides = array<i32>} : memref<1x8x128xf32, #tpu.memory_space<vmem>>, vector<1x8x128xf32>,
    } else {
    }
    return
  }
  func.func @transform_0(%arg0: i32, %arg1: i32, %arg2: i32) -> (i32, i32) {
    %c0_i32 = arith.constant 0 : i32
    return %arg0, %arg2 : i32, i32
  }
  func.func @transform_1(%arg0: i32, %arg1: i32, %arg2: i32) -> (i32, i32) {
    %c0_i32 = arith.constant 0 : i32
    return %arg2, %arg1 : i32, i32
  }
  func.func @transform_2(%arg0: i32, %arg1: i32, %arg2: i32) -> (i32, i32) {
    %c0_i32 = arith.constant 0 : i32
    return %arg0, %arg1 : i32, i32
  }
  func.func @transform_3(%arg0: i32, %arg1: i32, %arg2: i32) -> (i32, i32, i32) {
    %c0_i32 = arith.constant 0 : i32
    %c0_i32_0 = arith.constant 0 : i32
    return %arg0, %c0_i32, %arg1 : i32, i32, i32
  }
}

module attributes {stable_mosaic.version = 11 : i64} {
  func.func @_matmul_stats_kernel(%arg0: i32, %arg1: i32, %arg2: i32, %arg3: memref<16x128xbf16, #tpu.memory_space<vmem>>, %arg4: memref<128x256xbf16, #tpu.memory_space<vmem>>, %arg5: memref<16x256xbf16, #tpu.memory_space<vmem>>, %arg6: memref<1x8x256xf32, #tpu.memory_space<vmem>>, %arg7: memref<16x256xf32, #tpu.memory_space<vmem>>) attributes {dimension_semantics = [#tpu.dimension_semantics<parallel>, #tpu.dimension_semantics<parallel>, #tpu.dimension_semantics<arbitrary>], iteration_bounds = array<i64: 1, 1, 1>, scalar_prefetch = 0 : i64, scratch_operands = 1 : i64, tpu.core_type = #tpu.core_type<tc>, window_params = [{transform_indices = @transform_0, window_bounds = array<i64: 16, 128>}, {transform_indices = @transform_1, window_bounds = array<i64: 128, 256>}, {transform_indices = @transform_2, window_bounds = array<i64: 16, 256>}, {transform_indices = @transform_3, window_bounds = array<i64: 1, 8, 256>}]} {
    %c0_i32 = arith.constant 0 : i32
    %0 = arith.cmpi eq, %arg2, %c0_i32 : i32
    %1 = arith.extui %0 : i1 to i32
    %c0_i32_0 = arith.constant 0 : i32
    %2 = arith.cmpi ne, %1, %c0_i32_0 : i32
    scf.if %2 {
      %cst_10 = arith.constant 0.000000e+00 : f32
      %12 = vector.broadcast %cst_10 : f32 to vector<16x256xf32>
      %c0_11 = arith.constant 0 : index
      %c0_12 = arith.constant 0 : index
      %13 = vector.load %arg7[%c0_11, %c0_12] : memref<16x256xf32, #tpu.memory_space<vmem>>, vector<16x256xf32>
      tpu.vector_store %arg7[%c0_11, %c0_12], %12 {strides = array<i32>} : memref<16x256xf32, #tpu.memory_space<vmem>>, vector<16x256xf32>,
    } else {
    }
    %c0 = arith.constant 0 : index
    %c0_1 = arith.constant 0 : index
    %3 = vector.load %arg7[%c0, %c0_1] : memref<16x256xf32, #tpu.memory_space<vmem>>, vector<16x256xf32>
    %c0_2 = arith.constant 0 : index
    %c0_3 = arith.constant 0 : index
    %4 = vector.load %arg3[%c0_2, %c0_3] : memref<16x128xbf16, #tpu.memory_space<vmem>>, vector<16x128xbf16>
    %c0_4 = arith.constant 0 : index
    %c0_5 = arith.constant 0 : index
    %5 = vector.load %arg4[%c0_4, %c0_5] : memref<128x256xbf16, #tpu.memory_space<vmem>>, vector<128x256xbf16>
    %cst = arith.constant dense<0.000000e+00> : vector<16x256xf32>
    %6 = tpu.matmul %4, %5, %cst {dimension_numbers = #tpu.dot_dimension_numbers<[1], [0], [0], [1], [0, 0, 1, 1], [], []>} : vector<16x128xbf16>, vector<128x256xbf16>, vector<16x256xf32> -> vector<16x256xf32>
    %7 = arith.addf %3, %6 : vector<16x256xf32>
    %c0_6 = arith.constant 0 : index
    %c0_7 = arith.constant 0 : index
    %8 = vector.load %arg7[%c0_6, %c0_7] : memref<16x256xf32, #tpu.memory_space<vmem>>, vector<16x256xf32>
    tpu.vector_store %arg7[%c0_6, %c0_7], %7 {strides = array<i32>} : memref<16x256xf32, #tpu.memory_space<vmem>>, vector<16x256xf32>,
    %c0_i32_8 = arith.constant 0 : i32
    %9 = arith.cmpi eq, %arg2, %c0_i32_8 : i32
    %10 = arith.extui %9 : i1 to i32
    %c0_i32_9 = arith.constant 0 : i32
    %11 = arith.cmpi ne, %10, %c0_i32_9 : i32
    scf.if %11 {
      %c0_10 = arith.constant 0 : index
      %c0_11 = arith.constant 0 : index
      %12 = vector.load %arg7[%c0_10, %c0_11] : memref<16x256xf32, #tpu.memory_space<vmem>>, vector<16x256xf32>
      %13 = arith.truncf %12 : vector<16x256xf32> to vector<16x256xbf16>
      %c0_12 = arith.constant 0 : index
      %c0_13 = arith.constant 0 : index
      %14 = vector.load %arg5[%c0_12, %c0_13] : memref<16x256xbf16, #tpu.memory_space<vmem>>, vector<16x256xbf16>
      tpu.vector_store %arg5[%c0_12, %c0_13], %13 {strides = array<i32>} : memref<16x256xbf16, #tpu.memory_space<vmem>>, vector<16x256xbf16>,
      %cst_14 = arith.constant dense<0.000000e+00> : vector<256xf32>
      %15 = vector.multi_reduction <add>, %12, %cst_14 [0] : vector<16x256xf32> to vector<256xf32>
      %16 = vector.shape_cast %15 : vector<256xf32> to vector<1x256xf32>
      %17 = arith.mulf %12, %12 : vector<16x256xf32>
      %cst_15 = arith.constant dense<0.000000e+00> : vector<256xf32>
      %18 = vector.multi_reduction <add>, %17, %cst_15 [0] : vector<16x256xf32> to vector<256xf32>
      %19 = vector.shape_cast %18 : vector<256xf32> to vector<1x256xf32>
      %20 = tpu.iota {dimensions = array<i32: 0>} : vector<8x256xi32>
      %c0_i32_16 = arith.constant 0 : i32
      %21 = vector.broadcast %c0_i32_16 : i32 to vector<8x256xi32>
      %22 = arith.cmpi eq, %20, %21 : vector<8x256xi32>
      %c1_i32 = arith.constant 1 : i32
      %23 = vector.broadcast %c1_i32 : i32 to vector<8x256xi32>
      %24 = arith.cmpi eq, %20, %23 : vector<8x256xi32>
      %cst_17 = arith.constant 0.000000e+00 : f32
      %25 = vector.shape_cast %19 : vector<1x256xf32> to vector<1x256xf32>
      %26 = vector.broadcast %25 : vector<1x256xf32> to vector<8x256xf32>
      %27 = vector.broadcast %cst_17 : f32 to vector<8x256xf32>
      %28 = arith.select %24, %26, %27 : vector<8x256xi1>, vector<8x256xf32>
      %29 = vector.shape_cast %16 : vector<1x256xf32> to vector<1x256xf32>
      %30 = vector.broadcast %29 : vector<1x256xf32> to vector<8x256xf32>
      %31 = arith.select %22, %30, %28 : vector<8x256xi1>, vector<8x256xf32>
      %c0_18 = arith.constant 0 : index
      %c0_19 = arith.constant 0 : index
      %c0_20 = arith.constant 0 : index
      %32 = vector.load %arg6[%c0_18, %c0_19, %c0_20] : memref<1x8x256xf32, #tpu.memory_space<vmem>>, vector<1x8x256xf32>
      %33 = vector.shape_cast %32 : vector<1x8x256xf32> to vector<8x256xf32>
      %34 = vector.shape_cast %31 : vector<8x256xf32> to vector<1x8x256xf32>
      tpu.vector_store %arg6[%c0_18, %c0_19, %c0_20], %34 {strides = array<i32>} : memref<1x8x256xf32, #tpu.memory_space<vmem>>, vector<1x8x256xf32>,
    } else {
    }
    return
  }
  func.func @transform_0(%arg0: i32, %arg1: i32, %arg2: i32) -> (i32, i32) {
    %c0_i32 = arith.constant 0 : i32
    return %arg0, %arg2 : i32, i32
  }
  func.func @transform_1(%arg0: i32, %arg1: i32, %arg2: i32) -> (i32, i32) {
    %c0_i32 = arith.constant 0 : i32
    return %arg2, %arg1 : i32, i32
  }
  func.func @transform_2(%arg0: i32, %arg1: i32, %arg2: i32) -> (i32, i32) {
    %c0_i32 = arith.constant 0 : i32
    return %arg0, %arg1 : i32, i32
  }
  func.func @transform_3(%arg0: i32, %arg1: i32, %arg2: i32) -> (i32, i32, i32) {
    %c0_i32 = arith.constant 0 : i32
    %c0_i32_0 = arith.constant 0 : i32
    return %arg0, %c0_i32, %arg1 : i32, i32, i32
  }
}

module attributes {stable_mosaic.version = 11 : i64} {
  func.func @_bn_apply_kernel(%arg0: i32, %arg1: memref<16x256xbf16, #tpu.memory_space<vmem>>, %arg2: memref<1x256xf32, #tpu.memory_space<vmem>>, %arg3: memref<1x256xf32, #tpu.memory_space<vmem>>, %arg4: memref<16x256xbf16, #tpu.memory_space<vmem>>) attributes {dimension_semantics = [#tpu.dimension_semantics<parallel>], iteration_bounds = array<i64: 1>, scalar_prefetch = 0 : i64, scratch_operands = 0 : i64, tpu.core_type = #tpu.core_type<tc>, window_params = [{transform_indices = @transform_0, window_bounds = array<i64: 16, 256>}, {pipeline_mode = #tpu.pipeline_mode<synchronous>, transform_indices = @transform_1, window_bounds = array<i64: 1, 256>}, {pipeline_mode = #tpu.pipeline_mode<synchronous>, transform_indices = @transform_2, window_bounds = array<i64: 1, 256>}, {transform_indices = @transform_3, window_bounds = array<i64: 16, 256>}]} {
    %c0 = arith.constant 0 : index
    %c0_0 = arith.constant 0 : index
    %0 = vector.load %arg1[%c0, %c0_0] : memref<16x256xbf16, #tpu.memory_space<vmem>>, vector<16x256xbf16>
    %1 = arith.extf %0 : vector<16x256xbf16> to vector<16x256xf32>
    %c0_1 = arith.constant 0 : index
    %c0_2 = arith.constant 0 : index
    %2 = vector.load %arg2[%c0_1, %c0_2] : memref<1x256xf32, #tpu.memory_space<vmem>>, vector<1x256xf32>
    %3 = vector.broadcast %2 : vector<1x256xf32> to vector<16x256xf32>
    %4 = arith.mulf %1, %3 : vector<16x256xf32>
    %c0_3 = arith.constant 0 : index
    %c0_4 = arith.constant 0 : index
    %5 = vector.load %arg3[%c0_3, %c0_4] : memref<1x256xf32, #tpu.memory_space<vmem>>, vector<1x256xf32>
    %6 = vector.broadcast %5 : vector<1x256xf32> to vector<16x256xf32>
    %7 = arith.addf %4, %6 : vector<16x256xf32>
    %8 = arith.truncf %7 : vector<16x256xf32> to vector<16x256xbf16>
    %c0_5 = arith.constant 0 : index
    %c0_6 = arith.constant 0 : index
    %9 = vector.load %arg4[%c0_5, %c0_6] : memref<16x256xbf16, #tpu.memory_space<vmem>>, vector<16x256xbf16>
    tpu.vector_store %arg4[%c0_5, %c0_6], %8 {strides = array<i32>} : memref<16x256xbf16, #tpu.memory_space<vmem>>, vector<16x256xbf16>,
    return
  }
  func.func @transform_0(%arg0: i32) -> (i32, i32) {
    %c0_i32 = arith.constant 0 : i32
    %c0_i32_0 = arith.constant 0 : i32
    return %arg0, %c0_i32 : i32, i32
  }
  func.func @transform_1(%arg0: i32) -> (i32, i32) {
    %c0_i32 = arith.constant 0 : i32
    %c0_i32_0 = arith.constant 0 : i32
    %c0_i32_1 = arith.constant 0 : i32
    return %c0_i32, %c0_i32_0 : i32, i32
  }
  func.func @transform_2(%arg0: i32) -> (i32, i32) {
    %c0_i32 = arith.constant 0 : i32
    %c0_i32_0 = arith.constant 0 : i32
    %c0_i32_1 = arith.constant 0 : i32
    return %c0_i32, %c0_i32_0 : i32, i32
  }
  func.func @transform_3(%arg0: i32) -> (i32, i32) {
    %c0_i32 = arith.constant 0 : i32
    %c0_i32_0 = arith.constant 0 : i32
    return %arg0, %c0_i32 : i32, i32
  }
}

module attributes {stable_mosaic.version = 11 : i64} {
  func.func @_bn_apply_kernel(%arg0: i32, %arg1: memref<16x256xbf16, #tpu.memory_space<vmem>>, %arg2: memref<1x256xf32, #tpu.memory_space<vmem>>, %arg3: memref<1x256xf32, #tpu.memory_space<vmem>>, %arg4: memref<16x256xbf16, #tpu.memory_space<vmem>>) attributes {dimension_semantics = [#tpu.dimension_semantics<parallel>], iteration_bounds = array<i64: 1>, scalar_prefetch = 0 : i64, scratch_operands = 0 : i64, tpu.core_type = #tpu.core_type<tc>, window_params = [{transform_indices = @transform_0, window_bounds = array<i64: 16, 256>}, {pipeline_mode = #tpu.pipeline_mode<synchronous>, transform_indices = @transform_1, window_bounds = array<i64: 1, 256>}, {pipeline_mode = #tpu.pipeline_mode<synchronous>, transform_indices = @transform_2, window_bounds = array<i64: 1, 256>}, {transform_indices = @transform_3, window_bounds = array<i64: 16, 256>}]} {
    %c0 = arith.constant 0 : index
    %c0_0 = arith.constant 0 : index
    %0 = vector.load %arg1[%c0, %c0_0] : memref<16x256xbf16, #tpu.memory_space<vmem>>, vector<16x256xbf16>
    %1 = arith.extf %0 : vector<16x256xbf16> to vector<16x256xf32>
    %c0_1 = arith.constant 0 : index
    %c0_2 = arith.constant 0 : index
    %2 = vector.load %arg2[%c0_1, %c0_2] : memref<1x256xf32, #tpu.memory_space<vmem>>, vector<1x256xf32>
    %3 = vector.broadcast %2 : vector<1x256xf32> to vector<16x256xf32>
    %4 = arith.mulf %1, %3 : vector<16x256xf32>
    %c0_3 = arith.constant 0 : index
    %c0_4 = arith.constant 0 : index
    %5 = vector.load %arg3[%c0_3, %c0_4] : memref<1x256xf32, #tpu.memory_space<vmem>>, vector<1x256xf32>
    %6 = vector.broadcast %5 : vector<1x256xf32> to vector<16x256xf32>
    %7 = arith.addf %4, %6 : vector<16x256xf32>
    %cst = arith.constant 0.000000e+00 : f32
    %8 = vector.broadcast %cst : f32 to vector<16x256xf32>
    %9 = arith.maximumf %7, %8 : vector<16x256xf32>
    %10 = arith.truncf %9 : vector<16x256xf32> to vector<16x256xbf16>
    %c0_5 = arith.constant 0 : index
    %c0_6 = arith.constant 0 : index
    %11 = vector.load %arg4[%c0_5, %c0_6] : memref<16x256xbf16, #tpu.memory_space<vmem>>, vector<16x256xbf16>
    tpu.vector_store %arg4[%c0_5, %c0_6], %10 {strides = array<i32>} : memref<16x256xbf16, #tpu.memory_space<vmem>>, vector<16x256xbf16>,
    return
  }
  func.func @transform_0(%arg0: i32) -> (i32, i32) {
    %c0_i32 = arith.constant 0 : i32
    %c0_i32_0 = arith.constant 0 : i32
    return %arg0, %c0_i32 : i32, i32
  }
  func.func @transform_1(%arg0: i32) -> (i32, i32) {
    %c0_i32 = arith.constant 0 : i32
    %c0_i32_0 = arith.constant 0 : i32
    %c0_i32_1 = arith.constant 0 : i32
    return %c0_i32, %c0_i32_0 : i32, i32
  }
  func.func @transform_2(%arg0: i32) -> (i32, i32) {
    %c0_i32 = arith.constant 0 : i32
    %c0_i32_0 = arith.constant 0 : i32
    %c0_i32_1 = arith.constant 0 : i32
    return %c0_i32, %c0_i32_0 : i32, i32
  }
  func.func @transform_3(%arg0: i32) -> (i32, i32) {
    %c0_i32 = arith.constant 0 : i32
    %c0_i32_0 = arith.constant 0 : i32
    return %arg0, %c0_i32 : i32, i32
  }
}

module attributes {stable_mosaic.version = 11 : i64} {
  func.func @_matmul_stats_kernel(%arg0: i32, %arg1: i32, %arg2: i32, %arg3: memref<16x128xbf16, #tpu.memory_space<vmem>>, %arg4: memref<128x256xbf16, #tpu.memory_space<vmem>>, %arg5: memref<16x256xbf16, #tpu.memory_space<vmem>>, %arg6: memref<1x8x256xf32, #tpu.memory_space<vmem>>, %arg7: memref<16x256xf32, #tpu.memory_space<vmem>>) attributes {dimension_semantics = [#tpu.dimension_semantics<parallel>, #tpu.dimension_semantics<parallel>, #tpu.dimension_semantics<arbitrary>], iteration_bounds = array<i64: 1, 1, 9>, scalar_prefetch = 0 : i64, scratch_operands = 1 : i64, tpu.core_type = #tpu.core_type<tc>, window_params = [{transform_indices = @transform_0, window_bounds = array<i64: 16, 128>}, {transform_indices = @transform_1, window_bounds = array<i64: 128, 256>}, {transform_indices = @transform_2, window_bounds = array<i64: 16, 256>}, {transform_indices = @transform_3, window_bounds = array<i64: 1, 8, 256>}]} {
    %c0_i32 = arith.constant 0 : i32
    %0 = arith.cmpi eq, %arg2, %c0_i32 : i32
    %1 = arith.extui %0 : i1 to i32
    %c0_i32_0 = arith.constant 0 : i32
    %2 = arith.cmpi ne, %1, %c0_i32_0 : i32
    scf.if %2 {
      %cst_9 = arith.constant 0.000000e+00 : f32
      %12 = vector.broadcast %cst_9 : f32 to vector<16x256xf32>
      %c0_10 = arith.constant 0 : index
      %c0_11 = arith.constant 0 : index
      %13 = vector.load %arg7[%c0_10, %c0_11] : memref<16x256xf32, #tpu.memory_space<vmem>>, vector<16x256xf32>
      tpu.vector_store %arg7[%c0_10, %c0_11], %12 {strides = array<i32>} : memref<16x256xf32, #tpu.memory_space<vmem>>, vector<16x256xf32>,
    } else {
    }
    %c0 = arith.constant 0 : index
    %c0_1 = arith.constant 0 : index
    %3 = vector.load %arg7[%c0, %c0_1] : memref<16x256xf32, #tpu.memory_space<vmem>>, vector<16x256xf32>
    %c0_2 = arith.constant 0 : index
    %c0_3 = arith.constant 0 : index
    %4 = vector.load %arg3[%c0_2, %c0_3] : memref<16x128xbf16, #tpu.memory_space<vmem>>, vector<16x128xbf16>
    %c0_4 = arith.constant 0 : index
    %c0_5 = arith.constant 0 : index
    %5 = vector.load %arg4[%c0_4, %c0_5] : memref<128x256xbf16, #tpu.memory_space<vmem>>, vector<128x256xbf16>
    %cst = arith.constant dense<0.000000e+00> : vector<16x256xf32>
    %6 = tpu.matmul %4, %5, %cst {dimension_numbers = #tpu.dot_dimension_numbers<[1], [0], [0], [1], [0, 0, 1, 1], [], []>} : vector<16x128xbf16>, vector<128x256xbf16>, vector<16x256xf32> -> vector<16x256xf32>
    %7 = arith.addf %3, %6 : vector<16x256xf32>
    %c0_6 = arith.constant 0 : index
    %c0_7 = arith.constant 0 : index
    %8 = vector.load %arg7[%c0_6, %c0_7] : memref<16x256xf32, #tpu.memory_space<vmem>>, vector<16x256xf32>
    tpu.vector_store %arg7[%c0_6, %c0_7], %7 {strides = array<i32>} : memref<16x256xf32, #tpu.memory_space<vmem>>, vector<16x256xf32>,
    %c8_i32 = arith.constant 8 : i32
    %9 = arith.cmpi eq, %arg2, %c8_i32 : i32
    %10 = arith.extui %9 : i1 to i32
    %c0_i32_8 = arith.constant 0 : i32
    %11 = arith.cmpi ne, %10, %c0_i32_8 : i32
    scf.if %11 {
      %c0_9 = arith.constant 0 : index
      %c0_10 = arith.constant 0 : index
      %12 = vector.load %arg7[%c0_9, %c0_10] : memref<16x256xf32, #tpu.memory_space<vmem>>, vector<16x256xf32>
      %13 = arith.truncf %12 : vector<16x256xf32> to vector<16x256xbf16>
      %c0_11 = arith.constant 0 : index
      %c0_12 = arith.constant 0 : index
      %14 = vector.load %arg5[%c0_11, %c0_12] : memref<16x256xbf16, #tpu.memory_space<vmem>>, vector<16x256xbf16>
      tpu.vector_store %arg5[%c0_11, %c0_12], %13 {strides = array<i32>} : memref<16x256xbf16, #tpu.memory_space<vmem>>, vector<16x256xbf16>,
      %cst_13 = arith.constant dense<0.000000e+00> : vector<256xf32>
      %15 = vector.multi_reduction <add>, %12, %cst_13 [0] : vector<16x256xf32> to vector<256xf32>
      %16 = vector.shape_cast %15 : vector<256xf32> to vector<1x256xf32>
      %17 = arith.mulf %12, %12 : vector<16x256xf32>
      %cst_14 = arith.constant dense<0.000000e+00> : vector<256xf32>
      %18 = vector.multi_reduction <add>, %17, %cst_14 [0] : vector<16x256xf32> to vector<256xf32>
      %19 = vector.shape_cast %18 : vector<256xf32> to vector<1x256xf32>
      %20 = tpu.iota {dimensions = array<i32: 0>} : vector<8x256xi32>
      %c0_i32_15 = arith.constant 0 : i32
      %21 = vector.broadcast %c0_i32_15 : i32 to vector<8x256xi32>
      %22 = arith.cmpi eq, %20, %21 : vector<8x256xi32>
      %c1_i32 = arith.constant 1 : i32
      %23 = vector.broadcast %c1_i32 : i32 to vector<8x256xi32>
      %24 = arith.cmpi eq, %20, %23 : vector<8x256xi32>
      %cst_16 = arith.constant 0.000000e+00 : f32
      %25 = vector.shape_cast %19 : vector<1x256xf32> to vector<1x256xf32>
      %26 = vector.broadcast %25 : vector<1x256xf32> to vector<8x256xf32>
      %27 = vector.broadcast %cst_16 : f32 to vector<8x256xf32>
      %28 = arith.select %24, %26, %27 : vector<8x256xi1>, vector<8x256xf32>
      %29 = vector.shape_cast %16 : vector<1x256xf32> to vector<1x256xf32>
      %30 = vector.broadcast %29 : vector<1x256xf32> to vector<8x256xf32>
      %31 = arith.select %22, %30, %28 : vector<8x256xi1>, vector<8x256xf32>
      %c0_17 = arith.constant 0 : index
      %c0_18 = arith.constant 0 : index
      %c0_19 = arith.constant 0 : index
      %32 = vector.load %arg6[%c0_17, %c0_18, %c0_19] : memref<1x8x256xf32, #tpu.memory_space<vmem>>, vector<1x8x256xf32>
      %33 = vector.shape_cast %32 : vector<1x8x256xf32> to vector<8x256xf32>
      %34 = vector.shape_cast %31 : vector<8x256xf32> to vector<1x8x256xf32>
      tpu.vector_store %arg6[%c0_17, %c0_18, %c0_19], %34 {strides = array<i32>} : memref<1x8x256xf32, #tpu.memory_space<vmem>>, vector<1x8x256xf32>,
    } else {
    }
    return
  }
  func.func @transform_0(%arg0: i32, %arg1: i32, %arg2: i32) -> (i32, i32) {
    %c0_i32 = arith.constant 0 : i32
    return %arg0, %arg2 : i32, i32
  }
  func.func @transform_1(%arg0: i32, %arg1: i32, %arg2: i32) -> (i32, i32) {
    %c0_i32 = arith.constant 0 : i32
    return %arg2, %arg1 : i32, i32
  }
  func.func @transform_2(%arg0: i32, %arg1: i32, %arg2: i32) -> (i32, i32) {
    %c0_i32 = arith.constant 0 : i32
    return %arg0, %arg1 : i32, i32
  }
  func.func @transform_3(%arg0: i32, %arg1: i32, %arg2: i32) -> (i32, i32, i32) {
    %c0_i32 = arith.constant 0 : i32
    %c0_i32_0 = arith.constant 0 : i32
    return %arg0, %c0_i32, %arg1 : i32, i32, i32
  }
}

module attributes {stable_mosaic.version = 11 : i64} {
  func.func @_matmul_stats_kernel(%arg0: i32, %arg1: i32, %arg2: i32, %arg3: memref<16x256xbf16, #tpu.memory_space<vmem>>, %arg4: memref<256x256xbf16, #tpu.memory_space<vmem>>, %arg5: memref<16x256xbf16, #tpu.memory_space<vmem>>, %arg6: memref<1x8x256xf32, #tpu.memory_space<vmem>>, %arg7: memref<16x256xf32, #tpu.memory_space<vmem>>) attributes {dimension_semantics = [#tpu.dimension_semantics<parallel>, #tpu.dimension_semantics<parallel>, #tpu.dimension_semantics<arbitrary>], iteration_bounds = array<i64: 1, 1, 9>, scalar_prefetch = 0 : i64, scratch_operands = 1 : i64, tpu.core_type = #tpu.core_type<tc>, window_params = [{transform_indices = @transform_0, window_bounds = array<i64: 16, 256>}, {transform_indices = @transform_1, window_bounds = array<i64: 256, 256>}, {transform_indices = @transform_2, window_bounds = array<i64: 16, 256>}, {transform_indices = @transform_3, window_bounds = array<i64: 1, 8, 256>}]} {
    %c0_i32 = arith.constant 0 : i32
    %0 = arith.cmpi eq, %arg2, %c0_i32 : i32
    %1 = arith.extui %0 : i1 to i32
    %c0_i32_0 = arith.constant 0 : i32
    %2 = arith.cmpi ne, %1, %c0_i32_0 : i32
    scf.if %2 {
      %cst_9 = arith.constant 0.000000e+00 : f32
      %12 = vector.broadcast %cst_9 : f32 to vector<16x256xf32>
      %c0_10 = arith.constant 0 : index
      %c0_11 = arith.constant 0 : index
      %13 = vector.load %arg7[%c0_10, %c0_11] : memref<16x256xf32, #tpu.memory_space<vmem>>, vector<16x256xf32>
      tpu.vector_store %arg7[%c0_10, %c0_11], %12 {strides = array<i32>} : memref<16x256xf32, #tpu.memory_space<vmem>>, vector<16x256xf32>,
    } else {
    }
    %c0 = arith.constant 0 : index
    %c0_1 = arith.constant 0 : index
    %3 = vector.load %arg7[%c0, %c0_1] : memref<16x256xf32, #tpu.memory_space<vmem>>, vector<16x256xf32>
    %c0_2 = arith.constant 0 : index
    %c0_3 = arith.constant 0 : index
    %4 = vector.load %arg3[%c0_2, %c0_3] : memref<16x256xbf16, #tpu.memory_space<vmem>>, vector<16x256xbf16>
    %c0_4 = arith.constant 0 : index
    %c0_5 = arith.constant 0 : index
    %5 = vector.load %arg4[%c0_4, %c0_5] : memref<256x256xbf16, #tpu.memory_space<vmem>>, vector<256x256xbf16>
    %cst = arith.constant dense<0.000000e+00> : vector<16x256xf32>
    %6 = tpu.matmul %4, %5, %cst {dimension_numbers = #tpu.dot_dimension_numbers<[1], [0], [0], [1], [0, 0, 1, 1], [], []>} : vector<16x256xbf16>, vector<256x256xbf16>, vector<16x256xf32> -> vector<16x256xf32>
    %7 = arith.addf %3, %6 : vector<16x256xf32>
    %c0_6 = arith.constant 0 : index
    %c0_7 = arith.constant 0 : index
    %8 = vector.load %arg7[%c0_6, %c0_7] : memref<16x256xf32, #tpu.memory_space<vmem>>, vector<16x256xf32>
    tpu.vector_store %arg7[%c0_6, %c0_7], %7 {strides = array<i32>} : memref<16x256xf32, #tpu.memory_space<vmem>>, vector<16x256xf32>,
    %c8_i32 = arith.constant 8 : i32
    %9 = arith.cmpi eq, %arg2, %c8_i32 : i32
    %10 = arith.extui %9 : i1 to i32
    %c0_i32_8 = arith.constant 0 : i32
    %11 = arith.cmpi ne, %10, %c0_i32_8 : i32
    scf.if %11 {
      %c0_9 = arith.constant 0 : index
      %c0_10 = arith.constant 0 : index
      %12 = vector.load %arg7[%c0_9, %c0_10] : memref<16x256xf32, #tpu.memory_space<vmem>>, vector<16x256xf32>
      %13 = arith.truncf %12 : vector<16x256xf32> to vector<16x256xbf16>
      %c0_11 = arith.constant 0 : index
      %c0_12 = arith.constant 0 : index
      %14 = vector.load %arg5[%c0_11, %c0_12] : memref<16x256xbf16, #tpu.memory_space<vmem>>, vector<16x256xbf16>
      tpu.vector_store %arg5[%c0_11, %c0_12], %13 {strides = array<i32>} : memref<16x256xbf16, #tpu.memory_space<vmem>>, vector<16x256xbf16>,
      %cst_13 = arith.constant dense<0.000000e+00> : vector<256xf32>
      %15 = vector.multi_reduction <add>, %12, %cst_13 [0] : vector<16x256xf32> to vector<256xf32>
      %16 = vector.shape_cast %15 : vector<256xf32> to vector<1x256xf32>
      %17 = arith.mulf %12, %12 : vector<16x256xf32>
      %cst_14 = arith.constant dense<0.000000e+00> : vector<256xf32>
      %18 = vector.multi_reduction <add>, %17, %cst_14 [0] : vector<16x256xf32> to vector<256xf32>
      %19 = vector.shape_cast %18 : vector<256xf32> to vector<1x256xf32>
      %20 = tpu.iota {dimensions = array<i32: 0>} : vector<8x256xi32>
      %c0_i32_15 = arith.constant 0 : i32
      %21 = vector.broadcast %c0_i32_15 : i32 to vector<8x256xi32>
      %22 = arith.cmpi eq, %20, %21 : vector<8x256xi32>
      %c1_i32 = arith.constant 1 : i32
      %23 = vector.broadcast %c1_i32 : i32 to vector<8x256xi32>
      %24 = arith.cmpi eq, %20, %23 : vector<8x256xi32>
      %cst_16 = arith.constant 0.000000e+00 : f32
      %25 = vector.shape_cast %19 : vector<1x256xf32> to vector<1x256xf32>
      %26 = vector.broadcast %25 : vector<1x256xf32> to vector<8x256xf32>
      %27 = vector.broadcast %cst_16 : f32 to vector<8x256xf32>
      %28 = arith.select %24, %26, %27 : vector<8x256xi1>, vector<8x256xf32>
      %29 = vector.shape_cast %16 : vector<1x256xf32> to vector<1x256xf32>
      %30 = vector.broadcast %29 : vector<1x256xf32> to vector<8x256xf32>
      %31 = arith.select %22, %30, %28 : vector<8x256xi1>, vector<8x256xf32>
      %c0_17 = arith.constant 0 : index
      %c0_18 = arith.constant 0 : index
      %c0_19 = arith.constant 0 : index
      %32 = vector.load %arg6[%c0_17, %c0_18, %c0_19] : memref<1x8x256xf32, #tpu.memory_space<vmem>>, vector<1x8x256xf32>
      %33 = vector.shape_cast %32 : vector<1x8x256xf32> to vector<8x256xf32>
      %34 = vector.shape_cast %31 : vector<8x256xf32> to vector<1x8x256xf32>
      tpu.vector_store %arg6[%c0_17, %c0_18, %c0_19], %34 {strides = array<i32>} : memref<1x8x256xf32, #tpu.memory_space<vmem>>, vector<1x8x256xf32>,
    } else {
    }
    return
  }
  func.func @transform_0(%arg0: i32, %arg1: i32, %arg2: i32) -> (i32, i32) {
    %c0_i32 = arith.constant 0 : i32
    return %arg0, %arg2 : i32, i32
  }
  func.func @transform_1(%arg0: i32, %arg1: i32, %arg2: i32) -> (i32, i32) {
    %c0_i32 = arith.constant 0 : i32
    return %arg2, %arg1 : i32, i32
  }
  func.func @transform_2(%arg0: i32, %arg1: i32, %arg2: i32) -> (i32, i32) {
    %c0_i32 = arith.constant 0 : i32
    return %arg0, %arg1 : i32, i32
  }
  func.func @transform_3(%arg0: i32, %arg1: i32, %arg2: i32) -> (i32, i32, i32) {
    %c0_i32 = arith.constant 0 : i32
    %c0_i32_0 = arith.constant 0 : i32
    return %arg0, %c0_i32, %arg1 : i32, i32, i32
  }
}

module attributes {stable_mosaic.version = 11 : i64} {
  func.func @_bn_apply_res_kernel(%arg0: i32, %arg1: memref<16x256xbf16, #tpu.memory_space<vmem>>, %arg2: memref<1x256xf32, #tpu.memory_space<vmem>>, %arg3: memref<1x256xf32, #tpu.memory_space<vmem>>, %arg4: memref<16x256xbf16, #tpu.memory_space<vmem>>, %arg5: memref<16x256xbf16, #tpu.memory_space<vmem>>) attributes {dimension_semantics = [#tpu.dimension_semantics<parallel>], iteration_bounds = array<i64: 1>, scalar_prefetch = 0 : i64, scratch_operands = 0 : i64, tpu.core_type = #tpu.core_type<tc>, window_params = [{transform_indices = @transform_0, window_bounds = array<i64: 16, 256>}, {pipeline_mode = #tpu.pipeline_mode<synchronous>, transform_indices = @transform_1, window_bounds = array<i64: 1, 256>}, {pipeline_mode = #tpu.pipeline_mode<synchronous>, transform_indices = @transform_2, window_bounds = array<i64: 1, 256>}, {transform_indices = @transform_3, window_bounds = array<i64: 16, 256>}, {transform_indices = @transform_4, window_bounds = array<i64: 16, 256>}]} {
    %c0 = arith.constant 0 : index
    %c0_0 = arith.constant 0 : index
    %0 = vector.load %arg1[%c0, %c0_0] : memref<16x256xbf16, #tpu.memory_space<vmem>>, vector<16x256xbf16>
    %1 = arith.extf %0 : vector<16x256xbf16> to vector<16x256xf32>
    %c0_1 = arith.constant 0 : index
    %c0_2 = arith.constant 0 : index
    %2 = vector.load %arg2[%c0_1, %c0_2] : memref<1x256xf32, #tpu.memory_space<vmem>>, vector<1x256xf32>
    %3 = vector.broadcast %2 : vector<1x256xf32> to vector<16x256xf32>
    %4 = arith.mulf %1, %3 : vector<16x256xf32>
    %c0_3 = arith.constant 0 : index
    %c0_4 = arith.constant 0 : index
    %5 = vector.load %arg3[%c0_3, %c0_4] : memref<1x256xf32, #tpu.memory_space<vmem>>, vector<1x256xf32>
    %6 = vector.broadcast %5 : vector<1x256xf32> to vector<16x256xf32>
    %7 = arith.addf %4, %6 : vector<16x256xf32>
    %c0_5 = arith.constant 0 : index
    %c0_6 = arith.constant 0 : index
    %8 = vector.load %arg4[%c0_5, %c0_6] : memref<16x256xbf16, #tpu.memory_space<vmem>>, vector<16x256xbf16>
    %9 = arith.extf %8 : vector<16x256xbf16> to vector<16x256xf32>
    %10 = arith.addf %7, %9 : vector<16x256xf32>
    %cst = arith.constant 0.000000e+00 : f32
    %11 = vector.broadcast %cst : f32 to vector<16x256xf32>
    %12 = arith.maximumf %10, %11 : vector<16x256xf32>
    %13 = arith.truncf %12 : vector<16x256xf32> to vector<16x256xbf16>
    %c0_7 = arith.constant 0 : index
    %c0_8 = arith.constant 0 : index
    %14 = vector.load %arg5[%c0_7, %c0_8] : memref<16x256xbf16, #tpu.memory_space<vmem>>, vector<16x256xbf16>
    tpu.vector_store %arg5[%c0_7, %c0_8], %13 {strides = array<i32>} : memref<16x256xbf16, #tpu.memory_space<vmem>>, vector<16x256xbf16>,
    return
  }
  func.func @transform_0(%arg0: i32) -> (i32, i32) {
    %c0_i32 = arith.constant 0 : i32
    %c0_i32_0 = arith.constant 0 : i32
    return %arg0, %c0_i32 : i32, i32
  }
  func.func @transform_1(%arg0: i32) -> (i32, i32) {
    %c0_i32 = arith.constant 0 : i32
    %c0_i32_0 = arith.constant 0 : i32
    %c0_i32_1 = arith.constant 0 : i32
    return %c0_i32, %c0_i32_0 : i32, i32
  }
  func.func @transform_2(%arg0: i32) -> (i32, i32) {
    %c0_i32 = arith.constant 0 : i32
    %c0_i32_0 = arith.constant 0 : i32
    %c0_i32_1 = arith.constant 0 : i32
    return %c0_i32, %c0_i32_0 : i32, i32
  }
  func.func @transform_3(%arg0: i32) -> (i32, i32) {
    %c0_i32 = arith.constant 0 : i32
    %c0_i32_0 = arith.constant 0 : i32
    return %arg0, %c0_i32 : i32, i32
  }
  func.func @transform_4(%arg0: i32) -> (i32, i32) {
    %c0_i32 = arith.constant 0 : i32
    %c0_i32_0 = arith.constant 0 : i32
    return %arg0, %c0_i32 : i32, i32
  }
}

module attributes {stable_mosaic.version = 11 : i64} {
  func.func @_matmul_stats_kernel(%arg0: i32, %arg1: i32, %arg2: i32, %arg3: memref<16x256xbf16, #tpu.memory_space<vmem>>, %arg4: memref<256x512xbf16, #tpu.memory_space<vmem>>, %arg5: memref<16x512xbf16, #tpu.memory_space<vmem>>, %arg6: memref<1x8x512xf32, #tpu.memory_space<vmem>>, %arg7: memref<16x512xf32, #tpu.memory_space<vmem>>) attributes {dimension_semantics = [#tpu.dimension_semantics<parallel>, #tpu.dimension_semantics<parallel>, #tpu.dimension_semantics<arbitrary>], iteration_bounds = array<i64: 1, 1, 1>, scalar_prefetch = 0 : i64, scratch_operands = 1 : i64, tpu.core_type = #tpu.core_type<tc>, window_params = [{transform_indices = @transform_0, window_bounds = array<i64: 16, 256>}, {transform_indices = @transform_1, window_bounds = array<i64: 256, 512>}, {transform_indices = @transform_2, window_bounds = array<i64: 16, 512>}, {transform_indices = @transform_3, window_bounds = array<i64: 1, 8, 512>}]} {
    %c0_i32 = arith.constant 0 : i32
    %0 = arith.cmpi eq, %arg2, %c0_i32 : i32
    %1 = arith.extui %0 : i1 to i32
    %c0_i32_0 = arith.constant 0 : i32
    %2 = arith.cmpi ne, %1, %c0_i32_0 : i32
    scf.if %2 {
      %cst_10 = arith.constant 0.000000e+00 : f32
      %12 = vector.broadcast %cst_10 : f32 to vector<16x512xf32>
      %c0_11 = arith.constant 0 : index
      %c0_12 = arith.constant 0 : index
      %13 = vector.load %arg7[%c0_11, %c0_12] : memref<16x512xf32, #tpu.memory_space<vmem>>, vector<16x512xf32>
      tpu.vector_store %arg7[%c0_11, %c0_12], %12 {strides = array<i32>} : memref<16x512xf32, #tpu.memory_space<vmem>>, vector<16x512xf32>,
    } else {
    }
    %c0 = arith.constant 0 : index
    %c0_1 = arith.constant 0 : index
    %3 = vector.load %arg7[%c0, %c0_1] : memref<16x512xf32, #tpu.memory_space<vmem>>, vector<16x512xf32>
    %c0_2 = arith.constant 0 : index
    %c0_3 = arith.constant 0 : index
    %4 = vector.load %arg3[%c0_2, %c0_3] : memref<16x256xbf16, #tpu.memory_space<vmem>>, vector<16x256xbf16>
    %c0_4 = arith.constant 0 : index
    %c0_5 = arith.constant 0 : index
    %5 = vector.load %arg4[%c0_4, %c0_5] : memref<256x512xbf16, #tpu.memory_space<vmem>>, vector<256x512xbf16>
    %cst = arith.constant dense<0.000000e+00> : vector<16x512xf32>
    %6 = tpu.matmul %4, %5, %cst {dimension_numbers = #tpu.dot_dimension_numbers<[1], [0], [0], [1], [0, 0, 1, 1], [], []>} : vector<16x256xbf16>, vector<256x512xbf16>, vector<16x512xf32> -> vector<16x512xf32>
    %7 = arith.addf %3, %6 : vector<16x512xf32>
    %c0_6 = arith.constant 0 : index
    %c0_7 = arith.constant 0 : index
    %8 = vector.load %arg7[%c0_6, %c0_7] : memref<16x512xf32, #tpu.memory_space<vmem>>, vector<16x512xf32>
    tpu.vector_store %arg7[%c0_6, %c0_7], %7 {strides = array<i32>} : memref<16x512xf32, #tpu.memory_space<vmem>>, vector<16x512xf32>,
    %c0_i32_8 = arith.constant 0 : i32
    %9 = arith.cmpi eq, %arg2, %c0_i32_8 : i32
    %10 = arith.extui %9 : i1 to i32
    %c0_i32_9 = arith.constant 0 : i32
    %11 = arith.cmpi ne, %10, %c0_i32_9 : i32
    scf.if %11 {
      %c0_10 = arith.constant 0 : index
      %c0_11 = arith.constant 0 : index
      %12 = vector.load %arg7[%c0_10, %c0_11] : memref<16x512xf32, #tpu.memory_space<vmem>>, vector<16x512xf32>
      %13 = arith.truncf %12 : vector<16x512xf32> to vector<16x512xbf16>
      %c0_12 = arith.constant 0 : index
      %c0_13 = arith.constant 0 : index
      %14 = vector.load %arg5[%c0_12, %c0_13] : memref<16x512xbf16, #tpu.memory_space<vmem>>, vector<16x512xbf16>
      tpu.vector_store %arg5[%c0_12, %c0_13], %13 {strides = array<i32>} : memref<16x512xbf16, #tpu.memory_space<vmem>>, vector<16x512xbf16>,
      %cst_14 = arith.constant dense<0.000000e+00> : vector<512xf32>
      %15 = vector.multi_reduction <add>, %12, %cst_14 [0] : vector<16x512xf32> to vector<512xf32>
      %16 = vector.shape_cast %15 : vector<512xf32> to vector<1x512xf32>
      %17 = arith.mulf %12, %12 : vector<16x512xf32>
      %cst_15 = arith.constant dense<0.000000e+00> : vector<512xf32>
      %18 = vector.multi_reduction <add>, %17, %cst_15 [0] : vector<16x512xf32> to vector<512xf32>
      %19 = vector.shape_cast %18 : vector<512xf32> to vector<1x512xf32>
      %20 = tpu.iota {dimensions = array<i32: 0>} : vector<8x512xi32>
      %c0_i32_16 = arith.constant 0 : i32
      %21 = vector.broadcast %c0_i32_16 : i32 to vector<8x512xi32>
      %22 = arith.cmpi eq, %20, %21 : vector<8x512xi32>
      %c1_i32 = arith.constant 1 : i32
      %23 = vector.broadcast %c1_i32 : i32 to vector<8x512xi32>
      %24 = arith.cmpi eq, %20, %23 : vector<8x512xi32>
      %cst_17 = arith.constant 0.000000e+00 : f32
      %25 = vector.shape_cast %19 : vector<1x512xf32> to vector<1x512xf32>
      %26 = vector.broadcast %25 : vector<1x512xf32> to vector<8x512xf32>
      %27 = vector.broadcast %cst_17 : f32 to vector<8x512xf32>
      %28 = arith.select %24, %26, %27 : vector<8x512xi1>, vector<8x512xf32>
      %29 = vector.shape_cast %16 : vector<1x512xf32> to vector<1x512xf32>
      %30 = vector.broadcast %29 : vector<1x512xf32> to vector<8x512xf32>
      %31 = arith.select %22, %30, %28 : vector<8x512xi1>, vector<8x512xf32>
      %c0_18 = arith.constant 0 : index
      %c0_19 = arith.constant 0 : index
      %c0_20 = arith.constant 0 : index
      %32 = vector.load %arg6[%c0_18, %c0_19, %c0_20] : memref<1x8x512xf32, #tpu.memory_space<vmem>>, vector<1x8x512xf32>
      %33 = vector.shape_cast %32 : vector<1x8x512xf32> to vector<8x512xf32>
      %34 = vector.shape_cast %31 : vector<8x512xf32> to vector<1x8x512xf32>
      tpu.vector_store %arg6[%c0_18, %c0_19, %c0_20], %34 {strides = array<i32>} : memref<1x8x512xf32, #tpu.memory_space<vmem>>, vector<1x8x512xf32>,
    } else {
    }
    return
  }
  func.func @transform_0(%arg0: i32, %arg1: i32, %arg2: i32) -> (i32, i32) {
    %c0_i32 = arith.constant 0 : i32
    return %arg0, %arg2 : i32, i32
  }
  func.func @transform_1(%arg0: i32, %arg1: i32, %arg2: i32) -> (i32, i32) {
    %c0_i32 = arith.constant 0 : i32
    return %arg2, %arg1 : i32, i32
  }
  func.func @transform_2(%arg0: i32, %arg1: i32, %arg2: i32) -> (i32, i32) {
    %c0_i32 = arith.constant 0 : i32
    return %arg0, %arg1 : i32, i32
  }
  func.func @transform_3(%arg0: i32, %arg1: i32, %arg2: i32) -> (i32, i32, i32) {
    %c0_i32 = arith.constant 0 : i32
    %c0_i32_0 = arith.constant 0 : i32
    return %arg0, %c0_i32, %arg1 : i32, i32, i32
  }
}

module attributes {stable_mosaic.version = 11 : i64} {
  func.func @_bn_apply_kernel(%arg0: i32, %arg1: memref<16x512xbf16, #tpu.memory_space<vmem>>, %arg2: memref<1x512xf32, #tpu.memory_space<vmem>>, %arg3: memref<1x512xf32, #tpu.memory_space<vmem>>, %arg4: memref<16x512xbf16, #tpu.memory_space<vmem>>) attributes {dimension_semantics = [#tpu.dimension_semantics<parallel>], iteration_bounds = array<i64: 1>, scalar_prefetch = 0 : i64, scratch_operands = 0 : i64, tpu.core_type = #tpu.core_type<tc>, window_params = [{transform_indices = @transform_0, window_bounds = array<i64: 16, 512>}, {pipeline_mode = #tpu.pipeline_mode<synchronous>, transform_indices = @transform_1, window_bounds = array<i64: 1, 512>}, {pipeline_mode = #tpu.pipeline_mode<synchronous>, transform_indices = @transform_2, window_bounds = array<i64: 1, 512>}, {transform_indices = @transform_3, window_bounds = array<i64: 16, 512>}]} {
    %c0 = arith.constant 0 : index
    %c0_0 = arith.constant 0 : index
    %0 = vector.load %arg1[%c0, %c0_0] : memref<16x512xbf16, #tpu.memory_space<vmem>>, vector<16x512xbf16>
    %1 = arith.extf %0 : vector<16x512xbf16> to vector<16x512xf32>
    %c0_1 = arith.constant 0 : index
    %c0_2 = arith.constant 0 : index
    %2 = vector.load %arg2[%c0_1, %c0_2] : memref<1x512xf32, #tpu.memory_space<vmem>>, vector<1x512xf32>
    %3 = vector.broadcast %2 : vector<1x512xf32> to vector<16x512xf32>
    %4 = arith.mulf %1, %3 : vector<16x512xf32>
    %c0_3 = arith.constant 0 : index
    %c0_4 = arith.constant 0 : index
    %5 = vector.load %arg3[%c0_3, %c0_4] : memref<1x512xf32, #tpu.memory_space<vmem>>, vector<1x512xf32>
    %6 = vector.broadcast %5 : vector<1x512xf32> to vector<16x512xf32>
    %7 = arith.addf %4, %6 : vector<16x512xf32>
    %8 = arith.truncf %7 : vector<16x512xf32> to vector<16x512xbf16>
    %c0_5 = arith.constant 0 : index
    %c0_6 = arith.constant 0 : index
    %9 = vector.load %arg4[%c0_5, %c0_6] : memref<16x512xbf16, #tpu.memory_space<vmem>>, vector<16x512xbf16>
    tpu.vector_store %arg4[%c0_5, %c0_6], %8 {strides = array<i32>} : memref<16x512xbf16, #tpu.memory_space<vmem>>, vector<16x512xbf16>,
    return
  }
  func.func @transform_0(%arg0: i32) -> (i32, i32) {
    %c0_i32 = arith.constant 0 : i32
    %c0_i32_0 = arith.constant 0 : i32
    return %arg0, %c0_i32 : i32, i32
  }
  func.func @transform_1(%arg0: i32) -> (i32, i32) {
    %c0_i32 = arith.constant 0 : i32
    %c0_i32_0 = arith.constant 0 : i32
    %c0_i32_1 = arith.constant 0 : i32
    return %c0_i32, %c0_i32_0 : i32, i32
  }
  func.func @transform_2(%arg0: i32) -> (i32, i32) {
    %c0_i32 = arith.constant 0 : i32
    %c0_i32_0 = arith.constant 0 : i32
    %c0_i32_1 = arith.constant 0 : i32
    return %c0_i32, %c0_i32_0 : i32, i32
  }
  func.func @transform_3(%arg0: i32) -> (i32, i32) {
    %c0_i32 = arith.constant 0 : i32
    %c0_i32_0 = arith.constant 0 : i32
    return %arg0, %c0_i32 : i32, i32
  }
}

module attributes {stable_mosaic.version = 11 : i64} {
  func.func @_matmul_stats_kernel(%arg0: i32, %arg1: i32, %arg2: i32, %arg3: memref<16x256xbf16, #tpu.memory_space<vmem>>, %arg4: memref<256x512xbf16, #tpu.memory_space<vmem>>, %arg5: memref<16x512xbf16, #tpu.memory_space<vmem>>, %arg6: memref<1x8x512xf32, #tpu.memory_space<vmem>>, %arg7: memref<16x512xf32, #tpu.memory_space<vmem>>) attributes {dimension_semantics = [#tpu.dimension_semantics<parallel>, #tpu.dimension_semantics<parallel>, #tpu.dimension_semantics<arbitrary>], iteration_bounds = array<i64: 1, 1, 9>, scalar_prefetch = 0 : i64, scratch_operands = 1 : i64, tpu.core_type = #tpu.core_type<tc>, window_params = [{transform_indices = @transform_0, window_bounds = array<i64: 16, 256>}, {transform_indices = @transform_1, window_bounds = array<i64: 256, 512>}, {transform_indices = @transform_2, window_bounds = array<i64: 16, 512>}, {transform_indices = @transform_3, window_bounds = array<i64: 1, 8, 512>}]} {
    %c0_i32 = arith.constant 0 : i32
    %0 = arith.cmpi eq, %arg2, %c0_i32 : i32
    %1 = arith.extui %0 : i1 to i32
    %c0_i32_0 = arith.constant 0 : i32
    %2 = arith.cmpi ne, %1, %c0_i32_0 : i32
    scf.if %2 {
      %cst_9 = arith.constant 0.000000e+00 : f32
      %12 = vector.broadcast %cst_9 : f32 to vector<16x512xf32>
      %c0_10 = arith.constant 0 : index
      %c0_11 = arith.constant 0 : index
      %13 = vector.load %arg7[%c0_10, %c0_11] : memref<16x512xf32, #tpu.memory_space<vmem>>, vector<16x512xf32>
      tpu.vector_store %arg7[%c0_10, %c0_11], %12 {strides = array<i32>} : memref<16x512xf32, #tpu.memory_space<vmem>>, vector<16x512xf32>,
    } else {
    }
    %c0 = arith.constant 0 : index
    %c0_1 = arith.constant 0 : index
    %3 = vector.load %arg7[%c0, %c0_1] : memref<16x512xf32, #tpu.memory_space<vmem>>, vector<16x512xf32>
    %c0_2 = arith.constant 0 : index
    %c0_3 = arith.constant 0 : index
    %4 = vector.load %arg3[%c0_2, %c0_3] : memref<16x256xbf16, #tpu.memory_space<vmem>>, vector<16x256xbf16>
    %c0_4 = arith.constant 0 : index
    %c0_5 = arith.constant 0 : index
    %5 = vector.load %arg4[%c0_4, %c0_5] : memref<256x512xbf16, #tpu.memory_space<vmem>>, vector<256x512xbf16>
    %cst = arith.constant dense<0.000000e+00> : vector<16x512xf32>
    %6 = tpu.matmul %4, %5, %cst {dimension_numbers = #tpu.dot_dimension_numbers<[1], [0], [0], [1], [0, 0, 1, 1], [], []>} : vector<16x256xbf16>, vector<256x512xbf16>, vector<16x512xf32> -> vector<16x512xf32>
    %7 = arith.addf %3, %6 : vector<16x512xf32>
    %c0_6 = arith.constant 0 : index
    %c0_7 = arith.constant 0 : index
    %8 = vector.load %arg7[%c0_6, %c0_7] : memref<16x512xf32, #tpu.memory_space<vmem>>, vector<16x512xf32>
    tpu.vector_store %arg7[%c0_6, %c0_7], %7 {strides = array<i32>} : memref<16x512xf32, #tpu.memory_space<vmem>>, vector<16x512xf32>,
    %c8_i32 = arith.constant 8 : i32
    %9 = arith.cmpi eq, %arg2, %c8_i32 : i32
    %10 = arith.extui %9 : i1 to i32
    %c0_i32_8 = arith.constant 0 : i32
    %11 = arith.cmpi ne, %10, %c0_i32_8 : i32
    scf.if %11 {
      %c0_9 = arith.constant 0 : index
      %c0_10 = arith.constant 0 : index
      %12 = vector.load %arg7[%c0_9, %c0_10] : memref<16x512xf32, #tpu.memory_space<vmem>>, vector<16x512xf32>
      %13 = arith.truncf %12 : vector<16x512xf32> to vector<16x512xbf16>
      %c0_11 = arith.constant 0 : index
      %c0_12 = arith.constant 0 : index
      %14 = vector.load %arg5[%c0_11, %c0_12] : memref<16x512xbf16, #tpu.memory_space<vmem>>, vector<16x512xbf16>
      tpu.vector_store %arg5[%c0_11, %c0_12], %13 {strides = array<i32>} : memref<16x512xbf16, #tpu.memory_space<vmem>>, vector<16x512xbf16>,
      %cst_13 = arith.constant dense<0.000000e+00> : vector<512xf32>
      %15 = vector.multi_reduction <add>, %12, %cst_13 [0] : vector<16x512xf32> to vector<512xf32>
      %16 = vector.shape_cast %15 : vector<512xf32> to vector<1x512xf32>
      %17 = arith.mulf %12, %12 : vector<16x512xf32>
      %cst_14 = arith.constant dense<0.000000e+00> : vector<512xf32>
      %18 = vector.multi_reduction <add>, %17, %cst_14 [0] : vector<16x512xf32> to vector<512xf32>
      %19 = vector.shape_cast %18 : vector<512xf32> to vector<1x512xf32>
      %20 = tpu.iota {dimensions = array<i32: 0>} : vector<8x512xi32>
      %c0_i32_15 = arith.constant 0 : i32
      %21 = vector.broadcast %c0_i32_15 : i32 to vector<8x512xi32>
      %22 = arith.cmpi eq, %20, %21 : vector<8x512xi32>
      %c1_i32 = arith.constant 1 : i32
      %23 = vector.broadcast %c1_i32 : i32 to vector<8x512xi32>
      %24 = arith.cmpi eq, %20, %23 : vector<8x512xi32>
      %cst_16 = arith.constant 0.000000e+00 : f32
      %25 = vector.shape_cast %19 : vector<1x512xf32> to vector<1x512xf32>
      %26 = vector.broadcast %25 : vector<1x512xf32> to vector<8x512xf32>
      %27 = vector.broadcast %cst_16 : f32 to vector<8x512xf32>
      %28 = arith.select %24, %26, %27 : vector<8x512xi1>, vector<8x512xf32>
      %29 = vector.shape_cast %16 : vector<1x512xf32> to vector<1x512xf32>
      %30 = vector.broadcast %29 : vector<1x512xf32> to vector<8x512xf32>
      %31 = arith.select %22, %30, %28 : vector<8x512xi1>, vector<8x512xf32>
      %c0_17 = arith.constant 0 : index
      %c0_18 = arith.constant 0 : index
      %c0_19 = arith.constant 0 : index
      %32 = vector.load %arg6[%c0_17, %c0_18, %c0_19] : memref<1x8x512xf32, #tpu.memory_space<vmem>>, vector<1x8x512xf32>
      %33 = vector.shape_cast %32 : vector<1x8x512xf32> to vector<8x512xf32>
      %34 = vector.shape_cast %31 : vector<8x512xf32> to vector<1x8x512xf32>
      tpu.vector_store %arg6[%c0_17, %c0_18, %c0_19], %34 {strides = array<i32>} : memref<1x8x512xf32, #tpu.memory_space<vmem>>, vector<1x8x512xf32>,
    } else {
    }
    return
  }
  func.func @transform_0(%arg0: i32, %arg1: i32, %arg2: i32) -> (i32, i32) {
    %c0_i32 = arith.constant 0 : i32
    return %arg0, %arg2 : i32, i32
  }
  func.func @transform_1(%arg0: i32, %arg1: i32, %arg2: i32) -> (i32, i32) {
    %c0_i32 = arith.constant 0 : i32
    return %arg2, %arg1 : i32, i32
  }
  func.func @transform_2(%arg0: i32, %arg1: i32, %arg2: i32) -> (i32, i32) {
    %c0_i32 = arith.constant 0 : i32
    return %arg0, %arg1 : i32, i32
  }
  func.func @transform_3(%arg0: i32, %arg1: i32, %arg2: i32) -> (i32, i32, i32) {
    %c0_i32 = arith.constant 0 : i32
    %c0_i32_0 = arith.constant 0 : i32
    return %arg0, %c0_i32, %arg1 : i32, i32, i32
  }
}

module attributes {stable_mosaic.version = 11 : i64} {
  func.func @_bn_apply_kernel(%arg0: i32, %arg1: memref<16x512xbf16, #tpu.memory_space<vmem>>, %arg2: memref<1x512xf32, #tpu.memory_space<vmem>>, %arg3: memref<1x512xf32, #tpu.memory_space<vmem>>, %arg4: memref<16x512xbf16, #tpu.memory_space<vmem>>) attributes {dimension_semantics = [#tpu.dimension_semantics<parallel>], iteration_bounds = array<i64: 1>, scalar_prefetch = 0 : i64, scratch_operands = 0 : i64, tpu.core_type = #tpu.core_type<tc>, window_params = [{transform_indices = @transform_0, window_bounds = array<i64: 16, 512>}, {pipeline_mode = #tpu.pipeline_mode<synchronous>, transform_indices = @transform_1, window_bounds = array<i64: 1, 512>}, {pipeline_mode = #tpu.pipeline_mode<synchronous>, transform_indices = @transform_2, window_bounds = array<i64: 1, 512>}, {transform_indices = @transform_3, window_bounds = array<i64: 16, 512>}]} {
    %c0 = arith.constant 0 : index
    %c0_0 = arith.constant 0 : index
    %0 = vector.load %arg1[%c0, %c0_0] : memref<16x512xbf16, #tpu.memory_space<vmem>>, vector<16x512xbf16>
    %1 = arith.extf %0 : vector<16x512xbf16> to vector<16x512xf32>
    %c0_1 = arith.constant 0 : index
    %c0_2 = arith.constant 0 : index
    %2 = vector.load %arg2[%c0_1, %c0_2] : memref<1x512xf32, #tpu.memory_space<vmem>>, vector<1x512xf32>
    %3 = vector.broadcast %2 : vector<1x512xf32> to vector<16x512xf32>
    %4 = arith.mulf %1, %3 : vector<16x512xf32>
    %c0_3 = arith.constant 0 : index
    %c0_4 = arith.constant 0 : index
    %5 = vector.load %arg3[%c0_3, %c0_4] : memref<1x512xf32, #tpu.memory_space<vmem>>, vector<1x512xf32>
    %6 = vector.broadcast %5 : vector<1x512xf32> to vector<16x512xf32>
    %7 = arith.addf %4, %6 : vector<16x512xf32>
    %cst = arith.constant 0.000000e+00 : f32
    %8 = vector.broadcast %cst : f32 to vector<16x512xf32>
    %9 = arith.maximumf %7, %8 : vector<16x512xf32>
    %10 = arith.truncf %9 : vector<16x512xf32> to vector<16x512xbf16>
    %c0_5 = arith.constant 0 : index
    %c0_6 = arith.constant 0 : index
    %11 = vector.load %arg4[%c0_5, %c0_6] : memref<16x512xbf16, #tpu.memory_space<vmem>>, vector<16x512xbf16>
    tpu.vector_store %arg4[%c0_5, %c0_6], %10 {strides = array<i32>} : memref<16x512xbf16, #tpu.memory_space<vmem>>, vector<16x512xbf16>,
    return
  }
  func.func @transform_0(%arg0: i32) -> (i32, i32) {
    %c0_i32 = arith.constant 0 : i32
    %c0_i32_0 = arith.constant 0 : i32
    return %arg0, %c0_i32 : i32, i32
  }
  func.func @transform_1(%arg0: i32) -> (i32, i32) {
    %c0_i32 = arith.constant 0 : i32
    %c0_i32_0 = arith.constant 0 : i32
    %c0_i32_1 = arith.constant 0 : i32
    return %c0_i32, %c0_i32_0 : i32, i32
  }
  func.func @transform_2(%arg0: i32) -> (i32, i32) {
    %c0_i32 = arith.constant 0 : i32
    %c0_i32_0 = arith.constant 0 : i32
    %c0_i32_1 = arith.constant 0 : i32
    return %c0_i32, %c0_i32_0 : i32, i32
  }
  func.func @transform_3(%arg0: i32) -> (i32, i32) {
    %c0_i32 = arith.constant 0 : i32
    %c0_i32_0 = arith.constant 0 : i32
    return %arg0, %c0_i32 : i32, i32
  }
}

module attributes {stable_mosaic.version = 11 : i64} {
  func.func @_matmul_stats_kernel(%arg0: i32, %arg1: i32, %arg2: i32, %arg3: memref<16x512xbf16, #tpu.memory_space<vmem>>, %arg4: memref<512x512xbf16, #tpu.memory_space<vmem>>, %arg5: memref<16x512xbf16, #tpu.memory_space<vmem>>, %arg6: memref<1x8x512xf32, #tpu.memory_space<vmem>>, %arg7: memref<16x512xf32, #tpu.memory_space<vmem>>) attributes {dimension_semantics = [#tpu.dimension_semantics<parallel>, #tpu.dimension_semantics<parallel>, #tpu.dimension_semantics<arbitrary>], iteration_bounds = array<i64: 1, 1, 9>, scalar_prefetch = 0 : i64, scratch_operands = 1 : i64, tpu.core_type = #tpu.core_type<tc>, window_params = [{transform_indices = @transform_0, window_bounds = array<i64: 16, 512>}, {transform_indices = @transform_1, window_bounds = array<i64: 512, 512>}, {transform_indices = @transform_2, window_bounds = array<i64: 16, 512>}, {transform_indices = @transform_3, window_bounds = array<i64: 1, 8, 512>}]} {
    %c0_i32 = arith.constant 0 : i32
    %0 = arith.cmpi eq, %arg2, %c0_i32 : i32
    %1 = arith.extui %0 : i1 to i32
    %c0_i32_0 = arith.constant 0 : i32
    %2 = arith.cmpi ne, %1, %c0_i32_0 : i32
    scf.if %2 {
      %cst_9 = arith.constant 0.000000e+00 : f32
      %12 = vector.broadcast %cst_9 : f32 to vector<16x512xf32>
      %c0_10 = arith.constant 0 : index
      %c0_11 = arith.constant 0 : index
      %13 = vector.load %arg7[%c0_10, %c0_11] : memref<16x512xf32, #tpu.memory_space<vmem>>, vector<16x512xf32>
      tpu.vector_store %arg7[%c0_10, %c0_11], %12 {strides = array<i32>} : memref<16x512xf32, #tpu.memory_space<vmem>>, vector<16x512xf32>,
    } else {
    }
    %c0 = arith.constant 0 : index
    %c0_1 = arith.constant 0 : index
    %3 = vector.load %arg7[%c0, %c0_1] : memref<16x512xf32, #tpu.memory_space<vmem>>, vector<16x512xf32>
    %c0_2 = arith.constant 0 : index
    %c0_3 = arith.constant 0 : index
    %4 = vector.load %arg3[%c0_2, %c0_3] : memref<16x512xbf16, #tpu.memory_space<vmem>>, vector<16x512xbf16>
    %c0_4 = arith.constant 0 : index
    %c0_5 = arith.constant 0 : index
    %5 = vector.load %arg4[%c0_4, %c0_5] : memref<512x512xbf16, #tpu.memory_space<vmem>>, vector<512x512xbf16>
    %cst = arith.constant dense<0.000000e+00> : vector<16x512xf32>
    %6 = tpu.matmul %4, %5, %cst {dimension_numbers = #tpu.dot_dimension_numbers<[1], [0], [0], [1], [0, 0, 1, 1], [], []>} : vector<16x512xbf16>, vector<512x512xbf16>, vector<16x512xf32> -> vector<16x512xf32>
    %7 = arith.addf %3, %6 : vector<16x512xf32>
    %c0_6 = arith.constant 0 : index
    %c0_7 = arith.constant 0 : index
    %8 = vector.load %arg7[%c0_6, %c0_7] : memref<16x512xf32, #tpu.memory_space<vmem>>, vector<16x512xf32>
    tpu.vector_store %arg7[%c0_6, %c0_7], %7 {strides = array<i32>} : memref<16x512xf32, #tpu.memory_space<vmem>>, vector<16x512xf32>,
    %c8_i32 = arith.constant 8 : i32
    %9 = arith.cmpi eq, %arg2, %c8_i32 : i32
    %10 = arith.extui %9 : i1 to i32
    %c0_i32_8 = arith.constant 0 : i32
    %11 = arith.cmpi ne, %10, %c0_i32_8 : i32
    scf.if %11 {
      %c0_9 = arith.constant 0 : index
      %c0_10 = arith.constant 0 : index
      %12 = vector.load %arg7[%c0_9, %c0_10] : memref<16x512xf32, #tpu.memory_space<vmem>>, vector<16x512xf32>
      %13 = arith.truncf %12 : vector<16x512xf32> to vector<16x512xbf16>
      %c0_11 = arith.constant 0 : index
      %c0_12 = arith.constant 0 : index
      %14 = vector.load %arg5[%c0_11, %c0_12] : memref<16x512xbf16, #tpu.memory_space<vmem>>, vector<16x512xbf16>
      tpu.vector_store %arg5[%c0_11, %c0_12], %13 {strides = array<i32>} : memref<16x512xbf16, #tpu.memory_space<vmem>>, vector<16x512xbf16>,
      %cst_13 = arith.constant dense<0.000000e+00> : vector<512xf32>
      %15 = vector.multi_reduction <add>, %12, %cst_13 [0] : vector<16x512xf32> to vector<512xf32>
      %16 = vector.shape_cast %15 : vector<512xf32> to vector<1x512xf32>
      %17 = arith.mulf %12, %12 : vector<16x512xf32>
      %cst_14 = arith.constant dense<0.000000e+00> : vector<512xf32>
      %18 = vector.multi_reduction <add>, %17, %cst_14 [0] : vector<16x512xf32> to vector<512xf32>
      %19 = vector.shape_cast %18 : vector<512xf32> to vector<1x512xf32>
      %20 = tpu.iota {dimensions = array<i32: 0>} : vector<8x512xi32>
      %c0_i32_15 = arith.constant 0 : i32
      %21 = vector.broadcast %c0_i32_15 : i32 to vector<8x512xi32>
      %22 = arith.cmpi eq, %20, %21 : vector<8x512xi32>
      %c1_i32 = arith.constant 1 : i32
      %23 = vector.broadcast %c1_i32 : i32 to vector<8x512xi32>
      %24 = arith.cmpi eq, %20, %23 : vector<8x512xi32>
      %cst_16 = arith.constant 0.000000e+00 : f32
      %25 = vector.shape_cast %19 : vector<1x512xf32> to vector<1x512xf32>
      %26 = vector.broadcast %25 : vector<1x512xf32> to vector<8x512xf32>
      %27 = vector.broadcast %cst_16 : f32 to vector<8x512xf32>
      %28 = arith.select %24, %26, %27 : vector<8x512xi1>, vector<8x512xf32>
      %29 = vector.shape_cast %16 : vector<1x512xf32> to vector<1x512xf32>
      %30 = vector.broadcast %29 : vector<1x512xf32> to vector<8x512xf32>
      %31 = arith.select %22, %30, %28 : vector<8x512xi1>, vector<8x512xf32>
      %c0_17 = arith.constant 0 : index
      %c0_18 = arith.constant 0 : index
      %c0_19 = arith.constant 0 : index
      %32 = vector.load %arg6[%c0_17, %c0_18, %c0_19] : memref<1x8x512xf32, #tpu.memory_space<vmem>>, vector<1x8x512xf32>
      %33 = vector.shape_cast %32 : vector<1x8x512xf32> to vector<8x512xf32>
      %34 = vector.shape_cast %31 : vector<8x512xf32> to vector<1x8x512xf32>
      tpu.vector_store %arg6[%c0_17, %c0_18, %c0_19], %34 {strides = array<i32>} : memref<1x8x512xf32, #tpu.memory_space<vmem>>, vector<1x8x512xf32>,
    } else {
    }
    return
  }
  func.func @transform_0(%arg0: i32, %arg1: i32, %arg2: i32) -> (i32, i32) {
    %c0_i32 = arith.constant 0 : i32
    return %arg0, %arg2 : i32, i32
  }
  func.func @transform_1(%arg0: i32, %arg1: i32, %arg2: i32) -> (i32, i32) {
    %c0_i32 = arith.constant 0 : i32
    return %arg2, %arg1 : i32, i32
  }
  func.func @transform_2(%arg0: i32, %arg1: i32, %arg2: i32) -> (i32, i32) {
    %c0_i32 = arith.constant 0 : i32
    return %arg0, %arg1 : i32, i32
  }
  func.func @transform_3(%arg0: i32, %arg1: i32, %arg2: i32) -> (i32, i32, i32) {
    %c0_i32 = arith.constant 0 : i32
    %c0_i32_0 = arith.constant 0 : i32
    return %arg0, %c0_i32, %arg1 : i32, i32, i32
  }
}

module attributes {stable_mosaic.version = 11 : i64} {
  func.func @_bn_apply_res_kernel(%arg0: i32, %arg1: memref<16x512xbf16, #tpu.memory_space<vmem>>, %arg2: memref<1x512xf32, #tpu.memory_space<vmem>>, %arg3: memref<1x512xf32, #tpu.memory_space<vmem>>, %arg4: memref<16x512xbf16, #tpu.memory_space<vmem>>, %arg5: memref<16x512xbf16, #tpu.memory_space<vmem>>) attributes {dimension_semantics = [#tpu.dimension_semantics<parallel>], iteration_bounds = array<i64: 1>, scalar_prefetch = 0 : i64, scratch_operands = 0 : i64, tpu.core_type = #tpu.core_type<tc>, window_params = [{transform_indices = @transform_0, window_bounds = array<i64: 16, 512>}, {pipeline_mode = #tpu.pipeline_mode<synchronous>, transform_indices = @transform_1, window_bounds = array<i64: 1, 512>}, {pipeline_mode = #tpu.pipeline_mode<synchronous>, transform_indices = @transform_2, window_bounds = array<i64: 1, 512>}, {transform_indices = @transform_3, window_bounds = array<i64: 16, 512>}, {transform_indices = @transform_4, window_bounds = array<i64: 16, 512>}]} {
    %c0 = arith.constant 0 : index
    %c0_0 = arith.constant 0 : index
    %0 = vector.load %arg1[%c0, %c0_0] : memref<16x512xbf16, #tpu.memory_space<vmem>>, vector<16x512xbf16>
    %1 = arith.extf %0 : vector<16x512xbf16> to vector<16x512xf32>
    %c0_1 = arith.constant 0 : index
    %c0_2 = arith.constant 0 : index
    %2 = vector.load %arg2[%c0_1, %c0_2] : memref<1x512xf32, #tpu.memory_space<vmem>>, vector<1x512xf32>
    %3 = vector.broadcast %2 : vector<1x512xf32> to vector<16x512xf32>
    %4 = arith.mulf %1, %3 : vector<16x512xf32>
    %c0_3 = arith.constant 0 : index
    %c0_4 = arith.constant 0 : index
    %5 = vector.load %arg3[%c0_3, %c0_4] : memref<1x512xf32, #tpu.memory_space<vmem>>, vector<1x512xf32>
    %6 = vector.broadcast %5 : vector<1x512xf32> to vector<16x512xf32>
    %7 = arith.addf %4, %6 : vector<16x512xf32>
    %c0_5 = arith.constant 0 : index
    %c0_6 = arith.constant 0 : index
    %8 = vector.load %arg4[%c0_5, %c0_6] : memref<16x512xbf16, #tpu.memory_space<vmem>>, vector<16x512xbf16>
    %9 = arith.extf %8 : vector<16x512xbf16> to vector<16x512xf32>
    %10 = arith.addf %7, %9 : vector<16x512xf32>
    %cst = arith.constant 0.000000e+00 : f32
    %11 = vector.broadcast %cst : f32 to vector<16x512xf32>
    %12 = arith.maximumf %10, %11 : vector<16x512xf32>
    %13 = arith.truncf %12 : vector<16x512xf32> to vector<16x512xbf16>
    %c0_7 = arith.constant 0 : index
    %c0_8 = arith.constant 0 : index
    %14 = vector.load %arg5[%c0_7, %c0_8] : memref<16x512xbf16, #tpu.memory_space<vmem>>, vector<16x512xbf16>
    tpu.vector_store %arg5[%c0_7, %c0_8], %13 {strides = array<i32>} : memref<16x512xbf16, #tpu.memory_space<vmem>>, vector<16x512xbf16>,
    return
  }
  func.func @transform_0(%arg0: i32) -> (i32, i32) {
    %c0_i32 = arith.constant 0 : i32
    %c0_i32_0 = arith.constant 0 : i32
    return %arg0, %c0_i32 : i32, i32
  }
  func.func @transform_1(%arg0: i32) -> (i32, i32) {
    %c0_i32 = arith.constant 0 : i32
    %c0_i32_0 = arith.constant 0 : i32
    %c0_i32_1 = arith.constant 0 : i32
    return %c0_i32, %c0_i32_0 : i32, i32
  }
  func.func @transform_2(%arg0: i32) -> (i32, i32) {
    %c0_i32 = arith.constant 0 : i32
    %c0_i32_0 = arith.constant 0 : i32
    %c0_i32_1 = arith.constant 0 : i32
    return %c0_i32, %c0_i32_0 : i32, i32
  }
  func.func @transform_3(%arg0: i32) -> (i32, i32) {
    %c0_i32 = arith.constant 0 : i32
    %c0_i32_0 = arith.constant 0 : i32
    return %arg0, %c0_i32 : i32, i32
  }
  func.func @transform_4(%arg0: i32) -> (i32, i32) {
    %c0_i32 = arith.constant 0 : i32
    %c0_i32_0 = arith.constant 0 : i32
    return %arg0, %c0_i32 : i32, i32
  }
}

</mosaic_0001>

<bundles_post_ra>
// kernel: _lambda_.41
= control target key start
LH: loop header
LB: loop body
LE: loop exit
PB: predicated region body
PF: predicated region fallthrough
CT: control target
= control target key end

     0   :  { %s973_s1 = inlined_call_operand.vmem [shape: bf16[256,128], index: 1, kind: input, shape index: {}]   ;;  %s974_s0 = inlined_call_operand.vmem [shape: bf16[128,256], index: 0, kind: input, shape index: {}]   ;;  %s975_s2 = inlined_call_operand.vmem [shape: bf16[128,128], index: 2, kind: output, shape index: {0}]   ;;  %s976_s3 = inlined_call_operand.vmem [shape: f32[1,8,128], index: 3, kind: output, shape index: {1}]  }
   0x1   :  { %v766_v0 = vld [vmem:[%s973_s1 + $0x78] sm:$0xff]   ;;  %v768_v2 = vld [vmem:[%s973_s1 + $0x70] sm:$0xff]   ;;  %v770_v4 = vld [vmem:[%s973_s1 + $0x68] sm:$0xff]  }
   0x2   :  { %v767_v1 = vld [vmem:[%s973_s1 + $0x38] sm:$0xff]   ;;  %686 = vmatprep.subr.bf16.mxu0 %v766_v0  ;;  %750 = vmatprep.subr.bf16.mxu1 %v766_v0  ;;  %v769_v3 = vld [vmem:[%s973_s1 + $0x30] sm:$0xff]   ;;  %v771_v5 = vld [vmem:[%s973_s1 + $0x28] sm:$0xff]  }
   0x3   :  { %687 = vmatpush3.bf16.msra.mxu0 %v767_v1  ;;  %758 = vmatpush3.bf16.msra.mxu1 %v767_v1  ;;  %v772_v6 = vld [vmem:[%s973_s1 + $0x60] sm:$0xff]   ;;  %v774_v8 = vld [vmem:[%s973_s1 + $0x58] sm:$0xff]   ;;  %v776_v10 = vld [vmem:[%s973_s1 + $0x50] sm:$0xff]  }
   0x4   :  { %688 = vmatprep.subr.bf16.mxu0 %v768_v2  ;;  %751 = vmatprep.subr.bf16.mxu1 %v768_v2  ;;  %v773_v7 = vld [vmem:[%s973_s1 + $0x20] sm:$0xff]   ;;  %v775_v9 = vld [vmem:[%s973_s1 + $0x18] sm:$0xff]   ;;  %v777_v12 = vld [vmem:[%s973_s1 + $0x10] sm:$0xff]  }
   0x5   :  { %v784_v11 = vld [vmem:[%s974_s0 + $0x4] ss:$8 sps:$4 sm:$0xff]   ;;  %v782_v18 = vld [vmem:[%s974_s0] ss:$8 sps:$4 sm:$0xff]   ;;  %v785_v20 = vld [vmem:[%s974_s0 + $0x14] ss:$8 sps:$4 sm:$0xff]  }
   0x6   :  { %v790_v13 = vld [vmem:[%s974_s0 + $0x44] ss:$8 sps:$4 sm:$0xff]   ;;  %306 = vmatprep.mubr.bf16.mxu0 %v784_v11  ;;  %v788_v19 = vld [vmem:[%s974_s0 + $0x40] ss:$8 sps:$4 sm:$0xff]   ;;  %v794_v21 = vld [vmem:[%s974_s0 + $0x54] ss:$8 sps:$4 sm:$0xff]  }
   0x7   :  { %689 = vmatpush3.bf16.msra.mxu0 %v769_v3  ;;  %759 = vmatpush3.bf16.msra.mxu1 %v769_v3  ;;  %v778_v14 = vld [vmem:[%s973_s1 + $0x48] sm:$0xff]   ;;  %v780_v16 = vld [vmem:[%s973_s1 + $0x40] sm:$0xff]   ;;  %v787_v22 = vld [vmem:[%s974_s0 + $0x10] ss:$8 sps:$4 sm:$0xff]  }
   0x8   :  { %690 = vmatprep.subr.bf16.mxu0 %v770_v4  ;;  %752 = vmatprep.subr.bf16.mxu1 %v770_v4  ;;  %v779_v15 = vld [vmem:[%s973_s1 + $0x8] sm:$0xff]   ;;  %v781_v17 = vld [vmem:[%s973_s1] sm:$0xff]   ;;  %v796_v23 = vld [vmem:[%s974_s0 + $0x50] ss:$8 sps:$4 sm:$0xff]  }
   0x9   :  { %338 = vmatprep.mubr.bf16.mxu1 %v790_v13  ;;  %v791_v24 = vld [vmem:[%s974_s0 + $0x24] ss:$8 sps:$4 sm:$0xff]   ;;  %v793_v26 = vld [vmem:[%s974_s0 + $0x20] ss:$8 sps:$4 sm:$0xff]   ;;  %v797_v28 = vld [vmem:[%s974_s0 + $0x34] ss:$8 sps:$4 sm:$0xff]  }
   0xa   :  { %v800_v25 = vld [vmem:[%s974_s0 + $0x64] ss:$8 sps:$4 sm:$0xff]   ;;  %v802_v27 = vld [vmem:[%s974_s0 + $0x60] ss:$8 sps:$4 sm:$0xff]   ;;  %v803_v29 = vld [vmem:[%s974_s0 + $0x74] ss:$8 sps:$4 sm:$0xff]  }
   0xb   :  { %691 = vmatpush3.bf16.msra.mxu0 %v771_v5  ;;  %760 = vmatpush3.bf16.msra.mxu1 %v771_v5  ;;  %v799_v30 = vld [vmem:[%s974_s0 + $0x30] ss:$8 sps:$4 sm:$0xff]  }
   0xc   :  { %692 = vmatprep.subr.bf16.mxu0 %v772_v6  ;;  %753 = vmatprep.subr.bf16.mxu1 %v772_v6  ;;  %v805_v31 = vld [vmem:[%s974_s0 + $0x70] ss:$8 sps:$4 sm:$0xff]  }
   0xf   :  { %693 = vmatpush3.bf16.msra.mxu0 %v773_v7  ;;  %761 = vmatpush3.bf16.msra.mxu1 %v773_v7 }
  0x10   :  { %694 = vmatprep.subr.bf16.mxu0 %v774_v8  ;;  %754 = vmatprep.subr.bf16.mxu1 %v774_v8 }
  0x13   :  { %695 = vmatpush3.bf16.msra.mxu0 %v775_v9  ;;  %762 = vmatpush3.bf16.msra.mxu1 %v775_v9 }
  0x14   :  { %696 = vmatprep.subr.bf16.mxu0 %v776_v10  ;;  %755 = vmatprep.subr.bf16.mxu1 %v776_v10 }
  0x17   :  { %697 = vmatpush3.bf16.msra.mxu0 %v777_v12  ;;  %763 = vmatpush3.bf16.msra.mxu1 %v777_v12 }
  0x18   :  { %698 = vmatprep.subr.bf16.mxu0 %v778_v14  ;;  %756 = vmatprep.subr.bf16.mxu1 %v778_v14 }
  0x1b   :  { %699 = vmatpush3.bf16.msra.mxu0 %v779_v15  ;;  %764 = vmatpush3.bf16.msra.mxu1 %v779_v15 }
  0x1c   :  { %700 = vmatprep.subr.bf16.mxu0 %v780_v16  ;;  %757 = vmatprep.subr.bf16.mxu1 %v780_v16 }
  0x1f   :  { %701 = vmatpush3.bf16.msra.mxu0 %v781_v17  ;;  %765 = vmatpush3.bf16.msra.mxu1 %v781_v17 }
  0x22   :  { %307 = vmatmul.mubr.bf16.vlgmr.msra.gmra.mxu0 %v782_v18  ;;  %339 = vmatmul.mubr.bf16.vlgmr.msra.gmra.mxu1 %v788_v19 }
  0x23   :  { %314 = vmatprep.mubr.bf16.mxu0 %v785_v20  ;;  %346 = vmatprep.mubr.bf16.mxu1 %v794_v21 }
  0x2a   :  { %315 = vmatmul.mubr.bf16.gmra.mxu0 %v787_v22  ;;  %347 = vmatmul.mubr.bf16.gmra.mxu1 %v796_v23 }
  0x2b   :  { %322 = vmatprep.mubr.bf16.mxu0 %v791_v24  ;;  %354 = vmatprep.mubr.bf16.mxu1 %v800_v25 }
  0x32   :  { %323 = vmatmul.mubr.bf16.gmra.mxu0 %v793_v26  ;;  %355 = vmatmul.mubr.bf16.gmra.mxu1 %v802_v27 }
  0x33   :  { %330 = vmatprep.mubr.bf16.mxu0 %v797_v28  ;;  %362 = vmatprep.mubr.bf16.mxu1 %v803_v29 }
  0x3a   :  { %331 = vmatmul.mubr.bf16.gmra.mxu0 %v799_v30  ;;  %363 = vmatmul.mubr.bf16.gmra.mxu1 %v805_v31 }
  0xe2   :  { %v702_v32 = vpop.f32.mrf.mxu0  ;;  %v726_v33 = vpop.f32.mrf.mxu1 }
  0xe4   :  { %v703_v34 = vpop.f32.mrf.mxu0  ;;  %v727_v35 = vpop.f32.mrf.mxu1 }
  0xe5   :  { %v922_v38 = vadd.f32 %v727_v35, %v726_v33  ;;  %v704_v41 = vadd.f32 %v703_v34, %v702_v32 }
  0xe6   :  { %v705_v36 = vpop.f32.mrf.mxu0  ;;  %v729_v37 = vpop.f32.mrf.mxu1 }
  0xe7   :  { %v523_v1 = vmul.f32 %v704_v41, %v704_v41 }
  0xe8   :  { %v706_v39 = vpop.f32.mrf.mxu0  ;;  %v730_v40 = vpop.f32.mrf.mxu1 }
  0xe9   :  { %v707_v42 = vadd.f32 %v706_v39, %v705_v36  ;;  %v924_v43 = vadd.f32 %v730_v40, %v729_v37 }
  0xea   :  { %v708_v44 = vpop.f32.mrf.mxu0  ;;  %v732_v45 = vpop.f32.mrf.mxu1 }
  0xeb   :  { %v642_v46 = vpack.c.bf16 %v707_v42, %v704_v41  ;;  %v662_v47 = vpack.c.bf16 %v924_v43, %v922_v38  ;;  %v524_v62 = vmul.f32 %v707_v42, %v707_v42  ;;  %v502_v6 = vadd.f32 %v707_v42, %v704_v41 }
  0xec   :  { %v709_v48 = vpop.f32.mrf.mxu0  ;;  %v733_v49 = vpop.f32.mrf.mxu1 }
  0xed   :  { %643 = vst [vmem:[%s975_s2] sm:$0xff] %v642_v46   ;;  %682 = vst [vmem:[%s975_s2 + $0x20] sm:$0xff] %v662_v47   ;;  %v934_v52 = vadd.f32 %v733_v49, %v732_v45  ;;  %v710_v55 = vadd.f32 %v709_v48, %v708_v44  ;;  %v539_v8 = vadd.f32 %v524_v62, %v523_v1 }
  0xee   :  { %v711_v50 = vpop.f32.mrf.mxu0  ;;  %v735_v51 = vpop.f32.mrf.mxu1  ;;  %v531_v47 = vmul.f32 %v922_v38, %v922_v38 }
  0xef   :  { %v525_v2 = vmul.f32 %v710_v55, %v710_v55  ;;  %v503_v12 = vadd.f32 %v710_v55, %v502_v6 }
  0xf0   :  { %v712_v53 = vpop.f32.mrf.mxu0  ;;  %v736_v54 = vpop.f32.mrf.mxu1 }
  0xf1   :  { %v713_v56 = vadd.f32 %v712_v53, %v711_v50  ;;  %v936_v57 = vadd.f32 %v736_v54, %v735_v51  ;;  %v540_v15 = vadd.f32 %v539_v8, %v525_v2  ;;  %v532_v50 = vmul.f32 %v924_v43, %v924_v43 }
  0xf2   :  { %v714_v58 = vpop.f32.mrf.mxu0  ;;  %v738_v59 = vpop.f32.mrf.mxu1  ;;  %v533_v54 = vmul.f32 %v934_v52, %v934_v52 }
  0xf3   :  { %v647_v60 = vpack.c.bf16 %v713_v56, %v710_v55  ;;  %v667_v61 = vpack.c.bf16 %v936_v57, %v934_v52  ;;  %v526_v9 = vmul.f32 %v713_v56, %v713_v56  ;;  %v504_v19 = vadd.f32 %v713_v56, %v503_v12 }
  0xf4   :  { %v715_v63 = vpop.f32.mrf.mxu0  ;;  %v739_v0 = vpop.f32.mrf.mxu1 }
  0xf5   :  { %679 = vst [vmem:[%s975_s2 + $0x8] sm:$0xff] %v647_v60   ;;  %683 = vst [vmem:[%s975_s2 + $0x28] sm:$0xff] %v667_v61   ;;  %v716_v3 = vadd.f32 %v715_v63, %v714_v58  ;;  %v740_v7 = vadd.f32 %v739_v0, %v738_v59  ;;  %v541_v22 = vadd.f32 %v540_v15, %v526_v9 }
  0xf6   :  { %v717_v4 = vpop.f32.mrf.mxu0  ;;  %v741_v5 = vpop.f32.mrf.mxu1 }
  0xf7   :  { %v527_v16 = vmul.f32 %v716_v3, %v716_v3  ;;  %v505_v26 = vadd.f32 %v716_v3, %v504_v19  ;;  %v535_v60 = vmul.f32 %v740_v7, %v740_v7 }
  0xf8   :  { %v718_v10 = vpop.f32.mrf.mxu0  ;;  %v742_v11 = vpop.f32.mrf.mxu1 }
  0xf9   :  { %v719_v13 = vadd.f32 %v718_v10, %v717_v4  ;;  %v743_v14 = vadd.f32 %v742_v11, %v741_v5  ;;  %v542_v28 = vadd.f32 %v541_v22, %v527_v16  ;;  %v560_v11 = vlaneseq }
  0xfa   :  { %v720_v17 = vpop.f32.mrf.mxu0  ;;  %v744_v18 = vpop.f32.mrf.mxu1 }
  0xfb   :  { %v652_v20 = vpack.c.bf16 %v719_v13, %v716_v3  ;;  %v672_v21 = vpack.c.bf16 %v743_v14, %v740_v7  ;;  %v528_v23 = vmul.f32 %v719_v13, %v719_v13  ;;  %v506_v31 = vadd.f32 %v719_v13, %v505_v26 }
  0xfc   :  { %v721_v24 = vpop.f32.mrf.mxu0  ;;  %v745_v25 = vpop.f32.mrf.mxu1  ;;  %v536_v0 = vmul.f32 %v743_v14, %v743_v14 }
  0xfd   :  { %680 = vst [vmem:[%s975_s2 + $0x10] sm:$0xff] %v652_v20   ;;  %v722_v27 = vadd.f32 %v721_v24, %v720_v17  ;;  %684 = vst [vmem:[%s975_s2 + $0x30] sm:$0xff] %v672_v21   ;;  %v746_v33 = vadd.f32 %v745_v25, %v744_v18  ;;  %v543_v34 = vadd.f32 %v542_v28, %v528_v23 }
  0xfe   :  { %v723_v29 = vpop.f32.mrf.mxu0  ;;  %v747_v30 = vpop.f32.mrf.mxu1 }
  0xff   :  { %v529_v32 = vmul.f32 %v722_v27, %v722_v27  ;;  %v507_v37 = vadd.f32 %v722_v27, %v506_v31  ;;  %v537_v3 = vmul.f32 %v746_v33, %v746_v33 }
 0x100   :  { %v724_v35 = vpop.f32.mrf.mxu0  ;;  %v748_v36 = vpop.f32.mrf.mxu1 }
 0x101   :  { %v725_v39 = vadd.f32 %v724_v35, %v723_v29  ;;  %v749_v40 = vadd.f32 %v748_v36, %v747_v30  ;;  %v544_v41 = vadd.f32 %v543_v34, %v529_v32 }
 0x103   :  { %v657_v42 = vpack.c.bf16 %v725_v39, %v722_v27  ;;  %v508_v44 = vadd.f32 %v725_v39, %v507_v37  ;;  %v530_v45 = vmul.f32 %v725_v39, %v725_v39  ;;  %v677_v46 = vpack.c.bf16 %v749_v40, %v746_v33 }
 0x104   :  { %v538_v6 = vmul.f32 %v749_v40, %v749_v40 }
 0x105   :  { %681 = vst [vmem:[%s975_s2 + $0x18] sm:$0xff] %v657_v42   ;;  %v509_v48 = vadd.f32 %v922_v38, %v508_v44  ;;  %v545_v49 = vadd.f32 %v544_v41, %v530_v45  ;;  %685 = vst [vmem:[%s975_s2 + $0x38] sm:$0xff] %v677_v46   ;;  %v534_v38 = vmul.f32 %v936_v57, %v936_v57 }
 0x107   :  { %v510_v51 = vadd.f32 %v924_v43, %v509_v48  ;;  %v546_v53 = vadd.f32 %v545_v49, %v531_v47 }
 0x109   :  { %v547_v55 = vadd.f32 %v546_v53, %v532_v50  ;;  %v511_v56 = vadd.f32 %v934_v52, %v510_v51 }
 0x10b   :  { %v512_v58 = vadd.f32 %v936_v57, %v511_v56  ;;  %v548_v59 = vadd.f32 %v547_v55, %v533_v54 }
 0x10d   :  { %v513_v61 = vadd.f32 %v740_v7, %v512_v58  ;;  %v549_v62 = vadd.f32 %v548_v59, %v534_v38  ;;  %v561_v7 = vshrl.u32 %v560_v11, 7 }
 0x10f   :  { %v514_v63 = vadd.f32 %v743_v14, %v513_v61  ;;  %v550_v1 = vadd.f32 %v549_v62, %v535_v60  ;;  %vm563_vm0 = vcmp.eq.s32.totalorder %v561_v7, 1  ;;  %vm562_vm1 = vcmp.eq.s32.totalorder %v561_v7, 0 }
 0x111   :  { %v551_v43 = vadd.f32 %v550_v1, %v536_v0  ;;  %v515_v2 = vadd.f32 %v746_v33, %v514_v63 }
 0x113   :  { %v552_v4 = vadd.f32 %v551_v43, %v537_v3  ;;  %v516_v5 = vadd.f32 %v749_v40, %v515_v2 }
 0x115   :  { %v517_v8 = vrot.slane %v516_v5, 4  ;;  %v553_v52 = vadd.f32 %v552_v4, %v538_v6 }
 0x117   :  { %v518_v9 = vadd.f32 %v517_v8, %v516_v5  ;;  %v554_v10 = vrot.slane %v553_v52, 4 }
 0x119   :  { %v519_v12 = vrot.slane %v518_v9, 2  ;;  %v555_v57 = vadd.f32 %v554_v10, %v553_v52 }
 0x11b   :  { %v520_v13 = vadd.f32 %v519_v12, %v518_v9  ;;  %v556_v15 = vrot.slane %v555_v57, 2 }
 0x11d   :  { %v557_v16 = vadd.f32 %v556_v15, %v555_v57  ;;  %v521_v17 = vrot.slane %v520_v13, 1 }
 0x11f   :  { %v558_v14 = vrot.slane %v557_v16, 1  ;;  %v522_v19 = vadd.f32 %v521_v17, %v520_v13 }
 0x121   :  { %v559_v18 = vadd.f32 %v558_v14, %v557_v16 }
 0x123   :  { %v564_v20 = vsel %vm563_vm0, %v559_v18, 0.0 }
 0x124   :  { %v565_v21 = vsel %vm562_vm1, %v522_v19, %v564_v20 }
 0x125   :  { %566 = vst [vmem:[%s976_s3] sm:$0xff] %v565_v21 }

// kernel: _lambda_.42
= control target key start
LH: loop header
LB: loop body
LE: loop exit
PB: predicated region body
PF: predicated region fallthrough
CT: control target
= control target key end

     0   :  { %s422_s0 = inlined_call_operand.vmem [shape: bf16[128,128], index: 0, kind: input, shape index: {}]   ;;  %s423_s1 = inlined_call_operand.vmem [shape: f32[1,128], index: 1, kind: input, shape index: {}]   ;;  %s424_s2 = inlined_call_operand.vmem [shape: f32[1,128], index: 2, kind: input, shape index: {}]   ;;  %s425_s3 = inlined_call_operand.vmem [shape: bf16[128,128], index: 3, kind: output, shape index: {}]  }
   0x1   :  { %v227_v0 = vld [vmem:[%s422_s0] sm:$0xff]   ;;  %v298_v4 = vld [vmem:[%s422_s0 + $0x8] sm:$0xff]   ;;  %v299_v5 = vld [vmem:[%s422_s0 + $0x10] sm:$0xff]  }
   0x2   :  { %v338_v1 = vld [vmem:[%s423_s1] ss:$0 sm:$0xff]  ;;  %v228_v2 = vunpack.c.l.bf16 %v227_v0  ;;  %v229_v3 = vunpack.c.h.bf16 %v227_v0  ;;  %v300_v6 = vld [vmem:[%s422_s0 + $0x18] sm:$0xff]   ;;  %v232_v8 = vunpack.c.l.bf16 %v298_v4  ;;  %v233_v9 = vunpack.c.h.bf16 %v298_v4  ;;  %v302_v33 = vld [vmem:[%s422_s0 + $0x28] sm:$0xff]  }
   0x3   :  { %v352_v7 = vld [vmem:[%s424_s2] ss:$0 sm:$0xff]  ;;  %v236_v10 = vunpack.c.l.bf16 %v299_v5  ;;  %v237_v11 = vunpack.c.h.bf16 %v299_v5  ;;  %v240_v14 = vunpack.c.l.bf16 %v300_v6  ;;  %v241_v15 = vunpack.c.h.bf16 %v300_v6  ;;  %v303_v38 = vld [vmem:[%s422_s0 + $0x30] sm:$0xff]   ;;  %v304_v43 = vld [vmem:[%s422_s0 + $0x38] sm:$0xff]  }
   0x4   :  { %v53_v12 = vmul.f32 %v228_v2, %v338_v1  ;;  %v54_v13 = vmul.f32 %v229_v3, %v338_v1  ;;  %v55_v16 = vmul.f32 %v232_v8, %v338_v1  ;;  %v56_v17 = vmul.f32 %v233_v9, %v338_v1  ;;  %v301_v28 = vld [vmem:[%s422_s0 + $0x20] sm:$0xff]  }
   0x5   :  { %v57_v18 = vmul.f32 %v236_v10, %v338_v1  ;;  %v58_v19 = vmul.f32 %v237_v11, %v338_v1  ;;  %v59_v22 = vmul.f32 %v240_v14, %v338_v1  ;;  %v60_v23 = vmul.f32 %v241_v15, %v338_v1 }
   0x6   :  { %v76_v20 = vadd.f32 %v352_v7, %v53_v12  ;;  %v77_v21 = vadd.f32 %v352_v7, %v54_v13  ;;  %v78_v24 = vadd.f32 %v352_v7, %v55_v16  ;;  %v79_v25 = vadd.f32 %v352_v7, %v56_v17 }
   0x7   :  { %v80_v26 = vadd.f32 %v352_v7, %v57_v18  ;;  %v81_v27 = vadd.f32 %v352_v7, %v58_v19  ;;  %v82_v31 = vadd.f32 %v352_v7, %v59_v22  ;;  %v83_v32 = vadd.f32 %v352_v7, %v60_v23 }
   0x8   :  { %v92_v29 = vmax.f32 %v76_v20, 0.0  ;;  %v93_v30 = vmax.f32 %v77_v21, 0.0  ;;  %v94_v34 = vmax.f32 %v78_v24, 0.0  ;;  %v95_v35 = vmax.f32 %v79_v25, 0.0 }
   0x9   :  { %v96_v36 = vmax.f32 %v80_v26, 0.0  ;;  %v97_v37 = vmax.f32 %v81_v27, 0.0  ;;  %v98_v40 = vmax.f32 %v82_v31, 0.0  ;;  %v99_v41 = vmax.f32 %v83_v32, 0.0 }
   0xa   :  { %v261_v39 = vpack.c.bf16 %v93_v30, %v92_v29  ;;  %v244_v42 = vunpack.c.l.bf16 %v301_v28  ;;  %v266_v44 = vpack.c.bf16 %v95_v35, %v94_v34  ;;  %v245_v46 = vunpack.c.h.bf16 %v301_v28 }
   0xb   :  { %v271_v45 = vpack.c.bf16 %v97_v37, %v96_v36  ;;  %v248_v47 = vunpack.c.l.bf16 %v302_v33  ;;  %v276_v48 = vpack.c.bf16 %v99_v41, %v98_v40  ;;  %v249_v50 = vunpack.c.h.bf16 %v302_v33 }
   0xc   :  { %262 = vst [vmem:[%s425_s3] sm:$0xff] %v261_v39   ;;  %v61_v49 = vmul.f32 %v244_v42, %v338_v1  ;;  %v252_v51 = vunpack.c.l.bf16 %v303_v38  ;;  %305 = vst [vmem:[%s425_s3 + $0x8] sm:$0xff] %v266_v44   ;;  %v62_v52 = vmul.f32 %v245_v46, %v338_v1  ;;  %v253_v54 = vunpack.c.h.bf16 %v303_v38 }
   0xd   :  { %306 = vst [vmem:[%s425_s3 + $0x10] sm:$0xff] %v271_v45   ;;  %v63_v53 = vmul.f32 %v248_v47, %v338_v1  ;;  %v256_v55 = vunpack.c.l.bf16 %v304_v43  ;;  %307 = vst [vmem:[%s425_s3 + $0x18] sm:$0xff] %v276_v48   ;;  %v64_v57 = vmul.f32 %v249_v50, %v338_v1  ;;  %v257_v59 = vunpack.c.h.bf16 %v304_v43 }
   0xe   :  { %v84_v56 = vadd.f32 %v352_v7, %v61_v49  ;;  %v65_v58 = vmul.f32 %v252_v51, %v338_v1  ;;  %v85_v60 = vadd.f32 %v352_v7, %v62_v52  ;;  %v66_v62 = vmul.f32 %v253_v54, %v338_v1 }
   0xf   :  { %v86_v61 = vadd.f32 %v352_v7, %v63_v53  ;;  %v67_v63 = vmul.f32 %v256_v55, %v338_v1  ;;  %v87_v2 = vadd.f32 %v352_v7, %v64_v57  ;;  %v68_v4 = vmul.f32 %v257_v59, %v338_v1 }
  0x10   :  { %v100_v0 = vmax.f32 %v84_v56, 0.0  ;;  %v88_v3 = vadd.f32 %v352_v7, %v65_v58  ;;  %v101_v5 = vmax.f32 %v85_v60, 0.0  ;;  %v89_v8 = vadd.f32 %v352_v7, %v66_v62 }
  0x11   :  { %v102_v6 = vmax.f32 %v86_v61, 0.0  ;;  %v90_v9 = vadd.f32 %v352_v7, %v67_v63  ;;  %v103_v10 = vmax.f32 %v87_v2, 0.0  ;;  %v91_v12 = vadd.f32 %v352_v7, %v68_v4 }
  0x12   :  { %v104_v11 = vmax.f32 %v88_v3, 0.0  ;;  %v281_v13 = vpack.c.bf16 %v101_v5, %v100_v0  ;;  %v105_v14 = vmax.f32 %v89_v8, 0.0 }
  0x13   :  { %v106_v15 = vmax.f32 %v90_v9, 0.0  ;;  %v286_v16 = vpack.c.bf16 %v103_v10, %v102_v6  ;;  %v107_v17 = vmax.f32 %v91_v12, 0.0 }
  0x14   :  { %308 = vst [vmem:[%s425_s3 + $0x20] sm:$0xff] %v281_v13   ;;  %v291_v1 = vpack.c.bf16 %v105_v14, %v104_v11 }
  0x15   :  { %309 = vst [vmem:[%s425_s3 + $0x28] sm:$0xff] %v286_v16   ;;  %v296_v18 = vpack.c.bf16 %v107_v17, %v106_v15 }
  0x16   :  { %310 = vst [vmem:[%s425_s3 + $0x30] sm:$0xff] %v291_v1  }
  0x17   :  { %311 = vst [vmem:[%s425_s3 + $0x38] sm:$0xff] %v296_v18  }

// kernel: _lambda_.43
= control target key start
LH: loop header
LB: loop body
LE: loop exit
PB: predicated region body
PF: predicated region fallthrough
CT: control target
= control target key end

     0   :  { %s631_s21 = smov 0   ;;  %s716_s0 = inlined_call_operand.vmem [shape: bf16[2,5,5,64], index: 0, kind: input, shape index: {}]   ;;  %s717_s1 = inlined_call_operand.vmem [shape: bf16[2,5,5,64], index: 1, kind: input, shape index: {}]   ;;  %s718_s2 = inlined_call_operand.vmem [shape: bf16[2,5,5,64], index: 2, kind: input, shape index: {}]   ;;  %s719_s3 = inlined_call_operand.vmem [shape: bf16[2,5,5,64], index: 3, kind: input, shape index: {}]   ;;  %s720_s4 = inlined_call_operand.vmem [shape: bf16[2,5,4,64], index: 4, kind: input, shape index: {}]   ;;  %s721_s5 = inlined_call_operand.vmem [shape: bf16[2,5,4,64], index: 5, kind: input, shape index: {}]   ;;  %s722_s6 = inlined_call_operand.vmem [shape: bf16[2,4,4,64], index: 6, kind: output, shape index: {}]  }
   0x1 LB: > { %s562_s22 = sadd.s32 4294967295, %s594_s21   ;;  %p566_p0 = scmp.ge.s32.totalorder %s594_s21, 1  ;;  %s594_s21 = sphi %s631_s21, %s16_s21  }
   0x2   : > { %p262_p1 = scmp.lt.s32.totalorder %s594_s21, 3 }
   0x4   : > { %p263_p2 = pnand %p566_p0, %p262_p1 }
   0x5   : > { %p317_p3 = scmp.lt.s32.totalorder (!%p263_p2), %s562_s22, 1 }
   0x6   : > { %266 = sbr.rel (%p263_p2) target bundleno = 42 (0x2a), region = 44 }
   0xb   : > { %s724_s22 = smov (!%p317_p3, %s562_s22), 1  ;;  %vm442_vm0 = vcmask 517120  }
   0xc   : > { %s578_s23 = smul.u32 20, %s724_s22  ;;  %s577_s19 = sshll.u32 %s724_s22, 3 }
   0xd   : > { %s579_s24 = smul.u32 10, %s724_s22 }
   0xe   : > { %s646_s27 = scalar_lea.vmem %s716_s0, %s578_s23  ;;  %s651_s30 = scalar_lea.vmem %s717_s1, %s578_s23 }
   0xf   : > { %s656_s9 = scalar_lea.vmem %s718_s2, %s578_s23  ;;  %s661_s12 = scalar_lea.vmem %s719_s3, %s578_s23  ;;  %v352_v0 = vld [vmem:[%s646_s27] sm:$0x7]  ;;  %v665_v1 = vld [vmem:[%s646_s27 + $0x4] sm:$0x7]  ;;  %v354_v18 = vld [vmem:[%s646_s27 + $0x8] sm:$0x7] }
  0x10   : > { %v362_v2 = vld [vmem:[%s651_s30] sm:$0x7]  ;;  %s671_s15 = scalar_lea.vmem %s720_s4, %s579_s24  ;;  %s676_s18 = scalar_lea.vmem %s721_s5, %s579_s24  ;;  %v357_v3 = vunpack.c.l.bf16 %v352_v0  ;;  %v358_v4 = vunpack.c.l.bf16 %v665_v1  ;;  %v680_v5 = vld [vmem:[%s651_s30 + $0x4] sm:$0x7]  ;;  %v364_v19 = vld [vmem:[%s651_s30 + $0x8] sm:$0x7]  ;;  %v359_v22 = vunpack.c.l.bf16 %v354_v18 }
  0x11   : > { %v367_v6 = vunpack.c.l.bf16 %v362_v2  ;;  %v372_v7 = vld [vmem:[%s656_s9] sm:$0x7]  ;;  %v373_v8 = vld [vmem:[%s656_s9 + $0x4] sm:$0x7]  ;;  %v368_v9 = vunpack.c.l.bf16 %v680_v5  ;;  %v369_v23 = vunpack.c.l.bf16 %v364_v19  ;;  %v374_v24 = vld [vmem:[%s656_s9 + $0x8] sm:$0x7]  ;;  %s351_s24 = scalar_lea.vmem %s722_s6, %s577_s19 }
  0x12   : > { %v380_v10 = vld [vmem:[%s661_s12] sm:$0x7]  ;;  %v376_v13 = vunpack.c.l.bf16 %v372_v7  ;;  %v377_v20 = vunpack.c.l.bf16 %v373_v8  ;;  %v381_v25 = vld [vmem:[%s661_s12 + $0x4] sm:$0x7]  ;;  %v378_v29 = vunpack.c.l.bf16 %v374_v24  ;;  %v355_v32 = vld [vmem:[%s646_s27 + $0xc] sm:$0x7] }
  0x13   : > { %v388_v11 = vld [vmem:[%s671_s15] sm:$0x3]  ;;  %v688_v12 = vld [vmem:[%s671_s15 + $0x2] sm:$0x3]  ;;  %v406_v17 = vmax.f32 %v357_v3, %v367_v6  ;;  %v407_v21 = vmax.f32 %v358_v4, %v368_v9  ;;  %v390_v26 = vld [vmem:[%s671_s15 + $0x4] sm:$0x3]  ;;  %v384_v27 = vunpack.c.l.bf16 %v380_v10  ;;  %v385_v35 = vunpack.c.l.bf16 %v381_v25 }
  0x14   : > { %v393_v14 = vunpack.c.l.bf16 %v388_v11  ;;  %v394_v15 = vunpack.c.l.bf16 %v688_v12  ;;  %v398_v16 = vld [vmem:[%s676_s18] sm:$0x3]  ;;  %v395_v30 = vunpack.c.l.bf16 %v390_v26  ;;  %v399_v31 = vld [vmem:[%s676_s18 + $0x2] sm:$0x3]  ;;  %v365_v33 = vld [vmem:[%s651_s30 + $0xc] sm:$0x7]  ;;  %v408_v36 = vmax.f32 %v359_v22, %v369_v23 }
  0x15   : > { %v360_v37 = vunpack.c.l.bf16 %v355_v32  ;;  %v375_v38 = vld [vmem:[%s656_s9 + $0xc] sm:$0x7]  ;;  %v382_v39 = vld [vmem:[%s661_s12 + $0x8] sm:$0x7]  ;;  %v391_v40 = vld [vmem:[%s671_s15 + $0x6] sm:$0x3]  ;;  %v402_v41 = vunpack.c.l.bf16 %v398_v16  ;;  %v403_v43 = vunpack.c.l.bf16 %v399_v31  ;;  %v370_v44 = vunpack.c.l.bf16 %v365_v33 }
  0x16   : > { %v410_v28 = vmax.f32 %v406_v17, %v393_v14  ;;  %v411_v34 = vmax.f32 %v407_v21, %v394_v15  ;;  %v400_v45 = vld [vmem:[%s676_s18 + $0x4] sm:$0x3]  ;;  %v412_v47 = vmax.f32 %v408_v36, %v395_v30  ;;  %v386_v48 = vunpack.c.l.bf16 %v382_v39  ;;  %v383_v50 = vld [vmem:[%s661_s12 + $0xc] sm:$0x7]  ;;  %v401_v57 = vld [vmem:[%s676_s18 + $0x6] sm:$0x3] }
  0x17   : > { %v396_v49 = vunpack.c.l.bf16 %v391_v40  ;;  %v379_v52 = vunpack.c.l.bf16 %v375_v38  ;;  %v409_v53 = vmax.f32 %v360_v37, %v370_v44  ;;  %v404_v56 = vunpack.c.l.bf16 %v400_v45  ;;  %v356_v63 = vld [vmem:[%s646_s27 + $0x10] sm:$0x7] }
  0x18   : > { %v414_v42 = vmax.f32 %v410_v28, %v376_v13  ;;  %v415_v46 = vmax.f32 %v411_v34, %v377_v20  ;;  %v416_v54 = vmax.f32 %v412_v47, %v378_v29  ;;  %v387_v60 = vunpack.c.l.bf16 %v383_v50  ;;  %v366_v6 = vld [vmem:[%s651_s30 + $0x10] sm:$0x7]  ;;  %v392_v13 = vld [vmem:[%s671_s15 + $0x8] sm:$0x3] }
  0x19   : > { %v413_v59 = vmax.f32 %v409_v53, %v396_v49  ;;  %v405_v2 = vunpack.c.l.bf16 %v401_v57  ;;  %v361_v8 = vunpack.c.l.bf16 %v356_v63  ;;  %v371_v16 = vunpack.c.l.bf16 %v366_v6 }
  0x1a   : > { %v418_v51 = vmax.f32 %v414_v42, %v384_v27  ;;  %v419_v55 = vmax.f32 %v415_v46, %v385_v35  ;;  %v420_v62 = vmax.f32 %v416_v54, %v386_v48  ;;  %v397_v20 = vunpack.c.l.bf16 %v392_v13 }
  0x1b   : > { %v417_v1 = vmax.f32 %v413_v59, %v379_v52 }
  0x1c   : > { %v422_v58 = vmax.f32 %v418_v51, %v402_v41  ;;  %v423_v61 = vmax.f32 %v419_v55, %v403_v43  ;;  %v424_v5 = vmax.f32 %v420_v62, %v404_v56 }
  0x1d   : > { %v421_v10 = vmax.f32 %v417_v1, %v387_v60 }
  0x1e   : > { %v426_v0 = vmax.f32 %v422_v58, %v358_v4  ;;  %v427_v3 = vmax.f32 %v423_v61, %v359_v22  ;;  %v428_v12 = vmax.f32 %v424_v5, %v360_v37 }
  0x1f   : > { %v425_v17 = vmax.f32 %v421_v10, %v405_v2 }
  0x20   : > { %v430_v7 = vmax.f32 %v426_v0, %v368_v9  ;;  %v431_v11 = vmax.f32 %v427_v3, %v369_v23  ;;  %v432_v18 = vmax.f32 %v428_v12, %v370_v44 }
  0x21   : > { %v429_v21 = vmax.f32 %v425_v17, %v361_v8 }
  0x22   : > { %v434_v14 = vmax.f32 %v430_v7, %v394_v15  ;;  %v435_v4 = vmax.f32 %v431_v11, %v395_v30  ;;  %v436_v9 = vmax.f32 %v432_v18, %v396_v49 }
  0x23   : > { %v433_v24 = vmax.f32 %v429_v21, %v371_v16 }
  0x24   : > { %v438_v19 = vpack.c.bf16 %v434_v14, %v434_v14  ;;  %v439_v22 = vpack.c.bf16 %v435_v4, %v435_v4  ;;  %v440_v23 = vpack.c.bf16 %v436_v9, %v436_v9 }
  0x25   : > { %v437_v25 = vmax.f32 %v433_v24, %v397_v20 }
  0x26   : > { %443 = vst.msk [vmem:[%s351_s24] sm:$0x3] %vm442_vm0, %v438_v19  ;;  %444 = vst.msk [vmem:[%s351_s24 + $0x2] sm:$0x3] %vm442_vm0, %v439_v22 }
  0x27   : > { %445 = vst.msk [vmem:[%s351_s24 + $0x4] sm:$0x3] %vm442_vm0, %v440_v23  ;;  %v441_v15 = vpack.c.bf16 %v437_v25, %v437_v25 }
  0x29   : > { %446 = vst.msk [vmem:[%s351_s24 + $0x6] sm:$0x3] %vm442_vm0, %v441_v15 }
  0x2a PF: > { %s16_s21 = sadd.s32 1, %s594_s21  }
  0x2b   : > { %p13_p4 = scmp.ge.s32.totalorder %s16_s21, 4  }
  0x2d   :  { %15 = sbr.rel (!%p13_p4) target bundleno = 1 (0x1), region = 89 }

// kernel: _lambda_.45
= control target key start
LH: loop header
LB: loop body
LE: loop exit
PB: predicated region body
PF: predicated region fallthrough
CT: control target
= control target key end

     0   :  { %s140_s0 = inlined_call_operand.vmem [shape: bf16[32,128], index: 0, kind: input, shape index: {}]   ;;  %s141_s1 = inlined_call_operand.vmem [shape: f32[1,128], index: 1, kind: input, shape index: {}]   ;;  %s142_s2 = inlined_call_operand.vmem [shape: f32[1,128], index: 2, kind: input, shape index: {}]   ;;  %s143_s3 = inlined_call_operand.vmem [shape: bf16[32,128], index: 3, kind: output, shape index: {}]  }
   0x1   :  { %v83_v0 = vld [vmem:[%s140_s0] sm:$0xff]   ;;  %v100_v4 = vld [vmem:[%s140_s0 + $0x8] sm:$0xff]  }
   0x2   :  { %v72_v1 = vld [vmem:[%s141_s1] ss:$0 sm:$0xff]  ;;  %v84_v2 = vunpack.c.l.bf16 %v83_v0  ;;  %v85_v3 = vunpack.c.h.bf16 %v83_v0  ;;  %v88_v6 = vunpack.c.l.bf16 %v100_v4  ;;  %v89_v7 = vunpack.c.h.bf16 %v100_v4 }
   0x3   :  { %v73_v5 = vld [vmem:[%s142_s2] ss:$0 sm:$0xff] }
   0x4   :  { %v29_v8 = vmul.f32 %v84_v2, %v72_v1  ;;  %v30_v9 = vmul.f32 %v85_v3, %v72_v1  ;;  %v31_v10 = vmul.f32 %v88_v6, %v72_v1  ;;  %v32_v11 = vmul.f32 %v89_v7, %v72_v1 }
   0x6   :  { %v40_v12 = vadd.f32 %v73_v5, %v29_v8  ;;  %v41_v13 = vadd.f32 %v73_v5, %v30_v9  ;;  %v42_v14 = vadd.f32 %v73_v5, %v31_v10  ;;  %v43_v15 = vadd.f32 %v73_v5, %v32_v11 }
   0x8   :  { %v44_v16 = vmax.f32 %v40_v12, 0.0  ;;  %v45_v17 = vmax.f32 %v41_v13, 0.0  ;;  %v46_v18 = vmax.f32 %v42_v14, 0.0  ;;  %v47_v19 = vmax.f32 %v43_v15, 0.0 }
   0xa   :  { %v93_v20 = vpack.c.bf16 %v45_v17, %v44_v16  ;;  %v98_v21 = vpack.c.bf16 %v47_v19, %v46_v18 }
   0xc   :  { %94 = vst [vmem:[%s143_s3] sm:$0xff] %v93_v20   ;;  %101 = vst [vmem:[%s143_s3 + $0x8] sm:$0xff] %v98_v21  }

// kernel: _lambda_.44
= control target key start
LH: loop header
LB: loop body
LE: loop exit
PB: predicated region body
PF: predicated region fallthrough
CT: control target
= control target key end

     0   :  { %s842_s12 = smov 0   ;;  %s844_s13 = smov 0   ;;  %s935_s0 = inlined_call_operand.vmem [shape: bf16[32,640], index: 0, kind: input, shape index: {}]   ;;  %s936_s1 = inlined_call_operand.vmem [shape: bf16[640,128], index: 1, kind: input, shape index: {}]   ;;  %s937_s2 = inlined_call_operand.vmem [shape: bf16[32,128], index: 2, kind: output, shape index: {0}]   ;;  %s938_s3 = inlined_call_operand.vmem [shape: f32[1,8,128], index: 3, kind: output, shape index: {1}]  }
   0x1   :  { %s846_s14 = smov 0   ;;  %s848_s15 = smov 0  }
   0x2   :  { %s850_s16 = smov 0  }
   0x3 LB: > { %s26_s17 = sadd.s32 1, %s815_s15  ;;  %p49_p1 = scmp.ne.s32.totalorder %s807_s13, %s803_s12  ;;  %s819_s16 = sphi %s850_s16, %s14_s16   ;;  %s815_s15 = sphi %s848_s15, %s942_s15   ;;  %s811_s14 = sphi %s846_s14, %s941_s14   ;;  %s807_s13 = sphi %s844_s13, %s940_s13   ;;  %s803_s12 = sphi %s842_s12, %s939_s12  }
   0x4   : > { %p27_p0 = scmp.ge.s32.totalorder %s26_s17, 5  ;;  %p50_p2 = scmp.eq.s32.totalorder %s819_s16, 0 }
   0x5   : > { %s42_s19 = sadd.s32 1, %s807_s13  ;;  %p657_p5 = scmp.ge.s32.totalorder %s819_s16, 5 }
   0x6   : > { %s944_s17 = smov (%p27_p0, %s26_s17), 0  ;;  %p51_p3 = por %p50_p2, %p49_p1 }
   0x7   : > { %s38_s18 = ssub.s32 %s815_s15, %s944_s17  ;;  %159 = sbr.rel (%p657_p5) target bundleno = 18 (0x12), region = 16 }
   0x8   : > { %p40_p4 = scmp.eq.s32.totalorder %s38_s18, 0 }
   0xa   : > { %s877_s20 = scalar_select %p40_p4, %s807_s13, %s42_s19  }
   0xc   : > { %162 = sbr.rel (!%p51_p3) target bundleno = 18 (0x12), region = 20  ;;  %s164_s21 = sand.u32 (%p51_p3), 1, %s807_s13  }
   0xd   : > { %s659_s22 = sshll.u32 (%p51_p3), %s815_s15, 2  ;;  %s658_s23 = sshll.u32 (%p51_p3), %s164_s21, 4 }
   0xe   : > { %s171_s26 = scalar_lea.vmem (%p51_p3), %s935_s0, %s659_s22  ;;  %s166_s27 = scalar_lea.vmem (%p51_p3), [#allocation3], %s658_s23 }
   0xf   : > { %v188_v0 = vld [vmem:[%s171_s26] sm:$0xf] (%p51_p3)  ;;  %v190_v1 = vld [vmem:[%s171_s26 + $0x14] sm:$0xf] (%p51_p3)  ;;  %v192_v2 = vld [vmem:[%s171_s26 + $0x28] sm:$0xf] (%p51_p3) }
  0x10   : > { %189 = vst [vmem:[%s166_s27] sm:$0xf] (%p51_p3), %v188_v0  ;;  %191 = vst [vmem:[%s166_s27 + $0x4] sm:$0xf] (%p51_p3), %v190_v1  ;;  %v194_v3 = vld [vmem:[%s171_s26 + $0x3c] sm:$0xf] (%p51_p3) }
  0x11   : > { %193 = vst [vmem:[%s166_s27 + $0x8] sm:$0xf] %v192_v2  ;;  %195 = vst [vmem:[%s166_s27 + $0xc] sm:$0xf] %v194_v3 }
  0x12 PF: > { %p660_p6 = scmp.ge.s32.totalorder %s819_s16, 1  ;;  %p238_p7 = scmp.lt.s32.totalorder %s819_s16, 6 }
  0x14   : > { %p239_p8 = pnand %p660_p6, %p238_p7 }
  0x15   : > { %s245_s28 = sand.u32 (!%p239_p8), 1, %s803_s12   ;;  %s662_s29 = sshll.u32 (!%p239_p8), %s811_s14, 4 }
  0x16   : > { %242 = sbr.rel (%p239_p8) target bundleno = 300 (0x12c), region = 65  ;;  %s889_s30 = sshll.u32 (!%p239_p8), %s245_s28, 4 }
  0x17   : > { %p288_p9 = scmp.lt.s32.totalorder (!%p239_p8), %s662_s29, 79  ;;  %s247_s8 = scalar_lea.vmem (!%p239_p8), [#allocation3], %s889_s30 }
  0x18   : > { %p664_p10 = scmp.ne.s32.totalorder (!%p239_p8), %s811_s14, 0 }
  0x1b   : > { %s946_s29 = smov (!%p288_p9, %s662_s29), 79  ;;  %316 = sbr.rel (%p664_p10) target bundleno = 35 (0x23), region = 73 }
  0x1c   : > { %s663_s4 = sshll.u32 %s946_s29, 2 }
  0x1d   : > { %s894_s7 = scalar_lea.vmem %s936_s1, %s663_s4 }
  0x20   : > { %v821_v4 = vmov 0.0  }
  0x21   : > { %317 = vst [vmem:[#allocation2 + $0x10] sm:$0xff] %v821_v4  ;;  %318 = vst [vmem:[#allocation2] sm:$0xff] %v821_v4 }
  0x22   : > { %319 = vst [vmem:[#allocation2 + $0x18] sm:$0xff] %v821_v4  ;;  %320 = vst [vmem:[#allocation2 + $0x8] sm:$0xff] %v821_v4 }
  0x23 PF: > { %v771_v5 = vld [vmem:[%s894_s7 + $0x38] sm:$0xff]   ;;  %v772_v6 = vld [vmem:[%s894_s7 + $0x30] sm:$0xff]   ;;  %v773_v7 = vld [vmem:[%s894_s7 + $0x28] sm:$0xff]   ;;  %p675_p11 = scmp.ne.s32.totalorder %s811_s14, 4 }
  0x24   : > { %710 = vmatprep.subr.bf16.mxu0 %v771_v5  ;;  %v774_v8 = vld [vmem:[%s894_s7 + $0x20] sm:$0xff]   ;;  %v775_v10 = vld [vmem:[%s894_s7 + $0x18] sm:$0xff]   ;;  %v776_v11 = vld [vmem:[%s894_s7 + $0x10] sm:$0xff]  }
  0x25   : > { %711 = vmatpush3.bf16.msra.mxu0 %v771_v5  ;;  %v779_v9 = vld [vmem:[%s247_s8] sm:$0xff]   ;;  %v777_v12 = vld [vmem:[%s894_s7 + $0x8] sm:$0xff]  }
  0x26   : > { %712 = vmatprep.subr.bf16.mxu0 %v772_v6  ;;  %726 = vmatprep.mubr.bf16.mxu0 %v779_v9  ;;  %v778_v13 = vld [vmem:[%s894_s7] sm:$0xff]   ;;  %v780_v14 = vld [vmem:[%s247_s8 + $0x8] sm:$0xff]  }
  0x28   : > { %v321_v17 = vld [vmem:[#allocation2 + $0x10] sm:$0xff]  ;;  %v322_v23 = vld [vmem:[#allocation2] sm:$0xff] }
  0x29   : > { %713 = vmatpush3.bf16.msra.mxu0 %v772_v6  ;;  %v323_v15 = vld [vmem:[#allocation2 + $0x18] sm:$0xff]  ;;  %v324_v20 = vld [vmem:[#allocation2 + $0x8] sm:$0xff] }
  0x2a   : > { %714 = vmatprep.subr.bf16.mxu0 %v773_v7 }
  0x2d   : > { %715 = vmatpush3.bf16.msra.mxu0 %v773_v7 }
  0x2e   : > { %716 = vmatprep.subr.bf16.mxu0 %v774_v8 }
  0x31   : > { %717 = vmatpush3.bf16.msra.mxu0 %v774_v8 }
  0x32   : > { %718 = vmatprep.subr.bf16.mxu0 %v775_v10 }
  0x35   : > { %719 = vmatpush3.bf16.msra.mxu0 %v775_v10 }
  0x36   : > { %720 = vmatprep.subr.bf16.mxu0 %v776_v11 }
  0x39   : > { %721 = vmatpush3.bf16.msra.mxu0 %v776_v11 }
  0x3a   : > { %722 = vmatprep.subr.bf16.mxu0 %v777_v12 }
  0x3d   : > { %723 = vmatpush3.bf16.msra.mxu0 %v777_v12 }
  0x3e   : > { %724 = vmatprep.subr.bf16.mxu0 %v778_v13 }
  0x41   : > { %725 = vmatpush3.bf16.msra.mxu0 %v778_v13 }
  0x44   : > { %727 = vmatmul.mubr.bf16.vlgmr.msra.gmra.mxu0 %v780_v14 }
 0x104   : > { %v728_v16 = vpop.f32.mrf.mxu0 }
 0x105   : > { %v456_v18 = vadd.f32 %v728_v16, %v323_v15 }
 0x106   : > { %v439_v19 = vpop.f32.mrf.mxu0 }
 0x107   : > { %460 = vst [vmem:[#allocation2 + $0x18] sm:$0xff] %v456_v18  ;;  %v454_v21 = vadd.f32 %v439_v19, %v321_v17 }
 0x108   : > { %v729_v22 = vpop.f32.mrf.mxu0 }
 0x109   : > { %458 = vst [vmem:[#allocation2 + $0x10] sm:$0xff] %v454_v21  ;;  %v457_v24 = vadd.f32 %v729_v22, %v324_v20  ;;  %465 = sbr.rel (%p675_p11) target bundleno = 300 (0x12c), region = 77 }
 0x10a   : > { %v442_v25 = vpop.f32.mrf.mxu0 }
 0x10b   : > { %461 = vst [vmem:[#allocation2 + $0x8] sm:$0xff] %v457_v24  ;;  %v455_v26 = vadd.f32 %v442_v25, %v322_v23 }
 0x10d   : > { %459 = vst [vmem:[#allocation2] sm:$0xff] %v455_v26 }
 0x10e   : > { %v468_v29 = vld [vmem:[#allocation2 + $0x18] sm:$0xff]  ;;  %v512_v46 = vlaneseq }
 0x10f   : > { %v501_v36 = vmul.f32 %v468_v29, %v468_v29 }
 0x110   : > { %v466_v27 = vld [vmem:[#allocation2 + $0x10] sm:$0xff]  ;;  %v513_v51 = vshrl.u32 %v512_v46, 7 }
 0x111   : > { %v499_v32 = vmul.f32 %v466_v27, %v466_v27 }
 0x112   : > { %v469_v34 = vld [vmem:[#allocation2 + $0x8] sm:$0xff]  ;;  %vm515_vm0 = vcmp.eq.s32.totalorder %v513_v51, 1  ;;  %vm514_vm1 = vcmp.eq.s32.totalorder %v513_v51, 0 }
 0x113   : > { %v697_v35 = vpack.c.bf16 %v469_v34, %v468_v29  ;;  %v502_v39 = vmul.f32 %v469_v34, %v469_v34 }
 0x114   : > { %v467_v28 = vld [vmem:[#allocation2] sm:$0xff] }
 0x115   : > { %v692_v30 = vpack.c.bf16 %v467_v28, %v466_v27  ;;  %v490_v31 = vadd.f32 %v467_v28, %v466_v27  ;;  %v500_v33 = vmul.f32 %v467_v28, %v467_v28  ;;  %699 = vst [vmem:[%s937_s2 + $0x8] sm:$0xff] %v697_v35  }
 0x117   : > { %693 = vst [vmem:[%s937_s2] sm:$0xff] %v692_v30   ;;  %v503_v37 = vadd.f32 %v500_v33, %v499_v32  ;;  %v491_v38 = vadd.f32 %v490_v31, %v468_v29 }
 0x119   : > { %v492_v40 = vadd.f32 %v491_v38, %v469_v34  ;;  %v504_v41 = vadd.f32 %v503_v37, %v501_v36 }
 0x11b   : > { %v493_v42 = vrot.slane %v492_v40, 4  ;;  %v505_v43 = vadd.f32 %v504_v41, %v502_v39 }
 0x11d   : > { %v494_v44 = vadd.f32 %v493_v42, %v492_v40  ;;  %v506_v45 = vrot.slane %v505_v43, 4 }
 0x11f   : > { %v495_v47 = vrot.slane %v494_v44, 2  ;;  %v507_v48 = vadd.f32 %v506_v45, %v505_v43 }
 0x121   : > { %v496_v49 = vadd.f32 %v495_v47, %v494_v44  ;;  %v508_v50 = vrot.slane %v507_v48, 2 }
 0x123   : > { %v497_v52 = vrot.slane %v496_v49, 1  ;;  %v509_v53 = vadd.f32 %v508_v50, %v507_v48 }
 0x125   : > { %v510_v54 = vrot.slane %v509_v53, 1  ;;  %v498_v55 = vadd.f32 %v497_v52, %v496_v49 }
 0x127   : > { %v511_v56 = vadd.f32 %v510_v54, %v509_v53 }
 0x129   : > { %v516_v57 = vsel %vm515_vm0, %v511_v56, 0.0 }
 0x12a   : > { %v517_v58 = vsel %vm514_vm1, %v498_v55, %v516_v57 }
 0x12b   : > { %518 = vst [vmem:[%s938_s3] sm:$0xff] %v517_v58 }
 0x12c PF: > { %s14_s16 = sadd.s32 1, %s819_s16   ;;  %s939_s12 = smov %s807_s13 }
 0x12d   : > { %p11_p12 = scmp.ge.s32.totalorder %s14_s16, 7   ;;  %s940_s13 = smov %s877_s20 }
 0x12e   : > { %s941_s14 = smov %s815_s15  ;;  %s942_s15 = smov %s944_s17 }
 0x12f   :  { %13 = sbr.rel (!%p11_p12) target bundleno = 3 (0x3), region = 127 }

// kernel: _lambda_.47
= control target key start
LH: loop header
LB: loop body
LE: loop exit
PB: predicated region body
PF: predicated region fallthrough
CT: control target
= control target key end

     0   :  { %s175_s0 = inlined_call_operand.vmem [shape: bf16[32,128], index: 0, kind: input, shape index: {}]   ;;  %s176_s1 = inlined_call_operand.vmem [shape: f32[1,128], index: 1, kind: input, shape index: {}]   ;;  %s177_s2 = inlined_call_operand.vmem [shape: f32[1,128], index: 2, kind: input, shape index: {}]   ;;  %s178_s3 = inlined_call_operand.vmem [shape: bf16[32,128], index: 3, kind: input, shape index: {}]   ;;  %s179_s4 = inlined_call_operand.vmem [shape: bf16[32,128], index: 4, kind: output, shape index: {}]  }
   0x1   :  { %v98_v0 = vld [vmem:[%s175_s0] sm:$0xff]   ;;  %v123_v5 = vld [vmem:[%s175_s0 + $0x8] sm:$0xff]  }
   0x2   :  { %v87_v1 = vld [vmem:[%s176_s1] ss:$0 sm:$0xff]  ;;  %v99_v2 = vunpack.c.l.bf16 %v98_v0  ;;  %v100_v3 = vunpack.c.h.bf16 %v98_v0  ;;  %v124_v6 = vld [vmem:[%s178_s3 + $0x8] sm:$0xff]   ;;  %v103_v8 = vunpack.c.l.bf16 %v123_v5  ;;  %v104_v9 = vunpack.c.h.bf16 %v123_v5 }
   0x3   :  { %v106_v4 = vld [vmem:[%s178_s3] sm:$0xff]   ;;  %v111_v16 = vunpack.c.l.bf16 %v124_v6  ;;  %v112_v17 = vunpack.c.h.bf16 %v124_v6 }
   0x4   :  { %v88_v7 = vld [vmem:[%s177_s2] ss:$0 sm:$0xff]  ;;  %v32_v10 = vmul.f32 %v99_v2, %v87_v1  ;;  %v33_v11 = vmul.f32 %v100_v3, %v87_v1  ;;  %v107_v12 = vunpack.c.l.bf16 %v106_v4  ;;  %v108_v13 = vunpack.c.h.bf16 %v106_v4 }
   0x5   :  { %v34_v14 = vmul.f32 %v103_v8, %v87_v1  ;;  %v35_v15 = vmul.f32 %v104_v9, %v87_v1 }
   0x6   :  { %v43_v18 = vadd.f32 %v88_v7, %v32_v10  ;;  %v44_v19 = vadd.f32 %v88_v7, %v33_v11 }
   0x7   :  { %v45_v20 = vadd.f32 %v88_v7, %v34_v14  ;;  %v46_v21 = vadd.f32 %v88_v7, %v35_v15 }
   0x8   :  { %v55_v22 = vadd.f32 %v107_v12, %v43_v18  ;;  %v56_v23 = vadd.f32 %v108_v13, %v44_v19 }
   0x9   :  { %v57_v24 = vadd.f32 %v111_v16, %v45_v20  ;;  %v58_v25 = vadd.f32 %v112_v17, %v46_v21 }
   0xa   :  { %v59_v26 = vmax.f32 %v55_v22, 0.0  ;;  %v60_v27 = vmax.f32 %v56_v23, 0.0 }
   0xb   :  { %v61_v28 = vmax.f32 %v57_v24, 0.0  ;;  %v62_v29 = vmax.f32 %v58_v25, 0.0 }
   0xc   :  { %v116_v30 = vpack.c.bf16 %v60_v27, %v59_v26 }
   0xd   :  { %v121_v31 = vpack.c.bf16 %v62_v29, %v61_v28 }
   0xe   :  { %117 = vst [vmem:[%s179_s4] sm:$0xff] %v116_v30  }
   0xf   :  { %125 = vst [vmem:[%s179_s4 + $0x8] sm:$0xff] %v121_v31  }

// kernel: _lambda_.52
= control target key start
LH: loop header
LB: loop body
LE: loop exit
PB: predicated region body
PF: predicated region fallthrough
CT: control target
= control target key end

     0   :  { %v243_v0 = vmov 0.0   ;;  %vm244_vm0 = vmmov 0   ;;  %v170_v22 = vlaneseq  ;;  %s298_s1 = inlined_call_operand.vmem [shape: bf16[128,128], index: 1, kind: input, shape index: {}]   ;;  %s299_s0 = inlined_call_operand.vmem [shape: bf16[16,128], index: 0, kind: input, shape index: {}]   ;;  %s300_s2 = inlined_call_operand.vmem [shape: bf16[16,128], index: 2, kind: output, shape index: {0}]   ;;  %s301_s3 = inlined_call_operand.vmem [shape: f32[1,8,128], index: 3, kind: output, shape index: {1}]  }
   0x1   :  { %212 = vmatprep.subr.bf16.mxu0 %v243_v0  ;;  %v234_v1 = vld [vmem:[%s298_s1 + $0x38] sm:$0xff]   ;;  %228 = vmatprep.mubr.msk.bf16.mxu0 %vm244_vm0, %v243_v0  ;;  %v235_v2 = vld [vmem:[%s298_s1 + $0x30] sm:$0xff]   ;;  %v236_v3 = vld [vmem:[%s298_s1 + $0x28] sm:$0xff]  }
   0x2   :  { %213 = vmatpush3.bf16.msra.mxu0 %v234_v1  ;;  %v237_v4 = vld [vmem:[%s298_s1 + $0x20] sm:$0xff]   ;;  %v238_v5 = vld [vmem:[%s298_s1 + $0x18] sm:$0xff]   ;;  %v239_v6 = vld [vmem:[%s298_s1 + $0x10] sm:$0xff]   ;;  %v171_v27 = vshrl.u32 %v170_v22, 7 }
   0x3   :  { %214 = vmatprep.subr.bf16.mxu0 %v243_v0  ;;  %v240_v7 = vld [vmem:[%s298_s1 + $0x8] sm:$0xff]   ;;  %v241_v8 = vld [vmem:[%s298_s1] sm:$0xff]  }
   0x4   :  { %v242_v9 = vld [vmem:[%s299_s0] sm:$0xff]   ;;  %vm173_vm1 = vcmp.eq.s32.totalorder %v171_v27, 1  ;;  %vm172_vm2 = vcmp.eq.s32.totalorder %v171_v27, 0 }
   0x6   :  { %215 = vmatpush3.bf16.msra.mxu0 %v235_v2 }
   0x7   :  { %216 = vmatprep.subr.bf16.mxu0 %v243_v0 }
   0xa   :  { %217 = vmatpush3.bf16.msra.mxu0 %v236_v3 }
   0xb   :  { %218 = vmatprep.subr.bf16.mxu0 %v243_v0 }
   0xe   :  { %219 = vmatpush3.bf16.msra.mxu0 %v237_v4 }
   0xf   :  { %220 = vmatprep.subr.bf16.mxu0 %v243_v0 }
  0x12   :  { %221 = vmatpush3.bf16.msra.mxu0 %v238_v5 }
  0x13   :  { %222 = vmatprep.subr.bf16.mxu0 %v243_v0 }
  0x16   :  { %223 = vmatpush3.bf16.msra.mxu0 %v239_v6 }
  0x17   :  { %224 = vmatprep.subr.bf16.mxu0 %v243_v0 }
  0x1a   :  { %225 = vmatpush3.bf16.msra.mxu0 %v240_v7 }
  0x1b   :  { %226 = vmatprep.subr.bf16.mxu0 %v243_v0 }
  0x1e   :  { %227 = vmatpush3.bf16.msra.mxu0 %v241_v8 }
  0x21   :  { %229 = vmatmul.mubr.bf16.vlgmr.msra.gmra.mxu0 %v242_v9 }
  0xe1   :  { %v128_v10 = vpop.f32.mrf.mxu0 }
  0xe2   :  { %v161_v13 = vmul.f32 %v128_v10, %v128_v10 }
  0xe3   :  { %v230_v11 = vpop.f32.mrf.mxu0 }
  0xe5   :  { %v131_v12 = vpop.f32.mrf.mxu0 }
  0xe6   :  { %v201_v14 = vpack.c.bf16 %v131_v12, %v128_v10  ;;  %v154_v15 = vadd.f32 %v131_v12, %v128_v10  ;;  %v162_v16 = vmul.f32 %v131_v12, %v131_v12 }
  0xe7   :  { %v231_v17 = vpop.f32.mrf.mxu0 }
  0xe8   :  { %202 = vst [vmem:[%s300_s2] sm:$0xff] %v201_v14   ;;  %v155_v18 = vrot.slane %v154_v15, 4  ;;  %v163_v19 = vadd.f32 %v162_v16, %v161_v13 }
  0xea   :  { %v156_v20 = vadd.f32 %v155_v18, %v154_v15  ;;  %v164_v21 = vrot.slane %v163_v19, 4 }
  0xec   :  { %v157_v23 = vrot.slane %v156_v20, 2  ;;  %v165_v24 = vadd.f32 %v164_v21, %v163_v19 }
  0xee   :  { %v158_v25 = vadd.f32 %v157_v23, %v156_v20  ;;  %v166_v26 = vrot.slane %v165_v24, 2 }
  0xf0   :  { %v167_v28 = vadd.f32 %v166_v26, %v165_v24  ;;  %v159_v29 = vrot.slane %v158_v25, 1 }
  0xf2   :  { %v168_v30 = vrot.slane %v167_v28, 1  ;;  %v160_v32 = vadd.f32 %v159_v29, %v158_v25 }
  0xf4   :  { %v169_v31 = vadd.f32 %v168_v30, %v167_v28 }
  0xf6   :  { %v174_v33 = vsel %vm173_vm1, %v169_v31, 0.0 }
  0xf7   :  { %v175_v34 = vsel %vm172_vm2, %v160_v32, %v174_v33 }
  0xf8   :  { %176 = vst [vmem:[%s301_s3] sm:$0xff] %v175_v34 }

// kernel: _lambda_.53
= control target key start
LH: loop header
LB: loop body
LE: loop exit
PB: predicated region body
PF: predicated region fallthrough
CT: control target
= control target key end

     0   :  { %s97_s0 = inlined_call_operand.vmem [shape: bf16[16,128], index: 0, kind: input, shape index: {}]   ;;  %s98_s1 = inlined_call_operand.vmem [shape: f32[1,128], index: 1, kind: input, shape index: {}]   ;;  %s99_s2 = inlined_call_operand.vmem [shape: f32[1,128], index: 2, kind: input, shape index: {}]   ;;  %s100_s3 = inlined_call_operand.vmem [shape: bf16[16,128], index: 3, kind: output, shape index: {}]  }
   0x1   :  { %v57_v0 = vld [vmem:[%s97_s0] sm:$0xff]  }
   0x2   :  { %v50_v1 = vld [vmem:[%s98_s1] ss:$0 sm:$0xff]  ;;  %v58_v2 = vunpack.c.l.bf16 %v57_v0  ;;  %v59_v3 = vunpack.c.h.bf16 %v57_v0 }
   0x3   :  { %v51_v4 = vld [vmem:[%s99_s2] ss:$0 sm:$0xff] }
   0x4   :  { %v25_v5 = vmul.f32 %v58_v2, %v50_v1  ;;  %v26_v6 = vmul.f32 %v59_v3, %v50_v1 }
   0x6   :  { %v34_v7 = vadd.f32 %v51_v4, %v25_v5  ;;  %v35_v8 = vadd.f32 %v51_v4, %v26_v6 }
   0x8   :  { %v63_v9 = vpack.c.bf16 %v35_v8, %v34_v7 }
   0xa   :  { %64 = vst [vmem:[%s100_s3] sm:$0xff] %v63_v9  }

// kernel: _lambda_.54
= control target key start
LH: loop header
LB: loop body
LE: loop exit
PB: predicated region body
PF: predicated region fallthrough
CT: control target
= control target key end

     0   :  { %s783_s12 = smov 0   ;;  %s785_s13 = smov 0   ;;  %s871_s0 = inlined_call_operand.vmem [shape: bf16[16,640], index: 0, kind: input, shape index: {}]   ;;  %s872_s1 = inlined_call_operand.vmem [shape: bf16[640,128], index: 1, kind: input, shape index: {}]   ;;  %s873_s2 = inlined_call_operand.vmem [shape: bf16[16,128], index: 2, kind: output, shape index: {0}]   ;;  %s874_s3 = inlined_call_operand.vmem [shape: f32[1,8,128], index: 3, kind: output, shape index: {1}]  }
   0x1   :  { %s787_s14 = smov 0   ;;  %s789_s15 = smov 0  }
   0x2   :  { %s791_s16 = smov 0  }
   0x3 LB: > { %s26_s17 = sadd.s32 1, %s754_s15  ;;  %p49_p1 = scmp.ne.s32.totalorder %s746_s13, %s742_s12  ;;  %s758_s16 = sphi %s791_s16, %s14_s16   ;;  %s754_s15 = sphi %s789_s15, %s878_s15   ;;  %s750_s14 = sphi %s787_s14, %s877_s14   ;;  %s746_s13 = sphi %s785_s13, %s876_s13   ;;  %s742_s12 = sphi %s783_s12, %s875_s12  }
   0x4   : > { %p27_p0 = scmp.ge.s32.totalorder %s26_s17, 5  ;;  %p50_p2 = scmp.eq.s32.totalorder %s758_s16, 0 }
   0x5   : > { %s42_s19 = sadd.s32 1, %s746_s13  ;;  %p607_p5 = scmp.ge.s32.totalorder %s758_s16, 5 }
   0x6   : > { %s880_s17 = smov (%p27_p0, %s26_s17), 0  ;;  %p51_p3 = por %p50_p2, %p49_p1 }
   0x7   : > { %s38_s18 = ssub.s32 %s754_s15, %s880_s17  ;;  %159 = sbr.rel (%p607_p5) target bundleno = 17 (0x11), region = 16 }
   0x8   : > { %p40_p4 = scmp.eq.s32.totalorder %s38_s18, 0 }
   0xa   : > { %s818_s20 = scalar_select %p40_p4, %s746_s13, %s42_s19  }
   0xc   : > { %162 = sbr.rel (!%p51_p3) target bundleno = 17 (0x11), region = 20  ;;  %s164_s21 = sand.u32 (%p51_p3), 1, %s746_s13  }
   0xd   : > { %s609_s22 = sshll.u32 (%p51_p3), %s754_s15, 2  ;;  %s608_s23 = sshll.u32 (%p51_p3), %s164_s21, 3 }
   0xe   : > { %s171_s26 = scalar_lea.vmem (%p51_p3), %s871_s0, %s609_s22  ;;  %s166_s27 = scalar_lea.vmem (%p51_p3), [#allocation3], %s608_s23 }
   0xf   : > { %v188_v0 = vld [vmem:[%s171_s26] sm:$0xf] (%p51_p3)  ;;  %v190_v1 = vld [vmem:[%s171_s26 + $0x14] sm:$0xf] (%p51_p3) }
  0x10   : > { %189 = vst [vmem:[%s166_s27] sm:$0xf] (%p51_p3), %v188_v0  ;;  %191 = vst [vmem:[%s166_s27 + $0x4] sm:$0xf] (%p51_p3), %v190_v1 }
  0x11 PF: > { %p610_p6 = scmp.ge.s32.totalorder %s758_s16, 1  ;;  %p230_p7 = scmp.lt.s32.totalorder %s758_s16, 6 }
  0x13   : > { %p231_p8 = pnand %p610_p6, %p230_p7 }
  0x14   : > { %s237_s28 = sand.u32 (!%p231_p8), 1, %s742_s12   ;;  %s612_s29 = sshll.u32 (!%p231_p8), %s750_s14, 4 }
  0x15   : > { %234 = sbr.rel (%p231_p8) target bundleno = 292 (0x124), region = 65  ;;  %s830_s30 = sshll.u32 (!%p231_p8), %s237_s28, 3 }
  0x16   : > { %p280_p9 = scmp.lt.s32.totalorder (!%p231_p8), %s612_s29, 79  ;;  %s239_s8 = scalar_lea.vmem (!%p231_p8), [#allocation3], %s830_s30 }
  0x17   : > { %p614_p10 = scmp.ne.s32.totalorder (!%p231_p8), %s750_s14, 0 }
  0x1a   : > { %s882_s29 = smov (!%p280_p9, %s612_s29), 79  ;;  %308 = sbr.rel (%p614_p10) target bundleno = 33 (0x21), region = 73 }
  0x1b   : > { %s613_s4 = sshll.u32 %s882_s29, 2 }
  0x1c   : > { %s835_s7 = scalar_lea.vmem %s872_s1, %s613_s4 }
  0x1f   : > { %v760_v2 = vmov 0.0  }
  0x20   : > { %309 = vst [vmem:[#allocation2] sm:$0xff] %v760_v2  ;;  %310 = vst [vmem:[#allocation2 + $0x8] sm:$0xff] %v760_v2 }
  0x21 PF: > { %v711_v3 = vld [vmem:[%s835_s7 + $0x38] sm:$0xff]   ;;  %v761_v4 = vmov 0.0   ;;  %v712_v5 = vld [vmem:[%s835_s7 + $0x30] sm:$0xff]   ;;  %vm762_vm0 = vmmov 0   ;;  %v713_v6 = vld [vmem:[%s835_s7 + $0x28] sm:$0xff]   ;;  %p624_p11 = scmp.ne.s32.totalorder %s750_s14, 4 }
  0x22   : > { %648 = vmatprep.subr.bf16.mxu0 %v761_v4  ;;  %664 = vmatprep.mubr.msk.bf16.mxu0 %vm762_vm0, %v761_v4  ;;  %v714_v7 = vld [vmem:[%s835_s7 + $0x20] sm:$0xff]   ;;  %v715_v8 = vld [vmem:[%s835_s7 + $0x18] sm:$0xff]   ;;  %v716_v9 = vld [vmem:[%s835_s7 + $0x10] sm:$0xff]  }
  0x23   : > { %649 = vmatpush3.bf16.msra.mxu0 %v711_v3  ;;  %v717_v10 = vld [vmem:[%s835_s7 + $0x8] sm:$0xff]   ;;  %v718_v11 = vld [vmem:[%s835_s7] sm:$0xff]   ;;  %v719_v12 = vld [vmem:[%s239_s8] sm:$0xff]  }
  0x24   : > { %650 = vmatprep.subr.bf16.mxu0 %v761_v4 }
  0x27   : > { %651 = vmatpush3.bf16.msra.mxu0 %v712_v5  ;;  %v311_v13 = vld [vmem:[#allocation2] sm:$0xff]  ;;  %v312_v17 = vld [vmem:[#allocation2 + $0x8] sm:$0xff] }
  0x28   : > { %652 = vmatprep.subr.bf16.mxu0 %v761_v4 }
  0x2b   : > { %653 = vmatpush3.bf16.msra.mxu0 %v713_v6 }
  0x2c   : > { %654 = vmatprep.subr.bf16.mxu0 %v761_v4 }
  0x2f   : > { %655 = vmatpush3.bf16.msra.mxu0 %v714_v7 }
  0x30   : > { %656 = vmatprep.subr.bf16.mxu0 %v761_v4 }
  0x33   : > { %657 = vmatpush3.bf16.msra.mxu0 %v715_v8 }
  0x34   : > { %658 = vmatprep.subr.bf16.mxu0 %v761_v4 }
  0x37   : > { %659 = vmatpush3.bf16.msra.mxu0 %v716_v9 }
  0x38   : > { %660 = vmatprep.subr.bf16.mxu0 %v761_v4 }
  0x3b   : > { %661 = vmatpush3.bf16.msra.mxu0 %v717_v10 }
  0x3c   : > { %662 = vmatprep.subr.bf16.mxu0 %v761_v4 }
  0x3f   : > { %663 = vmatpush3.bf16.msra.mxu0 %v718_v11 }
  0x42   : > { %665 = vmatmul.mubr.bf16.vlgmr.msra.gmra.mxu0 %v719_v12 }
 0x102   : > { %v419_v14 = vpop.f32.mrf.mxu0 }
 0x103   : > { %v426_v15 = vadd.f32 %v419_v14, %v311_v13 }
 0x104   : > { %v666_v16 = vpop.f32.mrf.mxu0 }
 0x105   : > { %428 = vst [vmem:[#allocation2] sm:$0xff] %v426_v15  ;;  %433 = sbr.rel (%p624_p11) target bundleno = 292 (0x124), region = 77 }
 0x106   : > { %v422_v18 = vpop.f32.mrf.mxu0 }
 0x107   : > { %v427_v19 = vadd.f32 %v422_v18, %v312_v17 }
 0x108   : > { %v667_v20 = vpop.f32.mrf.mxu0 }
 0x109   : > { %429 = vst [vmem:[#allocation2 + $0x8] sm:$0xff] %v427_v19 }
 0x10a   : > { %v462_v31 = vlaneseq }
 0x10c   : > { %v434_v21 = vld [vmem:[#allocation2] sm:$0xff]  ;;  %v463_v36 = vshrl.u32 %v462_v31, 7 }
 0x10d   : > { %v453_v25 = vmul.f32 %v434_v21, %v434_v21 }
 0x10e   : > { %vm465_vm1 = vcmp.eq.s32.totalorder %v463_v36, 1  ;;  %vm464_vm2 = vcmp.eq.s32.totalorder %v463_v36, 0 }
 0x110   : > { %v435_v22 = vld [vmem:[#allocation2 + $0x8] sm:$0xff] }
 0x111   : > { %v637_v23 = vpack.c.bf16 %v435_v22, %v434_v21  ;;  %v446_v24 = vadd.f32 %v435_v22, %v434_v21  ;;  %v454_v26 = vmul.f32 %v435_v22, %v435_v22 }
 0x113   : > { %638 = vst [vmem:[%s873_s2] sm:$0xff] %v637_v23   ;;  %v447_v27 = vrot.slane %v446_v24, 4  ;;  %v455_v28 = vadd.f32 %v454_v26, %v453_v25 }
 0x115   : > { %v448_v29 = vadd.f32 %v447_v27, %v446_v24  ;;  %v456_v30 = vrot.slane %v455_v28, 4 }
 0x117   : > { %v449_v32 = vrot.slane %v448_v29, 2  ;;  %v457_v33 = vadd.f32 %v456_v30, %v455_v28 }
 0x119   : > { %v450_v34 = vadd.f32 %v449_v32, %v448_v29  ;;  %v458_v35 = vrot.slane %v457_v33, 2 }
 0x11b   : > { %v451_v37 = vrot.slane %v450_v34, 1  ;;  %v459_v38 = vadd.f32 %v458_v35, %v457_v33 }
 0x11d   : > { %v460_v39 = vrot.slane %v459_v38, 1  ;;  %v452_v40 = vadd.f32 %v451_v37, %v450_v34 }
 0x11f   : > { %v461_v41 = vadd.f32 %v460_v39, %v459_v38 }
 0x121   : > { %v466_v42 = vsel %vm465_vm1, %v461_v41, 0.0 }
 0x122   : > { %v467_v43 = vsel %vm464_vm2, %v452_v40, %v466_v42 }
 0x123   : > { %468 = vst [vmem:[%s874_s3] sm:$0xff] %v467_v43 }
 0x124 PF: > { %s14_s16 = sadd.s32 1, %s758_s16   ;;  %s875_s12 = smov %s746_s13 }
 0x125   : > { %p11_p12 = scmp.ge.s32.totalorder %s14_s16, 7   ;;  %s876_s13 = smov %s818_s20 }
 0x126   : > { %s877_s14 = smov %s754_s15  ;;  %s878_s15 = smov %s880_s17 }
 0x127   :  { %13 = sbr.rel (!%p11_p12) target bundleno = 3 (0x3), region = 127 }

// kernel: _lambda_.55
= control target key start
LH: loop header
LB: loop body
LE: loop exit
PB: predicated region body
PF: predicated region fallthrough
CT: control target
= control target key end

     0   :  { %s99_s0 = inlined_call_operand.vmem [shape: bf16[16,128], index: 0, kind: input, shape index: {}]   ;;  %s100_s1 = inlined_call_operand.vmem [shape: f32[1,128], index: 1, kind: input, shape index: {}]   ;;  %s101_s2 = inlined_call_operand.vmem [shape: f32[1,128], index: 2, kind: input, shape index: {}]   ;;  %s102_s3 = inlined_call_operand.vmem [shape: bf16[16,128], index: 3, kind: output, shape index: {}]  }
   0x1   :  { %v59_v0 = vld [vmem:[%s99_s0] sm:$0xff]  }
   0x2   :  { %v52_v1 = vld [vmem:[%s100_s1] ss:$0 sm:$0xff]  ;;  %v60_v2 = vunpack.c.l.bf16 %v59_v0  ;;  %v61_v3 = vunpack.c.h.bf16 %v59_v0 }
   0x3   :  { %v53_v4 = vld [vmem:[%s101_s2] ss:$0 sm:$0xff] }
   0x4   :  { %v25_v5 = vmul.f32 %v60_v2, %v52_v1  ;;  %v26_v6 = vmul.f32 %v61_v3, %v52_v1 }
   0x6   :  { %v34_v7 = vadd.f32 %v53_v4, %v25_v5  ;;  %v35_v8 = vadd.f32 %v53_v4, %v26_v6 }
   0x8   :  { %v36_v9 = vmax.f32 %v34_v7, 0.0  ;;  %v37_v10 = vmax.f32 %v35_v8, 0.0 }
   0xa   :  { %v65_v11 = vpack.c.bf16 %v37_v10, %v36_v9 }
   0xc   :  { %66 = vst [vmem:[%s102_s3] sm:$0xff] %v65_v11  }

// kernel: _lambda_.57
= control target key start
LH: loop header
LB: loop body
LE: loop exit
PB: predicated region body
PF: predicated region fallthrough
CT: control target
= control target key end

     0   :  { %s120_s0 = inlined_call_operand.vmem [shape: bf16[16,128], index: 0, kind: input, shape index: {}]   ;;  %s121_s1 = inlined_call_operand.vmem [shape: f32[1,128], index: 1, kind: input, shape index: {}]   ;;  %s122_s2 = inlined_call_operand.vmem [shape: f32[1,128], index: 2, kind: input, shape index: {}]   ;;  %s123_s3 = inlined_call_operand.vmem [shape: bf16[16,128], index: 3, kind: input, shape index: {}]   ;;  %s124_s4 = inlined_call_operand.vmem [shape: bf16[16,128], index: 4, kind: output, shape index: {}]  }
   0x1   :  { %v68_v0 = vld [vmem:[%s120_s0] sm:$0xff]  }
   0x2   :  { %v61_v1 = vld [vmem:[%s121_s1] ss:$0 sm:$0xff]  ;;  %v69_v2 = vunpack.c.l.bf16 %v68_v0  ;;  %v70_v3 = vunpack.c.h.bf16 %v68_v0 }
   0x3   :  { %v72_v4 = vld [vmem:[%s123_s3] sm:$0xff]  }
   0x4   :  { %v62_v5 = vld [vmem:[%s122_s2] ss:$0 sm:$0xff]  ;;  %v28_v6 = vmul.f32 %v69_v2, %v61_v1  ;;  %v29_v7 = vmul.f32 %v70_v3, %v61_v1  ;;  %v73_v8 = vunpack.c.l.bf16 %v72_v4  ;;  %v74_v9 = vunpack.c.h.bf16 %v72_v4 }
   0x6   :  { %v37_v10 = vadd.f32 %v62_v5, %v28_v6  ;;  %v38_v11 = vadd.f32 %v62_v5, %v29_v7 }
   0x8   :  { %v43_v12 = vadd.f32 %v73_v8, %v37_v10  ;;  %v44_v13 = vadd.f32 %v74_v9, %v38_v11 }
   0xa   :  { %v45_v14 = vmax.f32 %v43_v12, 0.0  ;;  %v46_v15 = vmax.f32 %v44_v13, 0.0 }
   0xc   :  { %v78_v16 = vpack.c.bf16 %v46_v15, %v45_v14 }
   0xe   :  { %79 = vst [vmem:[%s124_s4] sm:$0xff] %v78_v16  }

// kernel: _lambda_.56
= control target key start
LH: loop header
LB: loop body
LE: loop exit
PB: predicated region body
PF: predicated region fallthrough
CT: control target
= control target key end

     0   :  { %s783_s12 = smov 0   ;;  %s785_s13 = smov 0   ;;  %s871_s0 = inlined_call_operand.vmem [shape: bf16[16,1152], index: 0, kind: input, shape index: {}]   ;;  %s872_s1 = inlined_call_operand.vmem [shape: bf16[1152,128], index: 1, kind: input, shape index: {}]   ;;  %s873_s2 = inlined_call_operand.vmem [shape: bf16[16,128], index: 2, kind: output, shape index: {0}]   ;;  %s874_s3 = inlined_call_operand.vmem [shape: f32[1,8,128], index: 3, kind: output, shape index: {1}]  }
   0x1   :  { %s787_s14 = smov 0   ;;  %s789_s15 = smov 0  }
   0x2   :  { %s791_s16 = smov 0  }
   0x3 LB: > { %s26_s17 = sadd.s32 1, %s754_s15  ;;  %p49_p1 = scmp.ne.s32.totalorder %s746_s13, %s742_s12  ;;  %s758_s16 = sphi %s791_s16, %s14_s16   ;;  %s754_s15 = sphi %s789_s15, %s878_s15   ;;  %s750_s14 = sphi %s787_s14, %s877_s14   ;;  %s746_s13 = sphi %s785_s13, %s876_s13   ;;  %s742_s12 = sphi %s783_s12, %s875_s12  }
   0x4   : > { %p27_p0 = scmp.ge.s32.totalorder %s26_s17, 9  ;;  %p50_p2 = scmp.eq.s32.totalorder %s758_s16, 0 }
   0x5   : > { %s42_s19 = sadd.s32 1, %s746_s13  ;;  %p607_p5 = scmp.ge.s32.totalorder %s758_s16, 9 }
   0x6   : > { %s880_s17 = smov (%p27_p0, %s26_s17), 0  ;;  %p51_p3 = por %p50_p2, %p49_p1 }
   0x7   : > { %s38_s18 = ssub.s32 %s754_s15, %s880_s17  ;;  %159 = sbr.rel (%p607_p5) target bundleno = 17 (0x11), region = 16 }
   0x8   : > { %p40_p4 = scmp.eq.s32.totalorder %s38_s18, 0 }
   0xa   : > { %s818_s20 = scalar_select %p40_p4, %s746_s13, %s42_s19  }
   0xc   : > { %162 = sbr.rel (!%p51_p3) target bundleno = 17 (0x11), region = 20  ;;  %s164_s21 = sand.u32 (%p51_p3), 1, %s746_s13  }
   0xd   : > { %s609_s22 = sshll.u32 (%p51_p3), %s754_s15, 2  ;;  %s608_s23 = sshll.u32 (%p51_p3), %s164_s21, 3 }
   0xe   : > { %s171_s26 = scalar_lea.vmem (%p51_p3), %s871_s0, %s609_s22  ;;  %s166_s27 = scalar_lea.vmem (%p51_p3), [#allocation3], %s608_s23 }
   0xf   : > { %v188_v0 = vld [vmem:[%s171_s26] sm:$0xf] (%p51_p3)  ;;  %v190_v1 = vld [vmem:[%s171_s26 + $0x24] sm:$0xf] (%p51_p3) }
  0x10   : > { %189 = vst [vmem:[%s166_s27] sm:$0xf] (%p51_p3), %v188_v0  ;;  %191 = vst [vmem:[%s166_s27 + $0x4] sm:$0xf] (%p51_p3), %v190_v1 }
  0x11 PF: > { %p610_p6 = scmp.ge.s32.totalorder %s758_s16, 1  ;;  %p230_p7 = scmp.lt.s32.totalorder %s758_s16, 10 }
  0x13   : > { %p231_p8 = pnand %p610_p6, %p230_p7 }
  0x14   : > { %s237_s28 = sand.u32 (!%p231_p8), 1, %s742_s12   ;;  %s612_s29 = sshll.u32 (!%p231_p8), %s750_s14, 4 }
  0x15   : > { %234 = sbr.rel (%p231_p8) target bundleno = 292 (0x124), region = 65  ;;  %s830_s30 = sshll.u32 (!%p231_p8), %s237_s28, 3 }
  0x16   : > { %p280_p9 = scmp.lt.s32.totalorder (!%p231_p8), %s612_s29, 143  ;;  %s239_s8 = scalar_lea.vmem (!%p231_p8), [#allocation3], %s830_s30 }
  0x17   : > { %p614_p10 = scmp.ne.s32.totalorder (!%p231_p8), %s750_s14, 0 }
  0x1a   : > { %s882_s29 = smov (!%p280_p9, %s612_s29), 143  ;;  %308 = sbr.rel (%p614_p10) target bundleno = 33 (0x21), region = 73 }
  0x1b   : > { %s613_s4 = sshll.u32 %s882_s29, 2 }
  0x1c   : > { %s835_s7 = scalar_lea.vmem %s872_s1, %s613_s4 }
  0x1f   : > { %v760_v2 = vmov 0.0  }
  0x20   : > { %309 = vst [vmem:[#allocation2] sm:$0xff] %v760_v2  ;;  %310 = vst [vmem:[#allocation2 + $0x8] sm:$0xff] %v760_v2 }
  0x21 PF: > { %v711_v3 = vld [vmem:[%s835_s7 + $0x38] sm:$0xff]   ;;  %v761_v4 = vmov 0.0   ;;  %v712_v5 = vld [vmem:[%s835_s7 + $0x30] sm:$0xff]   ;;  %vm762_vm0 = vmmov 0   ;;  %v713_v6 = vld [vmem:[%s835_s7 + $0x28] sm:$0xff]   ;;  %p624_p11 = scmp.ne.s32.totalorder %s750_s14, 8 }
  0x22   : > { %648 = vmatprep.subr.bf16.mxu0 %v761_v4  ;;  %664 = vmatprep.mubr.msk.bf16.mxu0 %vm762_vm0, %v761_v4  ;;  %v714_v7 = vld [vmem:[%s835_s7 + $0x20] sm:$0xff]   ;;  %v715_v8 = vld [vmem:[%s835_s7 + $0x18] sm:$0xff]   ;;  %v716_v9 = vld [vmem:[%s835_s7 + $0x10] sm:$0xff]  }
  0x23   : > { %649 = vmatpush3.bf16.msra.mxu0 %v711_v3  ;;  %v717_v10 = vld [vmem:[%s835_s7 + $0x8] sm:$0xff]   ;;  %v718_v11 = vld [vmem:[%s835_s7] sm:$0xff]   ;;  %v719_v12 = vld [vmem:[%s239_s8] sm:$0xff]  }
  0x24   : > { %650 = vmatprep.subr.bf16.mxu0 %v761_v4 }
  0x27   : > { %651 = vmatpush3.bf16.msra.mxu0 %v712_v5  ;;  %v311_v13 = vld [vmem:[#allocation2] sm:$0xff]  ;;  %v312_v17 = vld [vmem:[#allocation2 + $0x8] sm:$0xff] }
  0x28   : > { %652 = vmatprep.subr.bf16.mxu0 %v761_v4 }
  0x2b   : > { %653 = vmatpush3.bf16.msra.mxu0 %v713_v6 }
  0x2c   : > { %654 = vmatprep.subr.bf16.mxu0 %v761_v4 }
  0x2f   : > { %655 = vmatpush3.bf16.msra.mxu0 %v714_v7 }
  0x30   : > { %656 = vmatprep.subr.bf16.mxu0 %v761_v4 }
  0x33   : > { %657 = vmatpush3.bf16.msra.mxu0 %v715_v8 }
  0x34   : > { %658 = vmatprep.subr.bf16.mxu0 %v761_v4 }
  0x37   : > { %659 = vmatpush3.bf16.msra.mxu0 %v716_v9 }
  0x38   : > { %660 = vmatprep.subr.bf16.mxu0 %v761_v4 }
  0x3b   : > { %661 = vmatpush3.bf16.msra.mxu0 %v717_v10 }
  0x3c   : > { %662 = vmatprep.subr.bf16.mxu0 %v761_v4 }
  0x3f   : > { %663 = vmatpush3.bf16.msra.mxu0 %v718_v11 }
  0x42   : > { %665 = vmatmul.mubr.bf16.vlgmr.msra.gmra.mxu0 %v719_v12 }
 0x102   : > { %v419_v14 = vpop.f32.mrf.mxu0 }
 0x103   : > { %v426_v15 = vadd.f32 %v419_v14, %v311_v13 }
 0x104   : > { %v666_v16 = vpop.f32.mrf.mxu0 }
 0x105   : > { %428 = vst [vmem:[#allocation2] sm:$0xff] %v426_v15  ;;  %433 = sbr.rel (%p624_p11) target bundleno = 292 (0x124), region = 77 }
 0x106   : > { %v422_v18 = vpop.f32.mrf.mxu0 }
 0x107   : > { %v427_v19 = vadd.f32 %v422_v18, %v312_v17 }
 0x108   : > { %v667_v20 = vpop.f32.mrf.mxu0 }
 0x109   : > { %429 = vst [vmem:[#allocation2 + $0x8] sm:$0xff] %v427_v19 }
 0x10a   : > { %v462_v31 = vlaneseq }
 0x10c   : > { %v434_v21 = vld [vmem:[#allocation2] sm:$0xff]  ;;  %v463_v36 = vshrl.u32 %v462_v31, 7 }
 0x10d   : > { %v453_v25 = vmul.f32 %v434_v21, %v434_v21 }
 0x10e   : > { %vm465_vm1 = vcmp.eq.s32.totalorder %v463_v36, 1  ;;  %vm464_vm2 = vcmp.eq.s32.totalorder %v463_v36, 0 }
 0x110   : > { %v435_v22 = vld [vmem:[#allocation2 + $0x8] sm:$0xff] }
 0x111   : > { %v637_v23 = vpack.c.bf16 %v435_v22, %v434_v21  ;;  %v446_v24 = vadd.f32 %v435_v22, %v434_v21  ;;  %v454_v26 = vmul.f32 %v435_v22, %v435_v22 }
 0x113   : > { %638 = vst [vmem:[%s873_s2] sm:$0xff] %v637_v23   ;;  %v447_v27 = vrot.slane %v446_v24, 4  ;;  %v455_v28 = vadd.f32 %v454_v26, %v453_v25 }
 0x115   : > { %v448_v29 = vadd.f32 %v447_v27, %v446_v24  ;;  %v456_v30 = vrot.slane %v455_v28, 4 }
 0x117   : > { %v449_v32 = vrot.slane %v448_v29, 2  ;;  %v457_v33 = vadd.f32 %v456_v30, %v455_v28 }
 0x119   : > { %v450_v34 = vadd.f32 %v449_v32, %v448_v29  ;;  %v458_v35 = vrot.slane %v457_v33, 2 }
 0x11b   : > { %v451_v37 = vrot.slane %v450_v34, 1  ;;  %v459_v38 = vadd.f32 %v458_v35, %v457_v33 }
 0x11d   : > { %v460_v39 = vrot.slane %v459_v38, 1  ;;  %v452_v40 = vadd.f32 %v451_v37, %v450_v34 }
 0x11f   : > { %v461_v41 = vadd.f32 %v460_v39, %v459_v38 }
 0x121   : > { %v466_v42 = vsel %vm465_vm1, %v461_v41, 0.0 }
 0x122   : > { %v467_v43 = vsel %vm464_vm2, %v452_v40, %v466_v42 }
 0x123   : > { %468 = vst [vmem:[%s874_s3] sm:$0xff] %v467_v43 }
 0x124 PF: > { %s14_s16 = sadd.s32 1, %s758_s16   ;;  %s875_s12 = smov %s746_s13 }
 0x125   : > { %p11_p12 = scmp.ge.s32.totalorder %s14_s16, 11   ;;  %s876_s13 = smov %s818_s20 }
 0x126   : > { %s877_s14 = smov %s754_s15  ;;  %s878_s15 = smov %s880_s17 }
 0x127   :  { %13 = sbr.rel (!%p11_p12) target bundleno = 3 (0x3), region = 127 }

// kernel: _lambda_.63
= control target key start
LH: loop header
LB: loop body
LE: loop exit
PB: predicated region body
PF: predicated region fallthrough
CT: control target
= control target key end

     0   :  { %v22_v0 = vlaneseq  ;;  %s112_s0 = inlined_call_operand.vmem [shape: bf16[16,256], index: 0, kind: input, shape index: {}]   ;;  %s113_s1 = inlined_call_operand.vmem [shape: f32[1,256], index: 1, kind: input, shape index: {}]   ;;  %s114_s2 = inlined_call_operand.vmem [shape: f32[1,256], index: 2, kind: input, shape index: {}]   ;;  %s115_s3 = inlined_call_operand.vmem [shape: bf16[16,256], index: 3, kind: output, shape index: {}]  }
   0x1   :  { %v14_v1 = vld [vmem:[%s112_s0] sm:$0xff]  ;;  %v15_v3 = vld [vmem:[%s112_s0 + $0x8] sm:$0xff] }
   0x2   :  { %v23_v2 = vshrl.u32 %v22_v0, 7  ;;  %v16_v4 = vunpack.c.l.bf16 %v14_v1  ;;  %v17_v5 = vunpack.c.h.bf16 %v14_v1  ;;  %v20_v6 = vld [vmem:[%s113_s1] sm:$0x3]  ;;  %v18_v10 = vunpack.c.l.bf16 %v15_v3 }
   0x3   :  { %v36_v7 = vld [vmem:[%s114_s2] sm:$0x3]  ;;  %v19_v11 = vunpack.c.h.bf16 %v15_v3 }
   0x4   :  { %v24_v8 = vsub.s32 0, %v23_v2  ;;  %v28_v9 = vsub.s32 1, %v23_v2 }
   0x6   :  { %v25_v12 = vrot.slane %v20_v6, %v24_v8  ;;  %v29_v13 = vrot.slane %v20_v6, %v28_v9  ;;  %v41_v14 = vrot.slane %v36_v7, %v24_v8  ;;  %v45_v15 = vrot.slane %v36_v7, %v28_v9 }
   0x8   :  { %v32_v16 = vmul.f32 %v25_v12, %v16_v4  ;;  %v33_v17 = vmul.f32 %v29_v13, %v17_v5  ;;  %v34_v18 = vmul.f32 %v25_v12, %v18_v10  ;;  %v35_v19 = vmul.f32 %v29_v13, %v19_v11 }
   0xa   :  { %v48_v20 = vadd.f32 %v41_v14, %v32_v16  ;;  %v49_v21 = vadd.f32 %v45_v15, %v33_v17  ;;  %v50_v22 = vadd.f32 %v41_v14, %v34_v18  ;;  %v51_v23 = vadd.f32 %v45_v15, %v35_v19 }
   0xc   :  { %v72_v24 = vpack.c.bf16 %v49_v21, %v48_v20  ;;  %v73_v25 = vpack.c.bf16 %v51_v23, %v50_v22 }
   0xe   :  { %64 = vst [vmem:[%s115_s3] sm:$0xff] %v72_v24  ;;  %65 = vst [vmem:[%s115_s3 + $0x8] sm:$0xff] %v73_v25 }

// kernel: _lambda_.62
= control target key start
LH: loop header
LB: loop body
LE: loop exit
PB: predicated region body
PF: predicated region fallthrough
CT: control target
= control target key end

     0   :  { %v299_v1 = vmov 0   ;;  %v234_v36 = vlaneseq  ;;  %s383_s1 = inlined_call_operand.vmem [shape: bf16[128,256], index: 1, kind: input, shape index: {}]   ;;  %s384_s0 = inlined_call_operand.vmem [shape: bf16[16,128], index: 0, kind: input, shape index: {}]   ;;  %s385_s2 = inlined_call_operand.vmem [shape: bf16[16,256], index: 2, kind: output, shape index: {0}]   ;;  %s386_s3 = inlined_call_operand.vmem [shape: f32[1,8,256], index: 3, kind: output, shape index: {1}]  }
   0x1   :  { %v274_v0 = vld [vmem:[%s383_s1 + $0x74] ss:$8 sps:$4 sm:$0xff]   ;;  %162 = vmatprep.mubr.bf16.mxu0 %v299_v1  ;;  %v276_v2 = vld [vmem:[%s383_s1 + $0x70] ss:$8 sps:$4 sm:$0xff]   ;;  %v277_v3 = vld [vmem:[%s383_s1 + $0x64] ss:$8 sps:$4 sm:$0xff]  }
   0x2   :  { %130 = vmatprep.subr.bf16.mxu0 %v274_v0  ;;  %v279_v4 = vld [vmem:[%s383_s1 + $0x60] ss:$8 sps:$4 sm:$0xff]   ;;  %v280_v5 = vld [vmem:[%s383_s1 + $0x54] ss:$8 sps:$4 sm:$0xff]   ;;  %v282_v6 = vld [vmem:[%s383_s1 + $0x50] ss:$8 sps:$4 sm:$0xff]  }
   0x3   :  { %131 = vmatpush1.bf16.msra.mxu0 %v276_v2  ;;  %v283_v7 = vld [vmem:[%s383_s1 + $0x44] ss:$8 sps:$4 sm:$0xff]   ;;  %v285_v8 = vld [vmem:[%s383_s1 + $0x40] ss:$8 sps:$4 sm:$0xff]   ;;  %v286_v9 = vld [vmem:[%s383_s1 + $0x34] ss:$8 sps:$4 sm:$0xff]  }
   0x4   :  { %132 = vmatprep.subr.bf16.mxu0 %v277_v3  ;;  %v288_v10 = vld [vmem:[%s383_s1 + $0x30] ss:$8 sps:$4 sm:$0xff]   ;;  %v289_v11 = vld [vmem:[%s383_s1 + $0x24] ss:$8 sps:$4 sm:$0xff]   ;;  %v291_v12 = vld [vmem:[%s383_s1 + $0x20] ss:$8 sps:$4 sm:$0xff]  }
   0x5   :  { %v292_v13 = vld [vmem:[%s383_s1 + $0x14] ss:$8 sps:$4 sm:$0xff]   ;;  %v294_v14 = vld [vmem:[%s383_s1 + $0x10] ss:$8 sps:$4 sm:$0xff]   ;;  %v295_v15 = vld [vmem:[%s383_s1 + $0x4] ss:$8 sps:$4 sm:$0xff]  }
   0x6   :  { %v297_v16 = vld [vmem:[%s383_s1] ss:$8 sps:$4 sm:$0xff]   ;;  %v235_v45 = vshrl.u32 %v234_v36, 7 }
   0x7   :  { %133 = vmatpush1.bf16.msra.mxu0 %v279_v4  ;;  %v298_v17 = vld [vmem:[%s384_s0] sm:$0xff]  }
   0x8   :  { %134 = vmatprep.subr.bf16.mxu0 %v280_v5  ;;  %vm237_vm0 = vcmp.eq.s32.totalorder %v235_v45, 1  ;;  %vm236_vm1 = vcmp.eq.s32.totalorder %v235_v45, 0 }
   0xb   :  { %135 = vmatpush1.bf16.msra.mxu0 %v282_v6 }
   0xc   :  { %136 = vmatprep.subr.bf16.mxu0 %v283_v7 }
   0xf   :  { %137 = vmatpush1.bf16.msra.mxu0 %v285_v8 }
  0x10   :  { %138 = vmatprep.subr.bf16.mxu0 %v286_v9 }
  0x13   :  { %139 = vmatpush1.bf16.msra.mxu0 %v288_v10 }
  0x14   :  { %140 = vmatprep.subr.bf16.mxu0 %v289_v11 }
  0x17   :  { %141 = vmatpush1.bf16.msra.mxu0 %v291_v12 }
  0x18   :  { %142 = vmatprep.subr.bf16.mxu0 %v292_v13 }
  0x1b   :  { %143 = vmatpush1.bf16.msra.mxu0 %v294_v14 }
  0x1c   :  { %144 = vmatprep.subr.bf16.mxu0 %v295_v15 }
  0x1f   :  { %145 = vmatpush1.bf16.msra.mxu0 %v297_v16 }
  0x22   :  { %163 = vmatmul.mubr.bf16.vlgmr.msra.gmra.mxu0 %v298_v17 }
  0xe2   :  { %v164_v18 = vpop.f32.mrf.mxu0 }
  0xe3   :  { %v216_v22 = vmul.f32 %v164_v18, %v164_v18 }
  0xe4   :  { %v166_v19 = vpop.f32.mrf.mxu0 }
  0xe5   :  { %v271_v20 = vpack.c.bf16 %v166_v19, %v164_v18  ;;  %v217_v30 = vmul.f32 %v166_v19, %v166_v19 }
  0xe6   :  { %v168_v21 = vpop.f32.mrf.mxu0 }
  0xe7   :  { %v202_v23 = vadd.f32 %v168_v21, %v164_v18  ;;  %v218_v24 = vmul.f32 %v168_v21, %v168_v21  ;;  %200 = vst [vmem:[%s385_s2] sm:$0xff] %v271_v20 }
  0xe8   :  { %v170_v25 = vpop.f32.mrf.mxu0 }
  0xe9   :  { %v203_v26 = vrot.slane %v202_v23, 4  ;;  %v220_v27 = vadd.f32 %v218_v24, %v216_v22  ;;  %v272_v28 = vpack.c.bf16 %v170_v25, %v168_v21  ;;  %v209_v29 = vadd.f32 %v170_v25, %v166_v19 }
  0xea   :  { %v219_v31 = vmul.f32 %v170_v25, %v170_v25 }
  0xeb   :  { %v204_v32 = vadd.f32 %v203_v26, %v202_v23  ;;  %v221_v33 = vrot.slane %v220_v27, 4  ;;  %201 = vst [vmem:[%s385_s2 + $0x8] sm:$0xff] %v272_v28  ;;  %v210_v34 = vrot.slane %v209_v29, 4 }
  0xec   :  { %v227_v35 = vadd.f32 %v219_v31, %v217_v30 }
  0xed   :  { %v205_v37 = vrot.slane %v204_v32, 2  ;;  %v222_v38 = vadd.f32 %v221_v33, %v220_v27  ;;  %v211_v39 = vadd.f32 %v210_v34, %v209_v29 }
  0xee   :  { %v228_v40 = vrot.slane %v227_v35, 4 }
  0xef   :  { %v206_v41 = vadd.f32 %v205_v37, %v204_v32  ;;  %v223_v42 = vrot.slane %v222_v38, 2  ;;  %v212_v43 = vrot.slane %v211_v39, 2 }
  0xf0   :  { %v229_v44 = vadd.f32 %v228_v40, %v227_v35 }
  0xf1   :  { %v224_v46 = vadd.f32 %v223_v42, %v222_v38  ;;  %v213_v47 = vadd.f32 %v212_v43, %v211_v39  ;;  %v207_v48 = vrot.slane %v206_v41, 1 }
  0xf2   :  { %v230_v49 = vrot.slane %v229_v44, 2 }
  0xf3   :  { %v225_v50 = vrot.slane %v224_v46, 1  ;;  %v214_v53 = vrot.slane %v213_v47, 1  ;;  %v208_v54 = vadd.f32 %v207_v48, %v206_v41 }
  0xf4   :  { %v231_v51 = vadd.f32 %v230_v49, %v229_v44 }
  0xf5   :  { %v226_v52 = vadd.f32 %v225_v50, %v224_v46  ;;  %v215_v59 = vadd.f32 %v214_v53, %v213_v47 }
  0xf6   :  { %v232_v55 = vrot.slane %v231_v51, 1 }
  0xf7   :  { %v238_v56 = vsel %vm237_vm0, %v226_v52, 0.0 }
  0xf8   :  { %v233_v57 = vadd.f32 %v232_v55, %v231_v51  ;;  %v240_v58 = vsel %vm236_vm1, %v208_v54, %v238_v56 }
  0xf9   :  { %242 = vst [vmem:[%s386_s3] sm:$0xff] %v240_v58 }
  0xfa   :  { %v239_v60 = vsel %vm237_vm0, %v233_v57, 0.0 }
  0xfb   :  { %v241_v61 = vsel %vm236_vm1, %v215_v59, %v239_v60 }
  0xfc   :  { %243 = vst [vmem:[%s386_s3 + $0x8] sm:$0xff] %v241_v61 }

// kernel: _lambda_.65
= control target key start
LH: loop header
LB: loop body
LE: loop exit
PB: predicated region body
PF: predicated region fallthrough
CT: control target
= control target key end

     0   :  { %v22_v0 = vlaneseq  ;;  %s116_s0 = inlined_call_operand.vmem [shape: bf16[16,256], index: 0, kind: input, shape index: {}]   ;;  %s117_s1 = inlined_call_operand.vmem [shape: f32[1,256], index: 1, kind: input, shape index: {}]   ;;  %s118_s2 = inlined_call_operand.vmem [shape: f32[1,256], index: 2, kind: input, shape index: {}]   ;;  %s119_s3 = inlined_call_operand.vmem [shape: bf16[16,256], index: 3, kind: output, shape index: {}]  }
   0x1   :  { %v14_v1 = vld [vmem:[%s116_s0] sm:$0xff]  ;;  %v15_v3 = vld [vmem:[%s116_s0 + $0x8] sm:$0xff] }
   0x2   :  { %v23_v2 = vshrl.u32 %v22_v0, 7  ;;  %v16_v4 = vunpack.c.l.bf16 %v14_v1  ;;  %v17_v5 = vunpack.c.h.bf16 %v14_v1  ;;  %v20_v6 = vld [vmem:[%s117_s1] sm:$0x3]  ;;  %v18_v10 = vunpack.c.l.bf16 %v15_v3 }
   0x3   :  { %v36_v7 = vld [vmem:[%s118_s2] sm:$0x3]  ;;  %v19_v11 = vunpack.c.h.bf16 %v15_v3 }
   0x4   :  { %v24_v8 = vsub.s32 0, %v23_v2  ;;  %v28_v9 = vsub.s32 1, %v23_v2 }
   0x6   :  { %v25_v12 = vrot.slane %v20_v6, %v24_v8  ;;  %v29_v13 = vrot.slane %v20_v6, %v28_v9  ;;  %v41_v14 = vrot.slane %v36_v7, %v24_v8  ;;  %v45_v15 = vrot.slane %v36_v7, %v28_v9 }
   0x8   :  { %v32_v16 = vmul.f32 %v25_v12, %v16_v4  ;;  %v33_v17 = vmul.f32 %v29_v13, %v17_v5  ;;  %v34_v18 = vmul.f32 %v25_v12, %v18_v10  ;;  %v35_v19 = vmul.f32 %v29_v13, %v19_v11 }
   0xa   :  { %v48_v20 = vadd.f32 %v41_v14, %v32_v16  ;;  %v49_v21 = vadd.f32 %v45_v15, %v33_v17  ;;  %v50_v22 = vadd.f32 %v41_v14, %v34_v18  ;;  %v51_v23 = vadd.f32 %v45_v15, %v35_v19 }
   0xc   :  { %v52_v24 = vmax.f32 %v48_v20, 0.0  ;;  %v53_v25 = vmax.f32 %v49_v21, 0.0  ;;  %v54_v26 = vmax.f32 %v50_v22, 0.0  ;;  %v55_v27 = vmax.f32 %v51_v23, 0.0 }
   0xe   :  { %v76_v28 = vpack.c.bf16 %v53_v25, %v52_v24  ;;  %v77_v29 = vpack.c.bf16 %v55_v27, %v54_v26 }
  0x10   :  { %68 = vst [vmem:[%s119_s3] sm:$0xff] %v76_v28  ;;  %69 = vst [vmem:[%s119_s3 + $0x8] sm:$0xff] %v77_v29 }

// kernel: _lambda_.64
= control target key start
LH: loop header
LB: loop body
LE: loop exit
PB: predicated region body
PF: predicated region fallthrough
CT: control target
= control target key end

     0   :  { %s880_s12 = smov 0   ;;  %s882_s13 = smov 0   ;;  %s982_s0 = inlined_call_operand.vmem [shape: bf16[16,1152], index: 0, kind: input, shape index: {}]   ;;  %s983_s1 = inlined_call_operand.vmem [shape: bf16[1152,256], index: 1, kind: input, shape index: {}]   ;;  %s984_s2 = inlined_call_operand.vmem [shape: bf16[16,256], index: 2, kind: output, shape index: {0}]   ;;  %s985_s3 = inlined_call_operand.vmem [shape: f32[1,8,256], index: 3, kind: output, shape index: {1}]  }
   0x1   :  { %s884_s14 = smov 0   ;;  %s886_s15 = smov 0  }
   0x2   :  { %s888_s16 = smov 0  }
   0x3 LB: > { %s26_s17 = sadd.s32 1, %s852_s15  ;;  %p49_p1 = scmp.ne.s32.totalorder %s844_s13, %s840_s12  ;;  %s856_s16 = sphi %s888_s16, %s14_s16   ;;  %s852_s15 = sphi %s886_s15, %s989_s15   ;;  %s848_s14 = sphi %s884_s14, %s988_s14   ;;  %s844_s13 = sphi %s882_s13, %s987_s13   ;;  %s840_s12 = sphi %s880_s12, %s986_s12  }
   0x4   : > { %p27_p0 = scmp.ge.s32.totalorder %s26_s17, 9  ;;  %p50_p2 = scmp.eq.s32.totalorder %s856_s16, 0 }
   0x5   : > { %s42_s19 = sadd.s32 1, %s844_s13  ;;  %p713_p5 = scmp.ge.s32.totalorder %s856_s16, 9 }
   0x6   : > { %s991_s17 = smov (%p27_p0, %s26_s17), 0  ;;  %p51_p3 = por %p50_p2, %p49_p1 }
   0x7   : > { %s38_s18 = ssub.s32 %s852_s15, %s991_s17  ;;  %159 = sbr.rel (%p713_p5) target bundleno = 17 (0x11), region = 16 }
   0x8   : > { %p40_p4 = scmp.eq.s32.totalorder %s38_s18, 0 }
   0xa   : > { %s915_s20 = scalar_select %p40_p4, %s844_s13, %s42_s19  }
   0xc   : > { %162 = sbr.rel (!%p51_p3) target bundleno = 17 (0x11), region = 20  ;;  %s164_s21 = sand.u32 (%p51_p3), 1, %s844_s13  }
   0xd   : > { %s715_s22 = sshll.u32 (%p51_p3), %s852_s15, 2  ;;  %s714_s23 = sshll.u32 (%p51_p3), %s164_s21, 3 }
   0xe   : > { %s171_s26 = scalar_lea.vmem (%p51_p3), %s982_s0, %s715_s22  ;;  %s166_s27 = scalar_lea.vmem (%p51_p3), [#allocation3], %s714_s23 }
   0xf   : > { %v188_v0 = vld [vmem:[%s171_s26] sm:$0xf] (%p51_p3)  ;;  %v190_v1 = vld [vmem:[%s171_s26 + $0x24] sm:$0xf] (%p51_p3) }
  0x10   : > { %189 = vst [vmem:[%s166_s27] sm:$0xf] (%p51_p3), %v188_v0  ;;  %191 = vst [vmem:[%s166_s27 + $0x4] sm:$0xf] (%p51_p3), %v190_v1 }
  0x11 PF: > { %p716_p6 = scmp.ge.s32.totalorder %s856_s16, 1  ;;  %p233_p7 = scmp.lt.s32.totalorder %s856_s16, 10 }
  0x13   : > { %p234_p8 = pnand %p716_p6, %p233_p7 }
  0x14   : > { %s240_s28 = sand.u32 (!%p234_p8), 1, %s840_s12   ;;  %s718_s29 = sshll.u32 (!%p234_p8), %s848_s14, 4 }
  0x15   : > { %237 = sbr.rel (%p234_p8) target bundleno = 295 (0x127), region = 65  ;;  %s927_s30 = sshll.u32 (!%p234_p8), %s240_s28, 3 }
  0x16   : > { %p290_p9 = scmp.lt.s32.totalorder (!%p234_p8), %s718_s29, 143  ;;  %s242_s8 = scalar_lea.vmem (!%p234_p8), [#allocation3], %s927_s30 }
  0x17   : > { %p721_p10 = scmp.ne.s32.totalorder (!%p234_p8), %s848_s14, 0 }
  0x1a   : > { %s993_s29 = smov (!%p290_p9, %s718_s29), 143  ;;  %326 = sbr.rel (%p721_p10) target bundleno = 34 (0x22), region = 73 }
  0x1b   : > { %s748_s4 = sshll.u32 %s993_s29, 3 }
  0x1c   : > { %s932_s7 = scalar_lea.vmem %s983_s1, %s748_s4 }
  0x1f   : > { %v858_v2 = vmov 0.0  }
  0x20   : > { %327 = vst [vmem:[#allocation2 + $0x10] sm:$0xff] %v858_v2  ;;  %328 = vst [vmem:[#allocation2] sm:$0xff] %v858_v2 }
  0x21   : > { %329 = vst [vmem:[#allocation2 + $0x18] sm:$0xff] %v858_v2  ;;  %330 = vst [vmem:[#allocation2 + $0x8] sm:$0xff] %v858_v2 }
  0x22 PF: > { %v793_v3 = vld [vmem:[%s932_s7 + $0x74] ss:$8 sps:$4 sm:$0xff]   ;;  %v795_v4 = vld [vmem:[%s932_s7 + $0x70] ss:$8 sps:$4 sm:$0xff]   ;;  %v859_v5 = vmov 0   ;;  %v817_v20 = vld [vmem:[%s242_s8] sm:$0xff]  }
  0x23   : > { %471 = vmatprep.mubr.bf16.mxu0 %v859_v5  ;;  %439 = vmatprep.subr.bf16.mxu0 %v793_v3  ;;  %v796_v6 = vld [vmem:[%s932_s7 + $0x64] ss:$8 sps:$4 sm:$0xff]   ;;  %v798_v7 = vld [vmem:[%s932_s7 + $0x60] ss:$8 sps:$4 sm:$0xff]   ;;  %v799_v8 = vld [vmem:[%s932_s7 + $0x54] ss:$8 sps:$4 sm:$0xff]  }
  0x24   : > { %440 = vmatpush1.bf16.msra.mxu0 %v795_v4  ;;  %v801_v9 = vld [vmem:[%s932_s7 + $0x50] ss:$8 sps:$4 sm:$0xff]   ;;  %v802_v10 = vld [vmem:[%s932_s7 + $0x44] ss:$8 sps:$4 sm:$0xff]   ;;  %v804_v11 = vld [vmem:[%s932_s7 + $0x40] ss:$8 sps:$4 sm:$0xff]  }
  0x25   : > { %441 = vmatprep.subr.bf16.mxu0 %v796_v6  ;;  %v805_v12 = vld [vmem:[%s932_s7 + $0x34] ss:$8 sps:$4 sm:$0xff]   ;;  %v807_v13 = vld [vmem:[%s932_s7 + $0x30] ss:$8 sps:$4 sm:$0xff]   ;;  %v808_v14 = vld [vmem:[%s932_s7 + $0x24] ss:$8 sps:$4 sm:$0xff]  }
  0x26   : > { %v810_v15 = vld [vmem:[%s932_s7 + $0x20] ss:$8 sps:$4 sm:$0xff]   ;;  %v811_v16 = vld [vmem:[%s932_s7 + $0x14] ss:$8 sps:$4 sm:$0xff]   ;;  %v813_v17 = vld [vmem:[%s932_s7 + $0x10] ss:$8 sps:$4 sm:$0xff]  }
  0x27   : > { %v814_v18 = vld [vmem:[%s932_s7 + $0x4] ss:$8 sps:$4 sm:$0xff]   ;;  %v816_v19 = vld [vmem:[%s932_s7] ss:$8 sps:$4 sm:$0xff]   ;;  %v331_v21 = vld [vmem:[#allocation2 + $0x10] sm:$0xff]  ;;  %p739_p11 = scmp.ne.s32.totalorder %s848_s14, 8 }
  0x28   : > { %442 = vmatpush1.bf16.msra.mxu0 %v798_v7  ;;  %v332_v23 = vld [vmem:[#allocation2] sm:$0xff]  ;;  %v333_v26 = vld [vmem:[#allocation2 + $0x18] sm:$0xff]  ;;  %v334_v29 = vld [vmem:[#allocation2 + $0x8] sm:$0xff] }
  0x29   : > { %443 = vmatprep.subr.bf16.mxu0 %v799_v8 }
  0x2c   : > { %444 = vmatpush1.bf16.msra.mxu0 %v801_v9 }
  0x2d   : > { %445 = vmatprep.subr.bf16.mxu0 %v802_v10 }
  0x30   : > { %446 = vmatpush1.bf16.msra.mxu0 %v804_v11 }
  0x31   : > { %447 = vmatprep.subr.bf16.mxu0 %v805_v12 }
  0x34   : > { %448 = vmatpush1.bf16.msra.mxu0 %v807_v13 }
  0x35   : > { %449 = vmatprep.subr.bf16.mxu0 %v808_v14 }
  0x38   : > { %450 = vmatpush1.bf16.msra.mxu0 %v810_v15 }
  0x39   : > { %451 = vmatprep.subr.bf16.mxu0 %v811_v16 }
  0x3c   : > { %452 = vmatpush1.bf16.msra.mxu0 %v813_v17 }
  0x3d   : > { %453 = vmatprep.subr.bf16.mxu0 %v814_v18 }
  0x40   : > { %454 = vmatpush1.bf16.msra.mxu0 %v816_v19 }
  0x43   : > { %472 = vmatmul.mubr.bf16.vlgmr.msra.gmra.mxu0 %v817_v20 }
 0x103   : > { %v473_v22 = vpop.f32.mrf.mxu0 }
 0x104   : > { %v482_v24 = vadd.f32 %v473_v22, %v331_v21 }
 0x105   : > { %v475_v25 = vpop.f32.mrf.mxu0 }
 0x106   : > { %486 = vst [vmem:[#allocation2 + $0x10] sm:$0xff] %v482_v24  ;;  %v483_v27 = vadd.f32 %v475_v25, %v332_v23 }
 0x107   : > { %v477_v28 = vpop.f32.mrf.mxu0 }
 0x108   : > { %487 = vst [vmem:[#allocation2] sm:$0xff] %v483_v27  ;;  %v484_v30 = vadd.f32 %v477_v28, %v333_v26  ;;  %493 = sbr.rel (%p739_p11) target bundleno = 295 (0x127), region = 77 }
 0x109   : > { %v479_v31 = vpop.f32.mrf.mxu0 }
 0x10a   : > { %488 = vst [vmem:[#allocation2 + $0x18] sm:$0xff] %v484_v30  ;;  %v485_v32 = vadd.f32 %v479_v31, %v334_v29 }
 0x10c   : > { %489 = vst [vmem:[#allocation2 + $0x8] sm:$0xff] %v485_v32 }
 0x10d   : > { %v494_v33 = vld [vmem:[#allocation2 + $0x10] sm:$0xff]  ;;  %v544_v54 = vlaneseq }
 0x10e   : > { %v526_v37 = vmul.f32 %v494_v33, %v494_v33 }
 0x10f   : > { %v495_v34 = vld [vmem:[#allocation2] sm:$0xff]  ;;  %v545_v63 = vshrl.u32 %v544_v54, 7 }
 0x110   : > { %v749_v36 = vpack.c.bf16 %v495_v34, %v494_v33  ;;  %v527_v38 = vmul.f32 %v495_v34, %v495_v34 }
 0x111   : > { %v496_v35 = vld [vmem:[#allocation2 + $0x18] sm:$0xff]  ;;  %vm547_vm0 = vcmp.eq.s32.totalorder %v545_v63, 1  ;;  %vm546_vm1 = vcmp.eq.s32.totalorder %v545_v63, 0 }
 0x112   : > { %v512_v40 = vadd.f32 %v496_v35, %v494_v33  ;;  %v528_v43 = vmul.f32 %v496_v35, %v496_v35  ;;  %510 = vst [vmem:[%s984_s2] sm:$0xff] %v749_v36 }
 0x113   : > { %v497_v39 = vld [vmem:[#allocation2 + $0x8] sm:$0xff] }
 0x114   : > { %v750_v41 = vpack.c.bf16 %v497_v39, %v496_v35  ;;  %v519_v42 = vadd.f32 %v497_v39, %v495_v34  ;;  %v529_v44 = vmul.f32 %v497_v39, %v497_v39  ;;  %v513_v45 = vrot.slane %v512_v40, 4 }
 0x115   : > { %v530_v47 = vadd.f32 %v528_v43, %v526_v37 }
 0x116   : > { %511 = vst [vmem:[%s984_s2 + $0x8] sm:$0xff] %v750_v41  ;;  %v520_v46 = vrot.slane %v519_v42, 4  ;;  %v537_v48 = vadd.f32 %v529_v44, %v527_v38  ;;  %v514_v49 = vadd.f32 %v513_v45, %v512_v40 }
 0x117   : > { %v531_v51 = vrot.slane %v530_v47, 4 }
 0x118   : > { %v521_v50 = vadd.f32 %v520_v46, %v519_v42  ;;  %v538_v52 = vrot.slane %v537_v48, 4  ;;  %v515_v53 = vrot.slane %v514_v49, 2 }
 0x119   : > { %v532_v55 = vadd.f32 %v531_v51, %v530_v47 }
 0x11a   : > { %v522_v56 = vrot.slane %v521_v50, 2  ;;  %v539_v57 = vadd.f32 %v538_v52, %v537_v48  ;;  %v516_v58 = vadd.f32 %v515_v53, %v514_v49 }
 0x11b   : > { %v533_v59 = vrot.slane %v532_v55, 2 }
 0x11c   : > { %v523_v60 = vadd.f32 %v522_v56, %v521_v50  ;;  %v540_v61 = vrot.slane %v539_v57, 2  ;;  %v517_v62 = vrot.slane %v516_v58, 1 }
 0x11d   : > { %v534_v0 = vadd.f32 %v533_v59, %v532_v55 }
 0x11e   : > { %v524_v1 = vrot.slane %v523_v60, 1  ;;  %v541_v2 = vadd.f32 %v540_v61, %v539_v57  ;;  %v518_v5 = vadd.f32 %v517_v62, %v516_v58 }
 0x11f   : > { %v535_v3 = vrot.slane %v534_v0, 1 }
 0x120   : > { %v542_v4 = vrot.slane %v541_v2, 1  ;;  %v525_v6 = vadd.f32 %v524_v1, %v523_v60 }
 0x121   : > { %v536_v7 = vadd.f32 %v535_v3, %v534_v0 }
 0x122   : > { %v543_v8 = vadd.f32 %v542_v4, %v541_v2 }
 0x123   : > { %v548_v9 = vsel %vm547_vm0, %v536_v7, 0.0 }
 0x124   : > { %v549_v10 = vsel %vm547_vm0, %v543_v8, 0.0  ;;  %v550_v11 = vsel %vm546_vm1, %v518_v5, %v548_v9 }
 0x125   : > { %v551_v12 = vsel %vm546_vm1, %v525_v6, %v549_v10  ;;  %552 = vst [vmem:[%s985_s3] sm:$0xff] %v550_v11 }
 0x126   : > { %553 = vst [vmem:[%s985_s3 + $0x8] sm:$0xff] %v551_v12 }
 0x127 PF: > { %s14_s16 = sadd.s32 1, %s856_s16   ;;  %s986_s12 = smov %s844_s13 }
 0x128   : > { %p11_p12 = scmp.ge.s32.totalorder %s14_s16, 11   ;;  %s987_s13 = smov %s915_s20 }
 0x129   : > { %s988_s14 = smov %s852_s15  ;;  %s989_s15 = smov %s991_s17 }
 0x12a   :  { %13 = sbr.rel (!%p11_p12) target bundleno = 3 (0x3), region = 127 }

// kernel: _lambda_.67
= control target key start
LH: loop header
LB: loop body
LE: loop exit
PB: predicated region body
PF: predicated region fallthrough
CT: control target
= control target key end

     0   :  { %v25_v0 = vlaneseq  ;;  %s140_s0 = inlined_call_operand.vmem [shape: bf16[16,256], index: 0, kind: input, shape index: {}]   ;;  %s141_s1 = inlined_call_operand.vmem [shape: f32[1,256], index: 1, kind: input, shape index: {}]   ;;  %s142_s2 = inlined_call_operand.vmem [shape: f32[1,256], index: 2, kind: input, shape index: {}]   ;;  %s143_s3 = inlined_call_operand.vmem [shape: bf16[16,256], index: 3, kind: input, shape index: {}]   ;;  %s144_s4 = inlined_call_operand.vmem [shape: bf16[16,256], index: 4, kind: output, shape index: {}]  }
   0x1   :  { %v17_v1 = vld [vmem:[%s140_s0] sm:$0xff]  ;;  %v18_v3 = vld [vmem:[%s140_s0 + $0x8] sm:$0xff] }
   0x2   :  { %v26_v2 = vshrl.u32 %v25_v0, 7  ;;  %v19_v4 = vunpack.c.l.bf16 %v17_v1  ;;  %v20_v5 = vunpack.c.h.bf16 %v17_v1  ;;  %v23_v6 = vld [vmem:[%s141_s1] sm:$0x3]  ;;  %v21_v11 = vunpack.c.l.bf16 %v18_v3  ;;  %v56_v13 = vld [vmem:[%s143_s3 + $0x8] sm:$0xff] }
   0x3   :  { %v39_v7 = vld [vmem:[%s142_s2] sm:$0x3]  ;;  %v22_v12 = vunpack.c.h.bf16 %v18_v3  ;;  %v59_v20 = vunpack.c.l.bf16 %v56_v13  ;;  %v60_v21 = vunpack.c.h.bf16 %v56_v13 }
   0x4   :  { %v27_v8 = vsub.s32 0, %v26_v2  ;;  %v31_v9 = vsub.s32 1, %v26_v2  ;;  %v55_v10 = vld [vmem:[%s143_s3] sm:$0xff] }
   0x5   :  { %v57_v18 = vunpack.c.l.bf16 %v55_v10  ;;  %v58_v19 = vunpack.c.h.bf16 %v55_v10 }
   0x6   :  { %v28_v14 = vrot.slane %v23_v6, %v27_v8  ;;  %v32_v15 = vrot.slane %v23_v6, %v31_v9  ;;  %v44_v16 = vrot.slane %v39_v7, %v27_v8  ;;  %v48_v17 = vrot.slane %v39_v7, %v31_v9 }
   0x8   :  { %v35_v22 = vmul.f32 %v28_v14, %v19_v4  ;;  %v36_v23 = vmul.f32 %v32_v15, %v20_v5  ;;  %v37_v24 = vmul.f32 %v28_v14, %v21_v11  ;;  %v38_v25 = vmul.f32 %v32_v15, %v22_v12 }
   0xa   :  { %v51_v26 = vadd.f32 %v44_v16, %v35_v22  ;;  %v52_v27 = vadd.f32 %v48_v17, %v36_v23  ;;  %v53_v28 = vadd.f32 %v44_v16, %v37_v24  ;;  %v54_v29 = vadd.f32 %v48_v17, %v38_v25 }
   0xc   :  { %v61_v30 = vadd.f32 %v57_v18, %v51_v26  ;;  %v62_v31 = vadd.f32 %v58_v19, %v52_v27  ;;  %v63_v32 = vadd.f32 %v59_v20, %v53_v28  ;;  %v64_v33 = vadd.f32 %v60_v21, %v54_v29 }
   0xe   :  { %v65_v34 = vmax.f32 %v61_v30, 0.0  ;;  %v66_v35 = vmax.f32 %v62_v31, 0.0  ;;  %v67_v36 = vmax.f32 %v63_v32, 0.0  ;;  %v68_v37 = vmax.f32 %v64_v33, 0.0 }
  0x10   :  { %v89_v38 = vpack.c.bf16 %v66_v35, %v65_v34  ;;  %v90_v39 = vpack.c.bf16 %v68_v37, %v67_v36 }
  0x12   :  { %81 = vst [vmem:[%s144_s4] sm:$0xff] %v89_v38  ;;  %82 = vst [vmem:[%s144_s4 + $0x8] sm:$0xff] %v90_v39 }

// kernel: _lambda_.66
= control target key start
LH: loop header
LB: loop body
LE: loop exit
PB: predicated region body
PF: predicated region fallthrough
CT: control target
= control target key end

     0   :  { %s1017_s12 = smov 0   ;;  %s1019_s13 = smov 0   ;;  %s1137_s0 = inlined_call_operand.vmem [shape: bf16[16,2304], index: 0, kind: input, shape index: {}]   ;;  %s1138_s1 = inlined_call_operand.vmem [shape: bf16[2304,256], index: 1, kind: input, shape index: {}]   ;;  %s1139_s2 = inlined_call_operand.vmem [shape: bf16[16,256], index: 2, kind: output, shape index: {0}]   ;;  %s1140_s3 = inlined_call_operand.vmem [shape: f32[1,8,256], index: 3, kind: output, shape index: {1}]  }
   0x1   :  { %s1021_s14 = smov 0   ;;  %s1023_s15 = smov 0  }
   0x2   :  { %s1025_s16 = smov 0  }
   0x3 LB: > { %s26_s17 = sadd.s32 1, %s990_s15  ;;  %p49_p1 = scmp.ne.s32.totalorder %s982_s13, %s978_s12  ;;  %s994_s16 = sphi %s1025_s16, %s14_s16   ;;  %s990_s15 = sphi %s1023_s15, %s1144_s15   ;;  %s986_s14 = sphi %s1021_s14, %s1143_s14   ;;  %s982_s13 = sphi %s1019_s13, %s1142_s13   ;;  %s978_s12 = sphi %s1017_s12, %s1141_s12  }
   0x4   : > { %p27_p0 = scmp.ge.s32.totalorder %s26_s17, 9  ;;  %p50_p2 = scmp.eq.s32.totalorder %s994_s16, 0 }
   0x5   : > { %s42_s19 = sadd.s32 1, %s982_s13  ;;  %p807_p5 = scmp.ge.s32.totalorder %s994_s16, 9 }
   0x6   : > { %s1146_s17 = smov (%p27_p0, %s26_s17), 0  ;;  %p51_p3 = por %p50_p2, %p49_p1 }
   0x7   : > { %s38_s18 = ssub.s32 %s990_s15, %s1146_s17  ;;  %159 = sbr.rel (%p807_p5) target bundleno = 17 (0x11), region = 16 }
   0x8   : > { %p40_p4 = scmp.eq.s32.totalorder %s38_s18, 0 }
   0xa   : > { %s1052_s20 = scalar_select %p40_p4, %s982_s13, %s42_s19  }
   0xc   : > { %162 = sbr.rel (!%p51_p3) target bundleno = 17 (0x11), region = 20  ;;  %s164_s21 = sand.u32 (%p51_p3), 1, %s982_s13  }
   0xd   : > { %s860_s22 = sshll.u32 (%p51_p3), %s990_s15, 3  ;;  %s808_s23 = sshll.u32 (%p51_p3), %s164_s21, 4 }
   0xe   : > { %s172_s26 = scalar_lea.vmem (%p51_p3), %s1137_s0, %s860_s22  ;;  %s166_s27 = scalar_lea.vmem (%p51_p3), [#allocation3], %s808_s23 }
   0xf   : > { %v203_v0 = vld [vmem:[%s172_s26] sm:$0xff] (%p51_p3)  ;;  %v205_v1 = vld [vmem:[%s172_s26 + $0x48] sm:$0xff] (%p51_p3) }
  0x10   : > { %204 = vst [vmem:[%s166_s27] sm:$0xff] (%p51_p3), %v203_v0  ;;  %206 = vst [vmem:[%s166_s27 + $0x8] sm:$0xff] (%p51_p3), %v205_v1 }
  0x11 PF: > { %p811_p6 = scmp.ge.s32.totalorder %s994_s16, 1  ;;  %p226_p7 = scmp.lt.s32.totalorder %s994_s16, 10 }
  0x13   : > { %p227_p8 = pnand %p811_p6, %p226_p7 }
  0x14   : > { %s233_s28 = sand.u32 (!%p227_p8), 1, %s978_s12   ;;  %s813_s29 = sshll.u32 (!%p227_p8), %s986_s14, 5 }
  0x15   : > { %230 = sbr.rel (%p227_p8) target bundleno = 327 (0x147), region = 62  ;;  %s1064_s30 = sshll.u32 (!%p227_p8), %s233_s28, 4 }
  0x16   : > { %p284_p9 = scmp.lt.s32.totalorder (!%p227_p8), %s813_s29, 287  ;;  %s235_s8 = scalar_lea.vmem (!%p227_p8), [#allocation3], %s1064_s30 }
  0x17   : > { %p816_p10 = scmp.ne.s32.totalorder (!%p227_p8), %s986_s14, 0 }
  0x1a   : > { %s1148_s29 = smov (!%p284_p9, %s813_s29), 287  ;;  %319 = sbr.rel (%p816_p10) target bundleno = 34 (0x22), region = 70 }
  0x1b   : > { %s861_s4 = sshll.u32 %s1148_s29, 3 }
  0x1c   : > { %s1069_s7 = scalar_lea.vmem %s1138_s1, %s861_s4 }
  0x1f   : > { %v996_v2 = vmov 0.0  }
  0x20   : > { %320 = vst [vmem:[#allocation2 + $0x10] sm:$0xff] %v996_v2  ;;  %321 = vst [vmem:[#allocation2] sm:$0xff] %v996_v2 }
  0x21   : > { %322 = vst [vmem:[#allocation2 + $0x18] sm:$0xff] %v996_v2  ;;  %323 = vst [vmem:[#allocation2 + $0x8] sm:$0xff] %v996_v2 }
  0x22 PF: > { %v905_v3 = vld [vmem:[%s1069_s7 + $0x74] ss:$8 sps:$4 sm:$0xff]   ;;  %v907_v4 = vld [vmem:[%s1069_s7 + $0x70] ss:$8 sps:$4 sm:$0xff]   ;;  %v908_v5 = vld [vmem:[%s1069_s7 + $0x64] ss:$8 sps:$4 sm:$0xff]  }
  0x23   : > { %532 = vmatprep.subr.bf16.mxu0 %v905_v3  ;;  %v910_v6 = vld [vmem:[%s1069_s7 + $0x60] ss:$8 sps:$4 sm:$0xff]   ;;  %v911_v7 = vld [vmem:[%s1069_s7 + $0x54] ss:$8 sps:$4 sm:$0xff]   ;;  %v913_v8 = vld [vmem:[%s1069_s7 + $0x50] ss:$8 sps:$4 sm:$0xff]  }
  0x24   : > { %533 = vmatpush1.bf16.msra.mxu0 %v907_v4  ;;  %v914_v9 = vld [vmem:[%s1069_s7 + $0x44] ss:$8 sps:$4 sm:$0xff]   ;;  %v916_v10 = vld [vmem:[%s1069_s7 + $0x40] ss:$8 sps:$4 sm:$0xff]   ;;  %v917_v11 = vld [vmem:[%s1069_s7 + $0x34] ss:$8 sps:$4 sm:$0xff]  }
  0x25   : > { %534 = vmatprep.subr.bf16.mxu0 %v908_v5  ;;  %v919_v12 = vld [vmem:[%s1069_s7 + $0x30] ss:$8 sps:$4 sm:$0xff]   ;;  %v920_v13 = vld [vmem:[%s1069_s7 + $0x24] ss:$8 sps:$4 sm:$0xff]   ;;  %v922_v14 = vld [vmem:[%s1069_s7 + $0x20] ss:$8 sps:$4 sm:$0xff]  }
  0x26   : > { %v923_v15 = vld [vmem:[%s1069_s7 + $0x14] ss:$8 sps:$4 sm:$0xff]   ;;  %v925_v17 = vld [vmem:[%s1069_s7 + $0x10] ss:$8 sps:$4 sm:$0xff]   ;;  %v926_v18 = vld [vmem:[%s1069_s7 + $0x4] ss:$8 sps:$4 sm:$0xff]  }
  0x27   : > { %v955_v16 = vld [vmem:[%s235_s8 + $0x4] ss:$8 sps:$4 sm:$0xff]   ;;  %v928_v19 = vld [vmem:[%s1069_s7] ss:$8 sps:$4 sm:$0xff]   ;;  %v931_v21 = vld [vmem:[%s1069_s7 + $0xf0] ss:$8 sps:$4 sm:$0xff]  }
  0x28   : > { %535 = vmatpush1.bf16.msra.mxu0 %v910_v6  ;;  %564 = vmatprep.mubr.bf16.mxu0 %v955_v16  ;;  %v929_v20 = vld [vmem:[%s1069_s7 + $0xf4] ss:$8 sps:$4 sm:$0xff]   ;;  %v932_v22 = vld [vmem:[%s1069_s7 + $0xe4] ss:$8 sps:$4 sm:$0xff]   ;;  %v934_v23 = vld [vmem:[%s1069_s7 + $0xe0] ss:$8 sps:$4 sm:$0xff]  }
  0x29   : > { %536 = vmatprep.subr.bf16.mxu0 %v911_v7  ;;  %v935_v24 = vld [vmem:[%s1069_s7 + $0xd4] ss:$8 sps:$4 sm:$0xff]   ;;  %v937_v25 = vld [vmem:[%s1069_s7 + $0xd0] ss:$8 sps:$4 sm:$0xff]   ;;  %v938_v26 = vld [vmem:[%s1069_s7 + $0xc4] ss:$8 sps:$4 sm:$0xff]  }
  0x2a   : > { %v940_v27 = vld [vmem:[%s1069_s7 + $0xc0] ss:$8 sps:$4 sm:$0xff]   ;;  %v941_v28 = vld [vmem:[%s1069_s7 + $0xb4] ss:$8 sps:$4 sm:$0xff]   ;;  %v943_v29 = vld [vmem:[%s1069_s7 + $0xb0] ss:$8 sps:$4 sm:$0xff]  }
  0x2b   : > { %v944_v30 = vld [vmem:[%s1069_s7 + $0xa4] ss:$8 sps:$4 sm:$0xff]   ;;  %v946_v31 = vld [vmem:[%s1069_s7 + $0xa0] ss:$8 sps:$4 sm:$0xff]   ;;  %v947_v32 = vld [vmem:[%s1069_s7 + $0x94] ss:$8 sps:$4 sm:$0xff]  }
  0x2c   : > { %537 = vmatpush1.bf16.msra.mxu0 %v913_v8  ;;  %v949_v33 = vld [vmem:[%s1069_s7 + $0x90] ss:$8 sps:$4 sm:$0xff]   ;;  %v950_v34 = vld [vmem:[%s1069_s7 + $0x84] ss:$8 sps:$4 sm:$0xff]   ;;  %v952_v35 = vld [vmem:[%s1069_s7 + $0x80] ss:$8 sps:$4 sm:$0xff]  }
  0x2d   : > { %538 = vmatprep.subr.bf16.mxu0 %v914_v9  ;;  %v953_v36 = vld [vmem:[%s235_s8] ss:$8 sps:$4 sm:$0xff]   ;;  %p851_p11 = scmp.ne.s32.totalorder %s986_s14, 8 }
  0x2e   : > { %v324_v37 = vld [vmem:[#allocation2 + $0x10] sm:$0xff]  ;;  %v325_v39 = vld [vmem:[#allocation2] sm:$0xff]  ;;  %v326_v42 = vld [vmem:[#allocation2 + $0x18] sm:$0xff] }
  0x2f   : > { %v327_v45 = vld [vmem:[#allocation2 + $0x8] sm:$0xff] }
  0x30   : > { %539 = vmatpush1.bf16.msra.mxu0 %v916_v10 }
  0x31   : > { %540 = vmatprep.subr.bf16.mxu0 %v917_v11 }
  0x34   : > { %541 = vmatpush1.bf16.msra.mxu0 %v919_v12 }
  0x35   : > { %542 = vmatprep.subr.bf16.mxu0 %v920_v13 }
  0x38   : > { %543 = vmatpush1.bf16.msra.mxu0 %v922_v14 }
  0x39   : > { %544 = vmatprep.subr.bf16.mxu0 %v923_v15 }
  0x3c   : > { %545 = vmatpush1.bf16.msra.mxu0 %v925_v17 }
  0x3d   : > { %546 = vmatprep.subr.bf16.mxu0 %v926_v18 }
  0x40   : > { %547 = vmatpush1.bf16.msra.mxu0 %v928_v19 }
  0x41   : > { %548 = vmatprep.subr.bf16.mxu0 %v929_v20 }
  0x44   : > { %549 = vmatpush2.bf16.msra.mxu0 %v931_v21 }
  0x45   : > { %550 = vmatprep.subr.bf16.mxu0 %v932_v22 }
  0x48   : > { %551 = vmatpush2.bf16.msra.mxu0 %v934_v23 }
  0x49   : > { %552 = vmatprep.subr.bf16.mxu0 %v935_v24 }
  0x4c   : > { %553 = vmatpush2.bf16.msra.mxu0 %v937_v25 }
  0x4d   : > { %554 = vmatprep.subr.bf16.mxu0 %v938_v26 }
  0x50   : > { %555 = vmatpush2.bf16.msra.mxu0 %v940_v27 }
  0x51   : > { %556 = vmatprep.subr.bf16.mxu0 %v941_v28 }
  0x54   : > { %557 = vmatpush2.bf16.msra.mxu0 %v943_v29 }
  0x55   : > { %558 = vmatprep.subr.bf16.mxu0 %v944_v30 }
  0x58   : > { %559 = vmatpush2.bf16.msra.mxu0 %v946_v31 }
  0x59   : > { %560 = vmatprep.subr.bf16.mxu0 %v947_v32 }
  0x5c   : > { %561 = vmatpush2.bf16.msra.mxu0 %v949_v33 }
  0x5d   : > { %562 = vmatprep.subr.bf16.mxu0 %v950_v34 }
  0x60   : > { %563 = vmatpush2.bf16.msra.mxu0 %v952_v35 }
  0x63   : > { %565 = vmatmul.mubr.bf16.vlgmr.msra.gmra.mxu0 %v953_v36 }
 0x123   : > { %v566_v38 = vpop.f32.mrf.mxu0 }
 0x124   : > { %v575_v40 = vadd.f32 %v566_v38, %v324_v37 }
 0x125   : > { %v568_v41 = vpop.f32.mrf.mxu0 }
 0x126   : > { %579 = vst [vmem:[#allocation2 + $0x10] sm:$0xff] %v575_v40  ;;  %v576_v43 = vadd.f32 %v568_v41, %v325_v39 }
 0x127   : > { %v570_v44 = vpop.f32.mrf.mxu0 }
 0x128   : > { %580 = vst [vmem:[#allocation2] sm:$0xff] %v576_v43  ;;  %v577_v46 = vadd.f32 %v570_v44, %v326_v42  ;;  %586 = sbr.rel (%p851_p11) target bundleno = 327 (0x147), region = 74 }
 0x129   : > { %v572_v47 = vpop.f32.mrf.mxu0 }
 0x12a   : > { %581 = vst [vmem:[#allocation2 + $0x18] sm:$0xff] %v577_v46  ;;  %v578_v48 = vadd.f32 %v572_v47, %v327_v45 }
 0x12c   : > { %582 = vst [vmem:[#allocation2 + $0x8] sm:$0xff] %v578_v48 }
 0x12d   : > { %v587_v49 = vld [vmem:[#allocation2 + $0x10] sm:$0xff]  ;;  %v637_v6 = vlaneseq }
 0x12e   : > { %v619_v53 = vmul.f32 %v587_v49, %v587_v49 }
 0x12f   : > { %v588_v50 = vld [vmem:[#allocation2] sm:$0xff]  ;;  %v638_v15 = vshrl.u32 %v637_v6, 7 }
 0x130   : > { %v862_v52 = vpack.c.bf16 %v588_v50, %v587_v49  ;;  %v620_v54 = vmul.f32 %v588_v50, %v588_v50 }
 0x131   : > { %v589_v51 = vld [vmem:[#allocation2 + $0x18] sm:$0xff]  ;;  %vm640_vm0 = vcmp.eq.s32.totalorder %v638_v15, 1  ;;  %vm639_vm1 = vcmp.eq.s32.totalorder %v638_v15, 0 }
 0x132   : > { %v605_v56 = vadd.f32 %v589_v51, %v587_v49  ;;  %v621_v59 = vmul.f32 %v589_v51, %v589_v51  ;;  %603 = vst [vmem:[%s1139_s2] sm:$0xff] %v862_v52 }
 0x133   : > { %v590_v55 = vld [vmem:[#allocation2 + $0x8] sm:$0xff] }
 0x134   : > { %v863_v57 = vpack.c.bf16 %v590_v55, %v589_v51  ;;  %v612_v58 = vadd.f32 %v590_v55, %v588_v50  ;;  %v622_v60 = vmul.f32 %v590_v55, %v590_v55  ;;  %v606_v61 = vrot.slane %v605_v56, 4 }
 0x135   : > { %v623_v63 = vadd.f32 %v621_v59, %v619_v53 }
 0x136   : > { %604 = vst [vmem:[%s1139_s2 + $0x8] sm:$0xff] %v863_v57  ;;  %v613_v62 = vrot.slane %v612_v58, 4  ;;  %v630_v0 = vadd.f32 %v622_v60, %v620_v54  ;;  %v607_v1 = vadd.f32 %v606_v61, %v605_v56 }
 0x137   : > { %v624_v3 = vrot.slane %v623_v63, 4 }
 0x138   : > { %v614_v2 = vadd.f32 %v613_v62, %v612_v58  ;;  %v631_v4 = vrot.slane %v630_v0, 4  ;;  %v608_v5 = vrot.slane %v607_v1, 2 }
 0x139   : > { %v625_v7 = vadd.f32 %v624_v3, %v623_v63 }
 0x13a   : > { %v615_v8 = vrot.slane %v614_v2, 2  ;;  %v632_v9 = vadd.f32 %v631_v4, %v630_v0  ;;  %v609_v10 = vadd.f32 %v608_v5, %v607_v1 }
 0x13b   : > { %v626_v11 = vrot.slane %v625_v7, 2 }
 0x13c   : > { %v616_v12 = vadd.f32 %v615_v8, %v614_v2  ;;  %v633_v13 = vrot.slane %v632_v9, 2  ;;  %v610_v14 = vrot.slane %v609_v10, 1 }
 0x13d   : > { %v627_v16 = vadd.f32 %v626_v11, %v625_v7 }
 0x13e   : > { %v617_v17 = vrot.slane %v616_v12, 1  ;;  %v634_v18 = vadd.f32 %v633_v13, %v632_v9  ;;  %v611_v21 = vadd.f32 %v610_v14, %v609_v10 }
 0x13f   : > { %v628_v19 = vrot.slane %v627_v16, 1 }
 0x140   : > { %v635_v20 = vrot.slane %v634_v18, 1  ;;  %v618_v22 = vadd.f32 %v617_v17, %v616_v12 }
 0x141   : > { %v629_v23 = vadd.f32 %v628_v19, %v627_v16 }
 0x142   : > { %v636_v24 = vadd.f32 %v635_v20, %v634_v18 }
 0x143   : > { %v641_v25 = vsel %vm640_vm0, %v629_v23, 0.0 }
 0x144   : > { %v642_v26 = vsel %vm640_vm0, %v636_v24, 0.0  ;;  %v643_v27 = vsel %vm639_vm1, %v611_v21, %v641_v25 }
 0x145   : > { %v644_v28 = vsel %vm639_vm1, %v618_v22, %v642_v26  ;;  %645 = vst [vmem:[%s1140_s3] sm:$0xff] %v643_v27 }
 0x146   : > { %646 = vst [vmem:[%s1140_s3 + $0x8] sm:$0xff] %v644_v28 }
 0x147 PF: > { %s14_s16 = sadd.s32 1, %s994_s16   ;;  %s1141_s12 = smov %s982_s13 }
 0x148   : > { %p11_p12 = scmp.ge.s32.totalorder %s14_s16, 11   ;;  %s1142_s13 = smov %s1052_s20 }
 0x149   : > { %s1143_s14 = smov %s990_s15  ;;  %s1144_s15 = smov %s1146_s17 }
 0x14a   :  { %13 = sbr.rel (!%p11_p12) target bundleno = 3 (0x3), region = 124 }

// kernel: _lambda_.72
= control target key start
LH: loop header
LB: loop body
LE: loop exit
PB: predicated region body
PF: predicated region fallthrough
CT: control target
= control target key end

     0   :  { %s1093_s1 = inlined_call_operand.vmem [shape: bf16[256,512], index: 1, kind: input, shape index: {}]   ;;  %s1094_s0 = inlined_call_operand.vmem [shape: bf16[16,256], index: 0, kind: input, shape index: {}]   ;;  %s1095_s2 = inlined_call_operand.vmem [shape: bf16[16,512], index: 2, kind: output, shape index: {0}]   ;;  %s1096_s3 = inlined_call_operand.vmem [shape: f32[1,8,512], index: 3, kind: output, shape index: {1}]  }
   0x1   :  { %v732_v0 = vld [vmem:[%s1093_s1 + $0xe4] ss:$16 sps:$4 sm:$0xff]   ;;  %v734_v1 = vld [vmem:[%s1093_s1 + $0xec] ss:$16 sps:$4 sm:$0xff]   ;;  %v736_v2 = vld [vmem:[%s1093_s1 + $0xe0] ss:$16 sps:$4 sm:$0xff]  }
   0x2   :  { %429 = vmatprep.subr.bf16.mxu0 %v732_v0  ;;  %v737_v3 = vld [vmem:[%s1093_s1 + $0xe8] ss:$16 sps:$4 sm:$0xff]   ;;  %472 = vmatprep.subr.bf16.mxu1 %v734_v1  ;;  %v738_v4 = vld [vmem:[%s1093_s1 + $0xc4] ss:$16 sps:$4 sm:$0xff]   ;;  %v740_v5 = vld [vmem:[%s1093_s1 + $0xcc] ss:$16 sps:$4 sm:$0xff]  }
   0x3   :  { %430 = vmatpush1.bf16.msra.mxu0 %v736_v2  ;;  %473 = vmatpush1.bf16.msra.mxu1 %v737_v3  ;;  %v742_v6 = vld [vmem:[%s1093_s1 + $0xc0] ss:$16 sps:$4 sm:$0xff]   ;;  %v743_v7 = vld [vmem:[%s1093_s1 + $0xc8] ss:$16 sps:$4 sm:$0xff]   ;;  %v744_v8 = vld [vmem:[%s1093_s1 + $0xa4] ss:$16 sps:$4 sm:$0xff]  }
   0x4   :  { %431 = vmatprep.subr.bf16.mxu0 %v738_v4  ;;  %474 = vmatprep.subr.bf16.mxu1 %v740_v5  ;;  %v746_v9 = vld [vmem:[%s1093_s1 + $0xac] ss:$16 sps:$4 sm:$0xff]   ;;  %v748_v10 = vld [vmem:[%s1093_s1 + $0xa0] ss:$16 sps:$4 sm:$0xff]   ;;  %v749_v11 = vld [vmem:[%s1093_s1 + $0xa8] ss:$16 sps:$4 sm:$0xff]  }
   0x5   :  { %v750_v12 = vld [vmem:[%s1093_s1 + $0x84] ss:$16 sps:$4 sm:$0xff]   ;;  %v752_v13 = vld [vmem:[%s1093_s1 + $0x8c] ss:$16 sps:$4 sm:$0xff]   ;;  %v754_v14 = vld [vmem:[%s1093_s1 + $0x80] ss:$16 sps:$4 sm:$0xff]  }
   0x6   :  { %v755_v15 = vld [vmem:[%s1093_s1 + $0x88] ss:$16 sps:$4 sm:$0xff]   ;;  %v756_v16 = vld [vmem:[%s1093_s1 + $0x64] ss:$16 sps:$4 sm:$0xff]   ;;  %v758_v17 = vld [vmem:[%s1093_s1 + $0x6c] ss:$16 sps:$4 sm:$0xff]  }
   0x7   :  { %432 = vmatpush1.bf16.msra.mxu0 %v742_v6  ;;  %475 = vmatpush1.bf16.msra.mxu1 %v743_v7  ;;  %v760_v18 = vld [vmem:[%s1093_s1 + $0x60] ss:$16 sps:$4 sm:$0xff]   ;;  %v761_v19 = vld [vmem:[%s1093_s1 + $0x68] ss:$16 sps:$4 sm:$0xff]   ;;  %v762_v20 = vld [vmem:[%s1093_s1 + $0x44] ss:$16 sps:$4 sm:$0xff]   ;;  %v634_v6 = vlaneseq }
   0x8   :  { %433 = vmatprep.subr.bf16.mxu0 %v744_v8  ;;  %476 = vmatprep.subr.bf16.mxu1 %v746_v9  ;;  %v764_v21 = vld [vmem:[%s1093_s1 + $0x4c] ss:$16 sps:$4 sm:$0xff]   ;;  %v766_v22 = vld [vmem:[%s1093_s1 + $0x40] ss:$16 sps:$4 sm:$0xff]   ;;  %v767_v23 = vld [vmem:[%s1093_s1 + $0x48] ss:$16 sps:$4 sm:$0xff]  }
   0x9   :  { %v768_v24 = vld [vmem:[%s1093_s1 + $0x24] ss:$16 sps:$4 sm:$0xff]   ;;  %v770_v25 = vld [vmem:[%s1093_s1 + $0x2c] ss:$16 sps:$4 sm:$0xff]   ;;  %v772_v26 = vld [vmem:[%s1093_s1 + $0x20] ss:$16 sps:$4 sm:$0xff]  }
   0xa   :  { %v773_v27 = vld [vmem:[%s1093_s1 + $0x28] ss:$16 sps:$4 sm:$0xff]   ;;  %v774_v28 = vld [vmem:[%s1093_s1 + $0x4] ss:$16 sps:$4 sm:$0xff]   ;;  %v776_v29 = vld [vmem:[%s1093_s1 + $0xc] ss:$16 sps:$4 sm:$0xff]  }
   0xb   :  { %434 = vmatpush1.bf16.msra.mxu0 %v748_v10  ;;  %477 = vmatpush1.bf16.msra.mxu1 %v749_v11  ;;  %v778_v30 = vld [vmem:[%s1093_s1] ss:$16 sps:$4 sm:$0xff]   ;;  %v779_v31 = vld [vmem:[%s1093_s1 + $0x8] ss:$16 sps:$4 sm:$0xff]   ;;  %v780_v32 = vld [vmem:[%s1093_s1 + $0x1e4] ss:$16 sps:$4 sm:$0xff]  }
   0xc   :  { %435 = vmatprep.subr.bf16.mxu0 %v750_v12  ;;  %478 = vmatprep.subr.bf16.mxu1 %v752_v13  ;;  %v782_v33 = vld [vmem:[%s1093_s1 + $0x1ec] ss:$16 sps:$4 sm:$0xff]   ;;  %v784_v34 = vld [vmem:[%s1093_s1 + $0x1e0] ss:$16 sps:$4 sm:$0xff]   ;;  %v785_v35 = vld [vmem:[%s1093_s1 + $0x1e8] ss:$16 sps:$4 sm:$0xff]  }
   0xd   :  { %v786_v36 = vld [vmem:[%s1093_s1 + $0x1c4] ss:$16 sps:$4 sm:$0xff]   ;;  %v788_v37 = vld [vmem:[%s1093_s1 + $0x1cc] ss:$16 sps:$4 sm:$0xff]   ;;  %v790_v38 = vld [vmem:[%s1093_s1 + $0x1c0] ss:$16 sps:$4 sm:$0xff]  }
   0xe   :  { %v791_v39 = vld [vmem:[%s1093_s1 + $0x1c8] ss:$16 sps:$4 sm:$0xff]   ;;  %v792_v40 = vld [vmem:[%s1093_s1 + $0x1a4] ss:$16 sps:$4 sm:$0xff]   ;;  %v794_v41 = vld [vmem:[%s1093_s1 + $0x1ac] ss:$16 sps:$4 sm:$0xff]  }
   0xf   :  { %436 = vmatpush1.bf16.msra.mxu0 %v754_v14  ;;  %479 = vmatpush1.bf16.msra.mxu1 %v755_v15  ;;  %v796_v42 = vld [vmem:[%s1093_s1 + $0x1a0] ss:$16 sps:$4 sm:$0xff]   ;;  %v797_v43 = vld [vmem:[%s1093_s1 + $0x1a8] ss:$16 sps:$4 sm:$0xff]   ;;  %v798_v44 = vld [vmem:[%s1093_s1 + $0x184] ss:$16 sps:$4 sm:$0xff]  }
  0x10   :  { %437 = vmatprep.subr.bf16.mxu0 %v756_v16  ;;  %480 = vmatprep.subr.bf16.mxu1 %v758_v17  ;;  %v800_v45 = vld [vmem:[%s1093_s1 + $0x18c] ss:$16 sps:$4 sm:$0xff]   ;;  %v802_v47 = vld [vmem:[%s1093_s1 + $0x180] ss:$16 sps:$4 sm:$0xff]   ;;  %v803_v48 = vld [vmem:[%s1093_s1 + $0x188] ss:$16 sps:$4 sm:$0xff]  }
  0x11   :  { %v830_v46 = vld [vmem:[%s1094_s0 + $0x4] ss:$8 sps:$4 sm:$0xff]   ;;  %v808_v51 = vld [vmem:[%s1093_s1 + $0x160] ss:$16 sps:$4 sm:$0xff]   ;;  %v809_v52 = vld [vmem:[%s1093_s1 + $0x168] ss:$16 sps:$4 sm:$0xff]  }
  0x12   :  { %v804_v49 = vld [vmem:[%s1093_s1 + $0x164] ss:$16 sps:$4 sm:$0xff]   ;;  %v806_v50 = vld [vmem:[%s1093_s1 + $0x16c] ss:$16 sps:$4 sm:$0xff]   ;;  %461 = vmatprep.mubr.bf16.mxu0 %v830_v46  ;;  %504 = vmatprep.mubr.bf16.mxu1 %v830_v46  ;;  %v814_v55 = vld [vmem:[%s1093_s1 + $0x140] ss:$16 sps:$4 sm:$0xff]  }
  0x13   :  { %438 = vmatpush1.bf16.msra.mxu0 %v760_v18  ;;  %481 = vmatpush1.bf16.msra.mxu1 %v761_v19  ;;  %v810_v53 = vld [vmem:[%s1093_s1 + $0x144] ss:$16 sps:$4 sm:$0xff]   ;;  %v812_v54 = vld [vmem:[%s1093_s1 + $0x14c] ss:$16 sps:$4 sm:$0xff]   ;;  %v815_v56 = vld [vmem:[%s1093_s1 + $0x148] ss:$16 sps:$4 sm:$0xff]  }
  0x14   :  { %439 = vmatprep.subr.bf16.mxu0 %v762_v20  ;;  %482 = vmatprep.subr.bf16.mxu1 %v764_v21  ;;  %v816_v57 = vld [vmem:[%s1093_s1 + $0x124] ss:$16 sps:$4 sm:$0xff]   ;;  %v818_v58 = vld [vmem:[%s1093_s1 + $0x12c] ss:$16 sps:$4 sm:$0xff]   ;;  %v820_v59 = vld [vmem:[%s1093_s1 + $0x120] ss:$16 sps:$4 sm:$0xff]  }
  0x15   :  { %v821_v60 = vld [vmem:[%s1093_s1 + $0x128] ss:$16 sps:$4 sm:$0xff]   ;;  %v822_v61 = vld [vmem:[%s1093_s1 + $0x104] ss:$16 sps:$4 sm:$0xff]   ;;  %v824_v62 = vld [vmem:[%s1093_s1 + $0x10c] ss:$16 sps:$4 sm:$0xff]  }
  0x16   :  { %v826_v63 = vld [vmem:[%s1093_s1 + $0x100] ss:$16 sps:$4 sm:$0xff]   ;;  %v827_v0 = vld [vmem:[%s1093_s1 + $0x108] ss:$16 sps:$4 sm:$0xff]   ;;  %v1055_v19 = vshrl.u32 %v634_v6, 7 }
  0x17   :  { %440 = vmatpush1.bf16.msra.mxu0 %v766_v22  ;;  %483 = vmatpush1.bf16.msra.mxu1 %v767_v23  ;;  %v828_v1 = vld [vmem:[%s1094_s0] ss:$8 sps:$4 sm:$0xff]  }
  0x18   :  { %441 = vmatprep.subr.bf16.mxu0 %v768_v24  ;;  %484 = vmatprep.subr.bf16.mxu1 %v770_v25  ;;  %vm637_vm0 = vcmp.eq.s32.totalorder %v1055_v19, 1  ;;  %vm636_vm1 = vcmp.eq.s32.totalorder %v1055_v19, 0 }
  0x1b   :  { %442 = vmatpush1.bf16.msra.mxu0 %v772_v26  ;;  %485 = vmatpush1.bf16.msra.mxu1 %v773_v27 }
  0x1c   :  { %443 = vmatprep.subr.bf16.mxu0 %v774_v28  ;;  %486 = vmatprep.subr.bf16.mxu1 %v776_v29 }
  0x1f   :  { %444 = vmatpush1.bf16.msra.mxu0 %v778_v30  ;;  %487 = vmatpush1.bf16.msra.mxu1 %v779_v31 }
  0x20   :  { %445 = vmatprep.subr.bf16.mxu0 %v780_v32  ;;  %488 = vmatprep.subr.bf16.mxu1 %v782_v33 }
  0x23   :  { %446 = vmatpush2.bf16.msra.mxu0 %v784_v34  ;;  %489 = vmatpush2.bf16.msra.mxu1 %v785_v35 }
  0x24   :  { %447 = vmatprep.subr.bf16.mxu0 %v786_v36  ;;  %490 = vmatprep.subr.bf16.mxu1 %v788_v37 }
  0x27   :  { %448 = vmatpush2.bf16.msra.mxu0 %v790_v38  ;;  %491 = vmatpush2.bf16.msra.mxu1 %v791_v39 }
  0x28   :  { %449 = vmatprep.subr.bf16.mxu0 %v792_v40  ;;  %492 = vmatprep.subr.bf16.mxu1 %v794_v41 }
  0x2b   :  { %450 = vmatpush2.bf16.msra.mxu0 %v796_v42  ;;  %493 = vmatpush2.bf16.msra.mxu1 %v797_v43 }
  0x2c   :  { %451 = vmatprep.subr.bf16.mxu0 %v798_v44  ;;  %494 = vmatprep.subr.bf16.mxu1 %v800_v45 }
  0x2f   :  { %452 = vmatpush2.bf16.msra.mxu0 %v802_v47  ;;  %495 = vmatpush2.bf16.msra.mxu1 %v803_v48 }
  0x30   :  { %453 = vmatprep.subr.bf16.mxu0 %v804_v49  ;;  %496 = vmatprep.subr.bf16.mxu1 %v806_v50 }
  0x33   :  { %454 = vmatpush2.bf16.msra.mxu0 %v808_v51  ;;  %497 = vmatpush2.bf16.msra.mxu1 %v809_v52 }
  0x34   :  { %455 = vmatprep.subr.bf16.mxu0 %v810_v53  ;;  %498 = vmatprep.subr.bf16.mxu1 %v812_v54 }
  0x37   :  { %456 = vmatpush2.bf16.msra.mxu0 %v814_v55  ;;  %499 = vmatpush2.bf16.msra.mxu1 %v815_v56 }
  0x38   :  { %457 = vmatprep.subr.bf16.mxu0 %v816_v57  ;;  %500 = vmatprep.subr.bf16.mxu1 %v818_v58 }
  0x3b   :  { %458 = vmatpush2.bf16.msra.mxu0 %v820_v59  ;;  %501 = vmatpush2.bf16.msra.mxu1 %v821_v60 }
  0x3c   :  { %459 = vmatprep.subr.bf16.mxu0 %v822_v61  ;;  %502 = vmatprep.subr.bf16.mxu1 %v824_v62 }
  0x3f   :  { %460 = vmatpush2.bf16.msra.mxu0 %v826_v63  ;;  %503 = vmatpush2.bf16.msra.mxu1 %v827_v0 }
  0x42   :  { %462 = vmatmul.mubr.bf16.vlgmr.msra.gmra.mxu0 %v828_v1  ;;  %505 = vmatmul.mubr.bf16.vlgmr.msra.gmra.mxu1 %v828_v1 }
 0x102   :  { %v463_v2 = vpop.f32.mrf.mxu0  ;;  %v506_v3 = vpop.f32.mrf.mxu1 }
 0x103   :  { %v598_v9 = vmul.f32 %v463_v2, %v463_v2  ;;  %v600_v10 = vmul.f32 %v506_v3, %v506_v3 }
 0x104   :  { %v465_v4 = vpop.f32.mrf.mxu0  ;;  %v508_v5 = vpop.f32.mrf.mxu1 }
 0x105   :  { %v728_v7 = vpack.c.bf16 %v465_v4, %v463_v2  ;;  %v729_v8 = vpack.c.bf16 %v508_v5, %v506_v3  ;;  %v599_v17 = vmul.f32 %v465_v4, %v465_v4  ;;  %v601_v18 = vmul.f32 %v508_v5, %v508_v5 }
 0x106   :  { %v467_v11 = vpop.f32.mrf.mxu0  ;;  %v510_v12 = vpop.f32.mrf.mxu1 }
 0x107   :  { %566 = vst [vmem:[%s1095_s2] sm:$0xff] %v728_v7  ;;  %567 = vst [vmem:[%s1095_s2 + $0x8] sm:$0xff] %v729_v8  ;;  %v570_v13 = vadd.f32 %v467_v11, %v463_v2  ;;  %v602_v14 = vmul.f32 %v467_v11, %v467_v11  ;;  %v584_v15 = vadd.f32 %v510_v12, %v506_v3 }
 0x108   :  { %v604_v16 = vmul.f32 %v510_v12, %v510_v12  ;;  %v469_v20 = vpop.f32.mrf.mxu0  ;;  %v512_v21 = vpop.f32.mrf.mxu1 }
 0x109   :  { %v571_v22 = vrot.slane %v570_v13, 4  ;;  %v606_v23 = vadd.f32 %v602_v14, %v598_v9  ;;  %v585_v24 = vrot.slane %v584_v15, 4  ;;  %v730_v26 = vpack.c.bf16 %v469_v20, %v467_v11 }
 0x10a   :  { %v620_v25 = vadd.f32 %v604_v16, %v600_v10  ;;  %v577_v27 = vadd.f32 %v469_v20, %v465_v4  ;;  %v603_v28 = vmul.f32 %v469_v20, %v469_v20  ;;  %v731_v29 = vpack.c.bf16 %v512_v21, %v510_v12 }
 0x10b   :  { %v572_v30 = vadd.f32 %v571_v22, %v570_v13  ;;  %v607_v31 = vrot.slane %v606_v23, 4  ;;  %v586_v32 = vadd.f32 %v585_v24, %v584_v15  ;;  %568 = vst [vmem:[%s1095_s2 + $0x10] sm:$0xff] %v730_v26  ;;  %v591_v36 = vadd.f32 %v512_v21, %v508_v5 }
 0x10c   :  { %v621_v33 = vrot.slane %v620_v25, 4  ;;  %v578_v34 = vrot.slane %v577_v27, 4  ;;  %v613_v35 = vadd.f32 %v603_v28, %v599_v17  ;;  %569 = vst [vmem:[%s1095_s2 + $0x18] sm:$0xff] %v731_v29  ;;  %v605_v37 = vmul.f32 %v512_v21, %v512_v21 }
 0x10d   :  { %v573_v38 = vrot.slane %v572_v30, 2  ;;  %v608_v39 = vadd.f32 %v607_v31, %v606_v23  ;;  %v587_v40 = vrot.slane %v586_v32, 2  ;;  %v592_v44 = vrot.slane %v591_v36, 4 }
 0x10e   :  { %v622_v41 = vadd.f32 %v621_v33, %v620_v25  ;;  %v579_v42 = vadd.f32 %v578_v34, %v577_v27  ;;  %v614_v43 = vrot.slane %v613_v35, 4  ;;  %v627_v45 = vadd.f32 %v605_v37, %v601_v18 }
 0x10f   :  { %v574_v46 = vadd.f32 %v573_v38, %v572_v30  ;;  %v609_v47 = vrot.slane %v608_v39, 2  ;;  %v588_v48 = vadd.f32 %v587_v40, %v586_v32  ;;  %v593_v52 = vadd.f32 %v592_v44, %v591_v36 }
 0x110   :  { %v623_v49 = vrot.slane %v622_v41, 2  ;;  %v580_v50 = vrot.slane %v579_v42, 2  ;;  %v615_v51 = vadd.f32 %v614_v43, %v613_v35  ;;  %v628_v53 = vrot.slane %v627_v45, 4 }
 0x111   :  { %v575_v54 = vrot.slane %v574_v46, 1  ;;  %v610_v55 = vadd.f32 %v609_v47, %v608_v39  ;;  %v589_v56 = vrot.slane %v588_v48, 1  ;;  %v594_v60 = vrot.slane %v593_v52, 2 }
 0x112   :  { %v624_v57 = vadd.f32 %v623_v49, %v622_v41  ;;  %v581_v58 = vadd.f32 %v580_v50, %v579_v42  ;;  %v616_v59 = vrot.slane %v615_v51, 2  ;;  %v629_v61 = vadd.f32 %v628_v53, %v627_v45 }
 0x113   :  { %v611_v62 = vrot.slane %v610_v55, 1  ;;  %v595_v1 = vadd.f32 %v594_v60, %v593_v52  ;;  %v576_v6 = vadd.f32 %v575_v54, %v574_v46  ;;  %v590_v7 = vadd.f32 %v589_v56, %v588_v48 }
 0x114   :  { %v625_v63 = vrot.slane %v624_v57, 1  ;;  %v617_v0 = vadd.f32 %v616_v59, %v615_v51  ;;  %v630_v2 = vrot.slane %v629_v61, 2  ;;  %v582_v5 = vrot.slane %v581_v58, 1 }
 0x115   :  { %v612_v3 = vadd.f32 %v611_v62, %v610_v55  ;;  %v596_v15 = vrot.slane %v595_v1, 1 }
 0x116   :  { %v626_v4 = vadd.f32 %v625_v63, %v624_v57  ;;  %v618_v8 = vrot.slane %v617_v0, 1  ;;  %v631_v9 = vadd.f32 %v630_v2, %v629_v61  ;;  %v583_v16 = vadd.f32 %v582_v5, %v581_v58 }
 0x117   :  { %v638_v10 = vsel %vm637_vm0, %v612_v3, 0.0  ;;  %v597_v22 = vadd.f32 %v596_v15, %v595_v1 }
 0x118   :  { %v640_v11 = vsel %vm637_vm0, %v626_v4, 0.0  ;;  %v642_v12 = vsel %vm636_vm1, %v576_v6, %v638_v10  ;;  %v619_v14 = vadd.f32 %v618_v8, %v617_v0  ;;  %v632_v17 = vrot.slane %v631_v9, 1 }
 0x119   :  { %v644_v13 = vsel %vm636_vm1, %v590_v7, %v640_v11  ;;  %646 = vst [vmem:[%s1096_s3] sm:$0xff] %v642_v12 }
 0x11a   :  { %648 = vst [vmem:[%s1096_s3 + $0x10] sm:$0xff] %v644_v13  ;;  %v639_v18 = vsel %vm637_vm0, %v619_v14, 0.0  ;;  %v633_v21 = vadd.f32 %v632_v17, %v631_v9 }
 0x11b   :  { %v643_v20 = vsel %vm636_vm1, %v583_v16, %v639_v18 }
 0x11c   :  { %647 = vst [vmem:[%s1096_s3 + $0x8] sm:$0xff] %v643_v20  ;;  %v641_v23 = vsel %vm637_vm0, %v633_v21, 0.0 }
 0x11d   :  { %v645_v24 = vsel %vm636_vm1, %v597_v22, %v641_v23 }
 0x11e   :  { %649 = vst [vmem:[%s1096_s3 + $0x18] sm:$0xff] %v645_v24 }

// kernel: _lambda_.73
= control target key start
LH: loop header
LB: loop body
LE: loop exit
PB: predicated region body
PF: predicated region fallthrough
CT: control target
= control target key end

     0   :  { %v28_v0 = vlaneseq  ;;  %s176_s0 = inlined_call_operand.vmem [shape: bf16[16,512], index: 0, kind: input, shape index: {}]   ;;  %s177_s1 = inlined_call_operand.vmem [shape: f32[1,512], index: 1, kind: input, shape index: {}]   ;;  %s178_s2 = inlined_call_operand.vmem [shape: f32[1,512], index: 2, kind: input, shape index: {}]   ;;  %s179_s3 = inlined_call_operand.vmem [shape: bf16[16,512], index: 3, kind: output, shape index: {}]  }
   0x1   :  { %v14_v1 = vld [vmem:[%s176_s0] sm:$0xff]  ;;  %v15_v3 = vld [vmem:[%s176_s0 + $0x8] sm:$0xff]  ;;  %v16_v4 = vld [vmem:[%s176_s0 + $0x10] sm:$0xff] }
   0x2   :  { %v29_v2 = vshrl.u32 %v28_v0, 7  ;;  %v17_v5 = vld [vmem:[%s176_s0 + $0x18] sm:$0xff]  ;;  %v18_v6 = vunpack.c.l.bf16 %v14_v1  ;;  %v19_v7 = vunpack.c.h.bf16 %v14_v1  ;;  %v26_v8 = vld [vmem:[%s177_s1] sm:$0xf]  ;;  %v22_v10 = vunpack.c.l.bf16 %v16_v4 }
   0x3   :  { %v56_v9 = vld [vmem:[%s178_s2] sm:$0xf]  ;;  %v23_v11 = vunpack.c.h.bf16 %v16_v4  ;;  %v20_v16 = vunpack.c.l.bf16 %v15_v3  ;;  %v21_v17 = vunpack.c.h.bf16 %v15_v3  ;;  %v24_v18 = vunpack.c.l.bf16 %v17_v5 }
   0x4   :  { %v30_v12 = vsub.s32 0, %v29_v2  ;;  %v34_v13 = vsub.s32 1, %v29_v2  ;;  %v38_v14 = vsub.s32 2, %v29_v2  ;;  %v42_v15 = vsub.s32 3, %v29_v2 }
   0x5   :  { %v25_v19 = vunpack.c.h.bf16 %v17_v5 }
   0x6   :  { %v31_v20 = vrot.slane %v26_v8, %v30_v12  ;;  %v35_v21 = vrot.slane %v26_v8, %v34_v13  ;;  %v61_v22 = vrot.slane %v56_v9, %v30_v12  ;;  %v65_v23 = vrot.slane %v56_v9, %v34_v13 }
   0x7   :  { %v39_v24 = vrot.slane %v26_v8, %v38_v14  ;;  %v43_v25 = vrot.slane %v26_v8, %v42_v15  ;;  %v69_v26 = vrot.slane %v56_v9, %v38_v14  ;;  %v73_v27 = vrot.slane %v56_v9, %v42_v15 }
   0x8   :  { %v48_v28 = vmul.f32 %v31_v20, %v18_v6  ;;  %v49_v29 = vmul.f32 %v35_v21, %v19_v7  ;;  %v52_v30 = vmul.f32 %v31_v20, %v22_v10  ;;  %v53_v31 = vmul.f32 %v35_v21, %v23_v11 }
   0x9   :  { %v50_v32 = vmul.f32 %v39_v24, %v20_v16  ;;  %v51_v33 = vmul.f32 %v43_v25, %v21_v17  ;;  %v54_v34 = vmul.f32 %v39_v24, %v24_v18  ;;  %v55_v35 = vmul.f32 %v43_v25, %v25_v19 }
   0xa   :  { %v78_v36 = vadd.f32 %v61_v22, %v48_v28  ;;  %v79_v37 = vadd.f32 %v65_v23, %v49_v29  ;;  %v82_v38 = vadd.f32 %v61_v22, %v52_v30  ;;  %v83_v39 = vadd.f32 %v65_v23, %v53_v31 }
   0xb   :  { %v80_v40 = vadd.f32 %v69_v26, %v50_v32  ;;  %v81_v41 = vadd.f32 %v73_v27, %v51_v33  ;;  %v84_v42 = vadd.f32 %v69_v26, %v54_v34  ;;  %v85_v43 = vadd.f32 %v73_v27, %v55_v35 }
   0xc   :  { %v122_v44 = vpack.c.bf16 %v79_v37, %v78_v36  ;;  %v124_v45 = vpack.c.bf16 %v83_v39, %v82_v38 }
   0xd   :  { %v123_v46 = vpack.c.bf16 %v81_v41, %v80_v40  ;;  %v125_v47 = vpack.c.bf16 %v85_v43, %v84_v42 }
   0xe   :  { %110 = vst [vmem:[%s179_s3] sm:$0xff] %v122_v44  ;;  %112 = vst [vmem:[%s179_s3 + $0x10] sm:$0xff] %v124_v45 }
   0xf   :  { %111 = vst [vmem:[%s179_s3 + $0x8] sm:$0xff] %v123_v46  ;;  %113 = vst [vmem:[%s179_s3 + $0x18] sm:$0xff] %v125_v47 }

// kernel: _lambda_.75
= control target key start
LH: loop header
LB: loop body
LE: loop exit
PB: predicated region body
PF: predicated region fallthrough
CT: control target
= control target key end

     0   :  { %v28_v0 = vlaneseq  ;;  %s184_s0 = inlined_call_operand.vmem [shape: bf16[16,512], index: 0, kind: input, shape index: {}]   ;;  %s185_s1 = inlined_call_operand.vmem [shape: f32[1,512], index: 1, kind: input, shape index: {}]   ;;  %s186_s2 = inlined_call_operand.vmem [shape: f32[1,512], index: 2, kind: input, shape index: {}]   ;;  %s187_s3 = inlined_call_operand.vmem [shape: bf16[16,512], index: 3, kind: output, shape index: {}]  }
   0x1   :  { %v14_v1 = vld [vmem:[%s184_s0] sm:$0xff]  ;;  %v15_v3 = vld [vmem:[%s184_s0 + $0x8] sm:$0xff]  ;;  %v16_v4 = vld [vmem:[%s184_s0 + $0x10] sm:$0xff] }
   0x2   :  { %v29_v2 = vshrl.u32 %v28_v0, 7  ;;  %v17_v5 = vld [vmem:[%s184_s0 + $0x18] sm:$0xff]  ;;  %v18_v6 = vunpack.c.l.bf16 %v14_v1  ;;  %v19_v7 = vunpack.c.h.bf16 %v14_v1  ;;  %v26_v8 = vld [vmem:[%s185_s1] sm:$0xf]  ;;  %v22_v10 = vunpack.c.l.bf16 %v16_v4 }
   0x3   :  { %v56_v9 = vld [vmem:[%s186_s2] sm:$0xf]  ;;  %v23_v11 = vunpack.c.h.bf16 %v16_v4  ;;  %v20_v16 = vunpack.c.l.bf16 %v15_v3  ;;  %v21_v17 = vunpack.c.h.bf16 %v15_v3  ;;  %v24_v18 = vunpack.c.l.bf16 %v17_v5 }
   0x4   :  { %v30_v12 = vsub.s32 0, %v29_v2  ;;  %v34_v13 = vsub.s32 1, %v29_v2  ;;  %v38_v14 = vsub.s32 2, %v29_v2  ;;  %v42_v15 = vsub.s32 3, %v29_v2 }
   0x5   :  { %v25_v19 = vunpack.c.h.bf16 %v17_v5 }
   0x6   :  { %v31_v20 = vrot.slane %v26_v8, %v30_v12  ;;  %v35_v21 = vrot.slane %v26_v8, %v34_v13  ;;  %v61_v22 = vrot.slane %v56_v9, %v30_v12  ;;  %v65_v23 = vrot.slane %v56_v9, %v34_v13 }
   0x7   :  { %v39_v24 = vrot.slane %v26_v8, %v38_v14  ;;  %v43_v25 = vrot.slane %v26_v8, %v42_v15  ;;  %v69_v26 = vrot.slane %v56_v9, %v38_v14  ;;  %v73_v27 = vrot.slane %v56_v9, %v42_v15 }
   0x8   :  { %v48_v28 = vmul.f32 %v31_v20, %v18_v6  ;;  %v49_v29 = vmul.f32 %v35_v21, %v19_v7  ;;  %v52_v30 = vmul.f32 %v31_v20, %v22_v10  ;;  %v53_v31 = vmul.f32 %v35_v21, %v23_v11 }
   0x9   :  { %v50_v32 = vmul.f32 %v39_v24, %v20_v16  ;;  %v51_v33 = vmul.f32 %v43_v25, %v21_v17  ;;  %v54_v34 = vmul.f32 %v39_v24, %v24_v18  ;;  %v55_v35 = vmul.f32 %v43_v25, %v25_v19 }
   0xa   :  { %v78_v36 = vadd.f32 %v61_v22, %v48_v28  ;;  %v79_v37 = vadd.f32 %v65_v23, %v49_v29  ;;  %v82_v38 = vadd.f32 %v61_v22, %v52_v30  ;;  %v83_v39 = vadd.f32 %v65_v23, %v53_v31 }
   0xb   :  { %v80_v40 = vadd.f32 %v69_v26, %v50_v32  ;;  %v81_v41 = vadd.f32 %v73_v27, %v51_v33  ;;  %v84_v42 = vadd.f32 %v69_v26, %v54_v34  ;;  %v85_v43 = vadd.f32 %v73_v27, %v55_v35 }
   0xc   :  { %v86_v44 = vmax.f32 %v78_v36, 0.0  ;;  %v87_v45 = vmax.f32 %v79_v37, 0.0  ;;  %v90_v46 = vmax.f32 %v82_v38, 0.0  ;;  %v91_v47 = vmax.f32 %v83_v39, 0.0 }
   0xd   :  { %v88_v48 = vmax.f32 %v80_v40, 0.0  ;;  %v89_v49 = vmax.f32 %v81_v41, 0.0  ;;  %v92_v50 = vmax.f32 %v84_v42, 0.0  ;;  %v93_v51 = vmax.f32 %v85_v43, 0.0 }
   0xe   :  { %v130_v52 = vpack.c.bf16 %v87_v45, %v86_v44  ;;  %v132_v53 = vpack.c.bf16 %v91_v47, %v90_v46 }
   0xf   :  { %v131_v54 = vpack.c.bf16 %v89_v49, %v88_v48  ;;  %v133_v55 = vpack.c.bf16 %v93_v51, %v92_v50 }
  0x10   :  { %118 = vst [vmem:[%s187_s3] sm:$0xff] %v130_v52  ;;  %120 = vst [vmem:[%s187_s3 + $0x10] sm:$0xff] %v132_v53 }
  0x11   :  { %119 = vst [vmem:[%s187_s3 + $0x8] sm:$0xff] %v131_v54  ;;  %121 = vst [vmem:[%s187_s3 + $0x18] sm:$0xff] %v133_v55 }

// kernel: _lambda_.74
= control target key start
LH: loop header
LB: loop body
LE: loop exit
PB: predicated region body
PF: predicated region fallthrough
CT: control target
= control target key end

     0   :  { %s1408_s12 = smov 0   ;;  %s1410_s13 = smov 0   ;;  %s1580_s0 = inlined_call_operand.vmem [shape: bf16[16,2304], index: 0, kind: input, shape index: {}]   ;;  %s1581_s1 = inlined_call_operand.vmem [shape: bf16[2304,512], index: 1, kind: input, shape index: {}]   ;;  %s1582_s2 = inlined_call_operand.vmem [shape: bf16[16,512], index: 2, kind: output, shape index: {0}]   ;;  %s1583_s3 = inlined_call_operand.vmem [shape: f32[1,8,512], index: 3, kind: output, shape index: {1}]  }
   0x1   :  { %s1412_s14 = smov 0   ;;  %s1414_s15 = smov 0  }
   0x2   :  { %s1416_s16 = smov 0  }
   0x3 LB: > { %s26_s17 = sadd.s32 1, %s1381_s15  ;;  %p49_p1 = scmp.ne.s32.totalorder %s1373_s13, %s1369_s12  ;;  %s1385_s16 = sphi %s1416_s16, %s14_s16   ;;  %s1381_s15 = sphi %s1414_s15, %s1587_s15   ;;  %s1377_s14 = sphi %s1412_s14, %s1586_s14   ;;  %s1373_s13 = sphi %s1410_s13, %s1585_s13   ;;  %s1369_s12 = sphi %s1408_s12, %s1584_s12  }
   0x4   : > { %p27_p0 = scmp.ge.s32.totalorder %s26_s17, 9  ;;  %p50_p2 = scmp.eq.s32.totalorder %s1385_s16, 0 }
   0x5   : > { %s42_s19 = sadd.s32 1, %s1373_s13  ;;  %p1114_p5 = scmp.ge.s32.totalorder %s1385_s16, 9 }
   0x6   : > { %s1589_s17 = smov (%p27_p0, %s26_s17), 0  ;;  %p51_p3 = por %p50_p2, %p49_p1 }
   0x7   : > { %s38_s18 = ssub.s32 %s1381_s15, %s1589_s17  ;;  %159 = sbr.rel (%p1114_p5) target bundleno = 17 (0x11), region = 16 }
   0x8   : > { %p40_p4 = scmp.eq.s32.totalorder %s38_s18, 0 }
   0xa   : > { %s1443_s20 = scalar_select %p40_p4, %s1373_s13, %s42_s19  }
   0xc   : > { %162 = sbr.rel (!%p51_p3) target bundleno = 17 (0x11), region = 20  ;;  %s164_s21 = sand.u32 (%p51_p3), 1, %s1373_s13  }
   0xd   : > { %s1201_s22 = sshll.u32 (%p51_p3), %s1381_s15, 3  ;;  %s1115_s23 = sshll.u32 (%p51_p3), %s164_s21, 4 }
   0xe   : > { %s172_s26 = scalar_lea.vmem (%p51_p3), %s1580_s0, %s1201_s22  ;;  %s166_s27 = scalar_lea.vmem (%p51_p3), [#allocation3], %s1115_s23 }
   0xf   : > { %v203_v0 = vld [vmem:[%s172_s26] sm:$0xff] (%p51_p3)  ;;  %v205_v1 = vld [vmem:[%s172_s26 + $0x48] sm:$0xff] (%p51_p3) }
  0x10   : > { %204 = vst [vmem:[%s166_s27] sm:$0xff] (%p51_p3), %v203_v0  ;;  %206 = vst [vmem:[%s166_s27 + $0x8] sm:$0xff] (%p51_p3), %v205_v1 }
  0x11 PF: > { %p1118_p6 = scmp.ge.s32.totalorder %s1385_s16, 1  ;;  %p226_p7 = scmp.lt.s32.totalorder %s1385_s16, 10 }
  0x13   : > { %p227_p8 = pnand %p1118_p6, %p226_p7 }
  0x14   : > { %s233_s28 = sand.u32 (!%p227_p8), 1, %s1369_s12   ;;  %s1120_s29 = sshll.u32 (!%p227_p8), %s1377_s14, 5 }
  0x15   : > { %230 = sbr.rel (%p227_p8) target bundleno = 330 (0x14a), region = 62  ;;  %s1455_s30 = sshll.u32 (!%p227_p8), %s233_s28, 4 }
  0x16   : > { %p284_p9 = scmp.lt.s32.totalorder (!%p227_p8), %s1120_s29, 287  ;;  %s235_s8 = scalar_lea.vmem (!%p227_p8), [#allocation3], %s1455_s30 }
  0x17   : > { %p1123_p10 = scmp.ne.s32.totalorder (!%p227_p8), %s1377_s14, 0 }
  0x1a   : > { %s1591_s29 = smov (!%p284_p9, %s1120_s29), 287  ;;  %319 = sbr.rel (%p1123_p10) target bundleno = 36 (0x24), region = 70 }
  0x1b   : > { %s1202_s4 = sshll.u32 %s1591_s29, 4 }
  0x1c   : > { %s1460_s7 = scalar_lea.vmem %s1581_s1, %s1202_s4 }
  0x1f   : > { %v1387_v2 = vmov 0.0  }
  0x20   : > { %320 = vst [vmem:[#allocation2 + $0x30] sm:$0xff] %v1387_v2  ;;  %321 = vst [vmem:[#allocation2] sm:$0xff] %v1387_v2 }
  0x21   : > { %322 = vst [vmem:[#allocation2 + $0x18] sm:$0xff] %v1387_v2  ;;  %323 = vst [vmem:[#allocation2 + $0x10] sm:$0xff] %v1387_v2 }
  0x22   : > { %324 = vst [vmem:[#allocation2 + $0x8] sm:$0xff] %v1387_v2  ;;  %325 = vst [vmem:[#allocation2 + $0x20] sm:$0xff] %v1387_v2 }
  0x23   : > { %326 = vst [vmem:[#allocation2 + $0x28] sm:$0xff] %v1387_v2  ;;  %327 = vst [vmem:[#allocation2 + $0x38] sm:$0xff] %v1387_v2 }
  0x24 PF: > { %v1248_v3 = vld [vmem:[%s1460_s7 + $0xe4] ss:$16 sps:$4 sm:$0xff]   ;;  %v1250_v4 = vld [vmem:[%s1460_s7 + $0xec] ss:$16 sps:$4 sm:$0xff]   ;;  %v1252_v5 = vld [vmem:[%s1460_s7 + $0xe0] ss:$16 sps:$4 sm:$0xff]  }
  0x25   : > { %732 = vmatprep.subr.bf16.mxu0 %v1248_v3  ;;  %v1253_v6 = vld [vmem:[%s1460_s7 + $0xe8] ss:$16 sps:$4 sm:$0xff]   ;;  %775 = vmatprep.subr.bf16.mxu1 %v1250_v4  ;;  %v1254_v7 = vld [vmem:[%s1460_s7 + $0xc4] ss:$16 sps:$4 sm:$0xff]   ;;  %v1256_v8 = vld [vmem:[%s1460_s7 + $0xcc] ss:$16 sps:$4 sm:$0xff]  }
  0x26   : > { %733 = vmatpush1.bf16.msra.mxu0 %v1252_v5  ;;  %776 = vmatpush1.bf16.msra.mxu1 %v1253_v6  ;;  %v1258_v9 = vld [vmem:[%s1460_s7 + $0xc0] ss:$16 sps:$4 sm:$0xff]   ;;  %v1259_v10 = vld [vmem:[%s1460_s7 + $0xc8] ss:$16 sps:$4 sm:$0xff]   ;;  %v1260_v11 = vld [vmem:[%s1460_s7 + $0xa4] ss:$16 sps:$4 sm:$0xff]  }
  0x27   : > { %734 = vmatprep.subr.bf16.mxu0 %v1254_v7  ;;  %777 = vmatprep.subr.bf16.mxu1 %v1256_v8  ;;  %v1262_v12 = vld [vmem:[%s1460_s7 + $0xac] ss:$16 sps:$4 sm:$0xff]   ;;  %v1264_v13 = vld [vmem:[%s1460_s7 + $0xa0] ss:$16 sps:$4 sm:$0xff]   ;;  %v1265_v14 = vld [vmem:[%s1460_s7 + $0xa8] ss:$16 sps:$4 sm:$0xff]  }
  0x28   : > { %v1266_v15 = vld [vmem:[%s1460_s7 + $0x84] ss:$16 sps:$4 sm:$0xff]   ;;  %v1268_v16 = vld [vmem:[%s1460_s7 + $0x8c] ss:$16 sps:$4 sm:$0xff]   ;;  %v1270_v17 = vld [vmem:[%s1460_s7 + $0x80] ss:$16 sps:$4 sm:$0xff]  }
  0x29   : > { %v1271_v18 = vld [vmem:[%s1460_s7 + $0x88] ss:$16 sps:$4 sm:$0xff]   ;;  %v1272_v19 = vld [vmem:[%s1460_s7 + $0x64] ss:$16 sps:$4 sm:$0xff]   ;;  %v1274_v20 = vld [vmem:[%s1460_s7 + $0x6c] ss:$16 sps:$4 sm:$0xff]  }
  0x2a   : > { %735 = vmatpush1.bf16.msra.mxu0 %v1258_v9  ;;  %778 = vmatpush1.bf16.msra.mxu1 %v1259_v10  ;;  %v1276_v21 = vld [vmem:[%s1460_s7 + $0x60] ss:$16 sps:$4 sm:$0xff]   ;;  %v1277_v22 = vld [vmem:[%s1460_s7 + $0x68] ss:$16 sps:$4 sm:$0xff]   ;;  %v1278_v23 = vld [vmem:[%s1460_s7 + $0x44] ss:$16 sps:$4 sm:$0xff]  }
  0x2b   : > { %736 = vmatprep.subr.bf16.mxu0 %v1260_v11  ;;  %779 = vmatprep.subr.bf16.mxu1 %v1262_v12  ;;  %v1280_v24 = vld [vmem:[%s1460_s7 + $0x4c] ss:$16 sps:$4 sm:$0xff]   ;;  %v1282_v25 = vld [vmem:[%s1460_s7 + $0x40] ss:$16 sps:$4 sm:$0xff]   ;;  %v1283_v26 = vld [vmem:[%s1460_s7 + $0x48] ss:$16 sps:$4 sm:$0xff]  }
  0x2c   : > { %v1284_v27 = vld [vmem:[%s1460_s7 + $0x24] ss:$16 sps:$4 sm:$0xff]   ;;  %v1286_v28 = vld [vmem:[%s1460_s7 + $0x2c] ss:$16 sps:$4 sm:$0xff]   ;;  %v1288_v29 = vld [vmem:[%s1460_s7 + $0x20] ss:$16 sps:$4 sm:$0xff]  }
  0x2d   : > { %v1289_v30 = vld [vmem:[%s1460_s7 + $0x28] ss:$16 sps:$4 sm:$0xff]   ;;  %v1290_v31 = vld [vmem:[%s1460_s7 + $0x4] ss:$16 sps:$4 sm:$0xff]   ;;  %v1292_v32 = vld [vmem:[%s1460_s7 + $0xc] ss:$16 sps:$4 sm:$0xff]  }
  0x2e   : > { %737 = vmatpush1.bf16.msra.mxu0 %v1264_v13  ;;  %780 = vmatpush1.bf16.msra.mxu1 %v1265_v14  ;;  %v1294_v33 = vld [vmem:[%s1460_s7] ss:$16 sps:$4 sm:$0xff]   ;;  %v1295_v34 = vld [vmem:[%s1460_s7 + $0x8] ss:$16 sps:$4 sm:$0xff]   ;;  %v1296_v35 = vld [vmem:[%s1460_s7 + $0x1e4] ss:$16 sps:$4 sm:$0xff]  }
  0x2f   : > { %738 = vmatprep.subr.bf16.mxu0 %v1266_v15  ;;  %781 = vmatprep.subr.bf16.mxu1 %v1268_v16  ;;  %v1298_v36 = vld [vmem:[%s1460_s7 + $0x1ec] ss:$16 sps:$4 sm:$0xff]   ;;  %v1300_v37 = vld [vmem:[%s1460_s7 + $0x1e0] ss:$16 sps:$4 sm:$0xff]   ;;  %v1301_v38 = vld [vmem:[%s1460_s7 + $0x1e8] ss:$16 sps:$4 sm:$0xff]  }
  0x30   : > { %v1302_v39 = vld [vmem:[%s1460_s7 + $0x1c4] ss:$16 sps:$4 sm:$0xff]   ;;  %v1304_v40 = vld [vmem:[%s1460_s7 + $0x1cc] ss:$16 sps:$4 sm:$0xff]   ;;  %v1306_v41 = vld [vmem:[%s1460_s7 + $0x1c0] ss:$16 sps:$4 sm:$0xff]  }
  0x31   : > { %v1307_v42 = vld [vmem:[%s1460_s7 + $0x1c8] ss:$16 sps:$4 sm:$0xff]   ;;  %v1308_v43 = vld [vmem:[%s1460_s7 + $0x1a4] ss:$16 sps:$4 sm:$0xff]   ;;  %v1310_v44 = vld [vmem:[%s1460_s7 + $0x1ac] ss:$16 sps:$4 sm:$0xff]  }
  0x32   : > { %739 = vmatpush1.bf16.msra.mxu0 %v1270_v17  ;;  %782 = vmatpush1.bf16.msra.mxu1 %v1271_v18  ;;  %v1312_v45 = vld [vmem:[%s1460_s7 + $0x1a0] ss:$16 sps:$4 sm:$0xff]   ;;  %v1313_v46 = vld [vmem:[%s1460_s7 + $0x1a8] ss:$16 sps:$4 sm:$0xff]   ;;  %v1314_v47 = vld [vmem:[%s1460_s7 + $0x184] ss:$16 sps:$4 sm:$0xff]  }
  0x33   : > { %740 = vmatprep.subr.bf16.mxu0 %v1272_v19  ;;  %783 = vmatprep.subr.bf16.mxu1 %v1274_v20  ;;  %v1316_v48 = vld [vmem:[%s1460_s7 + $0x18c] ss:$16 sps:$4 sm:$0xff]   ;;  %v1318_v50 = vld [vmem:[%s1460_s7 + $0x180] ss:$16 sps:$4 sm:$0xff]   ;;  %v1319_v51 = vld [vmem:[%s1460_s7 + $0x188] ss:$16 sps:$4 sm:$0xff]  }
  0x34   : > { %v1346_v49 = vld [vmem:[%s235_s8 + $0x4] ss:$8 sps:$4 sm:$0xff]   ;;  %v1324_v54 = vld [vmem:[%s1460_s7 + $0x160] ss:$16 sps:$4 sm:$0xff]   ;;  %v1325_v55 = vld [vmem:[%s1460_s7 + $0x168] ss:$16 sps:$4 sm:$0xff]  }
  0x35   : > { %v1320_v52 = vld [vmem:[%s1460_s7 + $0x164] ss:$16 sps:$4 sm:$0xff]   ;;  %v1322_v53 = vld [vmem:[%s1460_s7 + $0x16c] ss:$16 sps:$4 sm:$0xff]   ;;  %764 = vmatprep.mubr.bf16.mxu0 %v1346_v49  ;;  %807 = vmatprep.mubr.bf16.mxu1 %v1346_v49  ;;  %v1330_v58 = vld [vmem:[%s1460_s7 + $0x140] ss:$16 sps:$4 sm:$0xff]  }
  0x36   : > { %741 = vmatpush1.bf16.msra.mxu0 %v1276_v21  ;;  %784 = vmatpush1.bf16.msra.mxu1 %v1277_v22  ;;  %v1326_v56 = vld [vmem:[%s1460_s7 + $0x144] ss:$16 sps:$4 sm:$0xff]   ;;  %v1328_v57 = vld [vmem:[%s1460_s7 + $0x14c] ss:$16 sps:$4 sm:$0xff]   ;;  %v1331_v59 = vld [vmem:[%s1460_s7 + $0x148] ss:$16 sps:$4 sm:$0xff]  }
  0x37   : > { %742 = vmatprep.subr.bf16.mxu0 %v1278_v23  ;;  %785 = vmatprep.subr.bf16.mxu1 %v1280_v24  ;;  %v1332_v60 = vld [vmem:[%s1460_s7 + $0x124] ss:$16 sps:$4 sm:$0xff]   ;;  %v1334_v61 = vld [vmem:[%s1460_s7 + $0x12c] ss:$16 sps:$4 sm:$0xff]   ;;  %v1336_v62 = vld [vmem:[%s1460_s7 + $0x120] ss:$16 sps:$4 sm:$0xff]  }
  0x38   : > { %v1337_v63 = vld [vmem:[%s1460_s7 + $0x128] ss:$16 sps:$4 sm:$0xff]   ;;  %v1338_v0 = vld [vmem:[%s1460_s7 + $0x104] ss:$16 sps:$4 sm:$0xff]   ;;  %v1340_v1 = vld [vmem:[%s1460_s7 + $0x10c] ss:$16 sps:$4 sm:$0xff]  }
  0x39   : > { %v1342_v2 = vld [vmem:[%s1460_s7 + $0x100] ss:$16 sps:$4 sm:$0xff]   ;;  %v1343_v3 = vld [vmem:[%s1460_s7 + $0x108] ss:$16 sps:$4 sm:$0xff]   ;;  %p1190_p11 = scmp.ne.s32.totalorder %s1377_s14, 8 }
  0x3a   : > { %743 = vmatpush1.bf16.msra.mxu0 %v1282_v25  ;;  %786 = vmatpush1.bf16.msra.mxu1 %v1283_v26  ;;  %v1344_v4 = vld [vmem:[%s235_s8] ss:$8 sps:$4 sm:$0xff]  }
  0x3b   : > { %744 = vmatprep.subr.bf16.mxu0 %v1284_v27  ;;  %787 = vmatprep.subr.bf16.mxu1 %v1286_v28  ;;  %v328_v5 = vld [vmem:[#allocation2 + $0x30] sm:$0xff]  ;;  %v330_v6 = vld [vmem:[#allocation2 + $0x18] sm:$0xff]  ;;  %v329_v9 = vld [vmem:[#allocation2] sm:$0xff] }
  0x3c   : > { %v331_v10 = vld [vmem:[#allocation2 + $0x10] sm:$0xff]  ;;  %v332_v15 = vld [vmem:[#allocation2 + $0x8] sm:$0xff]  ;;  %v333_v21 = vld [vmem:[#allocation2 + $0x20] sm:$0xff] }
  0x3d   : > { %v334_v16 = vld [vmem:[#allocation2 + $0x28] sm:$0xff]  ;;  %v335_v22 = vld [vmem:[#allocation2 + $0x38] sm:$0xff] }
  0x3e   : > { %745 = vmatpush1.bf16.msra.mxu0 %v1288_v29  ;;  %788 = vmatpush1.bf16.msra.mxu1 %v1289_v30 }
  0x3f   : > { %746 = vmatprep.subr.bf16.mxu0 %v1290_v31  ;;  %789 = vmatprep.subr.bf16.mxu1 %v1292_v32 }
  0x42   : > { %747 = vmatpush1.bf16.msra.mxu0 %v1294_v33  ;;  %790 = vmatpush1.bf16.msra.mxu1 %v1295_v34 }
  0x43   : > { %748 = vmatprep.subr.bf16.mxu0 %v1296_v35  ;;  %791 = vmatprep.subr.bf16.mxu1 %v1298_v36 }
  0x46   : > { %749 = vmatpush2.bf16.msra.mxu0 %v1300_v37  ;;  %792 = vmatpush2.bf16.msra.mxu1 %v1301_v38 }
  0x47   : > { %750 = vmatprep.subr.bf16.mxu0 %v1302_v39  ;;  %793 = vmatprep.subr.bf16.mxu1 %v1304_v40 }
  0x4a   : > { %751 = vmatpush2.bf16.msra.mxu0 %v1306_v41  ;;  %794 = vmatpush2.bf16.msra.mxu1 %v1307_v42 }
  0x4b   : > { %752 = vmatprep.subr.bf16.mxu0 %v1308_v43  ;;  %795 = vmatprep.subr.bf16.mxu1 %v1310_v44 }
  0x4e   : > { %753 = vmatpush2.bf16.msra.mxu0 %v1312_v45  ;;  %796 = vmatpush2.bf16.msra.mxu1 %v1313_v46 }
  0x4f   : > { %754 = vmatprep.subr.bf16.mxu0 %v1314_v47  ;;  %797 = vmatprep.subr.bf16.mxu1 %v1316_v48 }
  0x52   : > { %755 = vmatpush2.bf16.msra.mxu0 %v1318_v50  ;;  %798 = vmatpush2.bf16.msra.mxu1 %v1319_v51 }
  0x53   : > { %756 = vmatprep.subr.bf16.mxu0 %v1320_v52  ;;  %799 = vmatprep.subr.bf16.mxu1 %v1322_v53 }
  0x56   : > { %757 = vmatpush2.bf16.msra.mxu0 %v1324_v54  ;;  %800 = vmatpush2.bf16.msra.mxu1 %v1325_v55 }
  0x57   : > { %758 = vmatprep.subr.bf16.mxu0 %v1326_v56  ;;  %801 = vmatprep.subr.bf16.mxu1 %v1328_v57 }
  0x5a   : > { %759 = vmatpush2.bf16.msra.mxu0 %v1330_v58  ;;  %802 = vmatpush2.bf16.msra.mxu1 %v1331_v59 }
  0x5b   : > { %760 = vmatprep.subr.bf16.mxu0 %v1332_v60  ;;  %803 = vmatprep.subr.bf16.mxu1 %v1334_v61 }
  0x5e   : > { %761 = vmatpush2.bf16.msra.mxu0 %v1336_v62  ;;  %804 = vmatpush2.bf16.msra.mxu1 %v1337_v63 }
  0x5f   : > { %762 = vmatprep.subr.bf16.mxu0 %v1338_v0  ;;  %805 = vmatprep.subr.bf16.mxu1 %v1340_v1 }
  0x62   : > { %763 = vmatpush2.bf16.msra.mxu0 %v1342_v2  ;;  %806 = vmatpush2.bf16.msra.mxu1 %v1343_v3 }
  0x65   : > { %765 = vmatmul.mubr.bf16.vlgmr.msra.gmra.mxu0 %v1344_v4  ;;  %808 = vmatmul.mubr.bf16.vlgmr.msra.gmra.mxu1 %v1344_v4 }
 0x125   : > { %v766_v7 = vpop.f32.mrf.mxu0  ;;  %v809_v8 = vpop.f32.mrf.mxu1 }
 0x126   : > { %v818_v11 = vadd.f32 %v766_v7, %v328_v5  ;;  %v820_v12 = vadd.f32 %v809_v8, %v330_v6 }
 0x127   : > { %v768_v13 = vpop.f32.mrf.mxu0  ;;  %v811_v14 = vpop.f32.mrf.mxu1 }
 0x128   : > { %826 = vst [vmem:[#allocation2 + $0x30] sm:$0xff] %v818_v11  ;;  %828 = vst [vmem:[#allocation2 + $0x18] sm:$0xff] %v820_v12  ;;  %v819_v17 = vadd.f32 %v768_v13, %v329_v9  ;;  %v821_v18 = vadd.f32 %v811_v14, %v331_v10 }
 0x129   : > { %v770_v19 = vpop.f32.mrf.mxu0  ;;  %v813_v20 = vpop.f32.mrf.mxu1 }
 0x12a   : > { %827 = vst [vmem:[#allocation2] sm:$0xff] %v819_v17  ;;  %829 = vst [vmem:[#allocation2 + $0x10] sm:$0xff] %v821_v18  ;;  %v822_v23 = vadd.f32 %v770_v19, %v332_v15  ;;  %v824_v24 = vadd.f32 %v813_v20, %v334_v16  ;;  %837 = sbr.rel (%p1190_p11) target bundleno = 330 (0x14a), region = 74 }
 0x12b   : > { %v772_v25 = vpop.f32.mrf.mxu0  ;;  %v815_v26 = vpop.f32.mrf.mxu1 }
 0x12c   : > { %830 = vst [vmem:[#allocation2 + $0x8] sm:$0xff] %v822_v23  ;;  %832 = vst [vmem:[#allocation2 + $0x28] sm:$0xff] %v824_v24  ;;  %v823_v27 = vadd.f32 %v772_v25, %v333_v21  ;;  %v825_v28 = vadd.f32 %v815_v26, %v335_v22 }
 0x12e   : > { %831 = vst [vmem:[#allocation2 + $0x20] sm:$0xff] %v823_v27  ;;  %833 = vst [vmem:[#allocation2 + $0x38] sm:$0xff] %v825_v28 }
 0x12f   : > { %v838_v29 = vld [vmem:[#allocation2 + $0x30] sm:$0xff]  ;;  %v840_v31 = vld [vmem:[#allocation2 + $0x18] sm:$0xff]  ;;  %v938_v32 = vlaneseq }
 0x130   : > { %v902_v34 = vmul.f32 %v838_v29, %v838_v29  ;;  %v904_v37 = vmul.f32 %v840_v31, %v840_v31 }
 0x131   : > { %v839_v30 = vld [vmem:[#allocation2] sm:$0xff]  ;;  %v841_v36 = vld [vmem:[#allocation2 + $0x10] sm:$0xff]  ;;  %v939_v8 = vshrl.u32 %v938_v32, 7 }
 0x132   : > { %v1203_v33 = vpack.c.bf16 %v839_v30, %v838_v29  ;;  %v903_v35 = vmul.f32 %v839_v30, %v839_v30  ;;  %v1204_v40 = vpack.c.bf16 %v841_v36, %v840_v31  ;;  %v905_v41 = vmul.f32 %v841_v36, %v841_v36 }
 0x133   : > { %v842_v38 = vld [vmem:[#allocation2 + $0x8] sm:$0xff]  ;;  %vm940_vm0 = vcmp.eq.s32.totalorder %v939_v8, 0  ;;  %vm941_vm1 = vcmp.eq.s32.totalorder %v939_v8, 1 }
 0x134   : > { %v874_v43 = vadd.f32 %v842_v38, %v838_v29  ;;  %v844_v44 = vld [vmem:[#allocation2 + $0x28] sm:$0xff]  ;;  %870 = vst [vmem:[%s1582_s2] sm:$0xff] %v1203_v33  ;;  %v906_v47 = vmul.f32 %v842_v38, %v842_v38  ;;  %871 = vst [vmem:[%s1582_s2 + $0x8] sm:$0xff] %v1204_v40 }
 0x135   : > { %v843_v39 = vld [vmem:[#allocation2 + $0x20] sm:$0xff]  ;;  %v845_v45 = vld [vmem:[#allocation2 + $0x38] sm:$0xff]  ;;  %v888_v51 = vadd.f32 %v844_v44, %v840_v31  ;;  %v908_v53 = vmul.f32 %v844_v44, %v844_v44 }
 0x136   : > { %v1205_v42 = vpack.c.bf16 %v843_v39, %v842_v38  ;;  %v881_v46 = vadd.f32 %v843_v39, %v839_v30  ;;  %v907_v48 = vmul.f32 %v843_v39, %v843_v39  ;;  %v1206_v49 = vpack.c.bf16 %v845_v45, %v844_v44 }
 0x137   : > { %v875_v50 = vrot.slane %v874_v43, 4  ;;  %v895_v52 = vadd.f32 %v845_v45, %v841_v36  ;;  %v910_v55 = vadd.f32 %v906_v47, %v902_v34  ;;  %v909_v57 = vmul.f32 %v845_v45, %v845_v45 }
 0x138   : > { %872 = vst [vmem:[%s1582_s2 + $0x10] sm:$0xff] %v1205_v42  ;;  %v882_v54 = vrot.slane %v881_v46, 4  ;;  %v917_v56 = vadd.f32 %v907_v48, %v903_v35  ;;  %873 = vst [vmem:[%s1582_s2 + $0x18] sm:$0xff] %v1206_v49  ;;  %v889_v59 = vrot.slane %v888_v51, 4  ;;  %v924_v61 = vadd.f32 %v908_v53, %v904_v37 }
 0x139   : > { %v876_v58 = vadd.f32 %v875_v50, %v874_v43  ;;  %v896_v60 = vrot.slane %v895_v52, 4  ;;  %v911_v63 = vrot.slane %v910_v55, 4  ;;  %v931_v1 = vadd.f32 %v909_v57, %v905_v41 }
 0x13a   : > { %v883_v62 = vadd.f32 %v882_v54, %v881_v46  ;;  %v918_v0 = vrot.slane %v917_v56, 4  ;;  %v890_v2 = vadd.f32 %v889_v59, %v888_v51  ;;  %v925_v4 = vrot.slane %v924_v61, 4 }
 0x13b   : > { %v897_v3 = vadd.f32 %v896_v60, %v895_v52  ;;  %v877_v5 = vrot.slane %v876_v58, 2  ;;  %v932_v6 = vrot.slane %v931_v1, 4  ;;  %v912_v7 = vadd.f32 %v911_v63, %v910_v55 }
 0x13c   : > { %v884_v9 = vrot.slane %v883_v62, 2  ;;  %v919_v11 = vadd.f32 %v918_v0, %v917_v56  ;;  %v891_v12 = vrot.slane %v890_v2, 2  ;;  %v926_v13 = vadd.f32 %v925_v4, %v924_v61 }
 0x13d   : > { %v878_v10 = vadd.f32 %v877_v5, %v876_v58  ;;  %v913_v14 = vrot.slane %v912_v7, 2  ;;  %v898_v22 = vrot.slane %v897_v3, 2  ;;  %v933_v23 = vadd.f32 %v932_v6, %v931_v1 }
 0x13e   : > { %v885_v15 = vadd.f32 %v884_v9, %v883_v62  ;;  %v920_v17 = vrot.slane %v919_v11, 2  ;;  %v892_v18 = vadd.f32 %v891_v12, %v890_v2  ;;  %v927_v19 = vrot.slane %v926_v13, 2 }
 0x13f   : > { %v879_v16 = vrot.slane %v878_v10, 1  ;;  %v914_v20 = vadd.f32 %v913_v14, %v912_v7  ;;  %v899_v28 = vadd.f32 %v898_v22, %v897_v3  ;;  %v934_v29 = vrot.slane %v933_v23, 2 }
 0x140   : > { %v886_v21 = vrot.slane %v885_v15, 1  ;;  %v921_v24 = vadd.f32 %v920_v17, %v919_v11  ;;  %v893_v25 = vrot.slane %v892_v18, 1  ;;  %v928_v26 = vadd.f32 %v927_v19, %v926_v13 }
 0x141   : > { %v915_v27 = vrot.slane %v914_v20, 1  ;;  %v880_v30 = vadd.f32 %v879_v16, %v878_v10  ;;  %v900_v36 = vrot.slane %v899_v28, 1  ;;  %v935_v37 = vadd.f32 %v934_v29, %v933_v23 }
 0x142   : > { %v887_v31 = vadd.f32 %v886_v21, %v885_v15  ;;  %v922_v32 = vrot.slane %v921_v24, 1  ;;  %v929_v33 = vrot.slane %v928_v26, 1  ;;  %v894_v35 = vadd.f32 %v893_v25, %v892_v18 }
 0x143   : > { %v916_v34 = vadd.f32 %v915_v27, %v914_v20  ;;  %v936_v41 = vrot.slane %v935_v37, 1  ;;  %v901_v45 = vadd.f32 %v900_v36, %v899_v28 }
 0x144   : > { %v923_v38 = vadd.f32 %v922_v32, %v921_v24  ;;  %v930_v39 = vadd.f32 %v929_v33, %v928_v26 }
 0x145   : > { %v942_v40 = vsel %vm941_vm1, %v916_v34, 0.0  ;;  %v937_v48 = vadd.f32 %v936_v41, %v935_v37 }
 0x146   : > { %v946_v42 = vsel %vm940_vm0, %v880_v30, %v942_v40  ;;  %v943_v43 = vsel %vm941_vm1, %v923_v38, 0.0  ;;  %v944_v44 = vsel %vm941_vm1, %v930_v39, 0.0 }
 0x147   : > { %950 = vst [vmem:[%s1583_s3] sm:$0xff] %v946_v42  ;;  %v947_v46 = vsel %vm940_vm0, %v887_v31, %v943_v43  ;;  %v948_v47 = vsel %vm940_vm0, %v894_v35, %v944_v44  ;;  %v945_v49 = vsel %vm941_vm1, %v937_v48, 0.0 }
 0x148   : > { %951 = vst [vmem:[%s1583_s3 + $0x8] sm:$0xff] %v947_v46  ;;  %952 = vst [vmem:[%s1583_s3 + $0x10] sm:$0xff] %v948_v47  ;;  %v949_v50 = vsel %vm940_vm0, %v901_v45, %v945_v49 }
 0x149   : > { %953 = vst [vmem:[%s1583_s3 + $0x18] sm:$0xff] %v949_v50 }
 0x14a PF: > { %s14_s16 = sadd.s32 1, %s1385_s16   ;;  %s1584_s12 = smov %s1373_s13 }
 0x14b   : > { %p11_p12 = scmp.ge.s32.totalorder %s14_s16, 11   ;;  %s1585_s13 = smov %s1443_s20 }
 0x14c   : > { %s1586_s14 = smov %s1381_s15  ;;  %s1587_s15 = smov %s1589_s17 }
 0x14d   :  { %13 = sbr.rel (!%p11_p12) target bundleno = 3 (0x3), region = 124 }

// kernel: _lambda_.77
= control target key start
LH: loop header
LB: loop body
LE: loop exit
PB: predicated region body
PF: predicated region fallthrough
CT: control target
= control target key end

     0   :  { %v31_v0 = vlaneseq  ;;  %s224_s0 = inlined_call_operand.vmem [shape: bf16[16,512], index: 0, kind: input, shape index: {}]   ;;  %s225_s1 = inlined_call_operand.vmem [shape: f32[1,512], index: 1, kind: input, shape index: {}]   ;;  %s226_s2 = inlined_call_operand.vmem [shape: f32[1,512], index: 2, kind: input, shape index: {}]   ;;  %s227_s3 = inlined_call_operand.vmem [shape: bf16[16,512], index: 3, kind: input, shape index: {}]   ;;  %s228_s4 = inlined_call_operand.vmem [shape: bf16[16,512], index: 4, kind: output, shape index: {}]  }
   0x1   :  { %v17_v1 = vld [vmem:[%s224_s0] sm:$0xff]  ;;  %v18_v6 = vld [vmem:[%s224_s0 + $0x8] sm:$0xff]  ;;  %v19_v14 = vld [vmem:[%s224_s0 + $0x10] sm:$0xff] }
   0x2   :  { %v21_v2 = vunpack.c.l.bf16 %v17_v1  ;;  %v22_v3 = vunpack.c.h.bf16 %v17_v1  ;;  %v32_v4 = vshrl.u32 %v31_v0, 7  ;;  %v89_v5 = vld [vmem:[%s227_s3] sm:$0xff]  ;;  %v90_v7 = vld [vmem:[%s227_s3 + $0x8] sm:$0xff]  ;;  %v23_v12 = vunpack.c.l.bf16 %v18_v6  ;;  %v91_v27 = vld [vmem:[%s227_s3 + $0x10] sm:$0xff] }
   0x3   :  { %v29_v8 = vld [vmem:[%s225_s1] sm:$0xf]  ;;  %v93_v10 = vunpack.c.l.bf16 %v89_v5  ;;  %v94_v11 = vunpack.c.h.bf16 %v89_v5  ;;  %v24_v13 = vunpack.c.h.bf16 %v18_v6  ;;  %v95_v19 = vunpack.c.l.bf16 %v90_v7  ;;  %v20_v36 = vld [vmem:[%s224_s0 + $0x18] sm:$0xff] }
   0x4   :  { %v59_v9 = vld [vmem:[%s226_s2] sm:$0xf]  ;;  %v33_v15 = vsub.s32 0, %v32_v4  ;;  %v37_v16 = vsub.s32 1, %v32_v4  ;;  %v41_v17 = vsub.s32 2, %v32_v4  ;;  %v45_v18 = vsub.s32 3, %v32_v4 }
   0x5   :  { %v96_v20 = vunpack.c.h.bf16 %v90_v7  ;;  %v25_v21 = vunpack.c.l.bf16 %v19_v14  ;;  %v26_v22 = vunpack.c.h.bf16 %v19_v14  ;;  %v97_v39 = vunpack.c.l.bf16 %v91_v27  ;;  %v92_v57 = vld [vmem:[%s227_s3 + $0x18] sm:$0xff] }
   0x6   :  { %v34_v23 = vrot.slane %v29_v8, %v33_v15  ;;  %v38_v24 = vrot.slane %v29_v8, %v37_v16  ;;  %v64_v25 = vrot.slane %v59_v9, %v33_v15  ;;  %v68_v26 = vrot.slane %v59_v9, %v37_v16 }
   0x7   :  { %v42_v28 = vrot.slane %v29_v8, %v41_v17  ;;  %v46_v29 = vrot.slane %v29_v8, %v45_v18  ;;  %v72_v30 = vrot.slane %v59_v9, %v41_v17  ;;  %v76_v31 = vrot.slane %v59_v9, %v45_v18 }
   0x8   :  { %v51_v32 = vmul.f32 %v34_v23, %v21_v2  ;;  %v52_v33 = vmul.f32 %v38_v24, %v22_v3  ;;  %v55_v34 = vmul.f32 %v34_v23, %v25_v21  ;;  %v56_v35 = vmul.f32 %v38_v24, %v26_v22 }
   0x9   :  { %v53_v37 = vmul.f32 %v42_v28, %v23_v12  ;;  %v54_v38 = vmul.f32 %v46_v29, %v24_v13  ;;  %v98_v40 = vunpack.c.h.bf16 %v91_v27  ;;  %v27_v47 = vunpack.c.l.bf16 %v20_v36 }
   0xa   :  { %v81_v41 = vadd.f32 %v64_v25, %v51_v32  ;;  %v82_v42 = vadd.f32 %v68_v26, %v52_v33  ;;  %v85_v43 = vadd.f32 %v64_v25, %v55_v34  ;;  %v86_v44 = vadd.f32 %v68_v26, %v56_v35 }
   0xb   :  { %v83_v45 = vadd.f32 %v72_v30, %v53_v37  ;;  %v84_v46 = vadd.f32 %v76_v31, %v54_v38  ;;  %v28_v48 = vunpack.c.h.bf16 %v20_v36  ;;  %v57_v55 = vmul.f32 %v42_v28, %v27_v47 }
   0xc   :  { %v101_v49 = vadd.f32 %v93_v10, %v81_v41  ;;  %v102_v50 = vadd.f32 %v94_v11, %v82_v42  ;;  %v105_v51 = vadd.f32 %v97_v39, %v85_v43  ;;  %v106_v52 = vadd.f32 %v98_v40, %v86_v44 }
   0xd   :  { %v103_v53 = vadd.f32 %v95_v19, %v83_v45  ;;  %v104_v54 = vadd.f32 %v96_v20, %v84_v46  ;;  %v58_v56 = vmul.f32 %v46_v29, %v28_v48  ;;  %v87_v0 = vadd.f32 %v72_v30, %v57_v55 }
   0xe   :  { %v109_v58 = vmax.f32 %v101_v49, 0.0  ;;  %v110_v59 = vmax.f32 %v102_v50, 0.0  ;;  %v113_v60 = vmax.f32 %v105_v51, 0.0  ;;  %v114_v61 = vmax.f32 %v106_v52, 0.0 }
   0xf   :  { %v111_v62 = vmax.f32 %v103_v53, 0.0  ;;  %v112_v63 = vmax.f32 %v104_v54, 0.0  ;;  %v88_v1 = vadd.f32 %v76_v31, %v58_v56  ;;  %v99_v4 = vunpack.c.l.bf16 %v92_v57 }
  0x10   :  { %v153_v2 = vpack.c.bf16 %v110_v59, %v109_v58  ;;  %v155_v3 = vpack.c.bf16 %v114_v61, %v113_v60  ;;  %v100_v5 = vunpack.c.h.bf16 %v92_v57 }
  0x11   :  { %v154_v6 = vpack.c.bf16 %v112_v63, %v111_v62  ;;  %v107_v7 = vadd.f32 %v99_v4, %v87_v0 }
  0x12   :  { %141 = vst [vmem:[%s228_s4] sm:$0xff] %v153_v2  ;;  %143 = vst [vmem:[%s228_s4 + $0x10] sm:$0xff] %v155_v3  ;;  %v108_v8 = vadd.f32 %v100_v5, %v88_v1 }
  0x13   :  { %142 = vst [vmem:[%s228_s4 + $0x8] sm:$0xff] %v154_v6  ;;  %v115_v9 = vmax.f32 %v107_v7, 0.0 }
  0x14   :  { %v116_v10 = vmax.f32 %v108_v8, 0.0 }
  0x16   :  { %v156_v11 = vpack.c.bf16 %v116_v10, %v115_v9 }
  0x18   :  { %144 = vst [vmem:[%s228_s4 + $0x18] sm:$0xff] %v156_v11 }

// kernel: _lambda_.76
= control target key start
LH: loop header
LB: loop body
LE: loop exit
PB: predicated region body
PF: predicated region fallthrough
CT: control target
= control target key end

     0   :  { %s2041_s12 = smov 0   ;;  %s2043_s13 = smov 0   ;;  %s2284_s0 = inlined_call_operand.vmem [shape: bf16[16,4608], index: 0, kind: input, shape index: {}]   ;;  %s2285_s1 = inlined_call_operand.vmem [shape: bf16[4608,512], index: 1, kind: input, shape index: {}]   ;;  %s2286_s2 = inlined_call_operand.vmem [shape: bf16[16,512], index: 2, kind: output, shape index: {0}]   ;;  %s2287_s3 = inlined_call_operand.vmem [shape: f32[1,8,512], index: 3, kind: output, shape index: {1}]  }
   0x1   :  { %s2045_s14 = smov 0   ;;  %s2047_s15 = smov 0  }
   0x2   :  { %s2049_s16 = smov 0  }
   0x3 LB: > { %s26_s17 = sadd.s32 1, %s2014_s15  ;;  %p49_p1 = scmp.ne.s32.totalorder %s2006_s13, %s2002_s12  ;;  %s2018_s16 = sphi %s2049_s16, %s14_s16   ;;  %s2014_s15 = sphi %s2047_s15, %s2291_s15   ;;  %s2010_s14 = sphi %s2045_s14, %s2290_s14   ;;  %s2006_s13 = sphi %s2043_s13, %s2289_s13   ;;  %s2002_s12 = sphi %s2041_s12, %s2288_s12  }
   0x4   : > { %p27_p0 = scmp.ge.s32.totalorder %s26_s17, 9  ;;  %p50_p2 = scmp.eq.s32.totalorder %s2018_s16, 0 }
   0x5   : > { %s42_s19 = sadd.s32 1, %s2006_s13  ;;  %p1582_p5 = scmp.ge.s32.totalorder %s2018_s16, 9 }
   0x6   : > { %s2293_s17 = smov (%p27_p0, %s26_s17), 0  ;;  %p51_p3 = por %p50_p2, %p49_p1 }
   0x7   : > { %s38_s18 = ssub.s32 %s2014_s15, %s2293_s17  ;;  %159 = sbr.rel (%p1582_p5) target bundleno = 18 (0x12), region = 16 }
   0x8   : > { %p40_p4 = scmp.eq.s32.totalorder %s38_s18, 0 }
   0xa   : > { %s2076_s20 = scalar_select %p40_p4, %s2006_s13, %s42_s19  }
   0xc   : > { %162 = sbr.rel (!%p51_p3) target bundleno = 18 (0x12), region = 20  ;;  %s164_s21 = sand.u32 (%p51_p3), 1, %s2006_s13  }
   0xd   : > { %s1735_s22 = sshll.u32 (%p51_p3), %s2014_s15, 4  ;;  %s1583_s23 = sshll.u32 (%p51_p3), %s164_s21, 5 }
   0xe   : > { %s172_s26 = scalar_lea.vmem (%p51_p3), %s2284_s0, %s1735_s22  ;;  %s166_s27 = scalar_lea.vmem (%p51_p3), [#allocation3], %s1583_s23 }
   0xf   : > { %v185_v0 = vld [vmem:[%s172_s26] sm:$0xff] (%p51_p3)  ;;  %v187_v1 = vld [vmem:[%s172_s26 + $0x8] sm:$0xff] (%p51_p3)  ;;  %v189_v2 = vld [vmem:[%s172_s26 + $0x90] sm:$0xff] (%p51_p3) }
  0x10   : > { %186 = vst [vmem:[%s166_s27] sm:$0xff] (%p51_p3), %v185_v0  ;;  %188 = vst [vmem:[%s166_s27 + $0x8] sm:$0xff] (%p51_p3), %v187_v1  ;;  %v191_v3 = vld [vmem:[%s172_s26 + $0x98] sm:$0xff] (%p51_p3) }
  0x11   : > { %190 = vst [vmem:[%s166_s27 + $0x10] sm:$0xff] %v189_v2  ;;  %192 = vst [vmem:[%s166_s27 + $0x18] sm:$0xff] %v191_v3 }
  0x12 PF: > { %p1586_p6 = scmp.ge.s32.totalorder %s2018_s16, 1  ;;  %p212_p7 = scmp.lt.s32.totalorder %s2018_s16, 10 }
  0x14   : > { %p213_p8 = pnand %p1586_p6, %p212_p7 }
  0x15   : > { %s219_s28 = sand.u32 (!%p213_p8), 1, %s2002_s12   ;;  %s1588_s29 = sshll.u32 (!%p213_p8), %s2010_s14, 6 }
  0x16   : > { %216 = sbr.rel (%p213_p8) target bundleno = 397 (0x18d), region = 47  ;;  %s1587_s30 = sshll.u32 (!%p213_p8), %s219_s28, 5 }
  0x17   : > { %p270_p9 = scmp.lt.s32.totalorder (!%p213_p8), %s1588_s29, 575  ;;  %s2093_s8 = scalar_lea.vmem (!%p213_p8), [#allocation3], %s1587_s30 }
  0x18   : > { %p1591_p10 = scmp.ne.s32.totalorder (!%p213_p8), %s2010_s14, 0 }
  0x1b   : > { %s2295_s29 = smov (!%p270_p9, %s1588_s29), 575  ;;  %305 = sbr.rel (%p1591_p10) target bundleno = 37 (0x25), region = 55 }
  0x1c   : > { %s1736_s4 = sshll.u32 %s2295_s29, 4 }
  0x1d   : > { %s2091_s7 = scalar_lea.vmem %s2285_s1, %s1736_s4 }
  0x20   : > { %v2020_v4 = vmov 0.0  }
  0x21   : > { %306 = vst [vmem:[#allocation2 + $0x30] sm:$0xff] %v2020_v4  ;;  %307 = vst [vmem:[#allocation2] sm:$0xff] %v2020_v4 }
  0x22   : > { %308 = vst [vmem:[#allocation2 + $0x18] sm:$0xff] %v2020_v4  ;;  %309 = vst [vmem:[#allocation2 + $0x10] sm:$0xff] %v2020_v4 }
  0x23   : > { %310 = vst [vmem:[#allocation2 + $0x8] sm:$0xff] %v2020_v4  ;;  %311 = vst [vmem:[#allocation2 + $0x20] sm:$0xff] %v2020_v4 }
  0x24   : > { %312 = vst [vmem:[#allocation2 + $0x28] sm:$0xff] %v2020_v4  ;;  %313 = vst [vmem:[#allocation2 + $0x38] sm:$0xff] %v2020_v4 }
  0x25 PF: > { %v1782_v5 = vld [vmem:[%s2091_s7 + $0xe4] ss:$16 sps:$4 sm:$0xff]   ;;  %v1786_v7 = vld [vmem:[%s2091_s7 + $0xe0] ss:$16 sps:$4 sm:$0xff]   ;;  %v1883_v56 = vld [vmem:[%s2093_s8 + $0xc] ss:$16 sps:$4 sm:$0xff]  }
  0x26   : > { %v1784_v6 = vld [vmem:[%s2091_s7 + $0x2e4] ss:$16 sps:$4 sm:$0xff]   ;;  %1114 = vmatprep.subr.bf16.mxu0 %v1782_v5  ;;  %v1787_v8 = vld [vmem:[%s2091_s7 + $0x2e0] ss:$16 sps:$4 sm:$0xff]   ;;  %1189 = vmatprep.mubr.bf16.mxu1 %v1883_v56  ;;  %p1724_p11 = scmp.ne.s32.totalorder %s2010_s14, 8 }
  0x27   : > { %1157 = vmatprep.subr.bf16.mxu1 %v1784_v6  ;;  %v1788_v9 = vld [vmem:[%s2091_s7 + $0xc4] ss:$16 sps:$4 sm:$0xff]   ;;  %1115 = vmatpush1.bf16.msra.mxu0 %v1786_v7  ;;  %v1792_v11 = vld [vmem:[%s2091_s7 + $0xc0] ss:$16 sps:$4 sm:$0xff]   ;;  %v1886_v7 = vld [vmem:[%s2091_s7 + $0xec] ss:$16 sps:$4 sm:$0xff]  }
  0x28   : > { %1158 = vmatpush1.bf16.msra.mxu1 %v1787_v8  ;;  %v1790_v10 = vld [vmem:[%s2091_s7 + $0x2c4] ss:$16 sps:$4 sm:$0xff]   ;;  %1116 = vmatprep.subr.bf16.mxu0 %v1788_v9  ;;  %v1793_v12 = vld [vmem:[%s2091_s7 + $0x2c0] ss:$16 sps:$4 sm:$0xff]   ;;  %v1889_v8 = vld [vmem:[%s2091_s7 + $0x2ec] ss:$16 sps:$4 sm:$0xff]  }
  0x29   : > { %1159 = vmatprep.subr.bf16.mxu1 %v1790_v10  ;;  %v1794_v13 = vld [vmem:[%s2091_s7 + $0xa4] ss:$16 sps:$4 sm:$0xff]   ;;  %v1798_v15 = vld [vmem:[%s2091_s7 + $0xa0] ss:$16 sps:$4 sm:$0xff]   ;;  %v2168_v10 = vld [vmem:[%s2093_s8 + $0x8] ss:$16 sps:$4 sm:$0xff]  }
  0x2a   : > { %v1796_v14 = vld [vmem:[%s2091_s7 + $0x2a4] ss:$16 sps:$4 sm:$0xff]   ;;  %v1799_v16 = vld [vmem:[%s2091_s7 + $0x2a0] ss:$16 sps:$4 sm:$0xff]  }
  0x2b   : > { %1117 = vmatpush1.bf16.msra.mxu0 %v1792_v11  ;;  %v1800_v17 = vld [vmem:[%s2091_s7 + $0x84] ss:$16 sps:$4 sm:$0xff]   ;;  %v1804_v19 = vld [vmem:[%s2091_s7 + $0x80] ss:$16 sps:$4 sm:$0xff]   ;;  %v1884_v11 = vld [vmem:[%s2091_s7 + $0xe8] ss:$16 sps:$4 sm:$0xff]  }
  0x2c   : > { %1160 = vmatpush1.bf16.msra.mxu1 %v1793_v12  ;;  %1118 = vmatprep.subr.bf16.mxu0 %v1794_v13  ;;  %v1802_v18 = vld [vmem:[%s2091_s7 + $0x284] ss:$16 sps:$4 sm:$0xff]   ;;  %v1805_v20 = vld [vmem:[%s2091_s7 + $0x280] ss:$16 sps:$4 sm:$0xff]   ;;  %v1887_v12 = vld [vmem:[%s2091_s7 + $0x2e8] ss:$16 sps:$4 sm:$0xff]  }
  0x2d   : > { %1161 = vmatprep.subr.bf16.mxu1 %v1796_v14  ;;  %v1806_v21 = vld [vmem:[%s2091_s7 + $0x64] ss:$16 sps:$4 sm:$0xff]   ;;  %v1810_v23 = vld [vmem:[%s2091_s7 + $0x60] ss:$16 sps:$4 sm:$0xff]   ;;  %v1892_v13 = vld [vmem:[%s2091_s7 + $0xcc] ss:$16 sps:$4 sm:$0xff]  }
  0x2e   : > { %v1808_v22 = vld [vmem:[%s2091_s7 + $0x264] ss:$16 sps:$4 sm:$0xff]   ;;  %v1811_v24 = vld [vmem:[%s2091_s7 + $0x260] ss:$16 sps:$4 sm:$0xff]   ;;  %v1895_v14 = vld [vmem:[%s2091_s7 + $0x2cc] ss:$16 sps:$4 sm:$0xff]  }
  0x2f   : > { %1119 = vmatpush1.bf16.msra.mxu0 %v1798_v15  ;;  %v1812_v25 = vld [vmem:[%s2091_s7 + $0x44] ss:$16 sps:$4 sm:$0xff]   ;;  %v1816_v27 = vld [vmem:[%s2091_s7 + $0x40] ss:$16 sps:$4 sm:$0xff]   ;;  %v1890_v15 = vld [vmem:[%s2091_s7 + $0xc8] ss:$16 sps:$4 sm:$0xff]  }
  0x30   : > { %1162 = vmatpush1.bf16.msra.mxu1 %v1799_v16  ;;  %1120 = vmatprep.subr.bf16.mxu0 %v1800_v17  ;;  %v1814_v26 = vld [vmem:[%s2091_s7 + $0x244] ss:$16 sps:$4 sm:$0xff]   ;;  %v1817_v28 = vld [vmem:[%s2091_s7 + $0x240] ss:$16 sps:$4 sm:$0xff]   ;;  %v1893_v16 = vld [vmem:[%s2091_s7 + $0x2c8] ss:$16 sps:$4 sm:$0xff]  }
  0x31   : > { %1163 = vmatprep.subr.bf16.mxu1 %v1802_v18  ;;  %v1818_v29 = vld [vmem:[%s2091_s7 + $0x24] ss:$16 sps:$4 sm:$0xff]   ;;  %v1822_v31 = vld [vmem:[%s2091_s7 + $0x20] ss:$16 sps:$4 sm:$0xff]   ;;  %v1898_v17 = vld [vmem:[%s2091_s7 + $0xac] ss:$16 sps:$4 sm:$0xff]  }
  0x32   : > { %v1820_v30 = vld [vmem:[%s2091_s7 + $0x224] ss:$16 sps:$4 sm:$0xff]   ;;  %v1823_v32 = vld [vmem:[%s2091_s7 + $0x220] ss:$16 sps:$4 sm:$0xff]   ;;  %v1901_v18 = vld [vmem:[%s2091_s7 + $0x2ac] ss:$16 sps:$4 sm:$0xff]  }
  0x33   : > { %1121 = vmatpush1.bf16.msra.mxu0 %v1804_v19  ;;  %v1824_v33 = vld [vmem:[%s2091_s7 + $0x4] ss:$16 sps:$4 sm:$0xff]   ;;  %v1828_v35 = vld [vmem:[%s2091_s7] ss:$16 sps:$4 sm:$0xff]   ;;  %v1896_v19 = vld [vmem:[%s2091_s7 + $0xa8] ss:$16 sps:$4 sm:$0xff]  }
  0x34   : > { %1164 = vmatpush1.bf16.msra.mxu1 %v1805_v20  ;;  %1122 = vmatprep.subr.bf16.mxu0 %v1806_v21  ;;  %v1826_v34 = vld [vmem:[%s2091_s7 + $0x204] ss:$16 sps:$4 sm:$0xff]   ;;  %v1829_v36 = vld [vmem:[%s2091_s7 + $0x200] ss:$16 sps:$4 sm:$0xff]   ;;  %v1899_v20 = vld [vmem:[%s2091_s7 + $0x2a8] ss:$16 sps:$4 sm:$0xff]  }
  0x35   : > { %1165 = vmatprep.subr.bf16.mxu1 %v1808_v22  ;;  %v1830_v37 = vld [vmem:[%s2091_s7 + $0x1e4] ss:$16 sps:$4 sm:$0xff]   ;;  %v1834_v39 = vld [vmem:[%s2091_s7 + $0x1e0] ss:$16 sps:$4 sm:$0xff]   ;;  %v1904_v21 = vld [vmem:[%s2091_s7 + $0x8c] ss:$16 sps:$4 sm:$0xff]  }
  0x36   : > { %v1832_v38 = vld [vmem:[%s2091_s7 + $0x3e4] ss:$16 sps:$4 sm:$0xff]   ;;  %v1835_v40 = vld [vmem:[%s2091_s7 + $0x3e0] ss:$16 sps:$4 sm:$0xff]   ;;  %v1907_v22 = vld [vmem:[%s2091_s7 + $0x28c] ss:$16 sps:$4 sm:$0xff]  }
  0x37   : > { %1123 = vmatpush1.bf16.msra.mxu0 %v1810_v23  ;;  %v1836_v41 = vld [vmem:[%s2091_s7 + $0x1c4] ss:$16 sps:$4 sm:$0xff]   ;;  %v1840_v43 = vld [vmem:[%s2091_s7 + $0x1c0] ss:$16 sps:$4 sm:$0xff]   ;;  %v1902_v23 = vld [vmem:[%s2091_s7 + $0x88] ss:$16 sps:$4 sm:$0xff]  }
  0x38   : > { %1166 = vmatpush1.bf16.msra.mxu1 %v1811_v24  ;;  %1124 = vmatprep.subr.bf16.mxu0 %v1812_v25  ;;  %v1838_v42 = vld [vmem:[%s2091_s7 + $0x3c4] ss:$16 sps:$4 sm:$0xff]   ;;  %v1841_v44 = vld [vmem:[%s2091_s7 + $0x3c0] ss:$16 sps:$4 sm:$0xff]   ;;  %v1905_v24 = vld [vmem:[%s2091_s7 + $0x288] ss:$16 sps:$4 sm:$0xff]  }
  0x39   : > { %1167 = vmatprep.subr.bf16.mxu1 %v1814_v26  ;;  %v1842_v45 = vld [vmem:[%s2091_s7 + $0x1a4] ss:$16 sps:$4 sm:$0xff]   ;;  %v1846_v47 = vld [vmem:[%s2091_s7 + $0x1a0] ss:$16 sps:$4 sm:$0xff]   ;;  %v1910_v25 = vld [vmem:[%s2091_s7 + $0x6c] ss:$16 sps:$4 sm:$0xff]  }
  0x3a   : > { %v1844_v46 = vld [vmem:[%s2091_s7 + $0x3a4] ss:$16 sps:$4 sm:$0xff]   ;;  %v1847_v48 = vld [vmem:[%s2091_s7 + $0x3a0] ss:$16 sps:$4 sm:$0xff]   ;;  %v1913_v26 = vld [vmem:[%s2091_s7 + $0x26c] ss:$16 sps:$4 sm:$0xff]  }
  0x3b   : > { %1125 = vmatpush1.bf16.msra.mxu0 %v1816_v27  ;;  %v1848_v49 = vld [vmem:[%s2091_s7 + $0x184] ss:$16 sps:$4 sm:$0xff]   ;;  %v1852_v51 = vld [vmem:[%s2091_s7 + $0x180] ss:$16 sps:$4 sm:$0xff]   ;;  %v1908_v27 = vld [vmem:[%s2091_s7 + $0x68] ss:$16 sps:$4 sm:$0xff]  }
  0x3c   : > { %1168 = vmatpush1.bf16.msra.mxu1 %v1817_v28  ;;  %1126 = vmatprep.subr.bf16.mxu0 %v1818_v29  ;;  %v1850_v50 = vld [vmem:[%s2091_s7 + $0x384] ss:$16 sps:$4 sm:$0xff]   ;;  %v1853_v52 = vld [vmem:[%s2091_s7 + $0x380] ss:$16 sps:$4 sm:$0xff]   ;;  %v1911_v28 = vld [vmem:[%s2091_s7 + $0x268] ss:$16 sps:$4 sm:$0xff]  }
  0x3d   : > { %1169 = vmatprep.subr.bf16.mxu1 %v1820_v30  ;;  %v1854_v53 = vld [vmem:[%s2091_s7 + $0x164] ss:$16 sps:$4 sm:$0xff]   ;;  %v1858_v57 = vld [vmem:[%s2091_s7 + $0x160] ss:$16 sps:$4 sm:$0xff]   ;;  %v1916_v29 = vld [vmem:[%s2091_s7 + $0x4c] ss:$16 sps:$4 sm:$0xff]  }
  0x3e   : > { %v1880_v54 = vld [vmem:[%s2093_s8 + $0x4] ss:$16 sps:$4 sm:$0xff]   ;;  %v1859_v58 = vld [vmem:[%s2091_s7 + $0x360] ss:$16 sps:$4 sm:$0xff]   ;;  %v1919_v30 = vld [vmem:[%s2091_s7 + $0x24c] ss:$16 sps:$4 sm:$0xff]  }
  0x3f   : > { %1127 = vmatpush1.bf16.msra.mxu0 %v1822_v31  ;;  %v1856_v55 = vld [vmem:[%s2091_s7 + $0x364] ss:$16 sps:$4 sm:$0xff]   ;;  %1146 = vmatprep.mubr.bf16.mxu0 %v1880_v54  ;;  %v1864_v61 = vld [vmem:[%s2091_s7 + $0x140] ss:$16 sps:$4 sm:$0xff]   ;;  %v1914_v31 = vld [vmem:[%s2091_s7 + $0x48] ss:$16 sps:$4 sm:$0xff]  }
  0x40   : > { %1170 = vmatpush1.bf16.msra.mxu1 %v1823_v32  ;;  %1128 = vmatprep.subr.bf16.mxu0 %v1824_v33  ;;  %v1860_v59 = vld [vmem:[%s2091_s7 + $0x144] ss:$16 sps:$4 sm:$0xff]   ;;  %v1865_v62 = vld [vmem:[%s2091_s7 + $0x340] ss:$16 sps:$4 sm:$0xff]   ;;  %v1917_v32 = vld [vmem:[%s2091_s7 + $0x248] ss:$16 sps:$4 sm:$0xff]  }
  0x41   : > { %1171 = vmatprep.subr.bf16.mxu1 %v1826_v34  ;;  %v1862_v60 = vld [vmem:[%s2091_s7 + $0x344] ss:$16 sps:$4 sm:$0xff]   ;;  %v1870_v1 = vld [vmem:[%s2091_s7 + $0x120] ss:$16 sps:$4 sm:$0xff]   ;;  %v1922_v33 = vld [vmem:[%s2091_s7 + $0x2c] ss:$16 sps:$4 sm:$0xff]  }
  0x42   : > { %v1866_v63 = vld [vmem:[%s2091_s7 + $0x124] ss:$16 sps:$4 sm:$0xff]   ;;  %v1871_v2 = vld [vmem:[%s2091_s7 + $0x320] ss:$16 sps:$4 sm:$0xff]   ;;  %v1925_v34 = vld [vmem:[%s2091_s7 + $0x22c] ss:$16 sps:$4 sm:$0xff]  }
  0x43   : > { %1129 = vmatpush1.bf16.msra.mxu0 %v1828_v35  ;;  %v1868_v0 = vld [vmem:[%s2091_s7 + $0x324] ss:$16 sps:$4 sm:$0xff]   ;;  %v1876_v5 = vld [vmem:[%s2091_s7 + $0x100] ss:$16 sps:$4 sm:$0xff]   ;;  %v1920_v35 = vld [vmem:[%s2091_s7 + $0x28] ss:$16 sps:$4 sm:$0xff]  }
  0x44   : > { %1172 = vmatpush1.bf16.msra.mxu1 %v1829_v36  ;;  %1130 = vmatprep.subr.bf16.mxu0 %v1830_v37  ;;  %v1872_v3 = vld [vmem:[%s2091_s7 + $0x104] ss:$16 sps:$4 sm:$0xff]   ;;  %v1877_v6 = vld [vmem:[%s2091_s7 + $0x300] ss:$16 sps:$4 sm:$0xff]   ;;  %v1923_v36 = vld [vmem:[%s2091_s7 + $0x228] ss:$16 sps:$4 sm:$0xff]  }
  0x45   : > { %1173 = vmatprep.subr.bf16.mxu1 %v1832_v38  ;;  %v1874_v4 = vld [vmem:[%s2091_s7 + $0x304] ss:$16 sps:$4 sm:$0xff]   ;;  %v2165_v9 = vld [vmem:[%s2093_s8] ss:$16 sps:$4 sm:$0xff]   ;;  %v1928_v37 = vld [vmem:[%s2091_s7 + $0xc] ss:$16 sps:$4 sm:$0xff]  }
  0x46   : > { %v1931_v38 = vld [vmem:[%s2091_s7 + $0x20c] ss:$16 sps:$4 sm:$0xff]  }
  0x47   : > { %1131 = vmatpush2.bf16.msra.mxu0 %v1834_v39  ;;  %v1926_v39 = vld [vmem:[%s2091_s7 + $0x8] ss:$16 sps:$4 sm:$0xff]  }
  0x48   : > { %1174 = vmatpush2.bf16.msra.mxu1 %v1835_v40  ;;  %1132 = vmatprep.subr.bf16.mxu0 %v1836_v41  ;;  %v1929_v40 = vld [vmem:[%s2091_s7 + $0x208] ss:$16 sps:$4 sm:$0xff]   ;;  %v1934_v41 = vld [vmem:[%s2091_s7 + $0x1ec] ss:$16 sps:$4 sm:$0xff]  }
  0x49   : > { %1175 = vmatprep.subr.bf16.mxu1 %v1838_v42  ;;  %v1937_v42 = vld [vmem:[%s2091_s7 + $0x3ec] ss:$16 sps:$4 sm:$0xff]  }
  0x4b   : > { %1133 = vmatpush2.bf16.msra.mxu0 %v1840_v43  ;;  %v1932_v43 = vld [vmem:[%s2091_s7 + $0x1e8] ss:$16 sps:$4 sm:$0xff]  }
  0x4c   : > { %1176 = vmatpush2.bf16.msra.mxu1 %v1841_v44  ;;  %1134 = vmatprep.subr.bf16.mxu0 %v1842_v45  ;;  %v1935_v44 = vld [vmem:[%s2091_s7 + $0x3e8] ss:$16 sps:$4 sm:$0xff]   ;;  %v1940_v45 = vld [vmem:[%s2091_s7 + $0x1cc] ss:$16 sps:$4 sm:$0xff]  }
  0x4d   : > { %1177 = vmatprep.subr.bf16.mxu1 %v1844_v46  ;;  %v1943_v46 = vld [vmem:[%s2091_s7 + $0x3cc] ss:$16 sps:$4 sm:$0xff]  }
  0x4f   : > { %1135 = vmatpush2.bf16.msra.mxu0 %v1846_v47  ;;  %v1938_v47 = vld [vmem:[%s2091_s7 + $0x1c8] ss:$16 sps:$4 sm:$0xff]  }
  0x50   : > { %1178 = vmatpush2.bf16.msra.mxu1 %v1847_v48  ;;  %1136 = vmatprep.subr.bf16.mxu0 %v1848_v49  ;;  %v1941_v48 = vld [vmem:[%s2091_s7 + $0x3c8] ss:$16 sps:$4 sm:$0xff]   ;;  %v1946_v49 = vld [vmem:[%s2091_s7 + $0x1ac] ss:$16 sps:$4 sm:$0xff]  }
  0x51   : > { %1179 = vmatprep.subr.bf16.mxu1 %v1850_v50  ;;  %v1949_v50 = vld [vmem:[%s2091_s7 + $0x3ac] ss:$16 sps:$4 sm:$0xff]  }
  0x53   : > { %1137 = vmatpush2.bf16.msra.mxu0 %v1852_v51  ;;  %v1944_v51 = vld [vmem:[%s2091_s7 + $0x1a8] ss:$16 sps:$4 sm:$0xff]  }
  0x54   : > { %1180 = vmatpush2.bf16.msra.mxu1 %v1853_v52  ;;  %1138 = vmatprep.subr.bf16.mxu0 %v1854_v53  ;;  %v1947_v52 = vld [vmem:[%s2091_s7 + $0x3a8] ss:$16 sps:$4 sm:$0xff]   ;;  %v1952_v53 = vld [vmem:[%s2091_s7 + $0x18c] ss:$16 sps:$4 sm:$0xff]  }
  0x55   : > { %1181 = vmatprep.subr.bf16.mxu1 %v1856_v55  ;;  %v1950_v55 = vld [vmem:[%s2091_s7 + $0x188] ss:$16 sps:$4 sm:$0xff]  }
  0x57   : > { %1139 = vmatpush2.bf16.msra.mxu0 %v1858_v57  ;;  %v1958_v57 = vld [vmem:[%s2091_s7 + $0x16c] ss:$16 sps:$4 sm:$0xff]  }
  0x58   : > { %1182 = vmatpush2.bf16.msra.mxu1 %v1859_v58  ;;  %1140 = vmatprep.subr.bf16.mxu0 %v1860_v59  ;;  %v1961_v58 = vld [vmem:[%s2091_s7 + $0x36c] ss:$16 sps:$4 sm:$0xff]   ;;  %v1956_v59 = vld [vmem:[%s2091_s7 + $0x168] ss:$16 sps:$4 sm:$0xff]  }
  0x59   : > { %1183 = vmatprep.subr.bf16.mxu1 %v1862_v60  ;;  %v1959_v60 = vld [vmem:[%s2091_s7 + $0x368] ss:$16 sps:$4 sm:$0xff]  }
  0x5b   : > { %1141 = vmatpush2.bf16.msra.mxu0 %v1864_v61  ;;  %v1964_v61 = vld [vmem:[%s2091_s7 + $0x14c] ss:$16 sps:$4 sm:$0xff]  }
  0x5c   : > { %1184 = vmatpush2.bf16.msra.mxu1 %v1865_v62  ;;  %1142 = vmatprep.subr.bf16.mxu0 %v1866_v63  ;;  %v1967_v62 = vld [vmem:[%s2091_s7 + $0x34c] ss:$16 sps:$4 sm:$0xff]   ;;  %v1962_v63 = vld [vmem:[%s2091_s7 + $0x148] ss:$16 sps:$4 sm:$0xff]  }
  0x5d   : > { %1185 = vmatprep.subr.bf16.mxu1 %v1868_v0  ;;  %v1965_v0 = vld [vmem:[%s2091_s7 + $0x348] ss:$16 sps:$4 sm:$0xff]  }
  0x5f   : > { %1143 = vmatpush2.bf16.msra.mxu0 %v1870_v1  ;;  %v1970_v1 = vld [vmem:[%s2091_s7 + $0x12c] ss:$16 sps:$4 sm:$0xff]  }
  0x60   : > { %1186 = vmatpush2.bf16.msra.mxu1 %v1871_v2  ;;  %1144 = vmatprep.subr.bf16.mxu0 %v1872_v3  ;;  %v1973_v2 = vld [vmem:[%s2091_s7 + $0x32c] ss:$16 sps:$4 sm:$0xff]   ;;  %v1968_v3 = vld [vmem:[%s2091_s7 + $0x128] ss:$16 sps:$4 sm:$0xff]  }
  0x61   : > { %1187 = vmatprep.subr.bf16.mxu1 %v1874_v4  ;;  %v1971_v4 = vld [vmem:[%s2091_s7 + $0x328] ss:$16 sps:$4 sm:$0xff]  }
  0x63   : > { %1145 = vmatpush2.bf16.msra.mxu0 %v1876_v5  ;;  %v1976_v5 = vld [vmem:[%s2091_s7 + $0x10c] ss:$16 sps:$4 sm:$0xff]  }
  0x64   : > { %1188 = vmatpush2.bf16.msra.mxu1 %v1877_v6  ;;  %1200 = vmatprep.subr.bf16.mxu0 %v1886_v7  ;;  %v1979_v6 = vld [vmem:[%s2091_s7 + $0x30c] ss:$16 sps:$4 sm:$0xff]   ;;  %v1974_v7 = vld [vmem:[%s2091_s7 + $0x108] ss:$16 sps:$4 sm:$0xff]  }
  0x65   : > { %1243 = vmatprep.subr.bf16.mxu1 %v1889_v8  ;;  %v1977_v8 = vld [vmem:[%s2091_s7 + $0x308] ss:$16 sps:$4 sm:$0xff]  }
  0x66   : > { %1147 = vmatmul.mubr.bf16.vlgmr.msra.gmra.mxu0 %v2165_v9 }
  0x67   : > { %1190 = vmatmul.mubr.bf16.vlgmr.msra.gmra.mxu1 %v2168_v10  ;;  %1201 = vmatpush1.bf16.msra.mxu0 %v1884_v11 }
  0x68   : > { %1244 = vmatpush1.bf16.msra.mxu1 %v1887_v12  ;;  %1202 = vmatprep.subr.bf16.mxu0 %v1892_v13  ;;  %v314_v12 = vld [vmem:[#allocation2 + $0x30] sm:$0xff] }
  0x69   : > { %1245 = vmatprep.subr.bf16.mxu1 %v1895_v14  ;;  %1232 = vmatprep.mubr.bf16.mxu0 %v1880_v54  ;;  %v1955_v54 = vld [vmem:[%s2091_s7 + $0x38c] ss:$16 sps:$4 sm:$0xff]  }
  0x6a   : > { %1275 = vmatprep.mubr.bf16.mxu1 %v1883_v56  ;;  %v1953_v56 = vld [vmem:[%s2091_s7 + $0x388] ss:$16 sps:$4 sm:$0xff]  }
  0x6b   : > { %1203 = vmatpush1.bf16.msra.mxu0 %v1890_v15 }
  0x6c   : > { %1246 = vmatpush1.bf16.msra.mxu1 %v1893_v16  ;;  %1204 = vmatprep.subr.bf16.mxu0 %v1898_v17  ;;  %v315_v16 = vld [vmem:[#allocation2] sm:$0xff] }
  0x6d   : > { %1247 = vmatprep.subr.bf16.mxu1 %v1901_v18 }
  0x6f   : > { %1205 = vmatpush1.bf16.msra.mxu0 %v1896_v19 }
  0x70   : > { %1248 = vmatpush1.bf16.msra.mxu1 %v1899_v20  ;;  %1206 = vmatprep.subr.bf16.mxu0 %v1904_v21  ;;  %v318_v21 = vld [vmem:[#allocation2 + $0x8] sm:$0xff] }
  0x71   : > { %1249 = vmatprep.subr.bf16.mxu1 %v1907_v22 }
  0x73   : > { %1207 = vmatpush1.bf16.msra.mxu0 %v1902_v23 }
  0x74   : > { %1250 = vmatpush1.bf16.msra.mxu1 %v1905_v24  ;;  %1208 = vmatprep.subr.bf16.mxu0 %v1910_v25 }
  0x75   : > { %1251 = vmatprep.subr.bf16.mxu1 %v1913_v26  ;;  %v319_v26 = vld [vmem:[#allocation2 + $0x20] sm:$0xff] }
  0x77   : > { %1209 = vmatpush1.bf16.msra.mxu0 %v1908_v27 }
  0x78   : > { %1252 = vmatpush1.bf16.msra.mxu1 %v1911_v28  ;;  %1210 = vmatprep.subr.bf16.mxu0 %v1916_v29 }
  0x79   : > { %1253 = vmatprep.subr.bf16.mxu1 %v1919_v30  ;;  %v316_v30 = vld [vmem:[#allocation2 + $0x18] sm:$0xff] }
  0x7b   : > { %1211 = vmatpush1.bf16.msra.mxu0 %v1914_v31 }
  0x7c   : > { %1254 = vmatpush1.bf16.msra.mxu1 %v1917_v32  ;;  %1212 = vmatprep.subr.bf16.mxu0 %v1922_v33 }
  0x7d   : > { %1255 = vmatprep.subr.bf16.mxu1 %v1925_v34  ;;  %v317_v34 = vld [vmem:[#allocation2 + $0x10] sm:$0xff] }
  0x7f   : > { %1213 = vmatpush1.bf16.msra.mxu0 %v1920_v35 }
  0x80   : > { %1256 = vmatpush1.bf16.msra.mxu1 %v1923_v36  ;;  %1214 = vmatprep.subr.bf16.mxu0 %v1928_v37 }
  0x81   : > { %1257 = vmatprep.subr.bf16.mxu1 %v1931_v38 }
  0x83   : > { %1215 = vmatpush1.bf16.msra.mxu0 %v1926_v39  ;;  %v320_v39 = vld [vmem:[#allocation2 + $0x28] sm:$0xff] }
  0x84   : > { %1258 = vmatpush1.bf16.msra.mxu1 %v1929_v40  ;;  %1216 = vmatprep.subr.bf16.mxu0 %v1934_v41 }
  0x85   : > { %1259 = vmatprep.subr.bf16.mxu1 %v1937_v42 }
  0x87   : > { %1217 = vmatpush2.bf16.msra.mxu0 %v1932_v43 }
  0x88   : > { %1260 = vmatpush2.bf16.msra.mxu1 %v1935_v44  ;;  %1218 = vmatprep.subr.bf16.mxu0 %v1940_v45  ;;  %v321_v44 = vld [vmem:[#allocation2 + $0x38] sm:$0xff] }
  0x89   : > { %1261 = vmatprep.subr.bf16.mxu1 %v1943_v46 }
  0x8b   : > { %1219 = vmatpush2.bf16.msra.mxu0 %v1938_v47 }
  0x8c   : > { %1262 = vmatpush2.bf16.msra.mxu1 %v1941_v48  ;;  %1220 = vmatprep.subr.bf16.mxu0 %v1946_v49 }
  0x8d   : > { %1263 = vmatprep.subr.bf16.mxu1 %v1949_v50 }
  0x8f   : > { %1221 = vmatpush2.bf16.msra.mxu0 %v1944_v51 }
  0x90   : > { %1264 = vmatpush2.bf16.msra.mxu1 %v1947_v52  ;;  %1222 = vmatprep.subr.bf16.mxu0 %v1952_v53 }
  0x91   : > { %1265 = vmatprep.subr.bf16.mxu1 %v1955_v54 }
  0x93   : > { %1223 = vmatpush2.bf16.msra.mxu0 %v1950_v55 }
  0x94   : > { %1266 = vmatpush2.bf16.msra.mxu1 %v1953_v56  ;;  %1224 = vmatprep.subr.bf16.mxu0 %v1958_v57 }
  0x95   : > { %1267 = vmatprep.subr.bf16.mxu1 %v1961_v58 }
  0x97   : > { %1225 = vmatpush2.bf16.msra.mxu0 %v1956_v59 }
  0x98   : > { %1268 = vmatpush2.bf16.msra.mxu1 %v1959_v60  ;;  %1226 = vmatprep.subr.bf16.mxu0 %v1964_v61 }
  0x99   : > { %1269 = vmatprep.subr.bf16.mxu1 %v1967_v62 }
  0x9b   : > { %1227 = vmatpush2.bf16.msra.mxu0 %v1962_v63 }
  0x9c   : > { %1270 = vmatpush2.bf16.msra.mxu1 %v1965_v0  ;;  %1228 = vmatprep.subr.bf16.mxu0 %v1970_v1 }
  0x9d   : > { %1271 = vmatprep.subr.bf16.mxu1 %v1973_v2 }
  0x9f   : > { %1229 = vmatpush2.bf16.msra.mxu0 %v1968_v3 }
  0xa0   : > { %1272 = vmatpush2.bf16.msra.mxu1 %v1971_v4  ;;  %1230 = vmatprep.subr.bf16.mxu0 %v1976_v5 }
  0xa1   : > { %1273 = vmatprep.subr.bf16.mxu1 %v1979_v6 }
  0xa3   : > { %1231 = vmatpush2.bf16.msra.mxu0 %v1974_v7 }
  0xa4   : > { %1274 = vmatpush2.bf16.msra.mxu1 %v1977_v8 }
  0xa6   : > { %1233 = vmatmul.mubr.bf16.vlgmr.msra.gmra.mxu0 %v2165_v9 }
  0xa7   : > { %1276 = vmatmul.mubr.bf16.vlgmr.msra.gmra.mxu1 %v2168_v10 }
 0x126   : > { %v1148_v11 = vpop.f32.mrf.mxu0 }
 0x127   : > { %v1191_v13 = vpop.f32.mrf.mxu1 }
 0x128   : > { %v1192_v14 = vadd.f32 %v1191_v13, %v1148_v11  ;;  %v1150_v15 = vpop.f32.mrf.mxu0 }
 0x129   : > { %v1193_v17 = vpop.f32.mrf.mxu1 }
 0x12a   : > { %v1286_v18 = vadd.f32 %v1192_v14, %v314_v12  ;;  %v1194_v19 = vadd.f32 %v1193_v17, %v1150_v15  ;;  %v1152_v20 = vpop.f32.mrf.mxu0 }
 0x12b   : > { %v1195_v22 = vpop.f32.mrf.mxu1 }
 0x12c   : > { %1294 = vst [vmem:[#allocation2 + $0x30] sm:$0xff] %v1286_v18  ;;  %v1287_v23 = vadd.f32 %v1194_v19, %v315_v16  ;;  %v1196_v24 = vadd.f32 %v1195_v22, %v1152_v20  ;;  %v1154_v25 = vpop.f32.mrf.mxu0 }
 0x12d   : > { %v1197_v9 = vpop.f32.mrf.mxu1 }
 0x12e   : > { %1295 = vst [vmem:[#allocation2] sm:$0xff] %v1287_v23  ;;  %v1290_v10 = vadd.f32 %v1196_v24, %v318_v21  ;;  %v1198_v27 = vadd.f32 %v1197_v9, %v1154_v25 }
 0x130   : > { %1298 = vst [vmem:[#allocation2 + $0x8] sm:$0xff] %v1290_v10  ;;  %v1291_v28 = vadd.f32 %v1198_v27, %v319_v26 }
 0x132   : > { %1299 = vst [vmem:[#allocation2 + $0x20] sm:$0xff] %v1291_v28 }
 0x166   : > { %v1234_v29 = vpop.f32.mrf.mxu0 }
 0x167   : > { %v1277_v31 = vpop.f32.mrf.mxu1 }
 0x168   : > { %v1278_v32 = vadd.f32 %v1277_v31, %v1234_v29  ;;  %v1236_v33 = vpop.f32.mrf.mxu0 }
 0x169   : > { %v1279_v35 = vpop.f32.mrf.mxu1 }
 0x16a   : > { %v1288_v36 = vadd.f32 %v1278_v32, %v316_v30  ;;  %v1280_v37 = vadd.f32 %v1279_v35, %v1236_v33  ;;  %v1238_v38 = vpop.f32.mrf.mxu0 }
 0x16b   : > { %v1281_v40 = vpop.f32.mrf.mxu1 }
 0x16c   : > { %1296 = vst [vmem:[#allocation2 + $0x18] sm:$0xff] %v1288_v36  ;;  %v1289_v41 = vadd.f32 %v1280_v37, %v317_v34  ;;  %v1282_v42 = vadd.f32 %v1281_v40, %v1238_v38  ;;  %v1240_v43 = vpop.f32.mrf.mxu0 }
 0x16d   : > { %v1283_v45 = vpop.f32.mrf.mxu1 }
 0x16e   : > { %1297 = vst [vmem:[#allocation2 + $0x10] sm:$0xff] %v1289_v41  ;;  %v1292_v46 = vadd.f32 %v1282_v42, %v320_v39  ;;  %v1284_v47 = vadd.f32 %v1283_v45, %v1240_v43  ;;  %1305 = sbr.rel (%p1724_p11) target bundleno = 397 (0x18d), region = 59 }
 0x170   : > { %1300 = vst [vmem:[#allocation2 + $0x28] sm:$0xff] %v1292_v46  ;;  %v1293_v48 = vadd.f32 %v1284_v47, %v321_v44 }
 0x172   : > { %1301 = vst [vmem:[#allocation2 + $0x38] sm:$0xff] %v1293_v48 }
 0x173   : > { %v1306_v49 = vld [vmem:[#allocation2 + $0x30] sm:$0xff]  ;;  %v1307_v50 = vld [vmem:[#allocation2] sm:$0xff]  ;;  %v1308_v51 = vld [vmem:[#allocation2 + $0x18] sm:$0xff]  ;;  %v1406_v52 = vlaneseq }
 0x174   : > { %v1737_v53 = vpack.c.bf16 %v1307_v50, %v1306_v49  ;;  %v1370_v54 = vmul.f32 %v1306_v49, %v1306_v49  ;;  %v1371_v55 = vmul.f32 %v1307_v50, %v1307_v50  ;;  %v1372_v57 = vmul.f32 %v1308_v51, %v1308_v51  ;;  %v1310_v58 = vld [vmem:[#allocation2 + $0x8] sm:$0xff]  ;;  %v1311_v59 = vld [vmem:[#allocation2 + $0x20] sm:$0xff] }
 0x175   : > { %v1309_v56 = vld [vmem:[#allocation2 + $0x10] sm:$0xff]  ;;  %v1739_v62 = vpack.c.bf16 %v1311_v59, %v1310_v58  ;;  %v1342_v63 = vadd.f32 %v1310_v58, %v1306_v49  ;;  %v1349_v2 = vadd.f32 %v1311_v59, %v1307_v50  ;;  %v1374_v3 = vmul.f32 %v1310_v58, %v1310_v58 }
 0x176   : > { %v1738_v60 = vpack.c.bf16 %v1309_v56, %v1308_v51  ;;  %v1373_v61 = vmul.f32 %v1309_v56, %v1309_v56  ;;  %1338 = vst [vmem:[%s2286_s2] sm:$0xff] %v1737_v53  ;;  %v1375_v4 = vmul.f32 %v1311_v59, %v1311_v59  ;;  %v1407_v28 = vshrl.u32 %v1406_v52, 7 }
 0x177   : > { %v1312_v0 = vld [vmem:[#allocation2 + $0x28] sm:$0xff]  ;;  %1340 = vst [vmem:[%s2286_s2 + $0x10] sm:$0xff] %v1739_v62  ;;  %v1343_v6 = vrot.slane %v1342_v63, 4  ;;  %v1350_v12 = vrot.slane %v1349_v2, 4  ;;  %v1378_v13 = vadd.f32 %v1374_v3, %v1370_v54 }
 0x178   : > { %1339 = vst [vmem:[%s2286_s2 + $0x8] sm:$0xff] %v1738_v60  ;;  %v1356_v7 = vadd.f32 %v1312_v0, %v1308_v51  ;;  %v1376_v11 = vmul.f32 %v1312_v0, %v1312_v0  ;;  %v1385_v14 = vadd.f32 %v1375_v4, %v1371_v55  ;;  %vm1408_vm0 = vcmp.eq.s32.totalorder %v1407_v28, 0 }
 0x179   : > { %v1313_v1 = vld [vmem:[#allocation2 + $0x38] sm:$0xff]  ;;  %v1344_v16 = vadd.f32 %v1343_v6, %v1342_v63  ;;  %v1351_v20 = vadd.f32 %v1350_v12, %v1349_v2  ;;  %v1379_v21 = vrot.slane %v1378_v13, 4  ;;  %vm1409_vm1 = vcmp.eq.s32.totalorder %v1407_v28, 1 }
 0x17a   : > { %v1740_v5 = vpack.c.bf16 %v1313_v1, %v1312_v0  ;;  %v1363_v8 = vadd.f32 %v1313_v1, %v1309_v56  ;;  %v1377_v15 = vmul.f32 %v1313_v1, %v1313_v1  ;;  %v1357_v17 = vrot.slane %v1356_v7, 4 }
 0x17b   : > { %v1392_v19 = vadd.f32 %v1376_v11, %v1372_v57  ;;  %v1386_v22 = vrot.slane %v1385_v14, 4  ;;  %v1345_v9 = vrot.slane %v1344_v16, 2  ;;  %v1380_v27 = vadd.f32 %v1379_v21, %v1378_v13 }
 0x17c   : > { %1341 = vst [vmem:[%s2286_s2 + $0x18] sm:$0xff] %v1740_v5  ;;  %v1364_v18 = vrot.slane %v1363_v8, 4  ;;  %v1399_v23 = vadd.f32 %v1377_v15, %v1373_v61  ;;  %v1358_v24 = vadd.f32 %v1357_v17, %v1356_v7  ;;  %v1352_v29 = vrot.slane %v1351_v20, 2 }
 0x17d   : > { %v1393_v26 = vrot.slane %v1392_v19, 4  ;;  %v1346_v30 = vadd.f32 %v1345_v9, %v1344_v16  ;;  %v1387_v31 = vadd.f32 %v1386_v22, %v1385_v14  ;;  %v1381_v34 = vrot.slane %v1380_v27, 2 }
 0x17e   : > { %v1365_v25 = vadd.f32 %v1364_v18, %v1363_v8  ;;  %v1400_v10 = vrot.slane %v1399_v23, 4  ;;  %v1359_v32 = vrot.slane %v1358_v24, 2  ;;  %v1353_v35 = vadd.f32 %v1352_v29, %v1351_v20 }
 0x17f   : > { %v1394_v33 = vadd.f32 %v1393_v26, %v1392_v19  ;;  %v1347_v36 = vrot.slane %v1346_v30, 1  ;;  %v1388_v37 = vrot.slane %v1387_v31, 2  ;;  %v1382_v40 = vadd.f32 %v1381_v34, %v1380_v27 }
 0x180   : > { %v1360_v38 = vadd.f32 %v1359_v32, %v1358_v24  ;;  %v1354_v41 = vrot.slane %v1353_v35, 1  ;;  %v1366_v42 = vrot.slane %v1365_v25, 2  ;;  %v1401_v43 = vadd.f32 %v1400_v10, %v1399_v23 }
 0x181   : > { %v1395_v39 = vrot.slane %v1394_v33, 2  ;;  %v1389_v44 = vadd.f32 %v1388_v37, %v1387_v31  ;;  %v1383_v47 = vrot.slane %v1382_v40, 1  ;;  %v1348_v50 = vadd.f32 %v1347_v36, %v1346_v30 }
 0x182   : > { %v1361_v45 = vrot.slane %v1360_v38, 1  ;;  %v1367_v48 = vadd.f32 %v1366_v42, %v1365_v25  ;;  %v1402_v49 = vrot.slane %v1401_v43, 2  ;;  %v1355_v51 = vadd.f32 %v1354_v41, %v1353_v35 }
 0x183   : > { %v1396_v46 = vadd.f32 %v1395_v39, %v1394_v33  ;;  %v1390_v52 = vrot.slane %v1389_v44, 1  ;;  %v1384_v54 = vadd.f32 %v1383_v47, %v1382_v40 }
 0x184   : > { %v1362_v55 = vadd.f32 %v1361_v45, %v1360_v38  ;;  %v1368_v56 = vrot.slane %v1367_v48, 1  ;;  %v1403_v57 = vadd.f32 %v1402_v49, %v1401_v43 }
 0x185   : > { %v1397_v53 = vrot.slane %v1396_v46, 1  ;;  %v1391_v58 = vadd.f32 %v1390_v52, %v1389_v44  ;;  %v1410_v60 = vsel %vm1409_vm1, %v1384_v54, 0.0 }
 0x186   : > { %v1404_v61 = vrot.slane %v1403_v57, 1  ;;  %v1414_v62 = vsel %vm1408_vm0, %v1348_v50, %v1410_v60  ;;  %v1369_v1 = vadd.f32 %v1368_v56, %v1367_v48 }
 0x187   : > { %v1398_v59 = vadd.f32 %v1397_v53, %v1396_v46  ;;  %v1411_v63 = vsel %vm1409_vm1, %v1391_v58, 0.0  ;;  %1418 = vst [vmem:[%s2287_s3] sm:$0xff] %v1414_v62 }
 0x188   : > { %v1415_v2 = vsel %vm1408_vm0, %v1355_v51, %v1411_v63  ;;  %v1405_v4 = vadd.f32 %v1404_v61, %v1403_v57 }
 0x189   : > { %v1412_v0 = vsel %vm1409_vm1, %v1398_v59, 0.0  ;;  %1419 = vst [vmem:[%s2287_s3 + $0x8] sm:$0xff] %v1415_v2 }
 0x18a   : > { %v1416_v3 = vsel %vm1408_vm0, %v1362_v55, %v1412_v0  ;;  %v1413_v5 = vsel %vm1409_vm1, %v1405_v4, 0.0 }
 0x18b   : > { %1420 = vst [vmem:[%s2287_s3 + $0x10] sm:$0xff] %v1416_v3  ;;  %v1417_v6 = vsel %vm1408_vm0, %v1369_v1, %v1413_v5 }
 0x18c   : > { %1421 = vst [vmem:[%s2287_s3 + $0x18] sm:$0xff] %v1417_v6 }
 0x18d PF: > { %s14_s16 = sadd.s32 1, %s2018_s16   ;;  %s2288_s12 = smov %s2006_s13 }
 0x18e   : > { %p11_p12 = scmp.ge.s32.totalorder %s14_s16, 11   ;;  %s2289_s13 = smov %s2076_s20 }
 0x18f   : > { %s2290_s14 = smov %s2014_s15  ;;  %s2291_s15 = smov %s2293_s17 }
 0x190   :  { %13 = sbr.rel (!%p11_p12) target bundleno = 3 (0x3), region = 109 }

</bundles_post_ra>
